<compile_context>
chip_gen: v7x
topology: tpu7x:2x2x1
jax: 0.10.0
libtpu: 0.0.40
codegen_flags: <defaults>
</compile_context>

<pallas_src>
import functools
import math

import numpy as np
import jax
import jax.numpy as jnp
from jax.experimental import pallas as pl
from jax.experimental.pallas import tpu as pltpu


_VMEM_LIMIT = 32 * 1024 * 1024  # explicit; safe on v5e/v6e (128 MiB) and v7x (64 MiB)


def _cdiv(a, b):
    return -(-a // b)


def _row_tile(M, cap):
    """Full-array block if it fits, else a cap that is a multiple of 8."""
    return M if M <= cap else cap


def _cparams(*sems):
    return pltpu.CompilerParams(dimension_semantics=sems, vmem_limit_bytes=_VMEM_LIMIT)


# ----------------------------------------------------------------------------
# Pallas kernels
# ----------------------------------------------------------------------------
def _linear_kernel(*refs, act, has_add):
    if has_add:
        x_ref, a_ref, w_ref, b_ref, o_ref = refs
        x = (x_ref[...] + a_ref[...]).astype(w_ref.dtype)      # fused PE/residual add
    else:
        x_ref, w_ref, b_ref, o_ref = refs
        x = x_ref[...]
    y = jnp.dot(x, w_ref[...], preferred_element_type=jnp.float32) + b_ref[...]
    if act == "relu":
        y = jnp.maximum(y, 0.0)
    o_ref[...] = y.astype(o_ref.dtype)


def pallas_linear(x, w, b, act="none", add=None, out_dtype=None):
    """(..., K) @ (K, N) + b, optional fused elementwise add on the input + ReLU."""
    orig = x.shape
    K = orig[-1]
    N = w.shape[-1]
    M = int(np.prod(orig[:-1]))
    out_dtype = out_dtype or x.dtype
    cap = 256 if N > 512 else 512                              # keep v5e/v7x VMEM happy
    tm = _row_tile(M, cap)
    grid = (_cdiv(M, tm),)
    args = [x.reshape(M, K)]
    in_specs = [pl.BlockSpec((tm, K), lambda i: (i, 0))]
    if add is not None:
        args.append(add.reshape(M, K))
        in_specs.append(pl.BlockSpec((tm, K), lambda i: (i, 0)))
    args += [w, b.reshape(1, N)]
    in_specs += [pl.BlockSpec((K, N), lambda i: (0, 0)),
                 pl.BlockSpec((1, N), lambda i: (0, 0))]
    out = pl.pallas_call(
        functools.partial(_linear_kernel, act=act, has_add=add is not None),
        out_shape=jax.ShapeDtypeStruct((M, N), out_dtype),
        grid=grid,
        in_specs=in_specs,
        out_specs=pl.BlockSpec((tm, N), lambda i: (i, 0)),
        compiler_params=_cparams("parallel"),
    )(*args)
    return out.reshape(orig[:-1] + (N,))


def _kv_proj_kernel(*refs, has_pe):
    if has_pe:
        x_ref, pe_ref, wk_ref, bk_ref, wv_ref, bv_ref, k_ref, v_ref = refs
        xk = (x_ref[...] + pe_ref[...]).astype(wk_ref.dtype)
    else:
        x_ref, wk_ref, bk_ref, wv_ref, bv_ref, k_ref, v_ref = refs
        xk = x_ref[...]
    x = x_ref[...]
    k_ref[...] = (jnp.dot(xk, wk_ref[...], preferred_element_type=jnp.float32)
                  + bk_ref[...]).astype(k_ref.dtype)
    v_ref[...] = (jnp.dot(x, wv_ref[...], preferred_element_type=jnp.float32)
                  + bv_ref[...]).astype(v_ref.dtype)


def pallas_kv_proj(x, pe, wk, bk, wv, bv, out_dtype=None):
    """Fused K/V projections over a shared input slab (read x from HBM once):
       k = (x + pe) @ wk + bk  (pe optional),  v = x @ wv + bv."""
    orig = x.shape
    K = orig[-1]
    Nk, Nv = wk.shape[-1], wv.shape[-1]
    M = int(np.prod(orig[:-1]))
    out_dtype = out_dtype or x.dtype
    tm = _row_tile(M, 256)
    grid = (_cdiv(M, tm),)
    args = [x.reshape(M, K)]
    in_specs = [pl.BlockSpec((tm, K), lambda i: (i, 0))]
    if pe is not None:
        args.append(pe.reshape(M, K))
        in_specs.append(pl.BlockSpec((tm, K), lambda i: (i, 0)))
    args += [wk, bk.reshape(1, Nk), wv, bv.reshape(1, Nv)]
    in_specs += [pl.BlockSpec((K, Nk), lambda i: (0, 0)),
                 pl.BlockSpec((1, Nk), lambda i: (0, 0)),
                 pl.BlockSpec((K, Nv), lambda i: (0, 0)),
                 pl.BlockSpec((1, Nv), lambda i: (0, 0))]
    kp, vp = pl.pallas_call(
        functools.partial(_kv_proj_kernel, has_pe=pe is not None),
        out_shape=(jax.ShapeDtypeStruct((M, Nk), out_dtype),
                   jax.ShapeDtypeStruct((M, Nv), out_dtype)),
        grid=grid,
        in_specs=in_specs,
        out_specs=(pl.BlockSpec((tm, Nk), lambda i: (i, 0)),
                   pl.BlockSpec((tm, Nv), lambda i: (i, 0))),
        compiler_params=_cparams("parallel"),
    )(*args)
    return kp.reshape(orig[:-1] + (Nk,)), vp.reshape(orig[:-1] + (Nv,))


def _mlp2_kernel(x_ref, w1_ref, b1_ref, w2_ref, b2_ref, o_ref):
    h = jnp.dot(x_ref[...], w1_ref[...], preferred_element_type=jnp.float32) + b1_ref[...]
    h = jnp.maximum(h, 0.0).astype(w2_ref.dtype)
    y = jnp.dot(h, w2_ref[...], preferred_element_type=jnp.float32) + b2_ref[...]
    o_ref[...] = y.astype(o_ref.dtype)


def pallas_mlp2(x, w1, b1, w2, b2, out_dtype=None):
    """Token-side MLP: both linears + ReLU fused in one kernel (tiny M)."""
    orig = x.shape
    K = orig[-1]
    H = w1.shape[-1]
    N = w2.shape[-1]
    M = int(np.prod(orig[:-1]))
    out_dtype = out_dtype or x.dtype
    tm = _row_tile(M, 256)
    grid = (_cdiv(M, tm),)
    out = pl.pallas_call(
        _mlp2_kernel,
        out_shape=jax.ShapeDtypeStruct((M, N), out_dtype),
        grid=grid,
        in_specs=[pl.BlockSpec((tm, K), lambda i: (i, 0)),
                  pl.BlockSpec((K, H), lambda i: (0, 0)),
                  pl.BlockSpec((1, H), lambda i: (0, 0)),
                  pl.BlockSpec((H, N), lambda i: (0, 0)),
                  pl.BlockSpec((1, N), lambda i: (0, 0))],
        out_specs=pl.BlockSpec((tm, N), lambda i: (i, 0)),
        compiler_params=_cparams("parallel"),
    )(x.reshape(M, K), w1, b1.reshape(1, H), w2, b2.reshape(1, N))
    return out.reshape(orig[:-1] + (N,))


def _attn_kernel(q_ref, k_ref, v_ref, o_ref, *, num_heads):
    q = q_ref[0]
    k = k_ref[0]
    v = v_ref[0]
    hd = q.shape[-1] // num_heads
    scale = 1.0 / math.sqrt(hd)
    outs = []
    for h in range(num_heads):             # all heads of one (batch, q-tile) per step
        sl = slice(h * hd, (h + 1) * hd)
        s = jax.lax.dot_general(q[:, sl], k[:, sl], (((1,), (1,)), ((), ())),
                                preferred_element_type=jnp.float32) * scale
        s = s - jnp.max(s, axis=-1, keepdims=True)
        p = jnp.exp(s)
        # softmax divide on the EUP (approx reciprocal), not the VPU
        p = p * pl.reciprocal(jnp.sum(p, axis=-1, keepdims=True), approx=True)
        outs.append(jnp.dot(p.astype(v.dtype), v[:, sl],
                            preferred_element_type=jnp.float32))
    # single lane-dense store of all heads
    o_ref[0] = jnp.concatenate(outs, axis=-1).astype(o_ref.dtype)


def pallas_attention(q, k, v, num_heads):
    """q: (B, Lq, Di), k/v: (B, Lk, Di) -> (B, Lq, Di).
    Grid tiles (batch, q-rows); K/V stay resident per batch element, heads in-kernel."""
    B, Lq, Di = q.shape
    Lk = k.shape[1]
    tq = _row_tile(Lq, 512)
    grid = (B, _cdiv(Lq, tq))
    return pl.pallas_call(
        functools.partial(_attn_kernel, num_heads=num_heads),
        out_shape=jax.ShapeDtypeStruct((B, Lq, Di), q.dtype),
        grid=grid,
        in_specs=[pl.BlockSpec((1, tq, Di), lambda b, t: (b, t, 0)),
                  pl.BlockSpec((1, Lk, Di), lambda b, t: (b, 0, 0)),
                  pl.BlockSpec((1, Lk, Di), lambda b, t: (b, 0, 0))],
        out_specs=pl.BlockSpec((1, tq, Di), lambda b, t: (b, t, 0)),
        compiler_params=_cparams("parallel", "parallel"),
    )(q, k, v)


def _ln_kernel(*refs, eps, has_res):
    if has_res:
        x_ref, r_ref, w_ref, b_ref, o_ref = refs
        x = x_ref[...].astype(jnp.float32) + r_ref[...].astype(jnp.float32)
    else:
        x_ref, w_ref, b_ref, o_ref = refs
        x = x_ref[...].astype(jnp.float32)
    mu = jnp.mean(x, axis=-1, keepdims=True)
    xc = x - mu
    var = jnp.mean(xc * xc, axis=-1, keepdims=True)
    y = xc * jax.lax.rsqrt(var + eps) * w_ref[...] + b_ref[...]
    o_ref[...] = y.astype(o_ref.dtype)


def pallas_layernorm(x, w, b, eps=1e-5, residual=None, out_dtype=None):
    """LayerNorm over the last axis; residual add fused: y = LN(x + residual)."""
    orig = x.shape
    C = orig[-1]
    M = int(np.prod(orig[:-1]))
    out_dtype = out_dtype or x.dtype
    tm = _row_tile(M, 512)
    grid = (_cdiv(M, tm),)
    args = [x.reshape(M, C)]
    in_specs = [pl.BlockSpec((tm, C), lambda i: (i, 0))]
    if residual is not None:
        args.append(residual.reshape(M, C))
        in_specs.append(pl.BlockSpec((tm, C), lambda i: (i, 0)))
    args += [w.reshape(1, C), b.reshape(1, C)]
    in_specs += [pl.BlockSpec((1, C), lambda i: (0, 0)),
                 pl.BlockSpec((1, C), lambda i: (0, 0))]
    out = pl.pallas_call(
        functools.partial(_ln_kernel, eps=eps, has_res=residual is not None),
        out_shape=jax.ShapeDtypeStruct((M, C), out_dtype),
        grid=grid,
        in_specs=in_specs,
        out_specs=pl.BlockSpec((tm, C), lambda i: (i, 0)),
        compiler_params=_cparams("parallel"),
    )(*args)
    return out.reshape(orig)


def _matmul_kernel(a_ref, b_ref, o_ref):
    o_ref[...] = jnp.dot(a_ref[...], b_ref[...],
                         preferred_element_type=jnp.float32).astype(o_ref.dtype)


def pallas_matmul(a, b):
    """Row-tiled f32 matmul (used by the bilinear-resize path)."""
    M, K = a.shape
    N = b.shape[1]
    tm = _row_tile(M, 512)
    grid = (_cdiv(M, tm),)
    return pl.pallas_call(
        _matmul_kernel,
        out_shape=jax.ShapeDtypeStruct((M, N), jnp.float32),
        grid=grid,
        in_specs=[pl.BlockSpec((tm, K), lambda i: (i, 0)),
                  pl.BlockSpec((K, N), lambda i: (0, 0))],
        out_specs=pl.BlockSpec((tm, N), lambda i: (i, 0)),
        compiler_params=_cparams("parallel"),
    )(a, b)


def _left_bmm_kernel(w_ref, y_ref, o_ref):
    o_ref[0] = jnp.dot(w_ref[...], y_ref[0],
                       preferred_element_type=jnp.float32).astype(o_ref.dtype)


def pallas_left_bmm(wl, y):
    """out[b] = wl @ y[b]; wl: (Oh, H) shared, y: (BM, H, Ow), tiled over Ow."""
    Oh, H = wl.shape
    BM, _, Ow = y.shape
    tow = Ow if Ow <= 512 else 512
    grid = (BM, _cdiv(Ow, tow))
    return pl.pallas_call(
        _left_bmm_kernel,
        out_shape=jax.ShapeDtypeStruct((BM, Oh, Ow), jnp.float32),
        grid=grid,
        in_specs=[pl.BlockSpec((Oh, H), lambda b, j: (0, 0)),
                  pl.BlockSpec((1, H, tow), lambda b, j: (b, 0, j))],
        out_specs=pl.BlockSpec((1, Oh, tow), lambda b, j: (b, 0, j)),
        compiler_params=_cparams("parallel", "parallel"),
    )(wl, y)


def _mask_matmul_kernel(h_ref, u_ref, o_ref):
    o_ref[0] = jax.lax.dot_general(h_ref[0], u_ref[0], (((1,), (1,)), ((), ())),
                                   preferred_element_type=jnp.float32)


def pallas_mask_matmul(hyper_in, upscaled):
    """hyper_in: (B, nmt, C8) @ upscaled: (B, P, C8)^T -> (B, nmt, P), P tiled."""
    B, nmt, C8 = hyper_in.shape
    P = upscaled.shape[1]
    tp = P if P <= 8192 else 8192
    grid = (B, _cdiv(P, tp))
    return pl.pallas_call(
        _mask_matmul_kernel,
        out_shape=jax.ShapeDtypeStruct((B, nmt, P), jnp.float32),
        grid=grid,
        in_specs=[pl.BlockSpec((1, nmt, C8), lambda b, j: (b, 0, 0)),
                  pl.BlockSpec((1, tp, C8), lambda b, j: (b, j, 0))],
        out_specs=pl.BlockSpec((1, nmt, tp), lambda b, j: (b, 0, j)),
        compiler_params=_cparams("parallel", "parallel"),
    )(hyper_in, upscaled)


def _hyper_mlp_kernel(x_ref, w1_ref, b1_ref, w2_ref, b2_ref, w3_ref, b3_ref, o_ref):
    h = jnp.dot(x_ref[0], w1_ref[0], preferred_element_type=jnp.float32) + b1_ref[0]
    h = jnp.maximum(h, 0.0).astype(x_ref.dtype)
    h = jnp.dot(h, w2_ref[0], preferred_element_type=jnp.float32) + b2_ref[0]
    h = jnp.maximum(h, 0.0).astype(x_ref.dtype)
    y = jnp.dot(h, w3_ref[0], preferred_element_type=jnp.float32) + b3_ref[0]
    o_ref[0] = y.astype(o_ref.dtype)


def pallas_hyper_mlps(x, w1, b1, w2, b2, w3, b3, out_dtype=None):
    """All num_mask_tokens 3-layer hyper-MLPs in one batched kernel (grid over tokens)."""
    nmt, B, C = x.shape
    H1 = w1.shape[-1]
    H2 = w2.shape[-1]
    C8 = w3.shape[-1]
    out_dtype = out_dtype or x.dtype
    return pl.pallas_call(
        _hyper_mlp_kernel,
        out_shape=jax.ShapeDtypeStruct((nmt, B, C8), out_dtype),
        grid=(nmt,),
        in_specs=[pl.BlockSpec((1, B, C), lambda i: (i, 0, 0)),
                  pl.BlockSpec((1, C, H1), lambda i: (i, 0, 0)),
                  pl.BlockSpec((1, 1, H1), lambda i: (i, 0, 0)),
                  pl.BlockSpec((1, H1, H2), lambda i: (i, 0, 0)),
                  pl.BlockSpec((1, 1, H2), lambda i: (i, 0, 0)),
                  pl.BlockSpec((1, H2, C8), lambda i: (i, 0, 0)),
                  pl.BlockSpec((1, 1, C8), lambda i: (i, 0, 0))],
        out_specs=pl.BlockSpec((1, B, C8), lambda i: (i, 0, 0)),
        compiler_params=_cparams("parallel"),
    )(x, w1, b1, w2, b2, w3, b3)


# ----------------------------------------------------------------------------
# Module building blocks
# ----------------------------------------------------------------------------
def attention_module(q_in, k_in, v_in, p, num_heads, q_add=None, k_add=None):
    """SAM Attention: fused (add+)projection kernels -> per-batch multi-head SDPA ->
    output projection. q = (q_in + q_add) @ Wq, k = (k_in + k_add) @ Wk, v = v_in @ Wv."""
    qp = pallas_linear(q_in, p["q_w"], p["q_b"], add=q_add)
    if k_in is v_in:
        kp, vp = pallas_kv_proj(k_in, k_add, p["k_w"], p["k_b"], p["v_w"], p["v_b"])
    else:
        kp = pallas_linear(k_in, p["k_w"], p["k_b"], add=k_add)
        vp = pallas_linear(v_in, p["v_w"], p["v_b"])
    oh = pallas_attention(qp, kp, vp, num_heads)
    return pallas_linear(oh, p["o_w"], p["o_b"])


def two_way_block(queries, keys, query_pe, key_pe, p, num_heads, skip_first_layer_pe):
    # Self attention (residual add fused into the LN kernel).
    if skip_first_layer_pe:
        attn_out = attention_module(queries, queries, queries, p["self_attn"], num_heads)
        queries = pallas_layernorm(attn_out, p["norm1"]["w"], p["norm1"]["b"])
    else:
        attn_out = attention_module(queries, queries, queries, p["self_attn"], num_heads,
                                    q_add=query_pe, k_add=query_pe)
        queries = pallas_layernorm(queries, p["norm1"]["w"], p["norm1"]["b"],
                                   residual=attn_out)

    # Cross attention, tokens -> image (K/V read the image slab once).
    attn_out = attention_module(queries, keys, keys, p["cross_t2i"], num_heads,
                                q_add=query_pe, k_add=key_pe)
    queries = pallas_layernorm(queries, p["norm2"]["w"], p["norm2"]["b"],
                               residual=attn_out)

    # MLP: both linears fused into one kernel.
    mlp_out = pallas_mlp2(queries, p["mlp_lin1_w"], p["mlp_lin1_b"],
                          p["mlp_lin2_w"], p["mlp_lin2_b"])
    queries = pallas_layernorm(queries, p["norm3"]["w"], p["norm3"]["b"],
                               residual=mlp_out)

    # Cross attention, image -> tokens.
    attn_out = attention_module(keys, queries, queries, p["cross_i2t"], num_heads,
                                q_add=key_pe, k_add=query_pe)
    keys = pallas_layernorm(keys, p["norm4"]["w"], p["norm4"]["b"], residual=attn_out)
    return queries, keys


def conv_transpose_2x2_nhwc(x, wm, bm, cout, merge_spatial=True):
    """ConvTranspose2d(kernel=2, stride=2) on NHWC input as one tiled Pallas matmul.
    x: (B, H, W, Cin); wm: (Cin, 4*Cout) packed as (di, dj, co); bm: (4*Cout,).
    merge_spatial=True  -> (B, 2H, 2W, Cout)  (spatial un-shuffle in HBM)
    merge_spatial=False -> (B, H*W*4, Cout)   packed pixel order (h, w, di, dj);
                           caller un-shuffles a smaller downstream tensor instead."""
    B, H, W, Cin = x.shape
    y = pallas_linear(x.reshape(B * H * W, Cin), wm, bm)
    if merge_spatial:
        y = y.reshape(B, H, W, 2, 2, cout).transpose(0, 1, 3, 2, 4, 5)
        return y.reshape(B, 2 * H, 2 * W, cout)
    return y.reshape(B, H * W * 4, cout)


def pe_encoding(coords, gauss):
    """PositionEmbeddingRandom._pe_encoding. The K=2 matmul stays in XLA: it cannot
    usefully feed the MXU (2/128..2/256 of the contraction) and launch cost dominates."""
    c = coords * 2.0 - 1.0
    c = (2.0 * jnp.pi) * (c @ gauss)
    return jnp.concatenate([jnp.sin(c), jnp.cos(c)], axis=-1)


def _bilinear_matrix(in_size, out_size):
    """PyTorch F.interpolate(mode='bilinear', align_corners=False) weight matrix."""
    i = np.arange(out_size, dtype=np.float64)
    src = (i + 0.5) * (in_size / out_size) - 0.5
    src = np.maximum(src, 0.0)
    i0 = np.minimum(np.floor(src).astype(np.int64), in_size - 1)
    i1 = np.minimum(i0 + 1, in_size - 1)
    w1 = src - i0
    w0 = 1.0 - w1
    m = np.zeros((out_size, in_size), np.float32)
    m[np.arange(out_size), i0] += w0.astype(np.float32)
    m[np.arange(out_size), i1] += w1.astype(np.float32)
    return m


def bilinear_resize(x, out_h, out_w):
    """x: (B, M, H, W) -> (B, M, out_h, out_w); two separable Pallas matmuls with the
    intermediate transpose folded into a shared-LHS batched matmul (no HBM shuffle)."""
    B, M, H, W = x.shape
    ww_t = jnp.asarray(_bilinear_matrix(W, out_w).T)   # (W, out_w)
    wh = jnp.asarray(_bilinear_matrix(H, out_h))       # (out_h, H)
    y = pallas_matmul(x.reshape(B * M * H, W), ww_t)   # (B*M*H, out_w)
    y = y.reshape(B * M, H, out_w)
    out = pallas_left_bmm(wh, y)                       # (B*M, out_h, out_w)
    return out.reshape(B, M, out_h, out_w)


def resize_longest_static(orig_hw, longest_side):
    oh, ow = float(orig_hw[0]), float(orig_hw[1])
    scale = float(longest_side) / max(oh, ow)
    return int(math.floor(scale * oh + 0.5)), int(math.floor(scale * ow + 0.5))


# ----------------------------------------------------------------------------
# DecoderModel forward
# ----------------------------------------------------------------------------
def decoder_forward(params, cfg, image_embeddings, point_coords, point_labels,
                    orig_im_size_hw):
    C = cfg["dim"]
    He, We = cfg["He"], cfg["We"]
    img_size = cfg["img_size"]
    heads = cfg["num_heads"]
    nmt = cfg["num_mask_tokens"]
    pe = params["prompt_encoder"]
    md = params["mask_decoder"]
    bf16 = jnp.bfloat16

    B, N, _ = point_coords.shape

    # ---------------- _embed_points (JAX glue: sin/cos PE + label mixing) ------------
    coords = (point_coords + 0.5) / img_size
    pt_pe = pe_encoding(coords, pe["gauss"])                        # (B, N, C) f32
    labels = jnp.broadcast_to(point_labels[..., None], pt_pe.shape)
    pt_pe = pt_pe * (labels != -1)
    pt_pe = pt_pe + pe["not_a_point"] * (labels == -1)
    for i in range(cfg["num_point_embeddings"]):
        pt_pe = pt_pe + pe["point_embeds"][i] * (labels == i)
    sparse_embedding = pt_pe

    # ---------------- _embed_masks ----------------
    # forward() hard-codes mask_input = zeros and has_mask_input = zeros(1), so the
    # has_mask_input * mask_downscaling(input_mask) branch is exactly zero.
    # TODO(synk): mask_downscaling conv stack elided (multiplied by a literal 0 in forward).
    has_mask_input = jnp.zeros((1,), jnp.float32)
    dense_row = (1.0 - has_mask_input[0]) * pe["no_mask"]           # (1, C)

    # ---------------- get_dense_pe (channels-last token layout end to end) -----------
    ys = (jnp.arange(He, dtype=jnp.float32) + 0.5) / He
    xs = (jnp.arange(We, dtype=jnp.float32) + 0.5) / We
    xx, yy = jnp.meshgrid(xs, ys)
    grid_coords = jnp.stack([xx, yy], axis=-1)                      # (He, We, 2), x then y
    img_pe_tokens = pe_encoding(grid_coords, pe["gauss"]).reshape(1, He * We, C)
    img_pe_tokens = jnp.broadcast_to(img_pe_tokens, (B, He * We, C)).astype(bf16)

    # ---------------- mask_decoder.predict_masks ----------------
    output_tokens = jnp.concatenate([md["iou_token"], md["mask_tokens"]], axis=0)
    output_tokens = jnp.broadcast_to(output_tokens[None], (B,) + output_tokens.shape)
    tokens = jnp.concatenate([output_tokens, sparse_embedding], axis=1).astype(bf16)

    # Image embedding kept channels-last (single NCHW->NHWC transpose at the boundary).
    img_tokens = image_embeddings.transpose(0, 2, 3, 1).reshape(1, He * We, C) + dense_row
    img_tokens = jnp.broadcast_to(img_tokens, (B, He * We, C)).astype(bf16)

    queries, keys = tokens, img_tokens
    for li, lp in enumerate(md["layers"]):
        queries, keys = two_way_block(queries, keys, tokens, img_pe_tokens, lp, heads,
                                      skip_first_layer_pe=(li == 0))
    attn_out = attention_module(queries, keys, keys, md["final_attn"], heads,
                                q_add=tokens, k_add=img_pe_tokens)
    hs = pallas_layernorm(queries, md["norm_final"]["w"], md["norm_final"]["b"],
                          residual=attn_out)

    iou_token_out = hs[:, 0, :]
    mask_tokens_out = hs[:, 1:1 + nmt, :]

    # output_upscaling in NHWC: ConvT(2,2) -> LayerNorm2d -> GELU -> ConvT(2,2) -> GELU
    src_nhwc = keys.reshape(B, He, We, C)
    u1 = conv_transpose_2x2_nhwc(src_nhwc, md["up1_wm"], md["up1_bm"], C // 4)
    B1, H1, W1, C4 = u1.shape
    u1 = pallas_layernorm(u1.reshape(-1, C4), md["up_ln_w"], md["up_ln_b"], eps=1e-6)
    # exact (erf) GELU kept in XLA to match nn.GELU() semantics
    u1 = jax.nn.gelu(u1.astype(jnp.float32), approximate=False).astype(bf16)
    u1 = u1.reshape(B1, H1, W1, C4)
    # Second ConvT stays in packed (h, w, di, dj) pixel order: the spatial un-shuffle
    # is deferred to the (nmt)-channel masks tensor (8x smaller than the C/8 slab).
    c8 = C // 8
    u2 = conv_transpose_2x2_nhwc(u1, md["up2_wm"], md["up2_bm"], c8,
                                 merge_spatial=False)               # (B, H1*W1*4, C8)
    upscaled = jax.nn.gelu(u2.astype(jnp.float32), approximate=False).astype(bf16)

    # Hypernetwork MLPs: all mask tokens batched into one kernel.
    hx = mask_tokens_out.transpose(1, 0, 2)                          # (nmt, B, C)
    hyper = pallas_hyper_mlps(hx, md["hyper_w1"], md["hyper_b1"],
                              md["hyper_w2"], md["hyper_b2"],
                              md["hyper_w3"], md["hyper_b3"])        # (nmt, B, C8)
    hyper_in = hyper.transpose(1, 0, 2)                              # (B, nmt, C8)

    masks = pallas_mask_matmul(hyper_in, upscaled)                   # (B, nmt, H1*W1*4)
    # spatial un-shuffle on the small masks tensor: (h, w, di, dj) -> (2*H1, 2*W1)
    masks = masks.reshape(B, nmt, H1, W1, 2, 2).transpose(0, 1, 2, 4, 3, 5)
    masks = masks.reshape(B, nmt, 2 * H1, 2 * W1)                    # (B, nmt, 4He, 4We)

    # IoU head: a few rows x C — far too small to feed the MXU; left to XLA fusion.
    iou_pred = iou_token_out.astype(jnp.float32)
    n_layers = len(md["iou_head"])
    for li2, (w_, b_) in enumerate(md["iou_head"]):
        iou_pred = iou_pred @ w_ + b_
        if li2 < n_layers - 1:
            iou_pred = jnp.maximum(iou_pred, 0.0)
    scores = iou_pred                                                # (B, nmt) f32

    # ---------------- select_masks (return_single_mask) ----------------
    if cfg["return_single_mask"]:
        score_reweight = jnp.array([[1000.0] + [0.0] * (nmt - 1)], jnp.float32)
        score = scores + (N - 2.5) * score_reweight
        best_idx = jnp.argmax(score, axis=1)
        # Reference DecoderModel.select_masks gathers column 0 for the masks
        # (masks[arange(B), 0]) and uses best_idx only for iou_preds — kept as-is.
        masks = masks[:, 0:1, :, :]
        scores = jnp.take_along_axis(scores, best_idx[:, None], axis=1)

    # ---------------- mask_postprocessing ----------------
    # NOTE: orig_im_size determines output shapes -> must be static under JAX.
    masks_up = bilinear_resize(masks, img_size, img_size)
    ph, pw = resize_longest_static(orig_im_size_hw, img_size)
    masks_up = masks_up[..., :ph, :pw]
    oh, ow = int(orig_im_size_hw[0]), int(orig_im_size_hw[1])
    upscaled_masks = bilinear_resize(masks_up, oh, ow)

    return upscaled_masks, scores, masks


# ----------------------------------------------------------------------------
# Deterministic synthetic parameters (weights pre-cast / pre-packed once)
# ----------------------------------------------------------------------------
class ParamFactory:
    def __init__(self, key):
        self._key = key

    def next(self, shape, scale=0.05):
        self._key, sub = jax.random.split(self._key)
        return (scale * jax.random.normal(sub, shape)).astype(jnp.float32)


def pack_convt_2x2(w, b):
    """(Cin, Cout, 2, 2) ConvTranspose2d weights -> matmul form (Cin, 4*Cout) with
    lane packing (di, dj, co), plus the matching tiled bias (4*Cout,)."""
    cin, cout = w.shape[0], w.shape[1]
    wm = jnp.transpose(w, (0, 2, 3, 1)).reshape(cin, 4 * cout).astype(jnp.bfloat16)
    bm = jnp.tile(b, 4).astype(jnp.float32)
    return wm, bm


def build_params(key, cfg):
    pf = ParamFactory(key)
    C = cfg["dim"]
    nmt = cfg["num_mask_tokens"]
    bf16 = jnp.bfloat16

    def attn_p(internal):
        return dict(
            q_w=pf.next((C, internal)).astype(bf16), q_b=pf.next((internal,)),
            k_w=pf.next((C, internal)).astype(bf16), k_b=pf.next((internal,)),
            v_w=pf.next((C, internal)).astype(bf16), v_b=pf.next((internal,)),
            o_w=pf.next((internal, C)).astype(bf16), o_b=pf.next((C,)),
        )

    def ln_p(dim=C):
        return dict(w=jnp.ones((dim,), jnp.float32), b=jnp.zeros((dim,), jnp.float32))

    layers = []
    for _ in range(cfg["depth"]):
        layers.append(dict(
            self_attn=attn_p(C),
            norm1=ln_p(), norm2=ln_p(), norm3=ln_p(), norm4=ln_p(),
            cross_t2i=attn_p(C // 2),
            mlp_lin1_w=pf.next((C, cfg["mlp_dim"])).astype(bf16),
            mlp_lin1_b=pf.next((cfg["mlp_dim"],)),
            mlp_lin2_w=pf.next((cfg["mlp_dim"], C)).astype(bf16),
            mlp_lin2_b=pf.next((C,)),
            cross_i2t=attn_p(C // 2),
        ))

    hid = cfg["iou_head_hidden"]
    up1_wm, up1_bm = pack_convt_2x2(pf.next((C, C // 4, 2, 2)), pf.next((C // 4,)))
    up2_wm, up2_bm = pack_convt_2x2(pf.next((C // 4, C // 8, 2, 2)), pf.next((C // 8,)))

    # Hypernetwork MLP weights stacked over the mask-token axis for one batched kernel.
    hyper_w1 = jnp.stack([pf.next((C, C)) for _ in range(nmt)]).astype(bf16)
    hyper_b1 = jnp.stack([pf.next((C,)) for _ in range(nmt)])[:, None, :]
    hyper_w2 = jnp.stack([pf.next((C, C)) for _ in range(nmt)]).astype(bf16)
    hyper_b2 = jnp.stack([pf.next((C,)) for _ in range(nmt)])[:, None, :]
    hyper_w3 = jnp.stack([pf.next((C, C // 8)) for _ in range(nmt)]).astype(bf16)
    hyper_b3 = jnp.stack([pf.next((C // 8,)) for _ in range(nmt)])[:, None, :]

    md = dict(
        iou_token=pf.next((1, C)),
        mask_tokens=pf.next((nmt, C)),
        layers=layers,
        final_attn=attn_p(C // 2),
        norm_final=ln_p(),
        up1_wm=up1_wm, up1_bm=up1_bm,
        up_ln_w=jnp.ones((C // 4,), jnp.float32), up_ln_b=jnp.zeros((C // 4,), jnp.float32),
        up2_wm=up2_wm, up2_bm=up2_bm,
        hyper_w1=hyper_w1, hyper_b1=hyper_b1,
        hyper_w2=hyper_w2, hyper_b2=hyper_b2,
        hyper_w3=hyper_w3, hyper_b3=hyper_b3,
        iou_head=[(pf.next((C, hid)), pf.next((hid,))),
                  (pf.next((hid, hid)), pf.next((hid,))),
                  (pf.next((hid, nmt)), pf.next((nmt,)))],
    )
    pe_params = dict(
        gauss=pf.next((2, C // 2), scale=1.0),
        point_embeds=pf.next((cfg["num_point_embeddings"], C)),
        not_a_point=pf.next((1, C)),
        no_mask=pf.next((1, C)),
    )
    return dict(prompt_encoder=pe_params, mask_decoder=md)


# ----------------------------------------------------------------------------
if __name__ == "__main__":
    cfg = dict(
        dim=32,               # transformer_dim (SAM: 256)
        He=8, We=8,           # image-embedding spatial (SAM: 64x64)
        img_size=128,         # = 16 * He (SAM: 1024)
        num_heads=2,
        depth=2,
        mlp_dim=64,
        num_mask_tokens=4,
        num_point_embeddings=4,
        iou_head_hidden=32,
        return_single_mask=True,
    )

    root = jax.random.PRNGKey(0)
    k_params, k_img, k_pts = jax.random.split(root, 3)

    params = build_params(k_params, cfg)

    image_embeddings = jax.random.normal(k_img, (1, cfg["dim"], cfg["He"], cfg["We"]),
                                         jnp.float32)
    point_coords = jax.random.uniform(k_pts, (2, 3, 2), jnp.float32, 0.0,
                                      float(cfg["img_size"]))
    point_labels = jnp.array([[1.0, 0.0, -1.0], [2.0, 3.0, 1.0]], jnp.float32)
    orig_im_size = (100, 120)  # static (output shapes depend on it)

    fwd = jax.jit(lambda img, pc, plbl: decoder_forward(
        params, cfg, img, pc, plbl, orig_im_size))

    upscaled_masks, scores, masks = fwd(image_embeddings, point_coords, point_labels)
    (upscaled_masks, scores, masks) = jax.block_until_ready(
        (upscaled_masks, scores, masks))

    assert upscaled_masks.shape == (2, 1, 100, 120), upscaled_masks.shape
    assert scores.shape == (2, 1), scores.shape
    assert masks.shape == (2, 1, 4 * cfg["He"], 4 * cfg["We"]), masks.shape
    assert bool(jnp.isfinite(upscaled_masks).all()) and bool(jnp.isfinite(scores).all())

    print("KERNEL_OK")
</pallas_src>

<mosaic_0001>
module attributes {stable_mosaic.version = 11 : i64} {
  func.func @_kv_proj_kernel(%arg0: i32, %arg1: memref<16x32xbf16, #tpu.memory_space<vmem>>, %arg2: memref<32x32xbf16, #tpu.memory_space<vmem>>, %arg3: memref<1x32xf32, #tpu.memory_space<vmem>>, %arg4: memref<32x32xbf16, #tpu.memory_space<vmem>>, %arg5: memref<1x32xf32, #tpu.memory_space<vmem>>, %arg6: memref<16x32xbf16, #tpu.memory_space<vmem>>, %arg7: memref<16x32xbf16, #tpu.memory_space<vmem>>) attributes {dimension_semantics = [#tpu.dimension_semantics<parallel>], iteration_bounds = array<i64: 1>, scalar_prefetch = 0 : i64, scratch_operands = 0 : i64, tpu.core_type = #tpu.core_type<tc>, window_params = [{transform_indices = @transform_0, window_bounds = array<i64: 16, 32>}, {pipeline_mode = #tpu.pipeline_mode<synchronous>, transform_indices = @transform_1, window_bounds = array<i64: 32, 32>}, {pipeline_mode = #tpu.pipeline_mode<synchronous>, transform_indices = @transform_2, window_bounds = array<i64: 1, 32>}, {pipeline_mode = #tpu.pipeline_mode<synchronous>, transform_indices = @transform_3, window_bounds = array<i64: 32, 32>}, {pipeline_mode = #tpu.pipeline_mode<synchronous>, transform_indices = @transform_4, window_bounds = array<i64: 1, 32>}, {transform_indices = @transform_5, window_bounds = array<i64: 16, 32>}, {transform_indices = @transform_6, window_bounds = array<i64: 16, 32>}]} {
    %c0 = arith.constant 0 : index
    %c0_0 = arith.constant 0 : index
    %0 = vector.load %arg1[%c0, %c0_0] : memref<16x32xbf16, #tpu.memory_space<vmem>>, vector<16x32xbf16>
    %c0_1 = arith.constant 0 : index
    %c0_2 = arith.constant 0 : index
    %1 = vector.load %arg1[%c0_1, %c0_2] : memref<16x32xbf16, #tpu.memory_space<vmem>>, vector<16x32xbf16>
    %c0_3 = arith.constant 0 : index
    %c0_4 = arith.constant 0 : index
    %2 = vector.load %arg2[%c0_3, %c0_4] : memref<32x32xbf16, #tpu.memory_space<vmem>>, vector<32x32xbf16>
    %cst = arith.constant dense<0.000000e+00> : vector<16x32xf32>
    %3 = tpu.matmul %0, %2, %cst {dimension_numbers = #tpu.dot_dimension_numbers<[1], [0], [0], [1], [0, 0, 1, 1], [], []>} : vector<16x32xbf16>, vector<32x32xbf16>, vector<16x32xf32> -> vector<16x32xf32>
    %c0_5 = arith.constant 0 : index
    %c0_6 = arith.constant 0 : index
    %4 = vector.load %arg3[%c0_5, %c0_6] : memref<1x32xf32, #tpu.memory_space<vmem>>, vector<1x32xf32>
    %5 = vector.broadcast %4 : vector<1x32xf32> to vector<16x32xf32>
    %6 = arith.addf %3, %5 : vector<16x32xf32>
    %7 = arith.truncf %6 : vector<16x32xf32> to vector<16x32xbf16>
    %c0_7 = arith.constant 0 : index
    %c0_8 = arith.constant 0 : index
    %8 = vector.load %arg6[%c0_7, %c0_8] : memref<16x32xbf16, #tpu.memory_space<vmem>>, vector<16x32xbf16>
    tpu.vector_store %arg6[%c0_7, %c0_8], %7 {strides = array<i32>} : memref<16x32xbf16, #tpu.memory_space<vmem>>, vector<16x32xbf16>,
    %c0_9 = arith.constant 0 : index
    %c0_10 = arith.constant 0 : index
    %9 = vector.load %arg4[%c0_9, %c0_10] : memref<32x32xbf16, #tpu.memory_space<vmem>>, vector<32x32xbf16>
    %cst_11 = arith.constant dense<0.000000e+00> : vector<16x32xf32>
    %10 = tpu.matmul %1, %9, %cst_11 {dimension_numbers = #tpu.dot_dimension_numbers<[1], [0], [0], [1], [0, 0, 1, 1], [], []>} : vector<16x32xbf16>, vector<32x32xbf16>, vector<16x32xf32> -> vector<16x32xf32>
    %c0_12 = arith.constant 0 : index
    %c0_13 = arith.constant 0 : index
    %11 = vector.load %arg5[%c0_12, %c0_13] : memref<1x32xf32, #tpu.memory_space<vmem>>, vector<1x32xf32>
    %12 = vector.broadcast %11 : vector<1x32xf32> to vector<16x32xf32>
    %13 = arith.addf %10, %12 : vector<16x32xf32>
    %14 = arith.truncf %13 : vector<16x32xf32> to vector<16x32xbf16>
    %c0_14 = arith.constant 0 : index
    %c0_15 = arith.constant 0 : index
    %15 = vector.load %arg7[%c0_14, %c0_15] : memref<16x32xbf16, #tpu.memory_space<vmem>>, vector<16x32xbf16>
    tpu.vector_store %arg7[%c0_14, %c0_15], %14 {strides = array<i32>} : memref<16x32xbf16, #tpu.memory_space<vmem>>, vector<16x32xbf16>,
    return
  }
  func.func @transform_0(%arg0: i32) -> (i32, i32) {
    %c0_i32 = arith.constant 0 : i32
    %c0_i32_0 = arith.constant 0 : i32
    return %arg0, %c0_i32 : i32, i32
  }
  func.func @transform_1(%arg0: i32) -> (i32, i32) {
    %c0_i32 = arith.constant 0 : i32
    %c0_i32_0 = arith.constant 0 : i32
    %c0_i32_1 = arith.constant 0 : i32
    return %c0_i32, %c0_i32_0 : i32, i32
  }
  func.func @transform_2(%arg0: i32) -> (i32, i32) {
    %c0_i32 = arith.constant 0 : i32
    %c0_i32_0 = arith.constant 0 : i32
    %c0_i32_1 = arith.constant 0 : i32
    return %c0_i32, %c0_i32_0 : i32, i32
  }
  func.func @transform_3(%arg0: i32) -> (i32, i32) {
    %c0_i32 = arith.constant 0 : i32
    %c0_i32_0 = arith.constant 0 : i32
    %c0_i32_1 = arith.constant 0 : i32
    return %c0_i32, %c0_i32_0 : i32, i32
  }
  func.func @transform_4(%arg0: i32) -> (i32, i32) {
    %c0_i32 = arith.constant 0 : i32
    %c0_i32_0 = arith.constant 0 : i32
    %c0_i32_1 = arith.constant 0 : i32
    return %c0_i32, %c0_i32_0 : i32, i32
  }
  func.func @transform_5(%arg0: i32) -> (i32, i32) {
    %c0_i32 = arith.constant 0 : i32
    %c0_i32_0 = arith.constant 0 : i32
    return %arg0, %c0_i32 : i32, i32
  }
  func.func @transform_6(%arg0: i32) -> (i32, i32) {
    %c0_i32 = arith.constant 0 : i32
    %c0_i32_0 = arith.constant 0 : i32
    return %arg0, %c0_i32 : i32, i32
  }
}

module attributes {stable_mosaic.version = 11 : i64} {
  func.func @_attn_kernel(%arg0: i32, %arg1: i32, %arg2: memref<1x8x32xbf16, #tpu.memory_space<vmem>>, %arg3: memref<1x8x32xbf16, #tpu.memory_space<vmem>>, %arg4: memref<1x8x32xbf16, #tpu.memory_space<vmem>>, %arg5: memref<1x8x32xbf16, #tpu.memory_space<vmem>>) attributes {dimension_semantics = [#tpu.dimension_semantics<parallel>, #tpu.dimension_semantics<parallel>], iteration_bounds = array<i64: 2, 1>, scalar_prefetch = 0 : i64, scratch_operands = 0 : i64, tpu.core_type = #tpu.core_type<tc>, window_params = [{transform_indices = @transform_0, window_bounds = array<i64: 1, 8, 32>}, {transform_indices = @transform_1, window_bounds = array<i64: 1, 8, 32>}, {transform_indices = @transform_2, window_bounds = array<i64: 1, 8, 32>}, {transform_indices = @transform_3, window_bounds = array<i64: 1, 8, 32>}]} {
    %c0 = arith.constant 0 : index
    %c0_0 = arith.constant 0 : index
    %c0_1 = arith.constant 0 : index
    %0 = vector.load %arg2[%c0, %c0_0, %c0_1] : memref<1x8x32xbf16, #tpu.memory_space<vmem>>, vector<1x8x32xbf16>
    %1 = vector.shape_cast %0 : vector<1x8x32xbf16> to vector<8x32xbf16>
    %c0_2 = arith.constant 0 : index
    %c0_3 = arith.constant 0 : index
    %c0_4 = arith.constant 0 : index
    %2 = vector.load %arg3[%c0_2, %c0_3, %c0_4] : memref<1x8x32xbf16, #tpu.memory_space<vmem>>, vector<1x8x32xbf16>
    %3 = vector.shape_cast %2 : vector<1x8x32xbf16> to vector<8x32xbf16>
    %c0_5 = arith.constant 0 : index
    %c0_6 = arith.constant 0 : index
    %c0_7 = arith.constant 0 : index
    %4 = vector.load %arg4[%c0_5, %c0_6, %c0_7] : memref<1x8x32xbf16, #tpu.memory_space<vmem>>, vector<1x8x32xbf16>
    %5 = vector.shape_cast %4 : vector<1x8x32xbf16> to vector<8x32xbf16>
    %6 = vector.extract_strided_slice %1 {offsets = [0, 0], sizes = [8, 16], strides = [1, 1]} : vector<8x32xbf16> to vector<8x16xbf16>
    %7 = vector.extract_strided_slice %3 {offsets = [0, 0], sizes = [8, 16], strides = [1, 1]} : vector<8x32xbf16> to vector<8x16xbf16>
    %cst = arith.constant dense<0.000000e+00> : vector<8x8xf32>
    %8 = tpu.matmul %6, %7, %cst {dimension_numbers = #tpu.dot_dimension_numbers<[1], [1], [0], [0], [0, 0, 1, 0], [], []>} : vector<8x16xbf16>, vector<8x16xbf16>, vector<8x8xf32> -> vector<8x8xf32>
    %cst_8 = arith.constant 2.500000e-01 : f32
    %9 = vector.broadcast %cst_8 : f32 to vector<8x8xf32>
    %10 = arith.mulf %8, %9 : vector<8x8xf32>
    %cst_9 = arith.constant dense<0xFF800000> : vector<8xf32>
    %11 = vector.multi_reduction <maximumf>, %10, %cst_9 [1] : vector<8x8xf32> to vector<8xf32>
    %12 = vector.shape_cast %11 : vector<8xf32> to vector<8x1xf32>
    %13 = vector.broadcast %12 : vector<8x1xf32> to vector<8x8xf32>
    %14 = arith.subf %10, %13 : vector<8x8xf32>
    %15 = math.exp %14 : vector<8x8xf32>
    %cst_10 = arith.constant dense<0.000000e+00> : vector<8xf32>
    %16 = vector.multi_reduction <add>, %15, %cst_10 [1] : vector<8x8xf32> to vector<8xf32>
    %17 = vector.shape_cast %16 : vector<8xf32> to vector<8x1xf32>
    %18 = tpu.reciprocal %17 {approx = true} : vector<8x1xf32> -> vector<8x1xf32>
    %19 = vector.broadcast %18 : vector<8x1xf32> to vector<8x8xf32>
    %20 = arith.mulf %15, %19 : vector<8x8xf32>
    %21 = arith.truncf %20 : vector<8x8xf32> to vector<8x8xbf16>
    %22 = vector.extract_strided_slice %5 {offsets = [0, 0], sizes = [8, 16], strides = [1, 1]} : vector<8x32xbf16> to vector<8x16xbf16>
    %cst_11 = arith.constant dense<0.000000e+00> : vector<8x16xf32>
    %23 = tpu.matmul %21, %22, %cst_11 {dimension_numbers = #tpu.dot_dimension_numbers<[1], [0], [0], [1], [0, 0, 1, 1], [], []>} : vector<8x8xbf16>, vector<8x16xbf16>, vector<8x16xf32> -> vector<8x16xf32>
    %24 = vector.extract_strided_slice %1 {offsets = [0, 16], sizes = [8, 16], strides = [1, 1]} : vector<8x32xbf16> to vector<8x16xbf16>
    %25 = vector.extract_strided_slice %3 {offsets = [0, 16], sizes = [8, 16], strides = [1, 1]} : vector<8x32xbf16> to vector<8x16xbf16>
    %cst_12 = arith.constant dense<0.000000e+00> : vector<8x8xf32>
    %26 = tpu.matmul %24, %25, %cst_12 {dimension_numbers = #tpu.dot_dimension_numbers<[1], [1], [0], [0], [0, 0, 1, 0], [], []>} : vector<8x16xbf16>, vector<8x16xbf16>, vector<8x8xf32> -> vector<8x8xf32>
    %cst_13 = arith.constant 2.500000e-01 : f32
    %27 = vector.broadcast %cst_13 : f32 to vector<8x8xf32>
    %28 = arith.mulf %26, %27 : vector<8x8xf32>
    %cst_14 = arith.constant dense<0xFF800000> : vector<8xf32>
    %29 = vector.multi_reduction <maximumf>, %28, %cst_14 [1] : vector<8x8xf32> to vector<8xf32>
    %30 = vector.shape_cast %29 : vector<8xf32> to vector<8x1xf32>
    %31 = vector.broadcast %30 : vector<8x1xf32> to vector<8x8xf32>
    %32 = arith.subf %28, %31 : vector<8x8xf32>
    %33 = math.exp %32 : vector<8x8xf32>
    %cst_15 = arith.constant dense<0.000000e+00> : vector<8xf32>
    %34 = vector.multi_reduction <add>, %33, %cst_15 [1] : vector<8x8xf32> to vector<8xf32>
    %35 = vector.shape_cast %34 : vector<8xf32> to vector<8x1xf32>
    %36 = tpu.reciprocal %35 {approx = true} : vector<8x1xf32> -> vector<8x1xf32>
    %37 = vector.broadcast %36 : vector<8x1xf32> to vector<8x8xf32>
    %38 = arith.mulf %33, %37 : vector<8x8xf32>
    %39 = arith.truncf %38 : vector<8x8xf32> to vector<8x8xbf16>
    %40 = vector.extract_strided_slice %5 {offsets = [0, 16], sizes = [8, 16], strides = [1, 1]} : vector<8x32xbf16> to vector<8x16xbf16>
    %cst_16 = arith.constant dense<0.000000e+00> : vector<8x16xf32>
    %41 = tpu.matmul %39, %40, %cst_16 {dimension_numbers = #tpu.dot_dimension_numbers<[1], [0], [0], [1], [0, 0, 1, 1], [], []>} : vector<8x8xbf16>, vector<8x16xbf16>, vector<8x16xf32> -> vector<8x16xf32>
    %42 = tpu.concatenate %23, %41 in 1 : vector<8x16xf32>, vector<8x16xf32> -> vector<8x32xf32>
    %43 = arith.truncf %42 : vector<8x32xf32> to vector<8x32xbf16>
    %c0_17 = arith.constant 0 : index
    %c0_18 = arith.constant 0 : index
    %c0_19 = arith.constant 0 : index
    %44 = vector.load %arg5[%c0_17, %c0_18, %c0_19] : memref<1x8x32xbf16, #tpu.memory_space<vmem>>, vector<1x8x32xbf16>
    %45 = vector.shape_cast %44 : vector<1x8x32xbf16> to vector<8x32xbf16>
    %46 = vector.shape_cast %43 : vector<8x32xbf16> to vector<1x8x32xbf16>
    tpu.vector_store %arg5[%c0_17, %c0_18, %c0_19], %46 {strides = array<i32>} : memref<1x8x32xbf16, #tpu.memory_space<vmem>>, vector<1x8x32xbf16>,
    return
  }
  func.func @transform_0(%arg0: i32, %arg1: i32) -> (i32, i32, i32) {
    %c0_i32 = arith.constant 0 : i32
    %c0_i32_0 = arith.constant 0 : i32
    return %arg0, %arg1, %c0_i32 : i32, i32, i32
  }
  func.func @transform_1(%arg0: i32, %arg1: i32) -> (i32, i32, i32) {
    %c0_i32 = arith.constant 0 : i32
    %c0_i32_0 = arith.constant 0 : i32
    %c0_i32_1 = arith.constant 0 : i32
    return %arg0, %c0_i32, %c0_i32_0 : i32, i32, i32
  }
  func.func @transform_2(%arg0: i32, %arg1: i32) -> (i32, i32, i32) {
    %c0_i32 = arith.constant 0 : i32
    %c0_i32_0 = arith.constant 0 : i32
    %c0_i32_1 = arith.constant 0 : i32
    return %arg0, %c0_i32, %c0_i32_0 : i32, i32, i32
  }
  func.func @transform_3(%arg0: i32, %arg1: i32) -> (i32, i32, i32) {
    %c0_i32 = arith.constant 0 : i32
    %c0_i32_0 = arith.constant 0 : i32
    return %arg0, %arg1, %c0_i32 : i32, i32, i32
  }
}

module attributes {stable_mosaic.version = 11 : i64} {
  func.func @_linear_kernel(%arg0: i32, %arg1: memref<16x32xbf16, #tpu.memory_space<vmem>>, %arg2: memref<32x32xbf16, #tpu.memory_space<vmem>>, %arg3: memref<1x32xf32, #tpu.memory_space<vmem>>, %arg4: memref<16x32xbf16, #tpu.memory_space<vmem>>) attributes {dimension_semantics = [#tpu.dimension_semantics<parallel>], iteration_bounds = array<i64: 1>, scalar_prefetch = 0 : i64, scratch_operands = 0 : i64, tpu.core_type = #tpu.core_type<tc>, window_params = [{transform_indices = @transform_0, window_bounds = array<i64: 16, 32>}, {pipeline_mode = #tpu.pipeline_mode<synchronous>, transform_indices = @transform_1, window_bounds = array<i64: 32, 32>}, {pipeline_mode = #tpu.pipeline_mode<synchronous>, transform_indices = @transform_2, window_bounds = array<i64: 1, 32>}, {transform_indices = @transform_3, window_bounds = array<i64: 16, 32>}]} {
    %c0 = arith.constant 0 : index
    %c0_0 = arith.constant 0 : index
    %0 = vector.load %arg1[%c0, %c0_0] : memref<16x32xbf16, #tpu.memory_space<vmem>>, vector<16x32xbf16>
    %c0_1 = arith.constant 0 : index
    %c0_2 = arith.constant 0 : index
    %1 = vector.load %arg2[%c0_1, %c0_2] : memref<32x32xbf16, #tpu.memory_space<vmem>>, vector<32x32xbf16>
    %cst = arith.constant dense<0.000000e+00> : vector<16x32xf32>
    %2 = tpu.matmul %0, %1, %cst {dimension_numbers = #tpu.dot_dimension_numbers<[1], [0], [0], [1], [0, 0, 1, 1], [], []>} : vector<16x32xbf16>, vector<32x32xbf16>, vector<16x32xf32> -> vector<16x32xf32>
    %c0_3 = arith.constant 0 : index
    %c0_4 = arith.constant 0 : index
    %3 = vector.load %arg3[%c0_3, %c0_4] : memref<1x32xf32, #tpu.memory_space<vmem>>, vector<1x32xf32>
    %4 = vector.broadcast %3 : vector<1x32xf32> to vector<16x32xf32>
    %5 = arith.addf %2, %4 : vector<16x32xf32>
    %6 = arith.truncf %5 : vector<16x32xf32> to vector<16x32xbf16>
    %c0_5 = arith.constant 0 : index
    %c0_6 = arith.constant 0 : index
    %7 = vector.load %arg4[%c0_5, %c0_6] : memref<16x32xbf16, #tpu.memory_space<vmem>>, vector<16x32xbf16>
    tpu.vector_store %arg4[%c0_5, %c0_6], %6 {strides = array<i32>} : memref<16x32xbf16, #tpu.memory_space<vmem>>, vector<16x32xbf16>,
    return
  }
  func.func @transform_0(%arg0: i32) -> (i32, i32) {
    %c0_i32 = arith.constant 0 : i32
    %c0_i32_0 = arith.constant 0 : i32
    return %arg0, %c0_i32 : i32, i32
  }
  func.func @transform_1(%arg0: i32) -> (i32, i32) {
    %c0_i32 = arith.constant 0 : i32
    %c0_i32_0 = arith.constant 0 : i32
    %c0_i32_1 = arith.constant 0 : i32
    return %c0_i32, %c0_i32_0 : i32, i32
  }
  func.func @transform_2(%arg0: i32) -> (i32, i32) {
    %c0_i32 = arith.constant 0 : i32
    %c0_i32_0 = arith.constant 0 : i32
    %c0_i32_1 = arith.constant 0 : i32
    return %c0_i32, %c0_i32_0 : i32, i32
  }
  func.func @transform_3(%arg0: i32) -> (i32, i32) {
    %c0_i32 = arith.constant 0 : i32
    %c0_i32_0 = arith.constant 0 : i32
    return %arg0, %c0_i32 : i32, i32
  }
}

module attributes {stable_mosaic.version = 11 : i64} {
  func.func @_ln_kernel(%arg0: i32, %arg1: memref<16x32xbf16, #tpu.memory_space<vmem>>, %arg2: memref<1x32xf32, #tpu.memory_space<vmem>>, %arg3: memref<1x32xf32, #tpu.memory_space<vmem>>, %arg4: memref<16x32xbf16, #tpu.memory_space<vmem>>) attributes {dimension_semantics = [#tpu.dimension_semantics<parallel>], iteration_bounds = array<i64: 1>, scalar_prefetch = 0 : i64, scratch_operands = 0 : i64, tpu.core_type = #tpu.core_type<tc>, window_params = [{transform_indices = @transform_0, window_bounds = array<i64: 16, 32>}, {pipeline_mode = #tpu.pipeline_mode<synchronous>, transform_indices = @transform_1, window_bounds = array<i64: 1, 32>}, {pipeline_mode = #tpu.pipeline_mode<synchronous>, transform_indices = @transform_2, window_bounds = array<i64: 1, 32>}, {transform_indices = @transform_3, window_bounds = array<i64: 16, 32>}]} {
    %c0 = arith.constant 0 : index
    %c0_0 = arith.constant 0 : index
    %0 = vector.load %arg1[%c0, %c0_0] : memref<16x32xbf16, #tpu.memory_space<vmem>>, vector<16x32xbf16>
    %1 = arith.extf %0 : vector<16x32xbf16> to vector<16x32xf32>
    %cst = arith.constant dense<0.000000e+00> : vector<16xf32>
    %2 = vector.multi_reduction <add>, %1, %cst [1] : vector<16x32xf32> to vector<16xf32>
    %3 = vector.shape_cast %2 : vector<16xf32> to vector<16x1xf32>
    %cst_1 = arith.constant 3.200000e+01 : f32
    %4 = vector.broadcast %cst_1 : f32 to vector<16x1xf32>
    %5 = arith.divf %3, %4 : vector<16x1xf32>
    %6 = vector.broadcast %5 : vector<16x1xf32> to vector<16x32xf32>
    %7 = arith.subf %1, %6 : vector<16x32xf32>
    %8 = arith.mulf %7, %7 : vector<16x32xf32>
    %cst_2 = arith.constant dense<0.000000e+00> : vector<16xf32>
    %9 = vector.multi_reduction <add>, %8, %cst_2 [1] : vector<16x32xf32> to vector<16xf32>
    %10 = vector.shape_cast %9 : vector<16xf32> to vector<16x1xf32>
    %cst_3 = arith.constant 3.200000e+01 : f32
    %11 = vector.broadcast %cst_3 : f32 to vector<16x1xf32>
    %12 = arith.divf %10, %11 : vector<16x1xf32>
    %cst_4 = arith.constant 9.99999974E-6 : f32
    %13 = vector.broadcast %cst_4 : f32 to vector<16x1xf32>
    %14 = arith.addf %12, %13 : vector<16x1xf32>
    %15 = math.rsqrt %14 : vector<16x1xf32>
    %16 = vector.broadcast %15 : vector<16x1xf32> to vector<16x32xf32>
    %17 = arith.mulf %7, %16 : vector<16x32xf32>
    %c0_5 = arith.constant 0 : index
    %c0_6 = arith.constant 0 : index
    %18 = vector.load %arg2[%c0_5, %c0_6] : memref<1x32xf32, #tpu.memory_space<vmem>>, vector<1x32xf32>
    %19 = vector.broadcast %18 : vector<1x32xf32> to vector<16x32xf32>
    %20 = arith.mulf %17, %19 : vector<16x32xf32>
    %c0_7 = arith.constant 0 : index
    %c0_8 = arith.constant 0 : index
    %21 = vector.load %arg3[%c0_7, %c0_8] : memref<1x32xf32, #tpu.memory_space<vmem>>, vector<1x32xf32>
    %22 = vector.broadcast %21 : vector<1x32xf32> to vector<16x32xf32>
    %23 = arith.addf %20, %22 : vector<16x32xf32>
    %24 = arith.truncf %23 : vector<16x32xf32> to vector<16x32xbf16>
    %c0_9 = arith.constant 0 : index
    %c0_10 = arith.constant 0 : index
    %25 = vector.load %arg4[%c0_9, %c0_10] : memref<16x32xbf16, #tpu.memory_space<vmem>>, vector<16x32xbf16>
    tpu.vector_store %arg4[%c0_9, %c0_10], %24 {strides = array<i32>} : memref<16x32xbf16, #tpu.memory_space<vmem>>, vector<16x32xbf16>,
    return
  }
  func.func @transform_0(%arg0: i32) -> (i32, i32) {
    %c0_i32 = arith.constant 0 : i32
    %c0_i32_0 = arith.constant 0 : i32
    return %arg0, %c0_i32 : i32, i32
  }
  func.func @transform_1(%arg0: i32) -> (i32, i32) {
    %c0_i32 = arith.constant 0 : i32
    %c0_i32_0 = arith.constant 0 : i32
    %c0_i32_1 = arith.constant 0 : i32
    return %c0_i32, %c0_i32_0 : i32, i32
  }
  func.func @transform_2(%arg0: i32) -> (i32, i32) {
    %c0_i32 = arith.constant 0 : i32
    %c0_i32_0 = arith.constant 0 : i32
    %c0_i32_1 = arith.constant 0 : i32
    return %c0_i32, %c0_i32_0 : i32, i32
  }
  func.func @transform_3(%arg0: i32) -> (i32, i32) {
    %c0_i32 = arith.constant 0 : i32
    %c0_i32_0 = arith.constant 0 : i32
    return %arg0, %c0_i32 : i32, i32
  }
}

module attributes {stable_mosaic.version = 11 : i64} {
  func.func @_linear_kernel(%arg0: i32, %arg1: memref<16x32xbf16, #tpu.memory_space<vmem>>, %arg2: memref<16x32xbf16, #tpu.memory_space<vmem>>, %arg3: memref<32x16xbf16, #tpu.memory_space<vmem>>, %arg4: memref<1x16xf32, #tpu.memory_space<vmem>>, %arg5: memref<16x16xbf16, #tpu.memory_space<vmem>>) attributes {dimension_semantics = [#tpu.dimension_semantics<parallel>], iteration_bounds = array<i64: 1>, scalar_prefetch = 0 : i64, scratch_operands = 0 : i64, tpu.core_type = #tpu.core_type<tc>, window_params = [{transform_indices = @transform_0, window_bounds = array<i64: 16, 32>}, {transform_indices = @transform_1, window_bounds = array<i64: 16, 32>}, {pipeline_mode = #tpu.pipeline_mode<synchronous>, transform_indices = @transform_2, window_bounds = array<i64: 32, 16>}, {pipeline_mode = #tpu.pipeline_mode<synchronous>, transform_indices = @transform_3, window_bounds = array<i64: 1, 16>}, {transform_indices = @transform_4, window_bounds = array<i64: 16, 16>}]} {
    %c0 = arith.constant 0 : index
    %c0_0 = arith.constant 0 : index
    %0 = vector.load %arg1[%c0, %c0_0] : memref<16x32xbf16, #tpu.memory_space<vmem>>, vector<16x32xbf16>
    %c0_1 = arith.constant 0 : index
    %c0_2 = arith.constant 0 : index
    %1 = vector.load %arg2[%c0_1, %c0_2] : memref<16x32xbf16, #tpu.memory_space<vmem>>, vector<16x32xbf16>
    %2 = arith.addf %0, %1 : vector<16x32xbf16>
    %c0_3 = arith.constant 0 : index
    %c0_4 = arith.constant 0 : index
    %3 = vector.load %arg3[%c0_3, %c0_4] : memref<32x16xbf16, #tpu.memory_space<vmem>>, vector<32x16xbf16>
    %cst = arith.constant dense<0.000000e+00> : vector<16x16xf32>
    %4 = tpu.matmul %2, %3, %cst {dimension_numbers = #tpu.dot_dimension_numbers<[1], [0], [0], [1], [0, 0, 1, 1], [], []>} : vector<16x32xbf16>, vector<32x16xbf16>, vector<16x16xf32> -> vector<16x16xf32>
    %c0_5 = arith.constant 0 : index
    %c0_6 = arith.constant 0 : index
    %5 = vector.load %arg4[%c0_5, %c0_6] : memref<1x16xf32, #tpu.memory_space<vmem>>, vector<1x16xf32>
    %6 = vector.broadcast %5 : vector<1x16xf32> to vector<16x16xf32>
    %7 = arith.addf %4, %6 : vector<16x16xf32>
    %8 = arith.truncf %7 : vector<16x16xf32> to vector<16x16xbf16>
    %c0_7 = arith.constant 0 : index
    %c0_8 = arith.constant 0 : index
    %9 = vector.load %arg5[%c0_7, %c0_8] : memref<16x16xbf16, #tpu.memory_space<vmem>>, vector<16x16xbf16>
    tpu.vector_store %arg5[%c0_7, %c0_8], %8 {strides = array<i32>} : memref<16x16xbf16, #tpu.memory_space<vmem>>, vector<16x16xbf16>,
    return
  }
  func.func @transform_0(%arg0: i32) -> (i32, i32) {
    %c0_i32 = arith.constant 0 : i32
    %c0_i32_0 = arith.constant 0 : i32
    return %arg0, %c0_i32 : i32, i32
  }
  func.func @transform_1(%arg0: i32) -> (i32, i32) {
    %c0_i32 = arith.constant 0 : i32
    %c0_i32_0 = arith.constant 0 : i32
    return %arg0, %c0_i32 : i32, i32
  }
  func.func @transform_2(%arg0: i32) -> (i32, i32) {
    %c0_i32 = arith.constant 0 : i32
    %c0_i32_0 = arith.constant 0 : i32
    %c0_i32_1 = arith.constant 0 : i32
    return %c0_i32, %c0_i32_0 : i32, i32
  }
  func.func @transform_3(%arg0: i32) -> (i32, i32) {
    %c0_i32 = arith.constant 0 : i32
    %c0_i32_0 = arith.constant 0 : i32
    %c0_i32_1 = arith.constant 0 : i32
    return %c0_i32, %c0_i32_0 : i32, i32
  }
  func.func @transform_4(%arg0: i32) -> (i32, i32) {
    %c0_i32 = arith.constant 0 : i32
    %c0_i32_0 = arith.constant 0 : i32
    return %arg0, %c0_i32 : i32, i32
  }
}

module attributes {stable_mosaic.version = 11 : i64} {
  func.func @_attn_kernel(%arg0: i32, %arg1: i32, %arg2: memref<1x8x16xbf16, #tpu.memory_space<vmem>>, %arg3: memref<1x64x16xbf16, #tpu.memory_space<vmem>>, %arg4: memref<1x64x16xbf16, #tpu.memory_space<vmem>>, %arg5: memref<1x8x16xbf16, #tpu.memory_space<vmem>>) attributes {dimension_semantics = [#tpu.dimension_semantics<parallel>, #tpu.dimension_semantics<parallel>], iteration_bounds = array<i64: 2, 1>, scalar_prefetch = 0 : i64, scratch_operands = 0 : i64, tpu.core_type = #tpu.core_type<tc>, window_params = [{transform_indices = @transform_0, window_bounds = array<i64: 1, 8, 16>}, {transform_indices = @transform_1, window_bounds = array<i64: 1, 64, 16>}, {transform_indices = @transform_2, window_bounds = array<i64: 1, 64, 16>}, {transform_indices = @transform_3, window_bounds = array<i64: 1, 8, 16>}]} {
    %c0 = arith.constant 0 : index
    %c0_0 = arith.constant 0 : index
    %c0_1 = arith.constant 0 : index
    %0 = vector.load %arg2[%c0, %c0_0, %c0_1] : memref<1x8x16xbf16, #tpu.memory_space<vmem>>, vector<1x8x16xbf16>
    %1 = vector.shape_cast %0 : vector<1x8x16xbf16> to vector<8x16xbf16>
    %c0_2 = arith.constant 0 : index
    %c0_3 = arith.constant 0 : index
    %c0_4 = arith.constant 0 : index
    %2 = vector.load %arg3[%c0_2, %c0_3, %c0_4] : memref<1x64x16xbf16, #tpu.memory_space<vmem>>, vector<1x64x16xbf16>
    %3 = vector.shape_cast %2 : vector<1x64x16xbf16> to vector<64x16xbf16>
    %c0_5 = arith.constant 0 : index
    %c0_6 = arith.constant 0 : index
    %c0_7 = arith.constant 0 : index
    %4 = vector.load %arg4[%c0_5, %c0_6, %c0_7] : memref<1x64x16xbf16, #tpu.memory_space<vmem>>, vector<1x64x16xbf16>
    %5 = vector.shape_cast %4 : vector<1x64x16xbf16> to vector<64x16xbf16>
    %6 = vector.extract_strided_slice %1 {offsets = [0, 0], sizes = [8, 8], strides = [1, 1]} : vector<8x16xbf16> to vector<8x8xbf16>
    %7 = vector.extract_strided_slice %3 {offsets = [0, 0], sizes = [64, 8], strides = [1, 1]} : vector<64x16xbf16> to vector<64x8xbf16>
    %cst = arith.constant dense<0.000000e+00> : vector<8x64xf32>
    %8 = tpu.matmul %6, %7, %cst {dimension_numbers = #tpu.dot_dimension_numbers<[1], [1], [0], [0], [0, 0, 1, 0], [], []>} : vector<8x8xbf16>, vector<64x8xbf16>, vector<8x64xf32> -> vector<8x64xf32>
    %cst_8 = arith.constant 0.353553385 : f32
    %9 = vector.broadcast %cst_8 : f32 to vector<8x64xf32>
    %10 = arith.mulf %8, %9 : vector<8x64xf32>
    %cst_9 = arith.constant dense<0xFF800000> : vector<8xf32>
    %11 = vector.multi_reduction <maximumf>, %10, %cst_9 [1] : vector<8x64xf32> to vector<8xf32>
    %12 = vector.shape_cast %11 : vector<8xf32> to vector<8x1xf32>
    %13 = vector.broadcast %12 : vector<8x1xf32> to vector<8x64xf32>
    %14 = arith.subf %10, %13 : vector<8x64xf32>
    %15 = math.exp %14 : vector<8x64xf32>
    %cst_10 = arith.constant dense<0.000000e+00> : vector<8xf32>
    %16 = vector.multi_reduction <add>, %15, %cst_10 [1] : vector<8x64xf32> to vector<8xf32>
    %17 = vector.shape_cast %16 : vector<8xf32> to vector<8x1xf32>
    %18 = tpu.reciprocal %17 {approx = true} : vector<8x1xf32> -> vector<8x1xf32>
    %19 = vector.broadcast %18 : vector<8x1xf32> to vector<8x64xf32>
    %20 = arith.mulf %15, %19 : vector<8x64xf32>
    %21 = arith.truncf %20 : vector<8x64xf32> to vector<8x64xbf16>
    %22 = vector.extract_strided_slice %5 {offsets = [0, 0], sizes = [64, 8], strides = [1, 1]} : vector<64x16xbf16> to vector<64x8xbf16>
    %cst_11 = arith.constant dense<0.000000e+00> : vector<8x8xf32>
    %23 = tpu.matmul %21, %22, %cst_11 {dimension_numbers = #tpu.dot_dimension_numbers<[1], [0], [0], [1], [0, 0, 1, 1], [], []>} : vector<8x64xbf16>, vector<64x8xbf16>, vector<8x8xf32> -> vector<8x8xf32>
    %24 = vector.extract_strided_slice %1 {offsets = [0, 8], sizes = [8, 8], strides = [1, 1]} : vector<8x16xbf16> to vector<8x8xbf16>
    %25 = vector.extract_strided_slice %3 {offsets = [0, 8], sizes = [64, 8], strides = [1, 1]} : vector<64x16xbf16> to vector<64x8xbf16>
    %cst_12 = arith.constant dense<0.000000e+00> : vector<8x64xf32>
    %26 = tpu.matmul %24, %25, %cst_12 {dimension_numbers = #tpu.dot_dimension_numbers<[1], [1], [0], [0], [0, 0, 1, 0], [], []>} : vector<8x8xbf16>, vector<64x8xbf16>, vector<8x64xf32> -> vector<8x64xf32>
    %cst_13 = arith.constant 0.353553385 : f32
    %27 = vector.broadcast %cst_13 : f32 to vector<8x64xf32>
    %28 = arith.mulf %26, %27 : vector<8x64xf32>
    %cst_14 = arith.constant dense<0xFF800000> : vector<8xf32>
    %29 = vector.multi_reduction <maximumf>, %28, %cst_14 [1] : vector<8x64xf32> to vector<8xf32>
    %30 = vector.shape_cast %29 : vector<8xf32> to vector<8x1xf32>
    %31 = vector.broadcast %30 : vector<8x1xf32> to vector<8x64xf32>
    %32 = arith.subf %28, %31 : vector<8x64xf32>
    %33 = math.exp %32 : vector<8x64xf32>
    %cst_15 = arith.constant dense<0.000000e+00> : vector<8xf32>
    %34 = vector.multi_reduction <add>, %33, %cst_15 [1] : vector<8x64xf32> to vector<8xf32>
    %35 = vector.shape_cast %34 : vector<8xf32> to vector<8x1xf32>
    %36 = tpu.reciprocal %35 {approx = true} : vector<8x1xf32> -> vector<8x1xf32>
    %37 = vector.broadcast %36 : vector<8x1xf32> to vector<8x64xf32>
    %38 = arith.mulf %33, %37 : vector<8x64xf32>
    %39 = arith.truncf %38 : vector<8x64xf32> to vector<8x64xbf16>
    %40 = vector.extract_strided_slice %5 {offsets = [0, 8], sizes = [64, 8], strides = [1, 1]} : vector<64x16xbf16> to vector<64x8xbf16>
    %cst_16 = arith.constant dense<0.000000e+00> : vector<8x8xf32>
    %41 = tpu.matmul %39, %40, %cst_16 {dimension_numbers = #tpu.dot_dimension_numbers<[1], [0], [0], [1], [0, 0, 1, 1], [], []>} : vector<8x64xbf16>, vector<64x8xbf16>, vector<8x8xf32> -> vector<8x8xf32>
    %42 = tpu.concatenate %23, %41 in 1 : vector<8x8xf32>, vector<8x8xf32> -> vector<8x16xf32>
    %43 = arith.truncf %42 : vector<8x16xf32> to vector<8x16xbf16>
    %c0_17 = arith.constant 0 : index
    %c0_18 = arith.constant 0 : index
    %c0_19 = arith.constant 0 : index
    %44 = vector.load %arg5[%c0_17, %c0_18, %c0_19] : memref<1x8x16xbf16, #tpu.memory_space<vmem>>, vector<1x8x16xbf16>
    %45 = vector.shape_cast %44 : vector<1x8x16xbf16> to vector<8x16xbf16>
    %46 = vector.shape_cast %43 : vector<8x16xbf16> to vector<1x8x16xbf16>
    tpu.vector_store %arg5[%c0_17, %c0_18, %c0_19], %46 {strides = array<i32>} : memref<1x8x16xbf16, #tpu.memory_space<vmem>>, vector<1x8x16xbf16>,
    return
  }
  func.func @transform_0(%arg0: i32, %arg1: i32) -> (i32, i32, i32) {
    %c0_i32 = arith.constant 0 : i32
    %c0_i32_0 = arith.constant 0 : i32
    return %arg0, %arg1, %c0_i32 : i32, i32, i32
  }
  func.func @transform_1(%arg0: i32, %arg1: i32) -> (i32, i32, i32) {
    %c0_i32 = arith.constant 0 : i32
    %c0_i32_0 = arith.constant 0 : i32
    %c0_i32_1 = arith.constant 0 : i32
    return %arg0, %c0_i32, %c0_i32_0 : i32, i32, i32
  }
  func.func @transform_2(%arg0: i32, %arg1: i32) -> (i32, i32, i32) {
    %c0_i32 = arith.constant 0 : i32
    %c0_i32_0 = arith.constant 0 : i32
    %c0_i32_1 = arith.constant 0 : i32
    return %arg0, %c0_i32, %c0_i32_0 : i32, i32, i32
  }
  func.func @transform_3(%arg0: i32, %arg1: i32) -> (i32, i32, i32) {
    %c0_i32 = arith.constant 0 : i32
    %c0_i32_0 = arith.constant 0 : i32
    return %arg0, %arg1, %c0_i32 : i32, i32, i32
  }
}

module attributes {stable_mosaic.version = 11 : i64} {
  func.func @_kv_proj_kernel(%arg0: i32, %arg1: memref<128x32xbf16, #tpu.memory_space<vmem>>, %arg2: memref<128x32xbf16, #tpu.memory_space<vmem>>, %arg3: memref<32x16xbf16, #tpu.memory_space<vmem>>, %arg4: memref<1x16xf32, #tpu.memory_space<vmem>>, %arg5: memref<32x16xbf16, #tpu.memory_space<vmem>>, %arg6: memref<1x16xf32, #tpu.memory_space<vmem>>, %arg7: memref<128x16xbf16, #tpu.memory_space<vmem>>, %arg8: memref<128x16xbf16, #tpu.memory_space<vmem>>) attributes {dimension_semantics = [#tpu.dimension_semantics<parallel>], iteration_bounds = array<i64: 1>, scalar_prefetch = 0 : i64, scratch_operands = 0 : i64, tpu.core_type = #tpu.core_type<tc>, window_params = [{transform_indices = @transform_0, window_bounds = array<i64: 128, 32>}, {transform_indices = @transform_1, window_bounds = array<i64: 128, 32>}, {pipeline_mode = #tpu.pipeline_mode<synchronous>, transform_indices = @transform_2, window_bounds = array<i64: 32, 16>}, {pipeline_mode = #tpu.pipeline_mode<synchronous>, transform_indices = @transform_3, window_bounds = array<i64: 1, 16>}, {pipeline_mode = #tpu.pipeline_mode<synchronous>, transform_indices = @transform_4, window_bounds = array<i64: 32, 16>}, {pipeline_mode = #tpu.pipeline_mode<synchronous>, transform_indices = @transform_5, window_bounds = array<i64: 1, 16>}, {transform_indices = @transform_6, window_bounds = array<i64: 128, 16>}, {transform_indices = @transform_7, window_bounds = array<i64: 128, 16>}]} {
    %c0 = arith.constant 0 : index
    %c0_0 = arith.constant 0 : index
    %0 = vector.load %arg1[%c0, %c0_0] : memref<128x32xbf16, #tpu.memory_space<vmem>>, vector<128x32xbf16>
    %c0_1 = arith.constant 0 : index
    %c0_2 = arith.constant 0 : index
    %1 = vector.load %arg2[%c0_1, %c0_2] : memref<128x32xbf16, #tpu.memory_space<vmem>>, vector<128x32xbf16>
    %2 = arith.addf %0, %1 : vector<128x32xbf16>
    %c0_3 = arith.constant 0 : index
    %c0_4 = arith.constant 0 : index
    %3 = vector.load %arg1[%c0_3, %c0_4] : memref<128x32xbf16, #tpu.memory_space<vmem>>, vector<128x32xbf16>
    %c0_5 = arith.constant 0 : index
    %c0_6 = arith.constant 0 : index
    %4 = vector.load %arg3[%c0_5, %c0_6] : memref<32x16xbf16, #tpu.memory_space<vmem>>, vector<32x16xbf16>
    %cst = arith.constant dense<0.000000e+00> : vector<128x16xf32>
    %5 = tpu.matmul %2, %4, %cst {dimension_numbers = #tpu.dot_dimension_numbers<[1], [0], [0], [1], [0, 0, 1, 1], [], []>} : vector<128x32xbf16>, vector<32x16xbf16>, vector<128x16xf32> -> vector<128x16xf32>
    %c0_7 = arith.constant 0 : index
    %c0_8 = arith.constant 0 : index
    %6 = vector.load %arg4[%c0_7, %c0_8] : memref<1x16xf32, #tpu.memory_space<vmem>>, vector<1x16xf32>
    %7 = vector.broadcast %6 : vector<1x16xf32> to vector<128x16xf32>
    %8 = arith.addf %5, %7 : vector<128x16xf32>
    %9 = arith.truncf %8 : vector<128x16xf32> to vector<128x16xbf16>
    %c0_9 = arith.constant 0 : index
    %c0_10 = arith.constant 0 : index
    %10 = vector.load %arg7[%c0_9, %c0_10] : memref<128x16xbf16, #tpu.memory_space<vmem>>, vector<128x16xbf16>
    tpu.vector_store %arg7[%c0_9, %c0_10], %9 {strides = array<i32>} : memref<128x16xbf16, #tpu.memory_space<vmem>>, vector<128x16xbf16>,
    %c0_11 = arith.constant 0 : index
    %c0_12 = arith.constant 0 : index
    %11 = vector.load %arg5[%c0_11, %c0_12] : memref<32x16xbf16, #tpu.memory_space<vmem>>, vector<32x16xbf16>
    %cst_13 = arith.constant dense<0.000000e+00> : vector<128x16xf32>
    %12 = tpu.matmul %3, %11, %cst_13 {dimension_numbers = #tpu.dot_dimension_numbers<[1], [0], [0], [1], [0, 0, 1, 1], [], []>} : vector<128x32xbf16>, vector<32x16xbf16>, vector<128x16xf32> -> vector<128x16xf32>
    %c0_14 = arith.constant 0 : index
    %c0_15 = arith.constant 0 : index
    %13 = vector.load %arg6[%c0_14, %c0_15] : memref<1x16xf32, #tpu.memory_space<vmem>>, vector<1x16xf32>
    %14 = vector.broadcast %13 : vector<1x16xf32> to vector<128x16xf32>
    %15 = arith.addf %12, %14 : vector<128x16xf32>
    %16 = arith.truncf %15 : vector<128x16xf32> to vector<128x16xbf16>
    %c0_16 = arith.constant 0 : index
    %c0_17 = arith.constant 0 : index
    %17 = vector.load %arg8[%c0_16, %c0_17] : memref<128x16xbf16, #tpu.memory_space<vmem>>, vector<128x16xbf16>
    tpu.vector_store %arg8[%c0_16, %c0_17], %16 {strides = array<i32>} : memref<128x16xbf16, #tpu.memory_space<vmem>>, vector<128x16xbf16>,
    return
  }
  func.func @transform_0(%arg0: i32) -> (i32, i32) {
    %c0_i32 = arith.constant 0 : i32
    %c0_i32_0 = arith.constant 0 : i32
    return %arg0, %c0_i32 : i32, i32
  }
  func.func @transform_1(%arg0: i32) -> (i32, i32) {
    %c0_i32 = arith.constant 0 : i32
    %c0_i32_0 = arith.constant 0 : i32
    return %arg0, %c0_i32 : i32, i32
  }
  func.func @transform_2(%arg0: i32) -> (i32, i32) {
    %c0_i32 = arith.constant 0 : i32
    %c0_i32_0 = arith.constant 0 : i32
    %c0_i32_1 = arith.constant 0 : i32
    return %c0_i32, %c0_i32_0 : i32, i32
  }
  func.func @transform_3(%arg0: i32) -> (i32, i32) {
    %c0_i32 = arith.constant 0 : i32
    %c0_i32_0 = arith.constant 0 : i32
    %c0_i32_1 = arith.constant 0 : i32
    return %c0_i32, %c0_i32_0 : i32, i32
  }
  func.func @transform_4(%arg0: i32) -> (i32, i32) {
    %c0_i32 = arith.constant 0 : i32
    %c0_i32_0 = arith.constant 0 : i32
    %c0_i32_1 = arith.constant 0 : i32
    return %c0_i32, %c0_i32_0 : i32, i32
  }
  func.func @transform_5(%arg0: i32) -> (i32, i32) {
    %c0_i32 = arith.constant 0 : i32
    %c0_i32_0 = arith.constant 0 : i32
    %c0_i32_1 = arith.constant 0 : i32
    return %c0_i32, %c0_i32_0 : i32, i32
  }
  func.func @transform_6(%arg0: i32) -> (i32, i32) {
    %c0_i32 = arith.constant 0 : i32
    %c0_i32_0 = arith.constant 0 : i32
    return %arg0, %c0_i32 : i32, i32
  }
  func.func @transform_7(%arg0: i32) -> (i32, i32) {
    %c0_i32 = arith.constant 0 : i32
    %c0_i32_0 = arith.constant 0 : i32
    return %arg0, %c0_i32 : i32, i32
  }
}

module attributes {stable_mosaic.version = 11 : i64} {
  func.func @_linear_kernel(%arg0: i32, %arg1: memref<16x16xbf16, #tpu.memory_space<vmem>>, %arg2: memref<16x32xbf16, #tpu.memory_space<vmem>>, %arg3: memref<1x32xf32, #tpu.memory_space<vmem>>, %arg4: memref<16x32xbf16, #tpu.memory_space<vmem>>) attributes {dimension_semantics = [#tpu.dimension_semantics<parallel>], iteration_bounds = array<i64: 1>, scalar_prefetch = 0 : i64, scratch_operands = 0 : i64, tpu.core_type = #tpu.core_type<tc>, window_params = [{transform_indices = @transform_0, window_bounds = array<i64: 16, 16>}, {pipeline_mode = #tpu.pipeline_mode<synchronous>, transform_indices = @transform_1, window_bounds = array<i64: 16, 32>}, {pipeline_mode = #tpu.pipeline_mode<synchronous>, transform_indices = @transform_2, window_bounds = array<i64: 1, 32>}, {transform_indices = @transform_3, window_bounds = array<i64: 16, 32>}]} {
    %c0 = arith.constant 0 : index
    %c0_0 = arith.constant 0 : index
    %0 = vector.load %arg1[%c0, %c0_0] : memref<16x16xbf16, #tpu.memory_space<vmem>>, vector<16x16xbf16>
    %c0_1 = arith.constant 0 : index
    %c0_2 = arith.constant 0 : index
    %1 = vector.load %arg2[%c0_1, %c0_2] : memref<16x32xbf16, #tpu.memory_space<vmem>>, vector<16x32xbf16>
    %cst = arith.constant dense<0.000000e+00> : vector<16x32xf32>
    %2 = tpu.matmul %0, %1, %cst {dimension_numbers = #tpu.dot_dimension_numbers<[1], [0], [0], [1], [0, 0, 1, 1], [], []>} : vector<16x16xbf16>, vector<16x32xbf16>, vector<16x32xf32> -> vector<16x32xf32>
    %c0_3 = arith.constant 0 : index
    %c0_4 = arith.constant 0 : index
    %3 = vector.load %arg3[%c0_3, %c0_4] : memref<1x32xf32, #tpu.memory_space<vmem>>, vector<1x32xf32>
    %4 = vector.broadcast %3 : vector<1x32xf32> to vector<16x32xf32>
    %5 = arith.addf %2, %4 : vector<16x32xf32>
    %6 = arith.truncf %5 : vector<16x32xf32> to vector<16x32xbf16>
    %c0_5 = arith.constant 0 : index
    %c0_6 = arith.constant 0 : index
    %7 = vector.load %arg4[%c0_5, %c0_6] : memref<16x32xbf16, #tpu.memory_space<vmem>>, vector<16x32xbf16>
    tpu.vector_store %arg4[%c0_5, %c0_6], %6 {strides = array<i32>} : memref<16x32xbf16, #tpu.memory_space<vmem>>, vector<16x32xbf16>,
    return
  }
  func.func @transform_0(%arg0: i32) -> (i32, i32) {
    %c0_i32 = arith.constant 0 : i32
    %c0_i32_0 = arith.constant 0 : i32
    return %arg0, %c0_i32 : i32, i32
  }
  func.func @transform_1(%arg0: i32) -> (i32, i32) {
    %c0_i32 = arith.constant 0 : i32
    %c0_i32_0 = arith.constant 0 : i32
    %c0_i32_1 = arith.constant 0 : i32
    return %c0_i32, %c0_i32_0 : i32, i32
  }
  func.func @transform_2(%arg0: i32) -> (i32, i32) {
    %c0_i32 = arith.constant 0 : i32
    %c0_i32_0 = arith.constant 0 : i32
    %c0_i32_1 = arith.constant 0 : i32
    return %c0_i32, %c0_i32_0 : i32, i32
  }
  func.func @transform_3(%arg0: i32) -> (i32, i32) {
    %c0_i32 = arith.constant 0 : i32
    %c0_i32_0 = arith.constant 0 : i32
    return %arg0, %c0_i32 : i32, i32
  }
}

module attributes {stable_mosaic.version = 11 : i64} {
  func.func @_ln_kernel(%arg0: i32, %arg1: memref<16x32xbf16, #tpu.memory_space<vmem>>, %arg2: memref<16x32xbf16, #tpu.memory_space<vmem>>, %arg3: memref<1x32xf32, #tpu.memory_space<vmem>>, %arg4: memref<1x32xf32, #tpu.memory_space<vmem>>, %arg5: memref<16x32xbf16, #tpu.memory_space<vmem>>) attributes {dimension_semantics = [#tpu.dimension_semantics<parallel>], iteration_bounds = array<i64: 1>, scalar_prefetch = 0 : i64, scratch_operands = 0 : i64, tpu.core_type = #tpu.core_type<tc>, window_params = [{transform_indices = @transform_0, window_bounds = array<i64: 16, 32>}, {transform_indices = @transform_1, window_bounds = array<i64: 16, 32>}, {pipeline_mode = #tpu.pipeline_mode<synchronous>, transform_indices = @transform_2, window_bounds = array<i64: 1, 32>}, {pipeline_mode = #tpu.pipeline_mode<synchronous>, transform_indices = @transform_3, window_bounds = array<i64: 1, 32>}, {transform_indices = @transform_4, window_bounds = array<i64: 16, 32>}]} {
    %c0 = arith.constant 0 : index
    %c0_0 = arith.constant 0 : index
    %0 = vector.load %arg1[%c0, %c0_0] : memref<16x32xbf16, #tpu.memory_space<vmem>>, vector<16x32xbf16>
    %1 = arith.extf %0 : vector<16x32xbf16> to vector<16x32xf32>
    %c0_1 = arith.constant 0 : index
    %c0_2 = arith.constant 0 : index
    %2 = vector.load %arg2[%c0_1, %c0_2] : memref<16x32xbf16, #tpu.memory_space<vmem>>, vector<16x32xbf16>
    %3 = arith.extf %2 : vector<16x32xbf16> to vector<16x32xf32>
    %4 = arith.addf %1, %3 : vector<16x32xf32>
    %cst = arith.constant dense<0.000000e+00> : vector<16xf32>
    %5 = vector.multi_reduction <add>, %4, %cst [1] : vector<16x32xf32> to vector<16xf32>
    %6 = vector.shape_cast %5 : vector<16xf32> to vector<16x1xf32>
    %cst_3 = arith.constant 3.200000e+01 : f32
    %7 = vector.broadcast %cst_3 : f32 to vector<16x1xf32>
    %8 = arith.divf %6, %7 : vector<16x1xf32>
    %9 = vector.broadcast %8 : vector<16x1xf32> to vector<16x32xf32>
    %10 = arith.subf %4, %9 : vector<16x32xf32>
    %11 = arith.mulf %10, %10 : vector<16x32xf32>
    %cst_4 = arith.constant dense<0.000000e+00> : vector<16xf32>
    %12 = vector.multi_reduction <add>, %11, %cst_4 [1] : vector<16x32xf32> to vector<16xf32>
    %13 = vector.shape_cast %12 : vector<16xf32> to vector<16x1xf32>
    %cst_5 = arith.constant 3.200000e+01 : f32
    %14 = vector.broadcast %cst_5 : f32 to vector<16x1xf32>
    %15 = arith.divf %13, %14 : vector<16x1xf32>
    %cst_6 = arith.constant 9.99999974E-6 : f32
    %16 = vector.broadcast %cst_6 : f32 to vector<16x1xf32>
    %17 = arith.addf %15, %16 : vector<16x1xf32>
    %18 = math.rsqrt %17 : vector<16x1xf32>
    %19 = vector.broadcast %18 : vector<16x1xf32> to vector<16x32xf32>
    %20 = arith.mulf %10, %19 : vector<16x32xf32>
    %c0_7 = arith.constant 0 : index
    %c0_8 = arith.constant 0 : index
    %21 = vector.load %arg3[%c0_7, %c0_8] : memref<1x32xf32, #tpu.memory_space<vmem>>, vector<1x32xf32>
    %22 = vector.broadcast %21 : vector<1x32xf32> to vector<16x32xf32>
    %23 = arith.mulf %20, %22 : vector<16x32xf32>
    %c0_9 = arith.constant 0 : index
    %c0_10 = arith.constant 0 : index
    %24 = vector.load %arg4[%c0_9, %c0_10] : memref<1x32xf32, #tpu.memory_space<vmem>>, vector<1x32xf32>
    %25 = vector.broadcast %24 : vector<1x32xf32> to vector<16x32xf32>
    %26 = arith.addf %23, %25 : vector<16x32xf32>
    %27 = arith.truncf %26 : vector<16x32xf32> to vector<16x32xbf16>
    %c0_11 = arith.constant 0 : index
    %c0_12 = arith.constant 0 : index
    %28 = vector.load %arg5[%c0_11, %c0_12] : memref<16x32xbf16, #tpu.memory_space<vmem>>, vector<16x32xbf16>
    tpu.vector_store %arg5[%c0_11, %c0_12], %27 {strides = array<i32>} : memref<16x32xbf16, #tpu.memory_space<vmem>>, vector<16x32xbf16>,
    return
  }
  func.func @transform_0(%arg0: i32) -> (i32, i32) {
    %c0_i32 = arith.constant 0 : i32
    %c0_i32_0 = arith.constant 0 : i32
    return %arg0, %c0_i32 : i32, i32
  }
  func.func @transform_1(%arg0: i32) -> (i32, i32) {
    %c0_i32 = arith.constant 0 : i32
    %c0_i32_0 = arith.constant 0 : i32
    return %arg0, %c0_i32 : i32, i32
  }
  func.func @transform_2(%arg0: i32) -> (i32, i32) {
    %c0_i32 = arith.constant 0 : i32
    %c0_i32_0 = arith.constant 0 : i32
    %c0_i32_1 = arith.constant 0 : i32
    return %c0_i32, %c0_i32_0 : i32, i32
  }
  func.func @transform_3(%arg0: i32) -> (i32, i32) {
    %c0_i32 = arith.constant 0 : i32
    %c0_i32_0 = arith.constant 0 : i32
    %c0_i32_1 = arith.constant 0 : i32
    return %c0_i32, %c0_i32_0 : i32, i32
  }
  func.func @transform_4(%arg0: i32) -> (i32, i32) {
    %c0_i32 = arith.constant 0 : i32
    %c0_i32_0 = arith.constant 0 : i32
    return %arg0, %c0_i32 : i32, i32
  }
}

module attributes {stable_mosaic.version = 11 : i64} {
  func.func @_mlp2_kernel(%arg0: i32, %arg1: memref<16x32xbf16, #tpu.memory_space<vmem>>, %arg2: memref<32x64xbf16, #tpu.memory_space<vmem>>, %arg3: memref<1x64xf32, #tpu.memory_space<vmem>>, %arg4: memref<64x32xbf16, #tpu.memory_space<vmem>>, %arg5: memref<1x32xf32, #tpu.memory_space<vmem>>, %arg6: memref<16x32xbf16, #tpu.memory_space<vmem>>) attributes {dimension_semantics = [#tpu.dimension_semantics<parallel>], iteration_bounds = array<i64: 1>, scalar_prefetch = 0 : i64, scratch_operands = 0 : i64, tpu.core_type = #tpu.core_type<tc>, window_params = [{transform_indices = @transform_0, window_bounds = array<i64: 16, 32>}, {pipeline_mode = #tpu.pipeline_mode<synchronous>, transform_indices = @transform_1, window_bounds = array<i64: 32, 64>}, {pipeline_mode = #tpu.pipeline_mode<synchronous>, transform_indices = @transform_2, window_bounds = array<i64: 1, 64>}, {pipeline_mode = #tpu.pipeline_mode<synchronous>, transform_indices = @transform_3, window_bounds = array<i64: 64, 32>}, {pipeline_mode = #tpu.pipeline_mode<synchronous>, transform_indices = @transform_4, window_bounds = array<i64: 1, 32>}, {transform_indices = @transform_5, window_bounds = array<i64: 16, 32>}]} {
    %c0 = arith.constant 0 : index
    %c0_0 = arith.constant 0 : index
    %0 = vector.load %arg1[%c0, %c0_0] : memref<16x32xbf16, #tpu.memory_space<vmem>>, vector<16x32xbf16>
    %c0_1 = arith.constant 0 : index
    %c0_2 = arith.constant 0 : index
    %1 = vector.load %arg2[%c0_1, %c0_2] : memref<32x64xbf16, #tpu.memory_space<vmem>>, vector<32x64xbf16>
    %cst = arith.constant dense<0.000000e+00> : vector<16x64xf32>
    %2 = tpu.matmul %0, %1, %cst {dimension_numbers = #tpu.dot_dimension_numbers<[1], [0], [0], [1], [0, 0, 1, 1], [], []>} : vector<16x32xbf16>, vector<32x64xbf16>, vector<16x64xf32> -> vector<16x64xf32>
    %c0_3 = arith.constant 0 : index
    %c0_4 = arith.constant 0 : index
    %3 = vector.load %arg3[%c0_3, %c0_4] : memref<1x64xf32, #tpu.memory_space<vmem>>, vector<1x64xf32>
    %4 = vector.broadcast %3 : vector<1x64xf32> to vector<16x64xf32>
    %5 = arith.addf %2, %4 : vector<16x64xf32>
    %cst_5 = arith.constant 0.000000e+00 : f32
    %6 = vector.broadcast %cst_5 : f32 to vector<16x64xf32>
    %7 = arith.maximumf %5, %6 : vector<16x64xf32>
    %8 = arith.truncf %7 : vector<16x64xf32> to vector<16x64xbf16>
    %c0_6 = arith.constant 0 : index
    %c0_7 = arith.constant 0 : index
    %9 = vector.load %arg4[%c0_6, %c0_7] : memref<64x32xbf16, #tpu.memory_space<vmem>>, vector<64x32xbf16>
    %cst_8 = arith.constant dense<0.000000e+00> : vector<16x32xf32>
    %10 = tpu.matmul %8, %9, %cst_8 {dimension_numbers = #tpu.dot_dimension_numbers<[1], [0], [0], [1], [0, 0, 1, 1], [], []>} : vector<16x64xbf16>, vector<64x32xbf16>, vector<16x32xf32> -> vector<16x32xf32>
    %c0_9 = arith.constant 0 : index
    %c0_10 = arith.constant 0 : index
    %11 = vector.load %arg5[%c0_9, %c0_10] : memref<1x32xf32, #tpu.memory_space<vmem>>, vector<1x32xf32>
    %12 = vector.broadcast %11 : vector<1x32xf32> to vector<16x32xf32>
    %13 = arith.addf %10, %12 : vector<16x32xf32>
    %14 = arith.truncf %13 : vector<16x32xf32> to vector<16x32xbf16>
    %c0_11 = arith.constant 0 : index
    %c0_12 = arith.constant 0 : index
    %15 = vector.load %arg6[%c0_11, %c0_12] : memref<16x32xbf16, #tpu.memory_space<vmem>>, vector<16x32xbf16>
    tpu.vector_store %arg6[%c0_11, %c0_12], %14 {strides = array<i32>} : memref<16x32xbf16, #tpu.memory_space<vmem>>, vector<16x32xbf16>,
    return
  }
  func.func @transform_0(%arg0: i32) -> (i32, i32) {
    %c0_i32 = arith.constant 0 : i32
    %c0_i32_0 = arith.constant 0 : i32
    return %arg0, %c0_i32 : i32, i32
  }
  func.func @transform_1(%arg0: i32) -> (i32, i32) {
    %c0_i32 = arith.constant 0 : i32
    %c0_i32_0 = arith.constant 0 : i32
    %c0_i32_1 = arith.constant 0 : i32
    return %c0_i32, %c0_i32_0 : i32, i32
  }
  func.func @transform_2(%arg0: i32) -> (i32, i32) {
    %c0_i32 = arith.constant 0 : i32
    %c0_i32_0 = arith.constant 0 : i32
    %c0_i32_1 = arith.constant 0 : i32
    return %c0_i32, %c0_i32_0 : i32, i32
  }
  func.func @transform_3(%arg0: i32) -> (i32, i32) {
    %c0_i32 = arith.constant 0 : i32
    %c0_i32_0 = arith.constant 0 : i32
    %c0_i32_1 = arith.constant 0 : i32
    return %c0_i32, %c0_i32_0 : i32, i32
  }
  func.func @transform_4(%arg0: i32) -> (i32, i32) {
    %c0_i32 = arith.constant 0 : i32
    %c0_i32_0 = arith.constant 0 : i32
    %c0_i32_1 = arith.constant 0 : i32
    return %c0_i32, %c0_i32_0 : i32, i32
  }
  func.func @transform_5(%arg0: i32) -> (i32, i32) {
    %c0_i32 = arith.constant 0 : i32
    %c0_i32_0 = arith.constant 0 : i32
    return %arg0, %c0_i32 : i32, i32
  }
}

module attributes {stable_mosaic.version = 11 : i64} {
  func.func @_kv_proj_kernel(%arg0: i32, %arg1: memref<16x32xbf16, #tpu.memory_space<vmem>>, %arg2: memref<16x32xbf16, #tpu.memory_space<vmem>>, %arg3: memref<32x16xbf16, #tpu.memory_space<vmem>>, %arg4: memref<1x16xf32, #tpu.memory_space<vmem>>, %arg5: memref<32x16xbf16, #tpu.memory_space<vmem>>, %arg6: memref<1x16xf32, #tpu.memory_space<vmem>>, %arg7: memref<16x16xbf16, #tpu.memory_space<vmem>>, %arg8: memref<16x16xbf16, #tpu.memory_space<vmem>>) attributes {dimension_semantics = [#tpu.dimension_semantics<parallel>], iteration_bounds = array<i64: 1>, scalar_prefetch = 0 : i64, scratch_operands = 0 : i64, tpu.core_type = #tpu.core_type<tc>, window_params = [{transform_indices = @transform_0, window_bounds = array<i64: 16, 32>}, {transform_indices = @transform_1, window_bounds = array<i64: 16, 32>}, {pipeline_mode = #tpu.pipeline_mode<synchronous>, transform_indices = @transform_2, window_bounds = array<i64: 32, 16>}, {pipeline_mode = #tpu.pipeline_mode<synchronous>, transform_indices = @transform_3, window_bounds = array<i64: 1, 16>}, {pipeline_mode = #tpu.pipeline_mode<synchronous>, transform_indices = @transform_4, window_bounds = array<i64: 32, 16>}, {pipeline_mode = #tpu.pipeline_mode<synchronous>, transform_indices = @transform_5, window_bounds = array<i64: 1, 16>}, {transform_indices = @transform_6, window_bounds = array<i64: 16, 16>}, {transform_indices = @transform_7, window_bounds = array<i64: 16, 16>}]} {
    %c0 = arith.constant 0 : index
    %c0_0 = arith.constant 0 : index
    %0 = vector.load %arg1[%c0, %c0_0] : memref<16x32xbf16, #tpu.memory_space<vmem>>, vector<16x32xbf16>
    %c0_1 = arith.constant 0 : index
    %c0_2 = arith.constant 0 : index
    %1 = vector.load %arg2[%c0_1, %c0_2] : memref<16x32xbf16, #tpu.memory_space<vmem>>, vector<16x32xbf16>
    %2 = arith.addf %0, %1 : vector<16x32xbf16>
    %c0_3 = arith.constant 0 : index
    %c0_4 = arith.constant 0 : index
    %3 = vector.load %arg1[%c0_3, %c0_4] : memref<16x32xbf16, #tpu.memory_space<vmem>>, vector<16x32xbf16>
    %c0_5 = arith.constant 0 : index
    %c0_6 = arith.constant 0 : index
    %4 = vector.load %arg3[%c0_5, %c0_6] : memref<32x16xbf16, #tpu.memory_space<vmem>>, vector<32x16xbf16>
    %cst = arith.constant dense<0.000000e+00> : vector<16x16xf32>
    %5 = tpu.matmul %2, %4, %cst {dimension_numbers = #tpu.dot_dimension_numbers<[1], [0], [0], [1], [0, 0, 1, 1], [], []>} : vector<16x32xbf16>, vector<32x16xbf16>, vector<16x16xf32> -> vector<16x16xf32>
    %c0_7 = arith.constant 0 : index
    %c0_8 = arith.constant 0 : index
    %6 = vector.load %arg4[%c0_7, %c0_8] : memref<1x16xf32, #tpu.memory_space<vmem>>, vector<1x16xf32>
    %7 = vector.broadcast %6 : vector<1x16xf32> to vector<16x16xf32>
    %8 = arith.addf %5, %7 : vector<16x16xf32>
    %9 = arith.truncf %8 : vector<16x16xf32> to vector<16x16xbf16>
    %c0_9 = arith.constant 0 : index
    %c0_10 = arith.constant 0 : index
    %10 = vector.load %arg7[%c0_9, %c0_10] : memref<16x16xbf16, #tpu.memory_space<vmem>>, vector<16x16xbf16>
    tpu.vector_store %arg7[%c0_9, %c0_10], %9 {strides = array<i32>} : memref<16x16xbf16, #tpu.memory_space<vmem>>, vector<16x16xbf16>,
    %c0_11 = arith.constant 0 : index
    %c0_12 = arith.constant 0 : index
    %11 = vector.load %arg5[%c0_11, %c0_12] : memref<32x16xbf16, #tpu.memory_space<vmem>>, vector<32x16xbf16>
    %cst_13 = arith.constant dense<0.000000e+00> : vector<16x16xf32>
    %12 = tpu.matmul %3, %11, %cst_13 {dimension_numbers = #tpu.dot_dimension_numbers<[1], [0], [0], [1], [0, 0, 1, 1], [], []>} : vector<16x32xbf16>, vector<32x16xbf16>, vector<16x16xf32> -> vector<16x16xf32>
    %c0_14 = arith.constant 0 : index
    %c0_15 = arith.constant 0 : index
    %13 = vector.load %arg6[%c0_14, %c0_15] : memref<1x16xf32, #tpu.memory_space<vmem>>, vector<1x16xf32>
    %14 = vector.broadcast %13 : vector<1x16xf32> to vector<16x16xf32>
    %15 = arith.addf %12, %14 : vector<16x16xf32>
    %16 = arith.truncf %15 : vector<16x16xf32> to vector<16x16xbf16>
    %c0_16 = arith.constant 0 : index
    %c0_17 = arith.constant 0 : index
    %17 = vector.load %arg8[%c0_16, %c0_17] : memref<16x16xbf16, #tpu.memory_space<vmem>>, vector<16x16xbf16>
    tpu.vector_store %arg8[%c0_16, %c0_17], %16 {strides = array<i32>} : memref<16x16xbf16, #tpu.memory_space<vmem>>, vector<16x16xbf16>,
    return
  }
  func.func @transform_0(%arg0: i32) -> (i32, i32) {
    %c0_i32 = arith.constant 0 : i32
    %c0_i32_0 = arith.constant 0 : i32
    return %arg0, %c0_i32 : i32, i32
  }
  func.func @transform_1(%arg0: i32) -> (i32, i32) {
    %c0_i32 = arith.constant 0 : i32
    %c0_i32_0 = arith.constant 0 : i32
    return %arg0, %c0_i32 : i32, i32
  }
  func.func @transform_2(%arg0: i32) -> (i32, i32) {
    %c0_i32 = arith.constant 0 : i32
    %c0_i32_0 = arith.constant 0 : i32
    %c0_i32_1 = arith.constant 0 : i32
    return %c0_i32, %c0_i32_0 : i32, i32
  }
  func.func @transform_3(%arg0: i32) -> (i32, i32) {
    %c0_i32 = arith.constant 0 : i32
    %c0_i32_0 = arith.constant 0 : i32
    %c0_i32_1 = arith.constant 0 : i32
    return %c0_i32, %c0_i32_0 : i32, i32
  }
  func.func @transform_4(%arg0: i32) -> (i32, i32) {
    %c0_i32 = arith.constant 0 : i32
    %c0_i32_0 = arith.constant 0 : i32
    %c0_i32_1 = arith.constant 0 : i32
    return %c0_i32, %c0_i32_0 : i32, i32
  }
  func.func @transform_5(%arg0: i32) -> (i32, i32) {
    %c0_i32 = arith.constant 0 : i32
    %c0_i32_0 = arith.constant 0 : i32
    %c0_i32_1 = arith.constant 0 : i32
    return %c0_i32, %c0_i32_0 : i32, i32
  }
  func.func @transform_6(%arg0: i32) -> (i32, i32) {
    %c0_i32 = arith.constant 0 : i32
    %c0_i32_0 = arith.constant 0 : i32
    return %arg0, %c0_i32 : i32, i32
  }
  func.func @transform_7(%arg0: i32) -> (i32, i32) {
    %c0_i32 = arith.constant 0 : i32
    %c0_i32_0 = arith.constant 0 : i32
    return %arg0, %c0_i32 : i32, i32
  }
}

module attributes {stable_mosaic.version = 11 : i64} {
  func.func @_linear_kernel(%arg0: i32, %arg1: memref<128x32xbf16, #tpu.memory_space<vmem>>, %arg2: memref<128x32xbf16, #tpu.memory_space<vmem>>, %arg3: memref<32x16xbf16, #tpu.memory_space<vmem>>, %arg4: memref<1x16xf32, #tpu.memory_space<vmem>>, %arg5: memref<128x16xbf16, #tpu.memory_space<vmem>>) attributes {dimension_semantics = [#tpu.dimension_semantics<parallel>], iteration_bounds = array<i64: 1>, scalar_prefetch = 0 : i64, scratch_operands = 0 : i64, tpu.core_type = #tpu.core_type<tc>, window_params = [{transform_indices = @transform_0, window_bounds = array<i64: 128, 32>}, {transform_indices = @transform_1, window_bounds = array<i64: 128, 32>}, {pipeline_mode = #tpu.pipeline_mode<synchronous>, transform_indices = @transform_2, window_bounds = array<i64: 32, 16>}, {pipeline_mode = #tpu.pipeline_mode<synchronous>, transform_indices = @transform_3, window_bounds = array<i64: 1, 16>}, {transform_indices = @transform_4, window_bounds = array<i64: 128, 16>}]} {
    %c0 = arith.constant 0 : index
    %c0_0 = arith.constant 0 : index
    %0 = vector.load %arg1[%c0, %c0_0] : memref<128x32xbf16, #tpu.memory_space<vmem>>, vector<128x32xbf16>
    %c0_1 = arith.constant 0 : index
    %c0_2 = arith.constant 0 : index
    %1 = vector.load %arg2[%c0_1, %c0_2] : memref<128x32xbf16, #tpu.memory_space<vmem>>, vector<128x32xbf16>
    %2 = arith.addf %0, %1 : vector<128x32xbf16>
    %c0_3 = arith.constant 0 : index
    %c0_4 = arith.constant 0 : index
    %3 = vector.load %arg3[%c0_3, %c0_4] : memref<32x16xbf16, #tpu.memory_space<vmem>>, vector<32x16xbf16>
    %cst = arith.constant dense<0.000000e+00> : vector<128x16xf32>
    %4 = tpu.matmul %2, %3, %cst {dimension_numbers = #tpu.dot_dimension_numbers<[1], [0], [0], [1], [0, 0, 1, 1], [], []>} : vector<128x32xbf16>, vector<32x16xbf16>, vector<128x16xf32> -> vector<128x16xf32>
    %c0_5 = arith.constant 0 : index
    %c0_6 = arith.constant 0 : index
    %5 = vector.load %arg4[%c0_5, %c0_6] : memref<1x16xf32, #tpu.memory_space<vmem>>, vector<1x16xf32>
    %6 = vector.broadcast %5 : vector<1x16xf32> to vector<128x16xf32>
    %7 = arith.addf %4, %6 : vector<128x16xf32>
    %8 = arith.truncf %7 : vector<128x16xf32> to vector<128x16xbf16>
    %c0_7 = arith.constant 0 : index
    %c0_8 = arith.constant 0 : index
    %9 = vector.load %arg5[%c0_7, %c0_8] : memref<128x16xbf16, #tpu.memory_space<vmem>>, vector<128x16xbf16>
    tpu.vector_store %arg5[%c0_7, %c0_8], %8 {strides = array<i32>} : memref<128x16xbf16, #tpu.memory_space<vmem>>, vector<128x16xbf16>,
    return
  }
  func.func @transform_0(%arg0: i32) -> (i32, i32) {
    %c0_i32 = arith.constant 0 : i32
    %c0_i32_0 = arith.constant 0 : i32
    return %arg0, %c0_i32 : i32, i32
  }
  func.func @transform_1(%arg0: i32) -> (i32, i32) {
    %c0_i32 = arith.constant 0 : i32
    %c0_i32_0 = arith.constant 0 : i32
    return %arg0, %c0_i32 : i32, i32
  }
  func.func @transform_2(%arg0: i32) -> (i32, i32) {
    %c0_i32 = arith.constant 0 : i32
    %c0_i32_0 = arith.constant 0 : i32
    %c0_i32_1 = arith.constant 0 : i32
    return %c0_i32, %c0_i32_0 : i32, i32
  }
  func.func @transform_3(%arg0: i32) -> (i32, i32) {
    %c0_i32 = arith.constant 0 : i32
    %c0_i32_0 = arith.constant 0 : i32
    %c0_i32_1 = arith.constant 0 : i32
    return %c0_i32, %c0_i32_0 : i32, i32
  }
  func.func @transform_4(%arg0: i32) -> (i32, i32) {
    %c0_i32 = arith.constant 0 : i32
    %c0_i32_0 = arith.constant 0 : i32
    return %arg0, %c0_i32 : i32, i32
  }
}

module attributes {stable_mosaic.version = 11 : i64} {
  func.func @_attn_kernel(%arg0: i32, %arg1: i32, %arg2: memref<1x64x16xbf16, #tpu.memory_space<vmem>>, %arg3: memref<1x8x16xbf16, #tpu.memory_space<vmem>>, %arg4: memref<1x8x16xbf16, #tpu.memory_space<vmem>>, %arg5: memref<1x64x16xbf16, #tpu.memory_space<vmem>>) attributes {dimension_semantics = [#tpu.dimension_semantics<parallel>, #tpu.dimension_semantics<parallel>], iteration_bounds = array<i64: 2, 1>, scalar_prefetch = 0 : i64, scratch_operands = 0 : i64, tpu.core_type = #tpu.core_type<tc>, window_params = [{transform_indices = @transform_0, window_bounds = array<i64: 1, 64, 16>}, {transform_indices = @transform_1, window_bounds = array<i64: 1, 8, 16>}, {transform_indices = @transform_2, window_bounds = array<i64: 1, 8, 16>}, {transform_indices = @transform_3, window_bounds = array<i64: 1, 64, 16>}]} {
    %c0 = arith.constant 0 : index
    %c0_0 = arith.constant 0 : index
    %c0_1 = arith.constant 0 : index
    %0 = vector.load %arg2[%c0, %c0_0, %c0_1] : memref<1x64x16xbf16, #tpu.memory_space<vmem>>, vector<1x64x16xbf16>
    %1 = vector.shape_cast %0 : vector<1x64x16xbf16> to vector<64x16xbf16>
    %c0_2 = arith.constant 0 : index
    %c0_3 = arith.constant 0 : index
    %c0_4 = arith.constant 0 : index
    %2 = vector.load %arg3[%c0_2, %c0_3, %c0_4] : memref<1x8x16xbf16, #tpu.memory_space<vmem>>, vector<1x8x16xbf16>
    %3 = vector.shape_cast %2 : vector<1x8x16xbf16> to vector<8x16xbf16>
    %c0_5 = arith.constant 0 : index
    %c0_6 = arith.constant 0 : index
    %c0_7 = arith.constant 0 : index
    %4 = vector.load %arg4[%c0_5, %c0_6, %c0_7] : memref<1x8x16xbf16, #tpu.memory_space<vmem>>, vector<1x8x16xbf16>
    %5 = vector.shape_cast %4 : vector<1x8x16xbf16> to vector<8x16xbf16>
    %6 = vector.extract_strided_slice %1 {offsets = [0, 0], sizes = [64, 8], strides = [1, 1]} : vector<64x16xbf16> to vector<64x8xbf16>
    %7 = vector.extract_strided_slice %3 {offsets = [0, 0], sizes = [8, 8], strides = [1, 1]} : vector<8x16xbf16> to vector<8x8xbf16>
    %cst = arith.constant dense<0.000000e+00> : vector<64x8xf32>
    %8 = tpu.matmul %6, %7, %cst {dimension_numbers = #tpu.dot_dimension_numbers<[1], [1], [0], [0], [0, 0, 1, 0], [], []>} : vector<64x8xbf16>, vector<8x8xbf16>, vector<64x8xf32> -> vector<64x8xf32>
    %cst_8 = arith.constant 0.353553385 : f32
    %9 = vector.broadcast %cst_8 : f32 to vector<64x8xf32>
    %10 = arith.mulf %8, %9 : vector<64x8xf32>
    %cst_9 = arith.constant dense<0xFF800000> : vector<64xf32>
    %11 = vector.multi_reduction <maximumf>, %10, %cst_9 [1] : vector<64x8xf32> to vector<64xf32>
    %12 = vector.shape_cast %11 : vector<64xf32> to vector<64x1xf32>
    %13 = vector.broadcast %12 : vector<64x1xf32> to vector<64x8xf32>
    %14 = arith.subf %10, %13 : vector<64x8xf32>
    %15 = math.exp %14 : vector<64x8xf32>
    %cst_10 = arith.constant dense<0.000000e+00> : vector<64xf32>
    %16 = vector.multi_reduction <add>, %15, %cst_10 [1] : vector<64x8xf32> to vector<64xf32>
    %17 = vector.shape_cast %16 : vector<64xf32> to vector<64x1xf32>
    %18 = tpu.reciprocal %17 {approx = true} : vector<64x1xf32> -> vector<64x1xf32>
    %19 = vector.broadcast %18 : vector<64x1xf32> to vector<64x8xf32>
    %20 = arith.mulf %15, %19 : vector<64x8xf32>
    %21 = arith.truncf %20 : vector<64x8xf32> to vector<64x8xbf16>
    %22 = vector.extract_strided_slice %5 {offsets = [0, 0], sizes = [8, 8], strides = [1, 1]} : vector<8x16xbf16> to vector<8x8xbf16>
    %cst_11 = arith.constant dense<0.000000e+00> : vector<64x8xf32>
    %23 = tpu.matmul %21, %22, %cst_11 {dimension_numbers = #tpu.dot_dimension_numbers<[1], [0], [0], [1], [0, 0, 1, 1], [], []>} : vector<64x8xbf16>, vector<8x8xbf16>, vector<64x8xf32> -> vector<64x8xf32>
    %24 = vector.extract_strided_slice %1 {offsets = [0, 8], sizes = [64, 8], strides = [1, 1]} : vector<64x16xbf16> to vector<64x8xbf16>
    %25 = vector.extract_strided_slice %3 {offsets = [0, 8], sizes = [8, 8], strides = [1, 1]} : vector<8x16xbf16> to vector<8x8xbf16>
    %cst_12 = arith.constant dense<0.000000e+00> : vector<64x8xf32>
    %26 = tpu.matmul %24, %25, %cst_12 {dimension_numbers = #tpu.dot_dimension_numbers<[1], [1], [0], [0], [0, 0, 1, 0], [], []>} : vector<64x8xbf16>, vector<8x8xbf16>, vector<64x8xf32> -> vector<64x8xf32>
    %cst_13 = arith.constant 0.353553385 : f32
    %27 = vector.broadcast %cst_13 : f32 to vector<64x8xf32>
    %28 = arith.mulf %26, %27 : vector<64x8xf32>
    %cst_14 = arith.constant dense<0xFF800000> : vector<64xf32>
    %29 = vector.multi_reduction <maximumf>, %28, %cst_14 [1] : vector<64x8xf32> to vector<64xf32>
    %30 = vector.shape_cast %29 : vector<64xf32> to vector<64x1xf32>
    %31 = vector.broadcast %30 : vector<64x1xf32> to vector<64x8xf32>
    %32 = arith.subf %28, %31 : vector<64x8xf32>
    %33 = math.exp %32 : vector<64x8xf32>
    %cst_15 = arith.constant dense<0.000000e+00> : vector<64xf32>
    %34 = vector.multi_reduction <add>, %33, %cst_15 [1] : vector<64x8xf32> to vector<64xf32>
    %35 = vector.shape_cast %34 : vector<64xf32> to vector<64x1xf32>
    %36 = tpu.reciprocal %35 {approx = true} : vector<64x1xf32> -> vector<64x1xf32>
    %37 = vector.broadcast %36 : vector<64x1xf32> to vector<64x8xf32>
    %38 = arith.mulf %33, %37 : vector<64x8xf32>
    %39 = arith.truncf %38 : vector<64x8xf32> to vector<64x8xbf16>
    %40 = vector.extract_strided_slice %5 {offsets = [0, 8], sizes = [8, 8], strides = [1, 1]} : vector<8x16xbf16> to vector<8x8xbf16>
    %cst_16 = arith.constant dense<0.000000e+00> : vector<64x8xf32>
    %41 = tpu.matmul %39, %40, %cst_16 {dimension_numbers = #tpu.dot_dimension_numbers<[1], [0], [0], [1], [0, 0, 1, 1], [], []>} : vector<64x8xbf16>, vector<8x8xbf16>, vector<64x8xf32> -> vector<64x8xf32>
    %42 = tpu.concatenate %23, %41 in 1 : vector<64x8xf32>, vector<64x8xf32> -> vector<64x16xf32>
    %43 = arith.truncf %42 : vector<64x16xf32> to vector<64x16xbf16>
    %c0_17 = arith.constant 0 : index
    %c0_18 = arith.constant 0 : index
    %c0_19 = arith.constant 0 : index
    %44 = vector.load %arg5[%c0_17, %c0_18, %c0_19] : memref<1x64x16xbf16, #tpu.memory_space<vmem>>, vector<1x64x16xbf16>
    %45 = vector.shape_cast %44 : vector<1x64x16xbf16> to vector<64x16xbf16>
    %46 = vector.shape_cast %43 : vector<64x16xbf16> to vector<1x64x16xbf16>
    tpu.vector_store %arg5[%c0_17, %c0_18, %c0_19], %46 {strides = array<i32>} : memref<1x64x16xbf16, #tpu.memory_space<vmem>>, vector<1x64x16xbf16>,
    return
  }
  func.func @transform_0(%arg0: i32, %arg1: i32) -> (i32, i32, i32) {
    %c0_i32 = arith.constant 0 : i32
    %c0_i32_0 = arith.constant 0 : i32
    return %arg0, %arg1, %c0_i32 : i32, i32, i32
  }
  func.func @transform_1(%arg0: i32, %arg1: i32) -> (i32, i32, i32) {
    %c0_i32 = arith.constant 0 : i32
    %c0_i32_0 = arith.constant 0 : i32
    %c0_i32_1 = arith.constant 0 : i32
    return %arg0, %c0_i32, %c0_i32_0 : i32, i32, i32
  }
  func.func @transform_2(%arg0: i32, %arg1: i32) -> (i32, i32, i32) {
    %c0_i32 = arith.constant 0 : i32
    %c0_i32_0 = arith.constant 0 : i32
    %c0_i32_1 = arith.constant 0 : i32
    return %arg0, %c0_i32, %c0_i32_0 : i32, i32, i32
  }
  func.func @transform_3(%arg0: i32, %arg1: i32) -> (i32, i32, i32) {
    %c0_i32 = arith.constant 0 : i32
    %c0_i32_0 = arith.constant 0 : i32
    return %arg0, %arg1, %c0_i32 : i32, i32, i32
  }
}

module attributes {stable_mosaic.version = 11 : i64} {
  func.func @_linear_kernel(%arg0: i32, %arg1: memref<128x16xbf16, #tpu.memory_space<vmem>>, %arg2: memref<16x32xbf16, #tpu.memory_space<vmem>>, %arg3: memref<1x32xf32, #tpu.memory_space<vmem>>, %arg4: memref<128x32xbf16, #tpu.memory_space<vmem>>) attributes {dimension_semantics = [#tpu.dimension_semantics<parallel>], iteration_bounds = array<i64: 1>, scalar_prefetch = 0 : i64, scratch_operands = 0 : i64, tpu.core_type = #tpu.core_type<tc>, window_params = [{transform_indices = @transform_0, window_bounds = array<i64: 128, 16>}, {pipeline_mode = #tpu.pipeline_mode<synchronous>, transform_indices = @transform_1, window_bounds = array<i64: 16, 32>}, {pipeline_mode = #tpu.pipeline_mode<synchronous>, transform_indices = @transform_2, window_bounds = array<i64: 1, 32>}, {transform_indices = @transform_3, window_bounds = array<i64: 128, 32>}]} {
    %c0 = arith.constant 0 : index
    %c0_0 = arith.constant 0 : index
    %0 = vector.load %arg1[%c0, %c0_0] : memref<128x16xbf16, #tpu.memory_space<vmem>>, vector<128x16xbf16>
    %c0_1 = arith.constant 0 : index
    %c0_2 = arith.constant 0 : index
    %1 = vector.load %arg2[%c0_1, %c0_2] : memref<16x32xbf16, #tpu.memory_space<vmem>>, vector<16x32xbf16>
    %cst = arith.constant dense<0.000000e+00> : vector<128x32xf32>
    %2 = tpu.matmul %0, %1, %cst {dimension_numbers = #tpu.dot_dimension_numbers<[1], [0], [0], [1], [0, 0, 1, 1], [], []>} : vector<128x16xbf16>, vector<16x32xbf16>, vector<128x32xf32> -> vector<128x32xf32>
    %c0_3 = arith.constant 0 : index
    %c0_4 = arith.constant 0 : index
    %3 = vector.load %arg3[%c0_3, %c0_4] : memref<1x32xf32, #tpu.memory_space<vmem>>, vector<1x32xf32>
    %4 = vector.broadcast %3 : vector<1x32xf32> to vector<128x32xf32>
    %5 = arith.addf %2, %4 : vector<128x32xf32>
    %6 = arith.truncf %5 : vector<128x32xf32> to vector<128x32xbf16>
    %c0_5 = arith.constant 0 : index
    %c0_6 = arith.constant 0 : index
    %7 = vector.load %arg4[%c0_5, %c0_6] : memref<128x32xbf16, #tpu.memory_space<vmem>>, vector<128x32xbf16>
    tpu.vector_store %arg4[%c0_5, %c0_6], %6 {strides = array<i32>} : memref<128x32xbf16, #tpu.memory_space<vmem>>, vector<128x32xbf16>,
    return
  }
  func.func @transform_0(%arg0: i32) -> (i32, i32) {
    %c0_i32 = arith.constant 0 : i32
    %c0_i32_0 = arith.constant 0 : i32
    return %arg0, %c0_i32 : i32, i32
  }
  func.func @transform_1(%arg0: i32) -> (i32, i32) {
    %c0_i32 = arith.constant 0 : i32
    %c0_i32_0 = arith.constant 0 : i32
    %c0_i32_1 = arith.constant 0 : i32
    return %c0_i32, %c0_i32_0 : i32, i32
  }
  func.func @transform_2(%arg0: i32) -> (i32, i32) {
    %c0_i32 = arith.constant 0 : i32
    %c0_i32_0 = arith.constant 0 : i32
    %c0_i32_1 = arith.constant 0 : i32
    return %c0_i32, %c0_i32_0 : i32, i32
  }
  func.func @transform_3(%arg0: i32) -> (i32, i32) {
    %c0_i32 = arith.constant 0 : i32
    %c0_i32_0 = arith.constant 0 : i32
    return %arg0, %c0_i32 : i32, i32
  }
}

module attributes {stable_mosaic.version = 11 : i64} {
  func.func @_ln_kernel(%arg0: i32, %arg1: memref<128x32xbf16, #tpu.memory_space<vmem>>, %arg2: memref<128x32xbf16, #tpu.memory_space<vmem>>, %arg3: memref<1x32xf32, #tpu.memory_space<vmem>>, %arg4: memref<1x32xf32, #tpu.memory_space<vmem>>, %arg5: memref<128x32xbf16, #tpu.memory_space<vmem>>) attributes {dimension_semantics = [#tpu.dimension_semantics<parallel>], iteration_bounds = array<i64: 1>, scalar_prefetch = 0 : i64, scratch_operands = 0 : i64, tpu.core_type = #tpu.core_type<tc>, window_params = [{transform_indices = @transform_0, window_bounds = array<i64: 128, 32>}, {transform_indices = @transform_1, window_bounds = array<i64: 128, 32>}, {pipeline_mode = #tpu.pipeline_mode<synchronous>, transform_indices = @transform_2, window_bounds = array<i64: 1, 32>}, {pipeline_mode = #tpu.pipeline_mode<synchronous>, transform_indices = @transform_3, window_bounds = array<i64: 1, 32>}, {transform_indices = @transform_4, window_bounds = array<i64: 128, 32>}]} {
    %c0 = arith.constant 0 : index
    %c0_0 = arith.constant 0 : index
    %0 = vector.load %arg1[%c0, %c0_0] : memref<128x32xbf16, #tpu.memory_space<vmem>>, vector<128x32xbf16>
    %1 = arith.extf %0 : vector<128x32xbf16> to vector<128x32xf32>
    %c0_1 = arith.constant 0 : index
    %c0_2 = arith.constant 0 : index
    %2 = vector.load %arg2[%c0_1, %c0_2] : memref<128x32xbf16, #tpu.memory_space<vmem>>, vector<128x32xbf16>
    %3 = arith.extf %2 : vector<128x32xbf16> to vector<128x32xf32>
    %4 = arith.addf %1, %3 : vector<128x32xf32>
    %cst = arith.constant dense<0.000000e+00> : vector<128xf32>
    %5 = vector.multi_reduction <add>, %4, %cst [1] : vector<128x32xf32> to vector<128xf32>
    %6 = vector.shape_cast %5 : vector<128xf32> to vector<128x1xf32>
    %cst_3 = arith.constant 3.200000e+01 : f32
    %7 = vector.broadcast %cst_3 : f32 to vector<128x1xf32>
    %8 = arith.divf %6, %7 : vector<128x1xf32>
    %9 = vector.broadcast %8 : vector<128x1xf32> to vector<128x32xf32>
    %10 = arith.subf %4, %9 : vector<128x32xf32>
    %11 = arith.mulf %10, %10 : vector<128x32xf32>
    %cst_4 = arith.constant dense<0.000000e+00> : vector<128xf32>
    %12 = vector.multi_reduction <add>, %11, %cst_4 [1] : vector<128x32xf32> to vector<128xf32>
    %13 = vector.shape_cast %12 : vector<128xf32> to vector<128x1xf32>
    %cst_5 = arith.constant 3.200000e+01 : f32
    %14 = vector.broadcast %cst_5 : f32 to vector<128x1xf32>
    %15 = arith.divf %13, %14 : vector<128x1xf32>
    %cst_6 = arith.constant 9.99999974E-6 : f32
    %16 = vector.broadcast %cst_6 : f32 to vector<128x1xf32>
    %17 = arith.addf %15, %16 : vector<128x1xf32>
    %18 = math.rsqrt %17 : vector<128x1xf32>
    %19 = vector.broadcast %18 : vector<128x1xf32> to vector<128x32xf32>
    %20 = arith.mulf %10, %19 : vector<128x32xf32>
    %c0_7 = arith.constant 0 : index
    %c0_8 = arith.constant 0 : index
    %21 = vector.load %arg3[%c0_7, %c0_8] : memref<1x32xf32, #tpu.memory_space<vmem>>, vector<1x32xf32>
    %22 = vector.broadcast %21 : vector<1x32xf32> to vector<128x32xf32>
    %23 = arith.mulf %20, %22 : vector<128x32xf32>
    %c0_9 = arith.constant 0 : index
    %c0_10 = arith.constant 0 : index
    %24 = vector.load %arg4[%c0_9, %c0_10] : memref<1x32xf32, #tpu.memory_space<vmem>>, vector<1x32xf32>
    %25 = vector.broadcast %24 : vector<1x32xf32> to vector<128x32xf32>
    %26 = arith.addf %23, %25 : vector<128x32xf32>
    %27 = arith.truncf %26 : vector<128x32xf32> to vector<128x32xbf16>
    %c0_11 = arith.constant 0 : index
    %c0_12 = arith.constant 0 : index
    %28 = vector.load %arg5[%c0_11, %c0_12] : memref<128x32xbf16, #tpu.memory_space<vmem>>, vector<128x32xbf16>
    tpu.vector_store %arg5[%c0_11, %c0_12], %27 {strides = array<i32>} : memref<128x32xbf16, #tpu.memory_space<vmem>>, vector<128x32xbf16>,
    return
  }
  func.func @transform_0(%arg0: i32) -> (i32, i32) {
    %c0_i32 = arith.constant 0 : i32
    %c0_i32_0 = arith.constant 0 : i32
    return %arg0, %c0_i32 : i32, i32
  }
  func.func @transform_1(%arg0: i32) -> (i32, i32) {
    %c0_i32 = arith.constant 0 : i32
    %c0_i32_0 = arith.constant 0 : i32
    return %arg0, %c0_i32 : i32, i32
  }
  func.func @transform_2(%arg0: i32) -> (i32, i32) {
    %c0_i32 = arith.constant 0 : i32
    %c0_i32_0 = arith.constant 0 : i32
    %c0_i32_1 = arith.constant 0 : i32
    return %c0_i32, %c0_i32_0 : i32, i32
  }
  func.func @transform_3(%arg0: i32) -> (i32, i32) {
    %c0_i32 = arith.constant 0 : i32
    %c0_i32_0 = arith.constant 0 : i32
    %c0_i32_1 = arith.constant 0 : i32
    return %c0_i32, %c0_i32_0 : i32, i32
  }
  func.func @transform_4(%arg0: i32) -> (i32, i32) {
    %c0_i32 = arith.constant 0 : i32
    %c0_i32_0 = arith.constant 0 : i32
    return %arg0, %c0_i32 : i32, i32
  }
}

module attributes {stable_mosaic.version = 11 : i64} {
  func.func @_kv_proj_kernel(%arg0: i32, %arg1: memref<16x32xbf16, #tpu.memory_space<vmem>>, %arg2: memref<16x32xbf16, #tpu.memory_space<vmem>>, %arg3: memref<32x32xbf16, #tpu.memory_space<vmem>>, %arg4: memref<1x32xf32, #tpu.memory_space<vmem>>, %arg5: memref<32x32xbf16, #tpu.memory_space<vmem>>, %arg6: memref<1x32xf32, #tpu.memory_space<vmem>>, %arg7: memref<16x32xbf16, #tpu.memory_space<vmem>>, %arg8: memref<16x32xbf16, #tpu.memory_space<vmem>>) attributes {dimension_semantics = [#tpu.dimension_semantics<parallel>], iteration_bounds = array<i64: 1>, scalar_prefetch = 0 : i64, scratch_operands = 0 : i64, tpu.core_type = #tpu.core_type<tc>, window_params = [{transform_indices = @transform_0, window_bounds = array<i64: 16, 32>}, {transform_indices = @transform_1, window_bounds = array<i64: 16, 32>}, {pipeline_mode = #tpu.pipeline_mode<synchronous>, transform_indices = @transform_2, window_bounds = array<i64: 32, 32>}, {pipeline_mode = #tpu.pipeline_mode<synchronous>, transform_indices = @transform_3, window_bounds = array<i64: 1, 32>}, {pipeline_mode = #tpu.pipeline_mode<synchronous>, transform_indices = @transform_4, window_bounds = array<i64: 32, 32>}, {pipeline_mode = #tpu.pipeline_mode<synchronous>, transform_indices = @transform_5, window_bounds = array<i64: 1, 32>}, {transform_indices = @transform_6, window_bounds = array<i64: 16, 32>}, {transform_indices = @transform_7, window_bounds = array<i64: 16, 32>}]} {
    %c0 = arith.constant 0 : index
    %c0_0 = arith.constant 0 : index
    %0 = vector.load %arg1[%c0, %c0_0] : memref<16x32xbf16, #tpu.memory_space<vmem>>, vector<16x32xbf16>
    %c0_1 = arith.constant 0 : index
    %c0_2 = arith.constant 0 : index
    %1 = vector.load %arg2[%c0_1, %c0_2] : memref<16x32xbf16, #tpu.memory_space<vmem>>, vector<16x32xbf16>
    %2 = arith.addf %0, %1 : vector<16x32xbf16>
    %c0_3 = arith.constant 0 : index
    %c0_4 = arith.constant 0 : index
    %3 = vector.load %arg1[%c0_3, %c0_4] : memref<16x32xbf16, #tpu.memory_space<vmem>>, vector<16x32xbf16>
    %c0_5 = arith.constant 0 : index
    %c0_6 = arith.constant 0 : index
    %4 = vector.load %arg3[%c0_5, %c0_6] : memref<32x32xbf16, #tpu.memory_space<vmem>>, vector<32x32xbf16>
    %cst = arith.constant dense<0.000000e+00> : vector<16x32xf32>
    %5 = tpu.matmul %2, %4, %cst {dimension_numbers = #tpu.dot_dimension_numbers<[1], [0], [0], [1], [0, 0, 1, 1], [], []>} : vector<16x32xbf16>, vector<32x32xbf16>, vector<16x32xf32> -> vector<16x32xf32>
    %c0_7 = arith.constant 0 : index
    %c0_8 = arith.constant 0 : index
    %6 = vector.load %arg4[%c0_7, %c0_8] : memref<1x32xf32, #tpu.memory_space<vmem>>, vector<1x32xf32>
    %7 = vector.broadcast %6 : vector<1x32xf32> to vector<16x32xf32>
    %8 = arith.addf %5, %7 : vector<16x32xf32>
    %9 = arith.truncf %8 : vector<16x32xf32> to vector<16x32xbf16>
    %c0_9 = arith.constant 0 : index
    %c0_10 = arith.constant 0 : index
    %10 = vector.load %arg7[%c0_9, %c0_10] : memref<16x32xbf16, #tpu.memory_space<vmem>>, vector<16x32xbf16>
    tpu.vector_store %arg7[%c0_9, %c0_10], %9 {strides = array<i32>} : memref<16x32xbf16, #tpu.memory_space<vmem>>, vector<16x32xbf16>,
    %c0_11 = arith.constant 0 : index
    %c0_12 = arith.constant 0 : index
    %11 = vector.load %arg5[%c0_11, %c0_12] : memref<32x32xbf16, #tpu.memory_space<vmem>>, vector<32x32xbf16>
    %cst_13 = arith.constant dense<0.000000e+00> : vector<16x32xf32>
    %12 = tpu.matmul %3, %11, %cst_13 {dimension_numbers = #tpu.dot_dimension_numbers<[1], [0], [0], [1], [0, 0, 1, 1], [], []>} : vector<16x32xbf16>, vector<32x32xbf16>, vector<16x32xf32> -> vector<16x32xf32>
    %c0_14 = arith.constant 0 : index
    %c0_15 = arith.constant 0 : index
    %13 = vector.load %arg6[%c0_14, %c0_15] : memref<1x32xf32, #tpu.memory_space<vmem>>, vector<1x32xf32>
    %14 = vector.broadcast %13 : vector<1x32xf32> to vector<16x32xf32>
    %15 = arith.addf %12, %14 : vector<16x32xf32>
    %16 = arith.truncf %15 : vector<16x32xf32> to vector<16x32xbf16>
    %c0_16 = arith.constant 0 : index
    %c0_17 = arith.constant 0 : index
    %17 = vector.load %arg8[%c0_16, %c0_17] : memref<16x32xbf16, #tpu.memory_space<vmem>>, vector<16x32xbf16>
    tpu.vector_store %arg8[%c0_16, %c0_17], %16 {strides = array<i32>} : memref<16x32xbf16, #tpu.memory_space<vmem>>, vector<16x32xbf16>,
    return
  }
  func.func @transform_0(%arg0: i32) -> (i32, i32) {
    %c0_i32 = arith.constant 0 : i32
    %c0_i32_0 = arith.constant 0 : i32
    return %arg0, %c0_i32 : i32, i32
  }
  func.func @transform_1(%arg0: i32) -> (i32, i32) {
    %c0_i32 = arith.constant 0 : i32
    %c0_i32_0 = arith.constant 0 : i32
    return %arg0, %c0_i32 : i32, i32
  }
  func.func @transform_2(%arg0: i32) -> (i32, i32) {
    %c0_i32 = arith.constant 0 : i32
    %c0_i32_0 = arith.constant 0 : i32
    %c0_i32_1 = arith.constant 0 : i32
    return %c0_i32, %c0_i32_0 : i32, i32
  }
  func.func @transform_3(%arg0: i32) -> (i32, i32) {
    %c0_i32 = arith.constant 0 : i32
    %c0_i32_0 = arith.constant 0 : i32
    %c0_i32_1 = arith.constant 0 : i32
    return %c0_i32, %c0_i32_0 : i32, i32
  }
  func.func @transform_4(%arg0: i32) -> (i32, i32) {
    %c0_i32 = arith.constant 0 : i32
    %c0_i32_0 = arith.constant 0 : i32
    %c0_i32_1 = arith.constant 0 : i32
    return %c0_i32, %c0_i32_0 : i32, i32
  }
  func.func @transform_5(%arg0: i32) -> (i32, i32) {
    %c0_i32 = arith.constant 0 : i32
    %c0_i32_0 = arith.constant 0 : i32
    %c0_i32_1 = arith.constant 0 : i32
    return %c0_i32, %c0_i32_0 : i32, i32
  }
  func.func @transform_6(%arg0: i32) -> (i32, i32) {
    %c0_i32 = arith.constant 0 : i32
    %c0_i32_0 = arith.constant 0 : i32
    return %arg0, %c0_i32 : i32, i32
  }
  func.func @transform_7(%arg0: i32) -> (i32, i32) {
    %c0_i32 = arith.constant 0 : i32
    %c0_i32_0 = arith.constant 0 : i32
    return %arg0, %c0_i32 : i32, i32
  }
}

module attributes {stable_mosaic.version = 11 : i64} {
  func.func @_linear_kernel(%arg0: i32, %arg1: memref<16x32xbf16, #tpu.memory_space<vmem>>, %arg2: memref<16x32xbf16, #tpu.memory_space<vmem>>, %arg3: memref<32x32xbf16, #tpu.memory_space<vmem>>, %arg4: memref<1x32xf32, #tpu.memory_space<vmem>>, %arg5: memref<16x32xbf16, #tpu.memory_space<vmem>>) attributes {dimension_semantics = [#tpu.dimension_semantics<parallel>], iteration_bounds = array<i64: 1>, scalar_prefetch = 0 : i64, scratch_operands = 0 : i64, tpu.core_type = #tpu.core_type<tc>, window_params = [{transform_indices = @transform_0, window_bounds = array<i64: 16, 32>}, {transform_indices = @transform_1, window_bounds = array<i64: 16, 32>}, {pipeline_mode = #tpu.pipeline_mode<synchronous>, transform_indices = @transform_2, window_bounds = array<i64: 32, 32>}, {pipeline_mode = #tpu.pipeline_mode<synchronous>, transform_indices = @transform_3, window_bounds = array<i64: 1, 32>}, {transform_indices = @transform_4, window_bounds = array<i64: 16, 32>}]} {
    %c0 = arith.constant 0 : index
    %c0_0 = arith.constant 0 : index
    %0 = vector.load %arg1[%c0, %c0_0] : memref<16x32xbf16, #tpu.memory_space<vmem>>, vector<16x32xbf16>
    %c0_1 = arith.constant 0 : index
    %c0_2 = arith.constant 0 : index
    %1 = vector.load %arg2[%c0_1, %c0_2] : memref<16x32xbf16, #tpu.memory_space<vmem>>, vector<16x32xbf16>
    %2 = arith.addf %0, %1 : vector<16x32xbf16>
    %c0_3 = arith.constant 0 : index
    %c0_4 = arith.constant 0 : index
    %3 = vector.load %arg3[%c0_3, %c0_4] : memref<32x32xbf16, #tpu.memory_space<vmem>>, vector<32x32xbf16>
    %cst = arith.constant dense<0.000000e+00> : vector<16x32xf32>
    %4 = tpu.matmul %2, %3, %cst {dimension_numbers = #tpu.dot_dimension_numbers<[1], [0], [0], [1], [0, 0, 1, 1], [], []>} : vector<16x32xbf16>, vector<32x32xbf16>, vector<16x32xf32> -> vector<16x32xf32>
    %c0_5 = arith.constant 0 : index
    %c0_6 = arith.constant 0 : index
    %5 = vector.load %arg4[%c0_5, %c0_6] : memref<1x32xf32, #tpu.memory_space<vmem>>, vector<1x32xf32>
    %6 = vector.broadcast %5 : vector<1x32xf32> to vector<16x32xf32>
    %7 = arith.addf %4, %6 : vector<16x32xf32>
    %8 = arith.truncf %7 : vector<16x32xf32> to vector<16x32xbf16>
    %c0_7 = arith.constant 0 : index
    %c0_8 = arith.constant 0 : index
    %9 = vector.load %arg5[%c0_7, %c0_8] : memref<16x32xbf16, #tpu.memory_space<vmem>>, vector<16x32xbf16>
    tpu.vector_store %arg5[%c0_7, %c0_8], %8 {strides = array<i32>} : memref<16x32xbf16, #tpu.memory_space<vmem>>, vector<16x32xbf16>,
    return
  }
  func.func @transform_0(%arg0: i32) -> (i32, i32) {
    %c0_i32 = arith.constant 0 : i32
    %c0_i32_0 = arith.constant 0 : i32
    return %arg0, %c0_i32 : i32, i32
  }
  func.func @transform_1(%arg0: i32) -> (i32, i32) {
    %c0_i32 = arith.constant 0 : i32
    %c0_i32_0 = arith.constant 0 : i32
    return %arg0, %c0_i32 : i32, i32
  }
  func.func @transform_2(%arg0: i32) -> (i32, i32) {
    %c0_i32 = arith.constant 0 : i32
    %c0_i32_0 = arith.constant 0 : i32
    %c0_i32_1 = arith.constant 0 : i32
    return %c0_i32, %c0_i32_0 : i32, i32
  }
  func.func @transform_3(%arg0: i32) -> (i32, i32) {
    %c0_i32 = arith.constant 0 : i32
    %c0_i32_0 = arith.constant 0 : i32
    %c0_i32_1 = arith.constant 0 : i32
    return %c0_i32, %c0_i32_0 : i32, i32
  }
  func.func @transform_4(%arg0: i32) -> (i32, i32) {
    %c0_i32 = arith.constant 0 : i32
    %c0_i32_0 = arith.constant 0 : i32
    return %arg0, %c0_i32 : i32, i32
  }
}

module attributes {stable_mosaic.version = 11 : i64} {
  func.func @_linear_kernel(%arg0: i32, %arg1: memref<128x32xbf16, #tpu.memory_space<vmem>>, %arg2: memref<32x32xbf16, #tpu.memory_space<vmem>>, %arg3: memref<1x32xf32, #tpu.memory_space<vmem>>, %arg4: memref<128x32xbf16, #tpu.memory_space<vmem>>) attributes {dimension_semantics = [#tpu.dimension_semantics<parallel>], iteration_bounds = array<i64: 1>, scalar_prefetch = 0 : i64, scratch_operands = 0 : i64, tpu.core_type = #tpu.core_type<tc>, window_params = [{transform_indices = @transform_0, window_bounds = array<i64: 128, 32>}, {pipeline_mode = #tpu.pipeline_mode<synchronous>, transform_indices = @transform_1, window_bounds = array<i64: 32, 32>}, {pipeline_mode = #tpu.pipeline_mode<synchronous>, transform_indices = @transform_2, window_bounds = array<i64: 1, 32>}, {transform_indices = @transform_3, window_bounds = array<i64: 128, 32>}]} {
    %c0 = arith.constant 0 : index
    %c0_0 = arith.constant 0 : index
    %0 = vector.load %arg1[%c0, %c0_0] : memref<128x32xbf16, #tpu.memory_space<vmem>>, vector<128x32xbf16>
    %c0_1 = arith.constant 0 : index
    %c0_2 = arith.constant 0 : index
    %1 = vector.load %arg2[%c0_1, %c0_2] : memref<32x32xbf16, #tpu.memory_space<vmem>>, vector<32x32xbf16>
    %cst = arith.constant dense<0.000000e+00> : vector<128x32xf32>
    %2 = tpu.matmul %0, %1, %cst {dimension_numbers = #tpu.dot_dimension_numbers<[1], [0], [0], [1], [0, 0, 1, 1], [], []>} : vector<128x32xbf16>, vector<32x32xbf16>, vector<128x32xf32> -> vector<128x32xf32>
    %c0_3 = arith.constant 0 : index
    %c0_4 = arith.constant 0 : index
    %3 = vector.load %arg3[%c0_3, %c0_4] : memref<1x32xf32, #tpu.memory_space<vmem>>, vector<1x32xf32>
    %4 = vector.broadcast %3 : vector<1x32xf32> to vector<128x32xf32>
    %5 = arith.addf %2, %4 : vector<128x32xf32>
    %6 = arith.truncf %5 : vector<128x32xf32> to vector<128x32xbf16>
    %c0_5 = arith.constant 0 : index
    %c0_6 = arith.constant 0 : index
    %7 = vector.load %arg4[%c0_5, %c0_6] : memref<128x32xbf16, #tpu.memory_space<vmem>>, vector<128x32xbf16>
    tpu.vector_store %arg4[%c0_5, %c0_6], %6 {strides = array<i32>} : memref<128x32xbf16, #tpu.memory_space<vmem>>, vector<128x32xbf16>,
    return
  }
  func.func @transform_0(%arg0: i32) -> (i32, i32) {
    %c0_i32 = arith.constant 0 : i32
    %c0_i32_0 = arith.constant 0 : i32
    return %arg0, %c0_i32 : i32, i32
  }
  func.func @transform_1(%arg0: i32) -> (i32, i32) {
    %c0_i32 = arith.constant 0 : i32
    %c0_i32_0 = arith.constant 0 : i32
    %c0_i32_1 = arith.constant 0 : i32
    return %c0_i32, %c0_i32_0 : i32, i32
  }
  func.func @transform_2(%arg0: i32) -> (i32, i32) {
    %c0_i32 = arith.constant 0 : i32
    %c0_i32_0 = arith.constant 0 : i32
    %c0_i32_1 = arith.constant 0 : i32
    return %c0_i32, %c0_i32_0 : i32, i32
  }
  func.func @transform_3(%arg0: i32) -> (i32, i32) {
    %c0_i32 = arith.constant 0 : i32
    %c0_i32_0 = arith.constant 0 : i32
    return %arg0, %c0_i32 : i32, i32
  }
}

module attributes {stable_mosaic.version = 11 : i64} {
  func.func @_ln_kernel(%arg0: i32, %arg1: memref<512x8xbf16, #tpu.memory_space<vmem>>, %arg2: memref<1x8xf32, #tpu.memory_space<vmem>>, %arg3: memref<1x8xf32, #tpu.memory_space<vmem>>, %arg4: memref<512x8xbf16, #tpu.memory_space<vmem>>) attributes {dimension_semantics = [#tpu.dimension_semantics<parallel>], iteration_bounds = array<i64: 1>, scalar_prefetch = 0 : i64, scratch_operands = 0 : i64, tpu.core_type = #tpu.core_type<tc>, window_params = [{transform_indices = @transform_0, window_bounds = array<i64: 512, 8>}, {pipeline_mode = #tpu.pipeline_mode<synchronous>, transform_indices = @transform_1, window_bounds = array<i64: 1, 8>}, {pipeline_mode = #tpu.pipeline_mode<synchronous>, transform_indices = @transform_2, window_bounds = array<i64: 1, 8>}, {transform_indices = @transform_3, window_bounds = array<i64: 512, 8>}]} {
    %c0 = arith.constant 0 : index
    %c0_0 = arith.constant 0 : index
    %0 = vector.load %arg1[%c0, %c0_0] : memref<512x8xbf16, #tpu.memory_space<vmem>>, vector<512x8xbf16>
    %1 = arith.extf %0 : vector<512x8xbf16> to vector<512x8xf32>
    %cst = arith.constant dense<0.000000e+00> : vector<512xf32>
    %2 = vector.multi_reduction <add>, %1, %cst [1] : vector<512x8xf32> to vector<512xf32>
    %3 = vector.shape_cast %2 : vector<512xf32> to vector<512x1xf32>
    %cst_1 = arith.constant 8.000000e+00 : f32
    %4 = vector.broadcast %cst_1 : f32 to vector<512x1xf32>
    %5 = arith.divf %3, %4 : vector<512x1xf32>
    %6 = vector.broadcast %5 : vector<512x1xf32> to vector<512x8xf32>
    %7 = arith.subf %1, %6 : vector<512x8xf32>
    %8 = arith.mulf %7, %7 : vector<512x8xf32>
    %cst_2 = arith.constant dense<0.000000e+00> : vector<512xf32>
    %9 = vector.multi_reduction <add>, %8, %cst_2 [1] : vector<512x8xf32> to vector<512xf32>
    %10 = vector.shape_cast %9 : vector<512xf32> to vector<512x1xf32>
    %cst_3 = arith.constant 8.000000e+00 : f32
    %11 = vector.broadcast %cst_3 : f32 to vector<512x1xf32>
    %12 = arith.divf %10, %11 : vector<512x1xf32>
    %cst_4 = arith.constant 9.99999997E-7 : f32
    %13 = vector.broadcast %cst_4 : f32 to vector<512x1xf32>
    %14 = arith.addf %12, %13 : vector<512x1xf32>
    %15 = math.rsqrt %14 : vector<512x1xf32>
    %16 = vector.broadcast %15 : vector<512x1xf32> to vector<512x8xf32>
    %17 = arith.mulf %7, %16 : vector<512x8xf32>
    %c0_5 = arith.constant 0 : index
    %c0_6 = arith.constant 0 : index
    %18 = vector.load %arg2[%c0_5, %c0_6] : memref<1x8xf32, #tpu.memory_space<vmem>>, vector<1x8xf32>
    %19 = vector.broadcast %18 : vector<1x8xf32> to vector<512x8xf32>
    %20 = arith.mulf %17, %19 : vector<512x8xf32>
    %c0_7 = arith.constant 0 : index
    %c0_8 = arith.constant 0 : index
    %21 = vector.load %arg3[%c0_7, %c0_8] : memref<1x8xf32, #tpu.memory_space<vmem>>, vector<1x8xf32>
    %22 = vector.broadcast %21 : vector<1x8xf32> to vector<512x8xf32>
    %23 = arith.addf %20, %22 : vector<512x8xf32>
    %24 = arith.truncf %23 : vector<512x8xf32> to vector<512x8xbf16>
    %c0_9 = arith.constant 0 : index
    %c0_10 = arith.constant 0 : index
    %25 = vector.load %arg4[%c0_9, %c0_10] : memref<512x8xbf16, #tpu.memory_space<vmem>>, vector<512x8xbf16>
    tpu.vector_store %arg4[%c0_9, %c0_10], %24 {strides = array<i32>} : memref<512x8xbf16, #tpu.memory_space<vmem>>, vector<512x8xbf16>,
    return
  }
  func.func @transform_0(%arg0: i32) -> (i32, i32) {
    %c0_i32 = arith.constant 0 : i32
    %c0_i32_0 = arith.constant 0 : i32
    return %arg0, %c0_i32 : i32, i32
  }
  func.func @transform_1(%arg0: i32) -> (i32, i32) {
    %c0_i32 = arith.constant 0 : i32
    %c0_i32_0 = arith.constant 0 : i32
    %c0_i32_1 = arith.constant 0 : i32
    return %c0_i32, %c0_i32_0 : i32, i32
  }
  func.func @transform_2(%arg0: i32) -> (i32, i32) {
    %c0_i32 = arith.constant 0 : i32
    %c0_i32_0 = arith.constant 0 : i32
    %c0_i32_1 = arith.constant 0 : i32
    return %c0_i32, %c0_i32_0 : i32, i32
  }
  func.func @transform_3(%arg0: i32) -> (i32, i32) {
    %c0_i32 = arith.constant 0 : i32
    %c0_i32_0 = arith.constant 0 : i32
    return %arg0, %c0_i32 : i32, i32
  }
}

module attributes {stable_mosaic.version = 11 : i64} {
  func.func @_linear_kernel(%arg0: i32, %arg1: memref<512x8xbf16, #tpu.memory_space<vmem>>, %arg2: memref<8x16xbf16, #tpu.memory_space<vmem>>, %arg3: memref<1x16xf32, #tpu.memory_space<vmem>>, %arg4: memref<512x16xbf16, #tpu.memory_space<vmem>>) attributes {dimension_semantics = [#tpu.dimension_semantics<parallel>], iteration_bounds = array<i64: 1>, scalar_prefetch = 0 : i64, scratch_operands = 0 : i64, tpu.core_type = #tpu.core_type<tc>, window_params = [{transform_indices = @transform_0, window_bounds = array<i64: 512, 8>}, {pipeline_mode = #tpu.pipeline_mode<synchronous>, transform_indices = @transform_1, window_bounds = array<i64: 8, 16>}, {pipeline_mode = #tpu.pipeline_mode<synchronous>, transform_indices = @transform_2, window_bounds = array<i64: 1, 16>}, {transform_indices = @transform_3, window_bounds = array<i64: 512, 16>}]} {
    %c0 = arith.constant 0 : index
    %c0_0 = arith.constant 0 : index
    %0 = vector.load %arg1[%c0, %c0_0] : memref<512x8xbf16, #tpu.memory_space<vmem>>, vector<512x8xbf16>
    %c0_1 = arith.constant 0 : index
    %c0_2 = arith.constant 0 : index
    %1 = vector.load %arg2[%c0_1, %c0_2] : memref<8x16xbf16, #tpu.memory_space<vmem>>, vector<8x16xbf16>
    %cst = arith.constant dense<0.000000e+00> : vector<512x16xf32>
    %2 = tpu.matmul %0, %1, %cst {dimension_numbers = #tpu.dot_dimension_numbers<[1], [0], [0], [1], [0, 0, 1, 1], [], []>} : vector<512x8xbf16>, vector<8x16xbf16>, vector<512x16xf32> -> vector<512x16xf32>
    %c0_3 = arith.constant 0 : index
    %c0_4 = arith.constant 0 : index
    %3 = vector.load %arg3[%c0_3, %c0_4] : memref<1x16xf32, #tpu.memory_space<vmem>>, vector<1x16xf32>
    %4 = vector.broadcast %3 : vector<1x16xf32> to vector<512x16xf32>
    %5 = arith.addf %2, %4 : vector<512x16xf32>
    %6 = arith.truncf %5 : vector<512x16xf32> to vector<512x16xbf16>
    %c0_5 = arith.constant 0 : index
    %c0_6 = arith.constant 0 : index
    %7 = vector.load %arg4[%c0_5, %c0_6] : memref<512x16xbf16, #tpu.memory_space<vmem>>, vector<512x16xbf16>
    tpu.vector_store %arg4[%c0_5, %c0_6], %6 {strides = array<i32>} : memref<512x16xbf16, #tpu.memory_space<vmem>>, vector<512x16xbf16>,
    return
  }
  func.func @transform_0(%arg0: i32) -> (i32, i32) {
    %c0_i32 = arith.constant 0 : i32
    %c0_i32_0 = arith.constant 0 : i32
    return %arg0, %c0_i32 : i32, i32
  }
  func.func @transform_1(%arg0: i32) -> (i32, i32) {
    %c0_i32 = arith.constant 0 : i32
    %c0_i32_0 = arith.constant 0 : i32
    %c0_i32_1 = arith.constant 0 : i32
    return %c0_i32, %c0_i32_0 : i32, i32
  }
  func.func @transform_2(%arg0: i32) -> (i32, i32) {
    %c0_i32 = arith.constant 0 : i32
    %c0_i32_0 = arith.constant 0 : i32
    %c0_i32_1 = arith.constant 0 : i32
    return %c0_i32, %c0_i32_0 : i32, i32
  }
  func.func @transform_3(%arg0: i32) -> (i32, i32) {
    %c0_i32 = arith.constant 0 : i32
    %c0_i32_0 = arith.constant 0 : i32
    return %arg0, %c0_i32 : i32, i32
  }
}

module attributes {stable_mosaic.version = 11 : i64} {
  func.func @_hyper_mlp_kernel(%arg0: i32, %arg1: memref<1x2x32xbf16, #tpu.memory_space<vmem>>, %arg2: memref<1x32x32xbf16, #tpu.memory_space<vmem>>, %arg3: memref<1x1x32xf32, #tpu.memory_space<vmem>>, %arg4: memref<1x32x32xbf16, #tpu.memory_space<vmem>>, %arg5: memref<1x1x32xf32, #tpu.memory_space<vmem>>, %arg6: memref<1x32x4xbf16, #tpu.memory_space<vmem>>, %arg7: memref<1x1x4xf32, #tpu.memory_space<vmem>>, %arg8: memref<1x2x4xbf16, #tpu.memory_space<vmem>>) attributes {dimension_semantics = [#tpu.dimension_semantics<parallel>], iteration_bounds = array<i64: 4>, scalar_prefetch = 0 : i64, scratch_operands = 0 : i64, tpu.core_type = #tpu.core_type<tc>, window_params = [{transform_indices = @transform_0, window_bounds = array<i64: 1, 2, 32>}, {transform_indices = @transform_1, window_bounds = array<i64: 1, 32, 32>}, {transform_indices = @transform_2, window_bounds = array<i64: 1, 1, 32>}, {transform_indices = @transform_3, window_bounds = array<i64: 1, 32, 32>}, {transform_indices = @transform_4, window_bounds = array<i64: 1, 1, 32>}, {transform_indices = @transform_5, window_bounds = array<i64: 1, 32, 4>}, {transform_indices = @transform_6, window_bounds = array<i64: 1, 1, 4>}, {transform_indices = @transform_7, window_bounds = array<i64: 1, 2, 4>}]} {
    %c0 = arith.constant 0 : index
    %c0_0 = arith.constant 0 : index
    %c0_1 = arith.constant 0 : index
    %0 = vector.load %arg1[%c0, %c0_0, %c0_1] : memref<1x2x32xbf16, #tpu.memory_space<vmem>>, vector<1x2x32xbf16>
    %1 = vector.shape_cast %0 : vector<1x2x32xbf16> to vector<2x32xbf16>
    %c0_2 = arith.constant 0 : index
    %c0_3 = arith.constant 0 : index
    %c0_4 = arith.constant 0 : index
    %2 = vector.load %arg2[%c0_2, %c0_3, %c0_4] : memref<1x32x32xbf16, #tpu.memory_space<vmem>>, vector<1x32x32xbf16>
    %3 = vector.shape_cast %2 : vector<1x32x32xbf16> to vector<32x32xbf16>
    %cst = arith.constant dense<0.000000e+00> : vector<2x32xf32>
    %4 = tpu.matmul %1, %3, %cst {dimension_numbers = #tpu.dot_dimension_numbers<[1], [0], [0], [1], [0, 0, 1, 1], [], []>} : vector<2x32xbf16>, vector<32x32xbf16>, vector<2x32xf32> -> vector<2x32xf32>
    %c0_5 = arith.constant 0 : index
    %c0_6 = arith.constant 0 : index
    %c0_7 = arith.constant 0 : index
    %5 = vector.load %arg3[%c0_5, %c0_6, %c0_7] : memref<1x1x32xf32, #tpu.memory_space<vmem>>, vector<1x1x32xf32>
    %6 = vector.shape_cast %5 : vector<1x1x32xf32> to vector<1x32xf32>
    %7 = vector.broadcast %6 : vector<1x32xf32> to vector<2x32xf32>
    %8 = arith.addf %4, %7 : vector<2x32xf32>
    %cst_8 = arith.constant 0.000000e+00 : f32
    %9 = vector.broadcast %cst_8 : f32 to vector<2x32xf32>
    %10 = arith.maximumf %8, %9 : vector<2x32xf32>
    %11 = arith.truncf %10 : vector<2x32xf32> to vector<2x32xbf16>
    %c0_9 = arith.constant 0 : index
    %c0_10 = arith.constant 0 : index
    %c0_11 = arith.constant 0 : index
    %12 = vector.load %arg4[%c0_9, %c0_10, %c0_11] : memref<1x32x32xbf16, #tpu.memory_space<vmem>>, vector<1x32x32xbf16>
    %13 = vector.shape_cast %12 : vector<1x32x32xbf16> to vector<32x32xbf16>
    %cst_12 = arith.constant dense<0.000000e+00> : vector<2x32xf32>
    %14 = tpu.matmul %11, %13, %cst_12 {dimension_numbers = #tpu.dot_dimension_numbers<[1], [0], [0], [1], [0, 0, 1, 1], [], []>} : vector<2x32xbf16>, vector<32x32xbf16>, vector<2x32xf32> -> vector<2x32xf32>
    %c0_13 = arith.constant 0 : index
    %c0_14 = arith.constant 0 : index
    %c0_15 = arith.constant 0 : index
    %15 = vector.load %arg5[%c0_13, %c0_14, %c0_15] : memref<1x1x32xf32, #tpu.memory_space<vmem>>, vector<1x1x32xf32>
    %16 = vector.shape_cast %15 : vector<1x1x32xf32> to vector<1x32xf32>
    %17 = vector.broadcast %16 : vector<1x32xf32> to vector<2x32xf32>
    %18 = arith.addf %14, %17 : vector<2x32xf32>
    %cst_16 = arith.constant 0.000000e+00 : f32
    %19 = vector.broadcast %cst_16 : f32 to vector<2x32xf32>
    %20 = arith.maximumf %18, %19 : vector<2x32xf32>
    %21 = arith.truncf %20 : vector<2x32xf32> to vector<2x32xbf16>
    %c0_17 = arith.constant 0 : index
    %c0_18 = arith.constant 0 : index
    %c0_19 = arith.constant 0 : index
    %22 = vector.load %arg6[%c0_17, %c0_18, %c0_19] : memref<1x32x4xbf16, #tpu.memory_space<vmem>>, vector<1x32x4xbf16>
    %23 = vector.shape_cast %22 : vector<1x32x4xbf16> to vector<32x4xbf16>
    %cst_20 = arith.constant dense<0.000000e+00> : vector<2x4xf32>
    %24 = tpu.matmul %21, %23, %cst_20 {dimension_numbers = #tpu.dot_dimension_numbers<[1], [0], [0], [1], [0, 0, 1, 1], [], []>} : vector<2x32xbf16>, vector<32x4xbf16>, vector<2x4xf32> -> vector<2x4xf32>
    %c0_21 = arith.constant 0 : index
    %c0_22 = arith.constant 0 : index
    %c0_23 = arith.constant 0 : index
    %25 = vector.load %arg7[%c0_21, %c0_22, %c0_23] : memref<1x1x4xf32, #tpu.memory_space<vmem>>, vector<1x1x4xf32>
    %26 = vector.shape_cast %25 : vector<1x1x4xf32> to vector<1x4xf32>
    %27 = vector.broadcast %26 : vector<1x4xf32> to vector<2x4xf32>
    %28 = arith.addf %24, %27 : vector<2x4xf32>
    %29 = arith.truncf %28 : vector<2x4xf32> to vector<2x4xbf16>
    %c0_24 = arith.constant 0 : index
    %c0_25 = arith.constant 0 : index
    %c0_26 = arith.constant 0 : index
    %30 = vector.load %arg8[%c0_24, %c0_25, %c0_26] : memref<1x2x4xbf16, #tpu.memory_space<vmem>>, vector<1x2x4xbf16>
    %31 = vector.shape_cast %30 : vector<1x2x4xbf16> to vector<2x4xbf16>
    %32 = vector.shape_cast %29 : vector<2x4xbf16> to vector<1x2x4xbf16>
    tpu.vector_store %arg8[%c0_24, %c0_25, %c0_26], %32 {strides = array<i32>} : memref<1x2x4xbf16, #tpu.memory_space<vmem>>, vector<1x2x4xbf16>,
    return
  }
  func.func @transform_0(%arg0: i32) -> (i32, i32, i32) {
    %c0_i32 = arith.constant 0 : i32
    %c0_i32_0 = arith.constant 0 : i32
    %c0_i32_1 = arith.constant 0 : i32
    return %arg0, %c0_i32, %c0_i32_0 : i32, i32, i32
  }
  func.func @transform_1(%arg0: i32) -> (i32, i32, i32) {
    %c0_i32 = arith.constant 0 : i32
    %c0_i32_0 = arith.constant 0 : i32
    %c0_i32_1 = arith.constant 0 : i32
    return %arg0, %c0_i32, %c0_i32_0 : i32, i32, i32
  }
  func.func @transform_2(%arg0: i32) -> (i32, i32, i32) {
    %c0_i32 = arith.constant 0 : i32
    %c0_i32_0 = arith.constant 0 : i32
    %c0_i32_1 = arith.constant 0 : i32
    return %arg0, %c0_i32, %c0_i32_0 : i32, i32, i32
  }
  func.func @transform_3(%arg0: i32) -> (i32, i32, i32) {
    %c0_i32 = arith.constant 0 : i32
    %c0_i32_0 = arith.constant 0 : i32
    %c0_i32_1 = arith.constant 0 : i32
    return %arg0, %c0_i32, %c0_i32_0 : i32, i32, i32
  }
  func.func @transform_4(%arg0: i32) -> (i32, i32, i32) {
    %c0_i32 = arith.constant 0 : i32
    %c0_i32_0 = arith.constant 0 : i32
    %c0_i32_1 = arith.constant 0 : i32
    return %arg0, %c0_i32, %c0_i32_0 : i32, i32, i32
  }
  func.func @transform_5(%arg0: i32) -> (i32, i32, i32) {
    %c0_i32 = arith.constant 0 : i32
    %c0_i32_0 = arith.constant 0 : i32
    %c0_i32_1 = arith.constant 0 : i32
    return %arg0, %c0_i32, %c0_i32_0 : i32, i32, i32
  }
  func.func @transform_6(%arg0: i32) -> (i32, i32, i32) {
    %c0_i32 = arith.constant 0 : i32
    %c0_i32_0 = arith.constant 0 : i32
    %c0_i32_1 = arith.constant 0 : i32
    return %arg0, %c0_i32, %c0_i32_0 : i32, i32, i32
  }
  func.func @transform_7(%arg0: i32) -> (i32, i32, i32) {
    %c0_i32 = arith.constant 0 : i32
    %c0_i32_0 = arith.constant 0 : i32
    %c0_i32_1 = arith.constant 0 : i32
    return %arg0, %c0_i32, %c0_i32_0 : i32, i32, i32
  }
}

module attributes {stable_mosaic.version = 11 : i64} {
  func.func @_mask_matmul_kernel(%arg0: i32, %arg1: i32, %arg2: memref<1x4x4xbf16, #tpu.memory_space<vmem>>, %arg3: memref<1x1024x4xbf16, #tpu.memory_space<vmem>>, %arg4: memref<1x4x1024xf32, #tpu.memory_space<vmem>>) attributes {dimension_semantics = [#tpu.dimension_semantics<parallel>, #tpu.dimension_semantics<parallel>], iteration_bounds = array<i64: 2, 1>, scalar_prefetch = 0 : i64, scratch_operands = 0 : i64, tpu.core_type = #tpu.core_type<tc>, window_params = [{transform_indices = @transform_0, window_bounds = array<i64: 1, 4, 4>}, {transform_indices = @transform_1, window_bounds = array<i64: 1, 1024, 4>}, {transform_indices = @transform_2, window_bounds = array<i64: 1, 4, 1024>}]} {
    %c0 = arith.constant 0 : index
    %c0_0 = arith.constant 0 : index
    %c0_1 = arith.constant 0 : index
    %0 = vector.load %arg2[%c0, %c0_0, %c0_1] : memref<1x4x4xbf16, #tpu.memory_space<vmem>>, vector<1x4x4xbf16>
    %1 = vector.shape_cast %0 : vector<1x4x4xbf16> to vector<4x4xbf16>
    %c0_2 = arith.constant 0 : index
    %c0_3 = arith.constant 0 : index
    %c0_4 = arith.constant 0 : index
    %2 = vector.load %arg3[%c0_2, %c0_3, %c0_4] : memref<1x1024x4xbf16, #tpu.memory_space<vmem>>, vector<1x1024x4xbf16>
    %3 = vector.shape_cast %2 : vector<1x1024x4xbf16> to vector<1024x4xbf16>
    %cst = arith.constant dense<0.000000e+00> : vector<4x1024xf32>
    %4 = tpu.matmul %1, %3, %cst {dimension_numbers = #tpu.dot_dimension_numbers<[1], [1], [0], [0], [0, 0, 1, 0], [], []>} : vector<4x4xbf16>, vector<1024x4xbf16>, vector<4x1024xf32> -> vector<4x1024xf32>
    %c0_5 = arith.constant 0 : index
    %c0_6 = arith.constant 0 : index
    %c0_7 = arith.constant 0 : index
    %5 = vector.load %arg4[%c0_5, %c0_6, %c0_7] : memref<1x4x1024xf32, #tpu.memory_space<vmem>>, vector<1x4x1024xf32>
    %6 = vector.shape_cast %5 : vector<1x4x1024xf32> to vector<4x1024xf32>
    %7 = vector.shape_cast %4 : vector<4x1024xf32> to vector<1x4x1024xf32>
    tpu.vector_store %arg4[%c0_5, %c0_6, %c0_7], %7 {strides = array<i32>} : memref<1x4x1024xf32, #tpu.memory_space<vmem>>, vector<1x4x1024xf32>,
    return
  }
  func.func @transform_0(%arg0: i32, %arg1: i32) -> (i32, i32, i32) {
    %c0_i32 = arith.constant 0 : i32
    %c0_i32_0 = arith.constant 0 : i32
    %c0_i32_1 = arith.constant 0 : i32
    return %arg0, %c0_i32, %c0_i32_0 : i32, i32, i32
  }
  func.func @transform_1(%arg0: i32, %arg1: i32) -> (i32, i32, i32) {
    %c0_i32 = arith.constant 0 : i32
    %c0_i32_0 = arith.constant 0 : i32
    return %arg0, %arg1, %c0_i32 : i32, i32, i32
  }
  func.func @transform_2(%arg0: i32, %arg1: i32) -> (i32, i32, i32) {
    %c0_i32 = arith.constant 0 : i32
    %c0_i32_0 = arith.constant 0 : i32
    return %arg0, %c0_i32, %arg1 : i32, i32, i32
  }
}

module attributes {stable_mosaic.version = 11 : i64} {
  func.func @_matmul_kernel(%arg0: i32, %arg1: memref<64x32xf32, #tpu.memory_space<vmem>>, %arg2: memref<32x128xf32, #tpu.memory_space<vmem>>, %arg3: memref<64x128xf32, #tpu.memory_space<vmem>>) attributes {dimension_semantics = [#tpu.dimension_semantics<parallel>], iteration_bounds = array<i64: 1>, scalar_prefetch = 0 : i64, scratch_operands = 0 : i64, tpu.core_type = #tpu.core_type<tc>, window_params = [{transform_indices = @transform_0, window_bounds = array<i64: 64, 32>}, {pipeline_mode = #tpu.pipeline_mode<synchronous>, transform_indices = @transform_1, window_bounds = array<i64: 32, 128>}, {transform_indices = @transform_2, window_bounds = array<i64: 64, 128>}]} {
    %c0 = arith.constant 0 : index
    %c0_0 = arith.constant 0 : index
    %0 = vector.load %arg1[%c0, %c0_0] : memref<64x32xf32, #tpu.memory_space<vmem>>, vector<64x32xf32>
    %c0_1 = arith.constant 0 : index
    %c0_2 = arith.constant 0 : index
    %1 = vector.load %arg2[%c0_1, %c0_2] : memref<32x128xf32, #tpu.memory_space<vmem>>, vector<32x128xf32>
    %cst = arith.constant dense<0.000000e+00> : vector<64x128xf32>
    %2 = tpu.matmul %0, %1, %cst {dimension_numbers = #tpu.dot_dimension_numbers<[1], [0], [0], [1], [0, 0, 1, 1], [], []>} : vector<64x32xf32>, vector<32x128xf32>, vector<64x128xf32> -> vector<64x128xf32>
    %c0_3 = arith.constant 0 : index
    %c0_4 = arith.constant 0 : index
    %3 = vector.load %arg3[%c0_3, %c0_4] : memref<64x128xf32, #tpu.memory_space<vmem>>, vector<64x128xf32>
    tpu.vector_store %arg3[%c0_3, %c0_4], %2 {strides = array<i32>} : memref<64x128xf32, #tpu.memory_space<vmem>>, vector<64x128xf32>,
    return
  }
  func.func @transform_0(%arg0: i32) -> (i32, i32) {
    %c0_i32 = arith.constant 0 : i32
    %c0_i32_0 = arith.constant 0 : i32
    return %arg0, %c0_i32 : i32, i32
  }
  func.func @transform_1(%arg0: i32) -> (i32, i32) {
    %c0_i32 = arith.constant 0 : i32
    %c0_i32_0 = arith.constant 0 : i32
    %c0_i32_1 = arith.constant 0 : i32
    return %c0_i32, %c0_i32_0 : i32, i32
  }
  func.func @transform_2(%arg0: i32) -> (i32, i32) {
    %c0_i32 = arith.constant 0 : i32
    %c0_i32_0 = arith.constant 0 : i32
    return %arg0, %c0_i32 : i32, i32
  }
}

module attributes {stable_mosaic.version = 11 : i64} {
  func.func @_left_bmm_kernel(%arg0: i32, %arg1: i32, %arg2: memref<128x32xf32, #tpu.memory_space<vmem>>, %arg3: memref<1x32x128xf32, #tpu.memory_space<vmem>>, %arg4: memref<1x128x128xf32, #tpu.memory_space<vmem>>) attributes {dimension_semantics = [#tpu.dimension_semantics<parallel>, #tpu.dimension_semantics<parallel>], iteration_bounds = array<i64: 2, 1>, scalar_prefetch = 0 : i64, scratch_operands = 0 : i64, tpu.core_type = #tpu.core_type<tc>, window_params = [{pipeline_mode = #tpu.pipeline_mode<synchronous>, transform_indices = @transform_0, window_bounds = array<i64: 128, 32>}, {transform_indices = @transform_1, window_bounds = array<i64: 1, 32, 128>}, {transform_indices = @transform_2, window_bounds = array<i64: 1, 128, 128>}]} {
    %c0 = arith.constant 0 : index
    %c0_0 = arith.constant 0 : index
    %0 = vector.load %arg2[%c0, %c0_0] : memref<128x32xf32, #tpu.memory_space<vmem>>, vector<128x32xf32>
    %c0_1 = arith.constant 0 : index
    %c0_2 = arith.constant 0 : index
    %c0_3 = arith.constant 0 : index
    %1 = vector.load %arg3[%c0_1, %c0_2, %c0_3] : memref<1x32x128xf32, #tpu.memory_space<vmem>>, vector<1x32x128xf32>
    %2 = vector.shape_cast %1 : vector<1x32x128xf32> to vector<32x128xf32>
    %cst = arith.constant dense<0.000000e+00> : vector<128x128xf32>
    %3 = tpu.matmul %0, %2, %cst {dimension_numbers = #tpu.dot_dimension_numbers<[1], [0], [0], [1], [0, 0, 1, 1], [], []>} : vector<128x32xf32>, vector<32x128xf32>, vector<128x128xf32> -> vector<128x128xf32>
    %c0_4 = arith.constant 0 : index
    %c0_5 = arith.constant 0 : index
    %c0_6 = arith.constant 0 : index
    %4 = vector.load %arg4[%c0_4, %c0_5, %c0_6] : memref<1x128x128xf32, #tpu.memory_space<vmem>>, vector<1x128x128xf32>
    %5 = vector.shape_cast %4 : vector<1x128x128xf32> to vector<128x128xf32>
    %6 = vector.shape_cast %3 : vector<128x128xf32> to vector<1x128x128xf32>
    tpu.vector_store %arg4[%c0_4, %c0_5, %c0_6], %6 {strides = array<i32>} : memref<1x128x128xf32, #tpu.memory_space<vmem>>, vector<1x128x128xf32>,
    return
  }
  func.func @transform_0(%arg0: i32, %arg1: i32) -> (i32, i32) {
    %c0_i32 = arith.constant 0 : i32
    %c0_i32_0 = arith.constant 0 : i32
    %c0_i32_1 = arith.constant 0 : i32
    return %c0_i32, %c0_i32_0 : i32, i32
  }
  func.func @transform_1(%arg0: i32, %arg1: i32) -> (i32, i32, i32) {
    %c0_i32 = arith.constant 0 : i32
    %c0_i32_0 = arith.constant 0 : i32
    return %arg0, %c0_i32, %arg1 : i32, i32, i32
  }
  func.func @transform_2(%arg0: i32, %arg1: i32) -> (i32, i32, i32) {
    %c0_i32 = arith.constant 0 : i32
    %c0_i32_0 = arith.constant 0 : i32
    return %arg0, %c0_i32, %arg1 : i32, i32, i32
  }
}

module attributes {stable_mosaic.version = 11 : i64} {
  func.func @_matmul_kernel(%arg0: i32, %arg1: memref<214x128xf32, #tpu.memory_space<vmem>>, %arg2: memref<128x120xf32, #tpu.memory_space<vmem>>, %arg3: memref<214x120xf32, #tpu.memory_space<vmem>>) attributes {dimension_semantics = [#tpu.dimension_semantics<parallel>], iteration_bounds = array<i64: 1>, scalar_prefetch = 0 : i64, scratch_operands = 0 : i64, tpu.core_type = #tpu.core_type<tc>, window_params = [{transform_indices = @transform_0, window_bounds = array<i64: 214, 128>}, {pipeline_mode = #tpu.pipeline_mode<synchronous>, transform_indices = @transform_1, window_bounds = array<i64: 128, 120>}, {transform_indices = @transform_2, window_bounds = array<i64: 214, 120>}]} {
    %c0 = arith.constant 0 : index
    %c0_0 = arith.constant 0 : index
    %0 = vector.load %arg1[%c0, %c0_0] : memref<214x128xf32, #tpu.memory_space<vmem>>, vector<214x128xf32>
    %c0_1 = arith.constant 0 : index
    %c0_2 = arith.constant 0 : index
    %1 = vector.load %arg2[%c0_1, %c0_2] : memref<128x120xf32, #tpu.memory_space<vmem>>, vector<128x120xf32>
    %cst = arith.constant dense<0.000000e+00> : vector<214x120xf32>
    %2 = tpu.matmul %0, %1, %cst {dimension_numbers = #tpu.dot_dimension_numbers<[1], [0], [0], [1], [0, 0, 1, 1], [], []>} : vector<214x128xf32>, vector<128x120xf32>, vector<214x120xf32> -> vector<214x120xf32>
    %c0_3 = arith.constant 0 : index
    %c0_4 = arith.constant 0 : index
    %3 = vector.load %arg3[%c0_3, %c0_4] : memref<214x120xf32, #tpu.memory_space<vmem>>, vector<214x120xf32>
    tpu.vector_store %arg3[%c0_3, %c0_4], %2 {strides = array<i32>} : memref<214x120xf32, #tpu.memory_space<vmem>>, vector<214x120xf32>,
    return
  }
  func.func @transform_0(%arg0: i32) -> (i32, i32) {
    %c0_i32 = arith.constant 0 : i32
    %c0_i32_0 = arith.constant 0 : i32
    return %arg0, %c0_i32 : i32, i32
  }
  func.func @transform_1(%arg0: i32) -> (i32, i32) {
    %c0_i32 = arith.constant 0 : i32
    %c0_i32_0 = arith.constant 0 : i32
    %c0_i32_1 = arith.constant 0 : i32
    return %c0_i32, %c0_i32_0 : i32, i32
  }
  func.func @transform_2(%arg0: i32) -> (i32, i32) {
    %c0_i32 = arith.constant 0 : i32
    %c0_i32_0 = arith.constant 0 : i32
    return %arg0, %c0_i32 : i32, i32
  }
}

module attributes {stable_mosaic.version = 11 : i64} {
  func.func @_left_bmm_kernel(%arg0: i32, %arg1: i32, %arg2: memref<100x107xf32, #tpu.memory_space<vmem>>, %arg3: memref<1x107x120xf32, #tpu.memory_space<vmem>>, %arg4: memref<1x100x120xf32, #tpu.memory_space<vmem>>) attributes {dimension_semantics = [#tpu.dimension_semantics<parallel>, #tpu.dimension_semantics<parallel>], iteration_bounds = array<i64: 2, 1>, scalar_prefetch = 0 : i64, scratch_operands = 0 : i64, tpu.core_type = #tpu.core_type<tc>, window_params = [{pipeline_mode = #tpu.pipeline_mode<synchronous>, transform_indices = @transform_0, window_bounds = array<i64: 100, 107>}, {transform_indices = @transform_1, window_bounds = array<i64: 1, 107, 120>}, {transform_indices = @transform_2, window_bounds = array<i64: 1, 100, 120>}]} {
    %c0 = arith.constant 0 : index
    %c0_0 = arith.constant 0 : index
    %0 = vector.load %arg2[%c0, %c0_0] : memref<100x107xf32, #tpu.memory_space<vmem>>, vector<100x107xf32>
    %c0_1 = arith.constant 0 : index
    %c0_2 = arith.constant 0 : index
    %c0_3 = arith.constant 0 : index
    %1 = vector.load %arg3[%c0_1, %c0_2, %c0_3] : memref<1x107x120xf32, #tpu.memory_space<vmem>>, vector<1x107x120xf32>
    %2 = vector.shape_cast %1 : vector<1x107x120xf32> to vector<107x120xf32>
    %cst = arith.constant dense<0.000000e+00> : vector<100x120xf32>
    %3 = tpu.matmul %0, %2, %cst {dimension_numbers = #tpu.dot_dimension_numbers<[1], [0], [0], [1], [0, 0, 1, 1], [], []>} : vector<100x107xf32>, vector<107x120xf32>, vector<100x120xf32> -> vector<100x120xf32>
    %c0_4 = arith.constant 0 : index
    %c0_5 = arith.constant 0 : index
    %c0_6 = arith.constant 0 : index
    %4 = vector.load %arg4[%c0_4, %c0_5, %c0_6] : memref<1x100x120xf32, #tpu.memory_space<vmem>>, vector<1x100x120xf32>
    %5 = vector.shape_cast %4 : vector<1x100x120xf32> to vector<100x120xf32>
    %6 = vector.shape_cast %3 : vector<100x120xf32> to vector<1x100x120xf32>
    tpu.vector_store %arg4[%c0_4, %c0_5, %c0_6], %6 {strides = array<i32>} : memref<1x100x120xf32, #tpu.memory_space<vmem>>, vector<1x100x120xf32>,
    return
  }
  func.func @transform_0(%arg0: i32, %arg1: i32) -> (i32, i32) {
    %c0_i32 = arith.constant 0 : i32
    %c0_i32_0 = arith.constant 0 : i32
    %c0_i32_1 = arith.constant 0 : i32
    return %c0_i32, %c0_i32_0 : i32, i32
  }
  func.func @transform_1(%arg0: i32, %arg1: i32) -> (i32, i32, i32) {
    %c0_i32 = arith.constant 0 : i32
    %c0_i32_0 = arith.constant 0 : i32
    return %arg0, %c0_i32, %arg1 : i32, i32, i32
  }
  func.func @transform_2(%arg0: i32, %arg1: i32) -> (i32, i32, i32) {
    %c0_i32 = arith.constant 0 : i32
    %c0_i32_0 = arith.constant 0 : i32
    return %arg0, %c0_i32, %arg1 : i32, i32, i32
  }
}

</mosaic_0001>

<bundles_post_ra>
// kernel: _lambda_.48
= control target key start
LH: loop header
LB: loop body
LE: loop exit
PB: predicated region body
PF: predicated region fallthrough
CT: control target
= control target key end

     0   :  { %v130_v0 = vmov 0.0   ;;  %vm131_vm0 = vmmov 0   ;;  %vm45_vm1 = vcmask 261120   ;;  %vm98_vm2 = vcmask 257024   ;;  %s170_s1 = inlined_call_operand.vmem [shape: bf16[32,32], index: 1, kind: input, shape index: {}]   ;;  %s171_s0 = inlined_call_operand.vmem [shape: bf16[16,32], index: 0, kind: input, shape index: {}]   ;;  %s172_s2 = inlined_call_operand.vmem [shape: f32[1,32], index: 2, kind: input, shape index: {}]   ;;  %s173_s3 = inlined_call_operand.vmem [shape: bf16[16,32], index: 3, kind: output, shape index: {}]  }
   0x1   :  { %117 = vmatprep.subr.bf16.mxu0 %v130_v0  ;;  %v127_v1 = vld [vmem:[%s170_s1] sm:$0xff]   ;;  %121 = vmatprep.mubr.msk.bf16.mxu0 %vm131_vm0, %v130_v0  ;;  %v128_v2 = vld [vmem:[%s170_s1 + $0x8] sm:$0xff]  }
   0x2   :  { %118 = vmatpush3.bf16.msra.mxu0 %v127_v1  ;;  %v129_v3 = vld [vmem:[%s171_s0] sm:$0xff]  }
   0x3   :  { %119 = vmatprep.subr.bf16.mxu0 %v130_v0  ;;  %v105_v4 = vld [vmem:[%s172_s2] ss:$0 sm:$0xff] }
   0x6   :  { %120 = vmatpush3.bf16.msra.mxu0 %v128_v2 }
   0x9   :  { %122 = vmatmul.mubr.msk.bf16.vlgmr.msra.gmra.mrb[0].mxu0 %vm45_vm1, %v129_v3 }
  0xdc   :  { %v83_v5 = vpop.f32.mrb[0].mxu0 }
  0xdd   :  { %v84_v6 = vadd.f32 %v105_v4, %v83_v5  ;;  %v123_v7 = vpop.f32.mrb[1].mxu0 }
  0xde   :  { %v86_v8 = vpop.f32.mrb[2].mxu0 }
  0xdf   :  { %v112_v9 = vpack.c.bf16 %v84_v6, %v84_v6  ;;  %v87_v10 = vadd.f32 %v105_v4, %v86_v8  ;;  %v124_v11 = vpop.f32.mrb[3].mxu0 }
  0xe1   :  { %99 = vst.msk [vmem:[%s173_s3] sm:$0xf] %vm98_vm2, %v112_v9  ;;  %v113_v12 = vpack.c.bf16 %v87_v10, %v87_v10 }
  0xe3   :  { %100 = vst.msk [vmem:[%s173_s3 + $0x4] sm:$0xf] %vm98_vm2, %v113_v12 }

// kernel: _lambda_.49
= control target key start
LH: loop header
LB: loop body
LE: loop exit
PB: predicated region body
PF: predicated region fallthrough
CT: control target
= control target key end

     0   :  { %v237_v0 = vmov 0.0   ;;  %vm238_vm0 = vmmov 0   ;;  %vm53_vm1 = vcmask 261120   ;;  %vm106_vm2 = vcmask 257024   ;;  %s311_s1 = inlined_call_operand.vmem [shape: bf16[32,32], index: 1, kind: input, shape index: {}]   ;;  %s312_s3 = inlined_call_operand.vmem [shape: bf16[32,32], index: 3, kind: input, shape index: {}]   ;;  %s313_s0 = inlined_call_operand.vmem [shape: bf16[16,32], index: 0, kind: input, shape index: {}]   ;;  %s314_s2 = inlined_call_operand.vmem [shape: f32[1,32], index: 2, kind: input, shape index: {}]   ;;  %s315_s4 = inlined_call_operand.vmem [shape: f32[1,32], index: 4, kind: input, shape index: {}]   ;;  %s316_s5 = inlined_call_operand.vmem [shape: bf16[16,32], index: 5, kind: output, shape index: {0}]   ;;  %s317_s6 = inlined_call_operand.vmem [shape: bf16[16,32], index: 6, kind: output, shape index: {1}]  }
   0x1   :  { %214 = vmatprep.subr.bf16.mxu0 %v237_v0  ;;  %222 = vmatprep.subr.bf16.mxu1 %v237_v0  ;;  %v232_v1 = vld [vmem:[%s311_s1] sm:$0xff]   ;;  %v234_v3 = vld [vmem:[%s311_s1 + $0x8] sm:$0xff]  }
   0x2   :  { %v233_v2 = vld [vmem:[%s312_s3] sm:$0xff]   ;;  %218 = vmatprep.mubr.msk.bf16.mxu0 %vm238_vm0, %v237_v0  ;;  %226 = vmatprep.mubr.msk.bf16.mxu1 %vm238_vm0, %v237_v0  ;;  %v235_v4 = vld [vmem:[%s312_s3 + $0x8] sm:$0xff]  }
   0x3   :  { %215 = vmatpush3.bf16.msra.mxu0 %v232_v1  ;;  %223 = vmatpush3.bf16.msra.mxu1 %v233_v2  ;;  %v236_v5 = vld [vmem:[%s313_s0] sm:$0xff]  }
   0x4   :  { %216 = vmatprep.subr.bf16.mxu0 %v237_v0  ;;  %224 = vmatprep.subr.bf16.mxu1 %v237_v0  ;;  %v191_v6 = vld [vmem:[%s314_s2] ss:$0 sm:$0xff] }
   0x5   :  { %v198_v7 = vld [vmem:[%s315_s4] ss:$0 sm:$0xff] }
   0x7   :  { %217 = vmatpush3.bf16.msra.mxu0 %v234_v3  ;;  %225 = vmatpush3.bf16.msra.mxu1 %v235_v4 }
   0xa   :  { %219 = vmatmul.mubr.msk.bf16.vlgmr.msra.gmra.mrb[0].mxu0 %vm53_vm1, %v236_v5  ;;  %227 = vmatmul.mubr.msk.bf16.vlgmr.msra.gmra.mrb[0].mxu1 %vm53_vm1, %v236_v5 }
  0xdd   :  { %v91_v8 = vpop.f32.mrb[0].mxu0  ;;  %v166_v10 = vpop.f32.mrb[0].mxu1 }
  0xde   :  { %v92_v9 = vadd.f32 %v191_v6, %v91_v8  ;;  %v220_v11 = vpop.f32.mrb[1].mxu0  ;;  %v167_v12 = vadd.f32 %v198_v7, %v166_v10  ;;  %v228_v13 = vpop.f32.mrb[1].mxu1 }
  0xdf   :  { %v94_v14 = vpop.f32.mrb[2].mxu0  ;;  %v169_v17 = vpop.f32.mrb[2].mxu1 }
  0xe0   :  { %v204_v15 = vpack.c.bf16 %v92_v9, %v92_v9  ;;  %v95_v16 = vadd.f32 %v191_v6, %v94_v14  ;;  %v221_v18 = vpop.f32.mrb[3].mxu0  ;;  %v206_v19 = vpack.c.bf16 %v167_v12, %v167_v12  ;;  %v170_v20 = vadd.f32 %v198_v7, %v169_v17  ;;  %v229_v21 = vpop.f32.mrb[3].mxu1 }
  0xe2   :  { %107 = vst.msk [vmem:[%s316_s5] sm:$0xf] %vm106_vm2, %v204_v15  ;;  %v205_v22 = vpack.c.bf16 %v95_v16, %v95_v16  ;;  %181 = vst.msk [vmem:[%s317_s6] sm:$0xf] %vm106_vm2, %v206_v19  ;;  %v207_v23 = vpack.c.bf16 %v170_v20, %v170_v20 }
  0xe4   :  { %108 = vst.msk [vmem:[%s316_s5 + $0x4] sm:$0xf] %vm106_vm2, %v205_v22  ;;  %182 = vst.msk [vmem:[%s317_s6 + $0x4] sm:$0xf] %vm106_vm2, %v207_v23 }

// kernel: _lambda_.50
= control target key start
LH: loop header
LB: loop body
LE: loop exit
PB: predicated region body
PF: predicated region fallthrough
CT: control target
= control target key end

     0   :  { %s706_s12 = smov 0   ;;  %s708_s13 = smov 0   ;;  %s771_s0 = inlined_call_operand.vmem [shape: bf16[2,8,32], index: 0, kind: input, shape index: {}]   ;;  %s772_s1 = inlined_call_operand.vmem [shape: bf16[2,8,32], index: 1, kind: input, shape index: {}]   ;;  %s773_s2 = inlined_call_operand.vmem [shape: bf16[2,8,32], index: 2, kind: input, shape index: {}]   ;;  %s774_s3 = inlined_call_operand.vmem [shape: bf16[2,8,32], index: 3, kind: output, shape index: {}]  }
   0x1   :  { %s710_s14 = smov 0  }
   0x2 LB: > { %s25_s15 = sadd.s32 1, %s676_s13  ;;  %p573_p0 = scmp.ge.s32.totalorder %s680_s14, 1  ;;  %s680_s14 = sphi %s710_s14, %s13_s14   ;;  %s676_s13 = sphi %s708_s13, %s776_s13   ;;  %s672_s12 = sphi %s706_s12, %s775_s12  }
   0x3   : > { %p27_p1 = scmp.ge.s32.totalorder %s25_s15, 2  ;;  %p173_p2 = scmp.lt.s32.totalorder %s680_s14, 3 }
   0x5   : > { %s778_s15 = smov (%p27_p1, %s25_s15), 0  ;;  %p174_p3 = pnand %p573_p0, %p173_p2 }
   0x6   : > { %p209_p4 = scmp.lt.s32.totalorder (!%p174_p3), %s672_s12, 1  ;;  %v682_v0 = vmov (!%p174_p3), 0.0   ;;  %vm683_vm0 = vmmov (!%p174_p3), 0   ;;  %vm235_vm1 = vcmask (!%p174_p3), 130048   ;;  %vm283_vm2 = vcmask (!%p174_p3), 64512   ;;  %s684_s23 = smov (!%p174_p3), 112  }
   0x7   : > { %177 = sbr.rel (%p174_p3) target bundleno = 1425 (0x591), region = 32  ;;  %595 = vmatprep.subr.bf16.mxu0 (!%p174_p3), %v682_v0  ;;  %597 = vmatprep.mubr.msk.bf16.mxu0 (!%p174_p3), %vm683_vm0, %v682_v0  ;;  %vm299_vm3 = vcmask (!%p174_p3), 1043456   ;;  %s685_s27 = smov (!%p174_p3), 16   ;;  %vm469_vm4 = vcmask (!%p174_p3), 257024  }
   0x8   : > { %601 = vmatprep.subr.bf16.mxu1 (!%p174_p3), %v682_v0  ;;  %603 = vmatprep.mubr.msk.bf16.mxu1 (!%p174_p3), %vm683_vm0, %v682_v0 }
   0xe   : > { %s780_s12 = smov (!%p209_p4, %s672_s12), 1 }
   0xf   : > { %s726_s16 = sshll.u32 %s780_s12, 2 }
  0x10   : > { %s219_s19 = scalar_lea.vmem %s772_s1, %s726_s16  ;;  %s215_s22 = scalar_lea.vmem %s771_s0, %s726_s16 }
  0x11   : > { %v233_v1 = vld [vmem:[%s219_s19] sm:$0xf]  ;;  %s223_s26 = scalar_lea.vmem %s773_s2, %s726_s16  ;;  %s230_s30 = scalar_lea.vmem %s774_s3, %s726_s16 }
  0x12   : > { %v240_v2 = vsel %vm235_vm1, %v233_v1, 0  ;;  %v232_v3 = vld [vmem:[%s215_s22] sm:$0xf]  ;;  %v581_v10 = vcombine.low %v233_v1, %v233_v1 }
  0x13   : > { %596 = vmatpush3.bf16.xpose.msra.mxu0 %v240_v2  ;;  %v580_v11 = vcombine.low %v232_v3, %v232_v3  ;;  %v234_v17 = vld [vmem:[%s223_s26] sm:$0xf] }
  0x14   : > { %613 = vmatprep.subr.bf16.mxu0 %v682_v0  ;;  %351 = vrot.lane.b32.xlu1 %v581_v10, %s684_s23  ;;  %v301_v18 = vsel %vm299_vm3, %v234_v17, 0  ;;  %v583_v36 = vcombine.low %v234_v17, %v234_v17 }
  0x15   : > { %602 = vmatpush3.bf16.msra.mxu1 %v301_v18 }
  0x16   : > { %607 = vmatprep.subr.bf16.mxu1 %v682_v0 }
  0x18   : > { %346 = vrot.lane.b32.xlu1 %v580_v11, %s684_s23 }
  0x1a   : > { %598 = vmatmul.mubr.msk.bf16.vlgmr.msra.gmra.mrb[0].mxu0 %vm235_vm1, %v232_v3 }
  0x1b   : > { %615 = vmatprep.mubr.msk.bf16.mxu0 %vm683_vm0, %v682_v0 }
  0x86   : > { %v352_v21 = vpop.permute.xlu1 %351 }
  0x87   : > { %v357_v23 = vsel %vm235_vm1, %v352_v21, 0 }
  0x8a   : > { %v347_v25 = vpop.permute.xlu1 %346 }
  0xed   : > { %v276_v4 = vpop.f32.mrb[0].mxu0 }
  0xee   : > { %v282_v5 = vmul.f32 0.25, %v276_v4  ;;  %v599_v6 = vpop.f32.mrb[1].mxu0 }
  0xef   : > { %v279_v7 = vpop.f32.mrb[2].mxu0 }
  0xf0   : > { %v600_v8 = vpop.f32.mrb[3].mxu0  ;;  %v284_v9 = vsel %vm283_vm2, %v282_v5, -inf }
  0xf1   : > { %285 = vmax.xlane.f32.xlu0 %v284_v9 }
 0x17e   : > { %v286_v12 = vpop.xlane.xlu0 %285 }
 0x17f   : > { %v287_v13 = vsub.f32 %v282_v5, %v286_v12 }
 0x181   : > { %v288_v14 = vmul.f32 1.442695, %v287_v13 }
 0x183   : > { %650 = vpow2.f32 %v288_v14 }
 0x18d   : > { %v651_v15 = vpop.eup %650 }
 0x18e   : > { %v290_v16 = vsel %vm283_vm2, %v651_v15, 0.0 }
 0x18f   : > { %291 = vadd.xlane.f32.xlu0 %v290_v16 }
 0x21c   : > { %v292_v19 = vpop.xlane.xlu0 %291 }
 0x21d   : > { %652 = vrcp.f32 %v292_v19 }
 0x227   : > { %v653_v20 = vpop.eup %652 }
 0x228   : > { %v294_v22 = vmul.f32 %v653_v20, %v651_v15 }
 0x22a   : > { %v295_v24 = vpack.c.bf16 %v294_v22, %v294_v22 }
 0x22c   : > { %604 = vmatmul.mubr.msk.bf16.vlgmr.msra.gmra.mrb[0].mxu1 %vm283_vm2, %v295_v24 }
 0x22d   : > { %608 = vmatpush3.bf16.xpose.msra.mxu1 %v357_v23  ;;  %609 = vmatprep.mubr.msk.bf16.mxu1 %vm683_vm0, %v682_v0 }
 0x234   : > { %610 = vmatmul.mubr.msk.bf16.vlgmr.msra.gmra.mrb[4].mxu1 %vm235_vm1, %v347_v25 }
 0x2ff   : > { %v337_v26 = vpop.f32.mrb[0].mxu1 }
 0x300   : > { %v605_v27 = vpop.f32.mrb[1].mxu1 }
 0x301   : > { %v340_v28 = vpop.f32.mrb[2].mxu1 }
 0x302   : > { %v606_v29 = vpop.f32.mrb[3].mxu1 }
 0x307   : > { %v393_v30 = vpop.f32.mrb[4].mxu1 }
 0x308   : > { %v399_v31 = vmul.f32 0.25, %v393_v30  ;;  %v611_v32 = vpop.f32.mrb[5].mxu1 }
 0x309   : > { %v396_v33 = vpop.f32.mrb[6].mxu1 }
 0x30a   : > { %v612_v34 = vpop.f32.mrb[7].mxu1  ;;  %v400_v35 = vsel %vm283_vm2, %v399_v31, -inf }
 0x30b   : > { %401 = vmax.xlane.f32.xlu0 %v400_v35 }
 0x321   : > { %415 = vrot.lane.b32.xlu0 %v583_v36, %s684_s23 }
 0x398   : > { %v402_v37 = vpop.xlane.xlu0 %401 }
 0x399   : > { %v403_v38 = vsub.f32 %v399_v31, %v402_v37 }
 0x39b   : > { %v404_v39 = vmul.f32 1.442695, %v403_v38 }
 0x39c   : > { %v416_v42 = vpop.permute.xlu0 %415 }
 0x39d   : > { %654 = vpow2.f32 %v404_v39  ;;  %v421_v43 = vsel %vm299_vm3, %v416_v42, 0 }
 0x39e   : > { %614 = vmatpush3.bf16.msra.mxu0 %v421_v43 }
 0x3a7   : > { %v655_v40 = vpop.eup %654 }
 0x3a8   : > { %v406_v41 = vsel %vm283_vm2, %v655_v40, 0.0 }
 0x3a9   : > { %407 = vadd.xlane.f32.xlu1 %v406_v41 }
 0x436   : > { %v408_v44 = vpop.xlane.xlu1 %407 }
 0x437   : > { %656 = vrcp.f32 %v408_v44 }
 0x441   : > { %v657_v45 = vpop.eup %656 }
 0x442   : > { %v410_v46 = vmul.f32 %v657_v45, %v655_v40 }
 0x444   : > { %v411_v47 = vpack.c.bf16 %v410_v46, %v410_v46 }
 0x446   : > { %616 = vmatmul.mubr.msk.bf16.vlgmr.msra.gmra.mrb[4].mxu0 %vm283_vm2, %v411_v47 }
 0x519   : > { %v457_v48 = vpop.f32.mrb[4].mxu0 }
 0x51a   : > { %464 = vrot.lane.b32.xlu0 %v457_v48, %s685_s27  ;;  %v617_v49 = vpop.f32.mrb[5].mxu0 }
 0x51b   : > { %v460_v50 = vpop.f32.mrb[6].mxu0 }
 0x51c   : > { %v618_v51 = vpop.f32.mrb[7].mxu0 }
 0x58c   : > { %v465_v52 = vpop.permute.xlu0 %464 }
 0x58d   : > { %v467_v53 = vsel %vm235_vm1, %v337_v26, %v465_v52 }
 0x58e   : > { %v468_v54 = vpack.c.bf16 %v467_v53, %v467_v53 }
 0x590   : > { %470 = vst.msk [vmem:[%s230_s30] sm:$0xf] %vm469_vm4, %v468_v54 }
 0x591 PF: > { %s13_s14 = sadd.s32 1, %s680_s14   ;;  %s775_s12 = smov %s676_s13 }
 0x592   : > { %p10_p5 = scmp.ge.s32.totalorder %s13_s14, 4   ;;  %s776_s13 = smov %s778_s15 }
 0x594   :  { %12 = sbr.rel (!%p10_p5) target bundleno = 2 (0x2), region = 68 }

// kernel: _lambda_.52
= control target key start
LH: loop header
LB: loop body
LE: loop exit
PB: predicated region body
PF: predicated region fallthrough
CT: control target
= control target key end

     0   :  { %vm18_vm0 = vcmask 261120   ;;  %vm72_vm1 = vcmask 257024   ;;  %s132_s0 = inlined_call_operand.vmem [shape: bf16[16,32], index: 0, kind: input, shape index: {}]   ;;  %s133_s1 = inlined_call_operand.vmem [shape: f32[1,32], index: 1, kind: input, shape index: {}]   ;;  %s134_s2 = inlined_call_operand.vmem [shape: f32[1,32], index: 2, kind: input, shape index: {}]   ;;  %s135_s3 = inlined_call_operand.vmem [shape: bf16[16,32], index: 3, kind: output, shape index: {}]  }
   0x1   :  { %v86_v0 = vld [vmem:[%s132_s0] sm:$0xff]  }
   0x2   :  { %v87_v1 = vunpack.c.l.bf16 %v86_v0  ;;  %v88_v2 = vunpack.c.h.bf16 %v86_v0  ;;  %v79_v22 = vld [vmem:[%s133_s1] ss:$0 sm:$0xff] }
   0x3   :  { %v80_v24 = vld [vmem:[%s134_s2] ss:$0 sm:$0xff] }
   0x4   :  { %v19_v3 = vsel %vm18_vm0, %v87_v1, 0.0  ;;  %v22_v4 = vsel %vm18_vm0, %v88_v2, 0.0 }
   0x5   :  { %20 = vadd.xlane.f32.xlu0 %v19_v3 }
   0x9   :  { %23 = vadd.xlane.f32.xlu0 %v22_v4 }
  0x92   :  { %v21_v5 = vpop.xlane.xlu0 %20 }
  0x93   :  { %v26_v6 = vmul.f32 0.03125, %v21_v5 }
  0x95   :  { %v28_v7 = vsub.f32 %v87_v1, %v26_v6 }
  0x96   :  { %v24_v8 = vpop.xlane.xlu0 %23 }
  0x97   :  { %v27_v9 = vmul.f32 0.03125, %v24_v8  ;;  %v30_v10 = vmul.f32 %v28_v7, %v28_v7 }
  0x99   :  { %v29_v11 = vsub.f32 %v88_v2, %v27_v9  ;;  %v32_v12 = vsel %vm18_vm0, %v30_v10, 0.0 }
  0x9a   :  { %33 = vadd.xlane.f32.xlu1 %v32_v12 }
  0x9b   :  { %v31_v13 = vmul.f32 %v29_v11, %v29_v11 }
  0x9d   :  { %v35_v14 = vsel %vm18_vm0, %v31_v13, 0.0 }
  0x9e   :  { %36 = vadd.xlane.f32.xlu1 %v35_v14 }
 0x127   :  { %v34_v15 = vpop.xlane.xlu1 %33 }
 0x128   :  { %v38_v16 = vmul.f32 0.03125, %v34_v15 }
 0x12a   :  { %v40_v17 = vadd.f32 1e-05, %v38_v16 }
 0x12b   :  { %v37_v18 = vpop.xlane.xlu1 %36 }
 0x12c   :  { %89 = vrsqrt.f32 %v40_v17  ;;  %v39_v19 = vmul.f32 0.03125, %v37_v18 }
 0x12e   :  { %v41_v20 = vadd.f32 1e-05, %v39_v19 }
 0x130   :  { %91 = vrsqrt.f32 %v41_v20 }
 0x136   :  { %v90_v21 = vpop.eup %89 }
 0x137   :  { %v44_v23 = vmul.f32 %v90_v21, %v28_v7 }
 0x139   :  { %v53_v25 = vmul.f32 %v79_v22, %v44_v23 }
 0x13a   :  { %v92_v26 = vpop.eup %91 }
 0x13b   :  { %v62_v27 = vadd.f32 %v80_v24, %v53_v25  ;;  %v45_v28 = vmul.f32 %v92_v26, %v29_v11 }
 0x13d   :  { %v83_v29 = vpack.c.bf16 %v62_v27, %v62_v27  ;;  %v54_v30 = vmul.f32 %v79_v22, %v45_v28 }
 0x13f   :  { %73 = vst.msk [vmem:[%s135_s3] sm:$0xf] %vm72_vm1, %v83_v29  ;;  %v63_v31 = vadd.f32 %v80_v24, %v54_v30 }
 0x141   :  { %v84_v32 = vpack.c.bf16 %v63_v31, %v63_v31 }
 0x143   :  { %74 = vst.msk [vmem:[%s135_s3 + $0x4] sm:$0xf] %vm72_vm1, %v84_v32 }

// kernel: _lambda_.53
= control target key start
LH: loop header
LB: loop body
LE: loop exit
PB: predicated region body
PF: predicated region fallthrough
CT: control target
= control target key end

     0   :  { %v136_v0 = vmov 0.0   ;;  %vm137_vm0 = vmmov 0   ;;  %vm52_vm1 = vcmask 261120   ;;  %vm105_vm2 = vcmask 125952   ;;  %s190_s2 = inlined_call_operand.vmem [shape: bf16[32,16], index: 2, kind: input, shape index: {}]   ;;  %s191_s0 = inlined_call_operand.vmem [shape: bf16[16,32], index: 0, kind: input, shape index: {}]   ;;  %s192_s1 = inlined_call_operand.vmem [shape: bf16[16,32], index: 1, kind: input, shape index: {}]   ;;  %s193_s3 = inlined_call_operand.vmem [shape: f32[1,16], index: 3, kind: input, shape index: {}]   ;;  %s194_s4 = inlined_call_operand.vmem [shape: bf16[16,16], index: 4, kind: output, shape index: {}]  }
   0x1   :  { %124 = vmatprep.subr.bf16.mxu0 %v136_v0  ;;  %v134_v1 = vld [vmem:[%s190_s2] sm:$0xff]   ;;  %128 = vmatprep.mubr.msk.bf16.mxu0 %vm137_vm0, %v136_v0  ;;  %v135_v2 = vld [vmem:[%s190_s2 + $0x8] sm:$0xff]  }
   0x2   :  { %125 = vmatpush3.bf16.msra.mxu0 %v134_v1  ;;  %v18_v3 = vld [vmem:[%s191_s0] sm:$0xf]  ;;  %v19_v4 = vld [vmem:[%s191_s0 + $0x4] sm:$0xf] }
   0x3   :  { %v20_v5 = vld [vmem:[%s192_s1] sm:$0xf]  ;;  %126 = vmatprep.subr.bf16.mxu0 %v136_v0  ;;  %v21_v6 = vld [vmem:[%s192_s1 + $0x4] sm:$0xf] }
   0x4   :  { %v22_v7 = vadd.bf16 %v20_v5, %v18_v3  ;;  %v23_v8 = vadd.bf16 %v21_v6, %v19_v4  ;;  %v112_v10 = vld [vmem:[%s193_s3] ss:$0 sm:$0xff] }
   0x6   :  { %127 = vmatpush3.bf16.msra.mxu0 %v135_v2  ;;  %v113_v9 = vcombine.low %v22_v7, %v23_v8 }
   0x9   :  { %129 = vmatmul.mubr.msk.bf16.vlgmr.msra.gmra.mrb[0].mxu0 %vm52_vm1, %v113_v9 }
  0xdc   :  { %v90_v11 = vpop.f32.mrb[0].mxu0 }
  0xdd   :  { %v91_v12 = vadd.f32 %v112_v10, %v90_v11  ;;  %v130_v13 = vpop.f32.mrb[1].mxu0 }
  0xde   :  { %v93_v14 = vpop.f32.mrb[2].mxu0 }
  0xdf   :  { %v119_v15 = vpack.c.bf16 %v91_v12, %v91_v12  ;;  %v94_v16 = vadd.f32 %v112_v10, %v93_v14  ;;  %v131_v17 = vpop.f32.mrb[3].mxu0 }
  0xe1   :  { %106 = vst.msk [vmem:[%s194_s4] sm:$0xf] %vm105_vm2, %v119_v15  ;;  %v120_v18 = vpack.c.bf16 %v94_v16, %v94_v16 }
  0xe3   :  { %107 = vst.msk [vmem:[%s194_s4 + $0x4] sm:$0xf] %vm105_vm2, %v120_v18 }

// kernel: _lambda_.55
= control target key start
LH: loop header
LB: loop body
LE: loop exit
PB: predicated region body
PF: predicated region fallthrough
CT: control target
= control target key end

     0   :  { %s843_s12 = smov 0   ;;  %s845_s13 = smov 0   ;;  %s948_s0 = inlined_call_operand.vmem [shape: bf16[2,8,16], index: 0, kind: input, shape index: {}]   ;;  %s949_s1 = inlined_call_operand.vmem [shape: bf16[2,64,16], index: 1, kind: input, shape index: {}]   ;;  %s950_s2 = inlined_call_operand.vmem [shape: bf16[2,64,16], index: 2, kind: input, shape index: {}]   ;;  %s951_s3 = inlined_call_operand.vmem [shape: bf16[2,8,16], index: 3, kind: output, shape index: {}]  }
   0x1   :  { %s847_s14 = smov 0  }
   0x2 LB: > { %s25_s15 = sadd.s32 1, %s813_s13  ;;  %p658_p0 = scmp.ge.s32.totalorder %s817_s14, 1  ;;  %s817_s14 = sphi %s847_s14, %s13_s14   ;;  %s813_s13 = sphi %s845_s13, %s953_s13   ;;  %s809_s12 = sphi %s843_s12, %s952_s12  }
   0x3   : > { %p27_p1 = scmp.ge.s32.totalorder %s25_s15, 2  ;;  %p175_p2 = scmp.lt.s32.totalorder %s817_s14, 3 }
   0x5   : > { %s955_s15 = smov (%p27_p1, %s25_s15), 0  ;;  %p176_p3 = pnand %p658_p0, %p175_p2 }
   0x6   : > { %p213_p4 = scmp.lt.s32.totalorder (!%p176_p3), %s809_s12, 1  ;;  %v819_v0 = vmov (!%p176_p3), 0.0   ;;  %vm820_vm0 = vmmov (!%p176_p3), 0   ;;  %vm275_vm1 = vcmask (!%p176_p3), 64512   ;;  %vm332_vm2 = vcmask (!%p176_p3), 523264   ;;  %s821_s24 = smov (!%p176_p3), 120  }
   0x7   : > { %179 = sbr.rel (%p176_p3) target bundleno = 1473 (0x5c1), region = 32  ;;  %702 = vmatprep.subr.bf16.mxu0 (!%p176_p3), %v819_v0  ;;  %710 = vmatprep.mubr.msk.bf16.mxu0 (!%p176_p3), %vm820_vm0, %v819_v0  ;;  %s822_s28 = smov (!%p176_p3), 8   ;;  %vm554_vm3 = vcmask (!%p176_p3), 125952  }
   0x8   : > { %714 = vmatprep.subr.bf16.mxu1 (!%p176_p3), %v819_v0  ;;  %722 = vmatprep.mubr.msk.bf16.mxu1 (!%p176_p3), %vm820_vm0, %v819_v0 }
   0xe   : > { %s957_s12 = smov (!%p213_p4, %s809_s12), 1 }
   0xf   : > { %s680_s16 = sshll.u32 %s957_s12, 5  ;;  %s659_s20 = sshll.u32 %s957_s12, 2 }
  0x10   : > { %s224_s19 = scalar_lea.vmem %s949_s1, %s680_s16  ;;  %s219_s23 = scalar_lea.vmem %s948_s0, %s659_s20 }
  0x11   : > { %v778_v1 = vld [vmem:[%s224_s19] sm:$0xff]   ;;  %v779_v3 = vld [vmem:[%s224_s19 + $0x8] sm:$0xff]   ;;  %v780_v5 = vld [vmem:[%s224_s19 + $0x10] sm:$0xff]   ;;  %s229_s27 = scalar_lea.vmem %s950_s2, %s680_s16  ;;  %s236_s4 = scalar_lea.vmem %s951_s3, %s659_s20 }
  0x12   : > { %v280_v2 = vsel %vm275_vm1, %v778_v1, 0  ;;  %v283_v4 = vsel %vm275_vm1, %v779_v3, 0  ;;  %v286_v6 = vsel %vm275_vm1, %v780_v5, 0  ;;  %v781_v7 = vld [vmem:[%s224_s19 + $0x18] sm:$0xff]   ;;  %v238_v9 = vld [vmem:[%s219_s23] sm:$0xf]  ;;  %417 = vrot.lane.b32.xlu1 %v778_v1, %s821_s24 }
  0x13   : > { %703 = vmatpush3.bf16.xpose.msra.mxu0 %v280_v2  ;;  %v289_v8 = vsel %vm275_vm1, %v781_v7, 0  ;;  %v675_v16 = vcombine.low %v238_v9, %v238_v9  ;;  %v783_v17 = vld [vmem:[%s229_s27] sm:$0xff]   ;;  %v902_v18 = vld [vmem:[%s229_s27 + $0x8] sm:$0xff]   ;;  %v785_v24 = vld [vmem:[%s229_s27 + $0x10] sm:$0xff]  }
  0x14   : > { %704 = vmatprep.subr.bf16.mxu0 %v819_v0  ;;  %715 = vmatpush3.bf16.msra.mxu1 %v783_v17  ;;  %v786_v25 = vld [vmem:[%s229_s27 + $0x18] sm:$0xff]  }
  0x15   : > { %716 = vmatprep.subr.bf16.mxu1 %v819_v0 }
  0x16   : > { %419 = vrot.lane.b32.xlu1 %v779_v3, %s821_s24 }
  0x18   : > { %717 = vmatpush3.bf16.msra.mxu1 %v902_v18 }
  0x19   : > { %718 = vmatprep.subr.bf16.mxu1 %v819_v0 }
  0x1a   : > { %423 = vrot.lane.b32.xlu1 %v781_v7, %s821_s24 }
  0x1b   : > { %705 = vmatpush3.bf16.xpose.msra.mxu0 %v283_v4 }
  0x1c   : > { %706 = vmatprep.subr.bf16.mxu0 %v819_v0  ;;  %719 = vmatpush3.bf16.msra.mxu1 %v785_v24 }
  0x1d   : > { %720 = vmatprep.subr.bf16.mxu1 %v819_v0 }
  0x1e   : > { %415 = vrot.lane.b32.xlu1 %v675_v16, %s821_s24 }
  0x20   : > { %721 = vmatpush3.bf16.msra.mxu1 %v786_v25 }
  0x21   : > { %726 = vmatprep.subr.bf16.mxu1 %v819_v0 }
  0x23   : > { %707 = vmatpush3.bf16.xpose.msra.mxu0 %v286_v6 }
  0x24   : > { %708 = vmatprep.subr.bf16.mxu0 %v819_v0 }
  0x2b   : > { %709 = vmatpush3.bf16.xpose.msra.mxu0 %v289_v8 }
  0x2c   : > { %738 = vmatprep.subr.bf16.mxu0 %v819_v0 }
  0x32   : > { %711 = vmatmul.mubr.msk.bf16.vlgmr.msra.gmra.mrb[0].mxu0 %vm275_vm1, %v238_v9 }
  0x33   : > { %746 = vmatprep.mubr.msk.bf16.mxu0 %vm820_vm0, %v819_v0 }
  0x84   : > { %v418_v28 = vpop.permute.xlu1 %417 }
  0x85   : > { %v429_v30 = vsel %vm275_vm1, %v418_v28, 0 }
  0x88   : > { %v420_v32 = vpop.permute.xlu1 %419 }
  0x89   : > { %v432_v33 = vsel %vm275_vm1, %v420_v32, 0 }
  0x8c   : > { %v424_v36 = vpop.permute.xlu1 %423 }
  0x8d   : > { %v438_v37 = vsel %vm275_vm1, %v424_v36, 0 }
  0x90   : > { %v416_v38 = vpop.permute.xlu1 %415 }
 0x105   : > { %v325_v10 = vpop.f32.mrb[0].mxu0 }
 0x106   : > { %v331_v11 = vmul.f32 0.35355338, %v325_v10  ;;  %v712_v12 = vpop.f32.mrb[1].mxu0 }
 0x107   : > { %v328_v13 = vpop.f32.mrb[2].mxu0 }
 0x108   : > { %v713_v14 = vpop.f32.mrb[3].mxu0  ;;  %v333_v15 = vsel %vm332_vm2, %v331_v11, -inf }
 0x109   : > { %334 = vmax.xlane.f32.xlu0 %v333_v15 }
 0x196   : > { %v335_v19 = vpop.xlane.xlu0 %334 }
 0x197   : > { %v336_v20 = vsub.f32 %v331_v11, %v335_v19 }
 0x199   : > { %v337_v21 = vmul.f32 1.442695, %v336_v20 }
 0x19b   : > { %787 = vpow2.f32 %v337_v21 }
 0x1a5   : > { %v788_v22 = vpop.eup %787 }
 0x1a6   : > { %v339_v23 = vsel %vm332_vm2, %v788_v22, 0.0 }
 0x1a7   : > { %340 = vadd.xlane.f32.xlu0 %v339_v23 }
 0x1bd   : > { %421 = vrot.lane.b32.xlu0 %v780_v5, %s821_s24 }
 0x234   : > { %v341_v26 = vpop.xlane.xlu0 %340 }
 0x235   : > { %789 = vrcp.f32 %v341_v26 }
 0x238   : > { %v422_v34 = vpop.permute.xlu0 %421 }
 0x239   : > { %v435_v35 = vsel %vm275_vm1, %v422_v34, 0 }
 0x23f   : > { %v790_v27 = vpop.eup %789 }
 0x240   : > { %v343_v29 = vmul.f32 %v790_v27, %v788_v22 }
 0x242   : > { %v344_v31 = vpack.c.bf16 %v343_v29, %v343_v29 }
 0x244   : > { %723 = vmatmul.mubr.msk.bf16.vlgmr.msra.gmra.mrb[0].mxu1 %vm332_vm2, %v344_v31 }
 0x245   : > { %727 = vmatpush3.bf16.xpose.msra.mxu1 %v429_v30  ;;  %734 = vmatprep.mubr.msk.bf16.mxu1 %vm820_vm0, %v819_v0 }
 0x246   : > { %728 = vmatprep.subr.bf16.mxu1 %v819_v0 }
 0x24d   : > { %729 = vmatpush3.bf16.xpose.msra.mxu1 %v432_v33 }
 0x24e   : > { %730 = vmatprep.subr.bf16.mxu1 %v819_v0 }
 0x255   : > { %731 = vmatpush3.bf16.xpose.msra.mxu1 %v435_v35 }
 0x256   : > { %732 = vmatprep.subr.bf16.mxu1 %v819_v0 }
 0x25d   : > { %733 = vmatpush3.bf16.xpose.msra.mxu1 %v438_v37 }
 0x264   : > { %735 = vmatmul.mubr.msk.bf16.vlgmr.msra.gmra.mrb[4].mxu1 %vm275_vm1, %v416_v38 }
 0x317   : > { %v406_v39 = vpop.f32.mrb[0].mxu1 }
 0x318   : > { %v724_v40 = vpop.f32.mrb[1].mxu1 }
 0x319   : > { %v409_v41 = vpop.f32.mrb[2].mxu1 }
 0x31a   : > { %v725_v42 = vpop.f32.mrb[3].mxu1 }
 0x337   : > { %v474_v43 = vpop.f32.mrb[4].mxu1 }
 0x338   : > { %v480_v44 = vmul.f32 0.35355338, %v474_v43  ;;  %v736_v45 = vpop.f32.mrb[5].mxu1 }
 0x339   : > { %v477_v46 = vpop.f32.mrb[6].mxu1 }
 0x33a   : > { %v737_v47 = vpop.f32.mrb[7].mxu1  ;;  %v481_v48 = vsel %vm332_vm2, %v480_v44, -inf }
 0x33b   : > { %482 = vmax.xlane.f32.xlu1 %v481_v48 }
 0x34c   : > { %493 = vrot.lane.b32.xlu1 %v783_v17, %s821_s24 }
 0x350   : > { %497 = vrot.lane.b32.xlu1 %v785_v24, %s821_s24 }
 0x354   : > { %499 = vrot.lane.b32.xlu1 %v786_v25, %s821_s24 }
 0x3c8   : > { %v483_v49 = vpop.xlane.xlu1 %482 }
 0x3c9   : > { %v484_v50 = vsub.f32 %v480_v44, %v483_v49 }
 0x3cb   : > { %v485_v51 = vmul.f32 1.442695, %v484_v50 }
 0x3cc   : > { %v494_v54 = vpop.permute.xlu1 %493 }
 0x3cd   : > { %791 = vpow2.f32 %v485_v51  ;;  %739 = vmatpush3.bf16.msra.mxu0 %v494_v54 }
 0x3ce   : > { %740 = vmatprep.subr.bf16.mxu0 %v819_v0 }
 0x3d0   : > { %v498_v57 = vpop.permute.xlu1 %497 }
 0x3d4   : > { %v500_v58 = vpop.permute.xlu1 %499 }
 0x3d7   : > { %v792_v52 = vpop.eup %791 }
 0x3d8   : > { %v487_v53 = vsel %vm332_vm2, %v792_v52, 0.0 }
 0x3d9   : > { %488 = vadd.xlane.f32.xlu0 %v487_v53 }
 0x3ef   : > { %495 = vrot.lane.b32.xlu0 %v902_v18, %s821_s24 }
 0x466   : > { %v489_v55 = vpop.xlane.xlu0 %488 }
 0x467   : > { %793 = vrcp.f32 %v489_v55 }
 0x46a   : > { %v496_v56 = vpop.permute.xlu0 %495 }
 0x46b   : > { %741 = vmatpush3.bf16.msra.mxu0 %v496_v56 }
 0x46c   : > { %742 = vmatprep.subr.bf16.mxu0 %v819_v0 }
 0x46f   : > { %743 = vmatpush3.bf16.msra.mxu0 %v498_v57 }
 0x470   : > { %744 = vmatprep.subr.bf16.mxu0 %v819_v0 }
 0x471   : > { %v794_v59 = vpop.eup %793 }
 0x472   : > { %v491_v60 = vmul.f32 %v794_v59, %v792_v52 }
 0x473   : > { %745 = vmatpush3.bf16.msra.mxu0 %v500_v58 }
 0x474   : > { %v492_v61 = vpack.c.bf16 %v491_v60, %v491_v60 }
 0x476   : > { %747 = vmatmul.mubr.msk.bf16.vlgmr.msra.gmra.mrb[4].mxu0 %vm332_vm2, %v492_v61 }
 0x549   : > { %v542_v62 = vpop.f32.mrb[4].mxu0 }
 0x54a   : > { %549 = vrot.lane.b32.xlu1 %v542_v62, %s822_s28  ;;  %v748_v63 = vpop.f32.mrb[5].mxu0 }
 0x54b   : > { %v545_v1 = vpop.f32.mrb[6].mxu0 }
 0x54c   : > { %v749_v2 = vpop.f32.mrb[7].mxu0 }
 0x5bc   : > { %v550_v3 = vpop.permute.xlu1 %549 }
 0x5bd   : > { %v552_v0 = vsel %vm275_vm1, %v406_v39, %v550_v3 }
 0x5be   : > { %v553_v4 = vpack.c.bf16 %v552_v0, %v552_v0 }
 0x5c0   : > { %555 = vst.msk [vmem:[%s236_s4] sm:$0xf] %vm554_vm3, %v553_v4 }
 0x5c1 PF: > { %s13_s14 = sadd.s32 1, %s817_s14   ;;  %s952_s12 = smov %s813_s13 }
 0x5c2   : > { %p10_p5 = scmp.ge.s32.totalorder %s13_s14, 4   ;;  %s953_s13 = smov %s955_s15 }
 0x5c4   :  { %12 = sbr.rel (!%p10_p5) target bundleno = 2 (0x2), region = 68 }

// kernel: _lambda_.54
= control target key start
LH: loop header
LB: loop body
LE: loop exit
PB: predicated region body
PF: predicated region fallthrough
CT: control target
= control target key end

     0   :  { %vm137_vm0 = vcmask 261120   ;;  %vm323_vm1 = vcmask 125952   ;;  %s1120_s2 = inlined_call_operand.vmem [shape: bf16[32,16], index: 2, kind: input, shape index: {}]   ;;  %s1121_s4 = inlined_call_operand.vmem [shape: bf16[32,16], index: 4, kind: input, shape index: {}]   ;;  %s1122_s0 = inlined_call_operand.vmem [shape: bf16[128,32], index: 0, kind: input, shape index: {}]   ;;  %s1123_s1 = inlined_call_operand.vmem [shape: bf16[128,32], index: 1, kind: input, shape index: {}]   ;;  %s1124_s3 = inlined_call_operand.vmem [shape: f32[1,16], index: 3, kind: input, shape index: {}]   ;;  %s1125_s5 = inlined_call_operand.vmem [shape: f32[1,16], index: 5, kind: input, shape index: {}]   ;;  %s1126_s6 = inlined_call_operand.vmem [shape: bf16[128,16], index: 6, kind: output, shape index: {0}]   ;;  %s1127_s7 = inlined_call_operand.vmem [shape: bf16[128,16], index: 7, kind: output, shape index: {1}]  }
   0x1   :  { %v774_v0 = vld [vmem:[%s1120_s2] sm:$0xff]   ;;  %v776_v2 = vld [vmem:[%s1120_s2 + $0x8] sm:$0xff]   ;;  %v30_v15 = vld [vmem:[%s1122_s0 + $0x10] sm:$0xf] }
   0x2   :  { %v775_v1 = vld [vmem:[%s1121_s4] sm:$0xff]   ;;  %734 = vmatprep.subr.bf16.mxu0 %v774_v0  ;;  %v777_v3 = vld [vmem:[%s1121_s4 + $0x8] sm:$0xff]   ;;  %v31_v19 = vld [vmem:[%s1122_s0 + $0x14] sm:$0xf] }
   0x3   :  { %754 = vmatprep.subr.bf16.mxu1 %v775_v1  ;;  %735 = vmatpush3.bf16.msra.mxu0 %v774_v0  ;;  %v26_v4 = vld [vmem:[%s1122_s0] sm:$0xf]  ;;  %v27_v5 = vld [vmem:[%s1122_s0 + $0x4] sm:$0xf]  ;;  %v28_v10 = vld [vmem:[%s1122_s0 + $0x8] sm:$0xf]  ;;  %v650_v25 = vcombine.low %v30_v15, %v31_v19 }
   0x4   :  { %755 = vmatpush3.bf16.msra.mxu1 %v775_v1  ;;  %736 = vmatprep.subr.bf16.mxu0 %v776_v2  ;;  %v42_v6 = vld [vmem:[%s1123_s1] sm:$0xf]  ;;  %v43_v7 = vld [vmem:[%s1123_s1 + $0x4] sm:$0xf]  ;;  %v648_v9 = vcombine.low %v26_v4, %v27_v5  ;;  %v29_v11 = vld [vmem:[%s1122_s0 + $0xc] sm:$0xf] }
   0x5   :  { %756 = vmatprep.subr.bf16.mxu1 %v777_v3  ;;  %v58_v8 = vadd.bf16 %v42_v6, %v26_v4  ;;  %v59_v12 = vadd.bf16 %v43_v7, %v27_v5  ;;  %v44_v13 = vld [vmem:[%s1123_s1 + $0x8] sm:$0xf]  ;;  %v45_v14 = vld [vmem:[%s1123_s1 + $0xc] sm:$0xf]  ;;  %v649_v18 = vcombine.low %v28_v10, %v29_v11  ;;  %v46_v20 = vld [vmem:[%s1123_s1 + $0x10] sm:$0xf] }
   0x6   :  { %758 = vmatprep.mubr.msk.bf16.mxu1 %vm137_vm0, %v648_v9  ;;  %v60_v16 = vadd.bf16 %v44_v13, %v28_v10  ;;  %v61_v17 = vadd.bf16 %v45_v14, %v29_v11  ;;  %v47_v21 = vld [vmem:[%s1123_s1 + $0x14] sm:$0xf]  ;;  %v62_v23 = vadd.bf16 %v46_v20, %v30_v15  ;;  %v32_v26 = vld [vmem:[%s1122_s0 + $0x18] sm:$0xf]  ;;  %v33_v27 = vld [vmem:[%s1122_s0 + $0x1c] sm:$0xf] }
   0x7   :  { %737 = vmatpush3.bf16.msra.mxu0 %v776_v2  ;;  %v613_v22 = vcombine.low %v58_v8, %v59_v12  ;;  %v63_v24 = vadd.bf16 %v47_v21, %v31_v19  ;;  %v48_v28 = vld [vmem:[%s1123_s1 + $0x18] sm:$0xf]  ;;  %v49_v30 = vld [vmem:[%s1123_s1 + $0x1c] sm:$0xf]  ;;  %v34_v31 = vld [vmem:[%s1122_s0 + $0x20] sm:$0xf]  ;;  %v651_v41 = vcombine.low %v32_v26, %v33_v27 }
   0x8   :  { %757 = vmatpush3.bf16.msra.mxu1 %v777_v3  ;;  %v614_v29 = vcombine.low %v60_v16, %v61_v17  ;;  %v35_v32 = vld [vmem:[%s1122_s0 + $0x24] sm:$0xf]  ;;  %v50_v34 = vld [vmem:[%s1123_s1 + $0x20] sm:$0xf]  ;;  %v64_v36 = vadd.bf16 %v48_v28, %v32_v26  ;;  %v65_v37 = vadd.bf16 %v49_v30, %v33_v27  ;;  %v36_v42 = vld [vmem:[%s1122_s0 + $0x28] sm:$0xf] }
   0x9   :  { %738 = vmatprep.mubr.msk.bf16.mxu0 %vm137_vm0, %v613_v22  ;;  %v615_v33 = vcombine.low %v62_v23, %v63_v24  ;;  %v51_v35 = vld [vmem:[%s1123_s1 + $0x24] sm:$0xf]  ;;  %v66_v38 = vadd.bf16 %v50_v34, %v34_v31  ;;  %v37_v43 = vld [vmem:[%s1122_s0 + $0x2c] sm:$0xf]  ;;  %v652_v45 = vcombine.low %v34_v31, %v35_v32  ;;  %v52_v46 = vld [vmem:[%s1123_s1 + $0x28] sm:$0xf] }
   0xa   :  { %739 = vmatmul.mubr.msk.bf16.vlgmr.msra.gmra.mrb[0].mxu0 %vm137_vm0, %v614_v29  ;;  %v67_v39 = vadd.bf16 %v51_v35, %v35_v32  ;;  %v616_v40 = vcombine.low %v64_v36, %v65_v37  ;;  %v53_v47 = vld [vmem:[%s1123_s1 + $0x2c] sm:$0xf]  ;;  %v38_v48 = vld [vmem:[%s1122_s0 + $0x30] sm:$0xf]  ;;  %v39_v49 = vld [vmem:[%s1122_s0 + $0x34] sm:$0xf]  ;;  %v68_v52 = vadd.bf16 %v52_v46, %v36_v42  ;;  %v653_v57 = vcombine.low %v36_v42, %v37_v43 }
   0xb   :  { %759 = vmatmul.mubr.msk.bf16.vlgmr.msra.gmra.mrb[0].mxu1 %vm137_vm0, %v649_v18  ;;  %742 = vmatprep.mubr.msk.bf16.mxu0 %vm137_vm0, %v615_v33  ;;  %v54_v50 = vld [vmem:[%s1123_s1 + $0x30] sm:$0xf]  ;;  %v55_v51 = vld [vmem:[%s1123_s1 + $0x34] sm:$0xf]  ;;  %v69_v53 = vadd.bf16 %v53_v47, %v37_v43  ;;  %v40_v58 = vld [vmem:[%s1122_s0 + $0x38] sm:$0xf]  ;;  %v654_v60 = vcombine.low %v38_v48, %v39_v49 }
   0xc   :  { %762 = vmatprep.mubr.msk.bf16.mxu1 %vm137_vm0, %v650_v25  ;;  %v617_v44 = vcombine.low %v66_v38, %v67_v39  ;;  %v70_v54 = vadd.bf16 %v54_v50, %v38_v48  ;;  %v71_v55 = vadd.bf16 %v55_v51, %v39_v49  ;;  %v41_v61 = vld [vmem:[%s1122_s0 + $0x3c] sm:$0xf]  ;;  %v56_v62 = vld [vmem:[%s1123_s1 + $0x38] sm:$0xf]  ;;  %v953_v4 = vld [vmem:[%s1124_s3] ss:$0 sm:$0xff] }
   0xd   :  { %v618_v56 = vcombine.low %v68_v52, %v69_v53  ;;  %v57_v63 = vld [vmem:[%s1123_s1 + $0x3c] sm:$0xf]  ;;  %v72_v0 = vadd.bf16 %v56_v62, %v40_v58  ;;  %v655_v3 = vcombine.low %v40_v58, %v41_v61  ;;  %v958_v5 = vld [vmem:[%s1125_s5] ss:$0 sm:$0xff] }
   0xe   :  { %v619_v59 = vcombine.low %v70_v54, %v71_v55  ;;  %v73_v1 = vadd.bf16 %v57_v63, %v41_v61 }
  0x10   :  { %v620_v2 = vcombine.low %v72_v0, %v73_v1 }
  0x12   :  { %743 = vmatmul.mubr.msk.bf16.gmra.mrb[4].mxu0 %vm137_vm0, %v616_v40 }
  0x13   :  { %763 = vmatmul.mubr.msk.bf16.gmra.mrb[4].mxu1 %vm137_vm0, %v651_v41  ;;  %746 = vmatprep.mubr.msk.bf16.mxu0 %vm137_vm0, %v617_v44 }
  0x14   :  { %766 = vmatprep.mubr.msk.bf16.mxu1 %vm137_vm0, %v652_v45 }
  0x1a   :  { %747 = vmatmul.mubr.msk.bf16.gmra.mrb[8].mxu0 %vm137_vm0, %v618_v56 }
  0x1b   :  { %767 = vmatmul.mubr.msk.bf16.gmra.mrb[8].mxu1 %vm137_vm0, %v653_v57  ;;  %750 = vmatprep.mubr.msk.bf16.mxu0 %vm137_vm0, %v619_v59 }
  0x1c   :  { %770 = vmatprep.mubr.msk.bf16.mxu1 %vm137_vm0, %v654_v60 }
  0x22   :  { %751 = vmatmul.mubr.msk.bf16.gmra.mrb[12].mxu0 %vm137_vm0, %v620_v2 }
  0x23   :  { %771 = vmatmul.mubr.msk.bf16.gmra.mrb[12].mxu1 %vm137_vm0, %v655_v3 }
  0xdd   :  { %v740_v6 = vpop.f32.mrb[0].mxu0 }
  0xde   :  { %v760_v7 = vpop.f32.mrb[0].mxu1  ;;  %v205_v8 = vadd.f32 %v740_v6, %v953_v4  ;;  %v196_v10 = vpop.f32.mrb[1].mxu0 }
  0xdf   :  { %v470_v9 = vadd.f32 %v760_v7, %v958_v5  ;;  %v461_v11 = vpop.f32.mrb[1].mxu1  ;;  %v197_v12 = vadd.f32 %v953_v4, %v196_v10  ;;  %v741_v14 = vpop.f32.mrb[2].mxu0 }
  0xe0   :  { %v462_v13 = vadd.f32 %v958_v5, %v461_v11  ;;  %v761_v15 = vpop.f32.mrb[2].mxu1  ;;  %v684_v16 = vpack.c.bf16 %v205_v8, %v205_v8  ;;  %v208_v18 = vadd.f32 %v741_v14, %v953_v4  ;;  %v199_v20 = vpop.f32.mrb[3].mxu0 }
  0xe1   :  { %v700_v17 = vpack.c.bf16 %v470_v9, %v470_v9  ;;  %v473_v19 = vadd.f32 %v761_v15, %v958_v5  ;;  %v464_v21 = vpop.f32.mrb[3].mxu1  ;;  %v682_v22 = vpack.c.bf16 %v197_v12, %v197_v12  ;;  %v200_v24 = vadd.f32 %v953_v4, %v199_v20 }
  0xe2   :  { %v698_v23 = vpack.c.bf16 %v462_v13, %v462_v13  ;;  %v465_v25 = vadd.f32 %v958_v5, %v464_v21  ;;  %326 = vst.msk [vmem:[%s1126_s6 + $0x8] sm:$0xf] %vm323_vm1, %v684_v16  ;;  %v685_v26 = vpack.c.bf16 %v208_v18, %v208_v18 }
  0xe3   :  { %590 = vst.msk [vmem:[%s1127_s7 + $0x8] sm:$0xf] %vm323_vm1, %v700_v17  ;;  %v701_v27 = vpack.c.bf16 %v473_v19, %v473_v19  ;;  %324 = vst.msk [vmem:[%s1126_s6] sm:$0xf] %vm323_vm1, %v682_v22  ;;  %v683_v28 = vpack.c.bf16 %v200_v24, %v200_v24 }
  0xe4   :  { %588 = vst.msk [vmem:[%s1127_s7] sm:$0xf] %vm323_vm1, %v698_v23  ;;  %v699_v29 = vpack.c.bf16 %v465_v25, %v465_v25  ;;  %327 = vst.msk [vmem:[%s1126_s6 + $0xc] sm:$0xf] %vm323_vm1, %v685_v26 }
  0xe5   :  { %591 = vst.msk [vmem:[%s1127_s7 + $0xc] sm:$0xf] %vm323_vm1, %v701_v27  ;;  %325 = vst.msk [vmem:[%s1126_s6 + $0x4] sm:$0xf] %vm323_vm1, %v683_v28  ;;  %v744_v30 = vpop.f32.mrb[4].mxu0 }
  0xe6   :  { %589 = vst.msk [vmem:[%s1127_s7 + $0x4] sm:$0xf] %vm323_vm1, %v699_v29  ;;  %v764_v31 = vpop.f32.mrb[4].mxu1  ;;  %v221_v32 = vadd.f32 %v744_v30, %v953_v4  ;;  %v212_v34 = vpop.f32.mrb[5].mxu0 }
  0xe7   :  { %v486_v33 = vadd.f32 %v764_v31, %v958_v5  ;;  %v477_v35 = vpop.f32.mrb[5].mxu1  ;;  %v213_v36 = vadd.f32 %v953_v4, %v212_v34  ;;  %v745_v38 = vpop.f32.mrb[6].mxu0 }
  0xe8   :  { %v478_v37 = vadd.f32 %v958_v5, %v477_v35  ;;  %v765_v39 = vpop.f32.mrb[6].mxu1  ;;  %v688_v40 = vpack.c.bf16 %v221_v32, %v221_v32  ;;  %v224_v42 = vadd.f32 %v745_v38, %v953_v4  ;;  %v215_v44 = vpop.f32.mrb[7].mxu0 }
  0xe9   :  { %v704_v41 = vpack.c.bf16 %v486_v33, %v486_v33  ;;  %v489_v43 = vadd.f32 %v765_v39, %v958_v5  ;;  %v480_v45 = vpop.f32.mrb[7].mxu1  ;;  %v686_v46 = vpack.c.bf16 %v213_v36, %v213_v36  ;;  %v216_v48 = vadd.f32 %v953_v4, %v215_v44 }
  0xea   :  { %v702_v47 = vpack.c.bf16 %v478_v37, %v478_v37  ;;  %v481_v49 = vadd.f32 %v958_v5, %v480_v45  ;;  %330 = vst.msk [vmem:[%s1126_s6 + $0x18] sm:$0xf] %vm323_vm1, %v688_v40  ;;  %v689_v50 = vpack.c.bf16 %v224_v42, %v224_v42 }
  0xeb   :  { %594 = vst.msk [vmem:[%s1127_s7 + $0x18] sm:$0xf] %vm323_vm1, %v704_v41  ;;  %v705_v51 = vpack.c.bf16 %v489_v43, %v489_v43  ;;  %328 = vst.msk [vmem:[%s1126_s6 + $0x10] sm:$0xf] %vm323_vm1, %v686_v46  ;;  %v687_v52 = vpack.c.bf16 %v216_v48, %v216_v48 }
  0xec   :  { %592 = vst.msk [vmem:[%s1127_s7 + $0x10] sm:$0xf] %vm323_vm1, %v702_v47  ;;  %v703_v53 = vpack.c.bf16 %v481_v49, %v481_v49  ;;  %331 = vst.msk [vmem:[%s1126_s6 + $0x1c] sm:$0xf] %vm323_vm1, %v689_v50 }
  0xed   :  { %595 = vst.msk [vmem:[%s1127_s7 + $0x1c] sm:$0xf] %vm323_vm1, %v705_v51  ;;  %329 = vst.msk [vmem:[%s1126_s6 + $0x14] sm:$0xf] %vm323_vm1, %v687_v52  ;;  %v748_v54 = vpop.f32.mrb[8].mxu0 }
  0xee   :  { %593 = vst.msk [vmem:[%s1127_s7 + $0x14] sm:$0xf] %vm323_vm1, %v703_v53  ;;  %v768_v55 = vpop.f32.mrb[8].mxu1  ;;  %v237_v56 = vadd.f32 %v748_v54, %v953_v4  ;;  %v228_v58 = vpop.f32.mrb[9].mxu0 }
  0xef   :  { %v502_v57 = vadd.f32 %v768_v55, %v958_v5  ;;  %v493_v59 = vpop.f32.mrb[9].mxu1  ;;  %v229_v60 = vadd.f32 %v953_v4, %v228_v58  ;;  %v749_v62 = vpop.f32.mrb[10].mxu0 }
  0xf0   :  { %v494_v61 = vadd.f32 %v958_v5, %v493_v59  ;;  %v769_v63 = vpop.f32.mrb[10].mxu1  ;;  %v692_v0 = vpack.c.bf16 %v237_v56, %v237_v56  ;;  %v240_v2 = vadd.f32 %v749_v62, %v953_v4  ;;  %v231_v6 = vpop.f32.mrb[11].mxu0 }
  0xf1   :  { %v708_v1 = vpack.c.bf16 %v502_v57, %v502_v57  ;;  %v505_v3 = vadd.f32 %v769_v63, %v958_v5  ;;  %v496_v7 = vpop.f32.mrb[11].mxu1  ;;  %v690_v8 = vpack.c.bf16 %v229_v60, %v229_v60  ;;  %v232_v10 = vadd.f32 %v953_v4, %v231_v6 }
  0xf2   :  { %v706_v9 = vpack.c.bf16 %v494_v61, %v494_v61  ;;  %v497_v11 = vadd.f32 %v958_v5, %v496_v7  ;;  %334 = vst.msk [vmem:[%s1126_s6 + $0x28] sm:$0xf] %vm323_vm1, %v692_v0  ;;  %v693_v12 = vpack.c.bf16 %v240_v2, %v240_v2 }
  0xf3   :  { %598 = vst.msk [vmem:[%s1127_s7 + $0x28] sm:$0xf] %vm323_vm1, %v708_v1  ;;  %v709_v13 = vpack.c.bf16 %v505_v3, %v505_v3  ;;  %332 = vst.msk [vmem:[%s1126_s6 + $0x20] sm:$0xf] %vm323_vm1, %v690_v8  ;;  %v691_v14 = vpack.c.bf16 %v232_v10, %v232_v10 }
  0xf4   :  { %596 = vst.msk [vmem:[%s1127_s7 + $0x20] sm:$0xf] %vm323_vm1, %v706_v9  ;;  %v707_v15 = vpack.c.bf16 %v497_v11, %v497_v11  ;;  %335 = vst.msk [vmem:[%s1126_s6 + $0x2c] sm:$0xf] %vm323_vm1, %v693_v12 }
  0xf5   :  { %599 = vst.msk [vmem:[%s1127_s7 + $0x2c] sm:$0xf] %vm323_vm1, %v709_v13  ;;  %333 = vst.msk [vmem:[%s1126_s6 + $0x24] sm:$0xf] %vm323_vm1, %v691_v14  ;;  %v752_v16 = vpop.f32.mrb[12].mxu0 }
  0xf6   :  { %597 = vst.msk [vmem:[%s1127_s7 + $0x24] sm:$0xf] %vm323_vm1, %v707_v15  ;;  %v772_v17 = vpop.f32.mrb[12].mxu1  ;;  %v253_v18 = vadd.f32 %v752_v16, %v953_v4  ;;  %v244_v20 = vpop.f32.mrb[13].mxu0 }
  0xf7   :  { %v518_v19 = vadd.f32 %v772_v17, %v958_v5  ;;  %v509_v21 = vpop.f32.mrb[13].mxu1  ;;  %v245_v22 = vadd.f32 %v953_v4, %v244_v20  ;;  %v753_v24 = vpop.f32.mrb[14].mxu0 }
  0xf8   :  { %v510_v23 = vadd.f32 %v958_v5, %v509_v21  ;;  %v773_v25 = vpop.f32.mrb[14].mxu1  ;;  %v696_v26 = vpack.c.bf16 %v253_v18, %v253_v18  ;;  %v256_v28 = vadd.f32 %v753_v24, %v953_v4  ;;  %v247_v30 = vpop.f32.mrb[15].mxu0 }
  0xf9   :  { %v712_v27 = vpack.c.bf16 %v518_v19, %v518_v19  ;;  %v521_v29 = vadd.f32 %v773_v25, %v958_v5  ;;  %v512_v31 = vpop.f32.mrb[15].mxu1  ;;  %v694_v32 = vpack.c.bf16 %v245_v22, %v245_v22  ;;  %v248_v34 = vadd.f32 %v953_v4, %v247_v30 }
  0xfa   :  { %v710_v33 = vpack.c.bf16 %v510_v23, %v510_v23  ;;  %v513_v35 = vadd.f32 %v958_v5, %v512_v31  ;;  %338 = vst.msk [vmem:[%s1126_s6 + $0x38] sm:$0xf] %vm323_vm1, %v696_v26  ;;  %v697_v36 = vpack.c.bf16 %v256_v28, %v256_v28 }
  0xfb   :  { %602 = vst.msk [vmem:[%s1127_s7 + $0x38] sm:$0xf] %vm323_vm1, %v712_v27  ;;  %v713_v37 = vpack.c.bf16 %v521_v29, %v521_v29  ;;  %336 = vst.msk [vmem:[%s1126_s6 + $0x30] sm:$0xf] %vm323_vm1, %v694_v32  ;;  %v695_v4 = vpack.c.bf16 %v248_v34, %v248_v34 }
  0xfc   :  { %600 = vst.msk [vmem:[%s1127_s7 + $0x30] sm:$0xf] %vm323_vm1, %v710_v33  ;;  %v711_v5 = vpack.c.bf16 %v513_v35, %v513_v35  ;;  %339 = vst.msk [vmem:[%s1126_s6 + $0x3c] sm:$0xf] %vm323_vm1, %v697_v36 }
  0xfd   :  { %603 = vst.msk [vmem:[%s1127_s7 + $0x3c] sm:$0xf] %vm323_vm1, %v713_v37  ;;  %337 = vst.msk [vmem:[%s1126_s6 + $0x34] sm:$0xf] %vm323_vm1, %v695_v4 }
  0xfe   :  { %601 = vst.msk [vmem:[%s1127_s7 + $0x34] sm:$0xf] %vm323_vm1, %v711_v5 }

// kernel: _lambda_.56
= control target key start
LH: loop header
LB: loop body
LE: loop exit
PB: predicated region body
PF: predicated region fallthrough
CT: control target
= control target key end

     0   :  { %v117_v0 = vmov 0.0   ;;  %vm118_vm0 = vmmov 0   ;;  %vm37_vm1 = vcmask 130048   ;;  %vm90_vm2 = vcmask 257024   ;;  %s154_s1 = inlined_call_operand.vmem [shape: bf16[16,32], index: 1, kind: input, shape index: {}]   ;;  %s155_s0 = inlined_call_operand.vmem [shape: bf16[16,16], index: 0, kind: input, shape index: {}]   ;;  %s156_s2 = inlined_call_operand.vmem [shape: f32[1,32], index: 2, kind: input, shape index: {}]   ;;  %s157_s3 = inlined_call_operand.vmem [shape: bf16[16,32], index: 3, kind: output, shape index: {}]  }
   0x1   :  { %107 = vmatprep.subr.bf16.mxu0 %v117_v0  ;;  %v115_v1 = vld [vmem:[%s154_s1] sm:$0xff]   ;;  %109 = vmatprep.mubr.msk.bf16.mxu0 %vm118_vm0, %v117_v0 }
   0x2   :  { %v116_v2 = vld [vmem:[%s155_s0] sm:$0xff]   ;;  %108 = vmatpush3.bf16.msra.mxu0 %v115_v1 }
   0x3   :  { %v97_v3 = vld [vmem:[%s156_s2] ss:$0 sm:$0xff] }
   0x5   :  { %110 = vmatmul.mubr.msk.bf16.vlgmr.msra.gmra.mrb[0].mxu0 %vm37_vm1, %v116_v2 }
  0xd8   :  { %v75_v4 = vpop.f32.mrb[0].mxu0 }
  0xd9   :  { %v76_v5 = vadd.f32 %v97_v3, %v75_v4  ;;  %v111_v6 = vpop.f32.mrb[1].mxu0 }
  0xda   :  { %v78_v7 = vpop.f32.mrb[2].mxu0 }
  0xdb   :  { %v103_v8 = vpack.c.bf16 %v76_v5, %v76_v5  ;;  %v79_v9 = vadd.f32 %v97_v3, %v78_v7  ;;  %v112_v10 = vpop.f32.mrb[3].mxu0 }
  0xdd   :  { %91 = vst.msk [vmem:[%s157_s3] sm:$0xf] %vm90_vm2, %v103_v8  ;;  %v104_v11 = vpack.c.bf16 %v79_v9, %v79_v9 }
  0xdf   :  { %92 = vst.msk [vmem:[%s157_s3 + $0x4] sm:$0xf] %vm90_vm2, %v104_v11 }

// kernel: _lambda_.57
= control target key start
LH: loop header
LB: loop body
LE: loop exit
PB: predicated region body
PF: predicated region fallthrough
CT: control target
= control target key end

     0   :  { %vm27_vm0 = vcmask 261120   ;;  %vm81_vm1 = vcmask 257024   ;;  %s153_s0 = inlined_call_operand.vmem [shape: bf16[16,32], index: 0, kind: input, shape index: {}]   ;;  %s154_s1 = inlined_call_operand.vmem [shape: bf16[16,32], index: 1, kind: input, shape index: {}]   ;;  %s155_s2 = inlined_call_operand.vmem [shape: f32[1,32], index: 2, kind: input, shape index: {}]   ;;  %s156_s3 = inlined_call_operand.vmem [shape: f32[1,32], index: 3, kind: input, shape index: {}]   ;;  %s157_s4 = inlined_call_operand.vmem [shape: bf16[16,32], index: 4, kind: output, shape index: {}]  }
   0x1   :  { %v95_v0 = vld [vmem:[%s153_s0] sm:$0xff]  }
   0x2   :  { %v99_v1 = vld [vmem:[%s154_s1] sm:$0xff]   ;;  %v96_v2 = vunpack.c.l.bf16 %v95_v0  ;;  %v97_v4 = vunpack.c.h.bf16 %v95_v0 }
   0x3   :  { %v100_v3 = vunpack.c.l.bf16 %v99_v1  ;;  %v101_v5 = vunpack.c.h.bf16 %v99_v1  ;;  %v88_v27 = vld [vmem:[%s155_s2] ss:$0 sm:$0xff] }
   0x4   :  { %v89_v29 = vld [vmem:[%s156_s3] ss:$0 sm:$0xff] }
   0x5   :  { %v25_v6 = vadd.f32 %v100_v3, %v96_v2  ;;  %v26_v7 = vadd.f32 %v101_v5, %v97_v4 }
   0x7   :  { %v28_v8 = vsel %vm27_vm0, %v25_v6, 0.0  ;;  %v31_v9 = vsel %vm27_vm0, %v26_v7, 0.0 }
   0x8   :  { %29 = vadd.xlane.f32.xlu0 %v28_v8 }
   0xc   :  { %32 = vadd.xlane.f32.xlu0 %v31_v9 }
  0x95   :  { %v30_v10 = vpop.xlane.xlu0 %29 }
  0x96   :  { %v35_v11 = vmul.f32 0.03125, %v30_v10 }
  0x98   :  { %v37_v12 = vsub.f32 %v25_v6, %v35_v11 }
  0x99   :  { %v33_v13 = vpop.xlane.xlu0 %32 }
  0x9a   :  { %v36_v14 = vmul.f32 0.03125, %v33_v13  ;;  %v39_v15 = vmul.f32 %v37_v12, %v37_v12 }
  0x9c   :  { %v38_v16 = vsub.f32 %v26_v7, %v36_v14  ;;  %v41_v17 = vsel %vm27_vm0, %v39_v15, 0.0 }
  0x9d   :  { %42 = vadd.xlane.f32.xlu1 %v41_v17 }
  0x9e   :  { %v40_v18 = vmul.f32 %v38_v16, %v38_v16 }
  0xa0   :  { %v44_v19 = vsel %vm27_vm0, %v40_v18, 0.0 }
  0xa1   :  { %45 = vadd.xlane.f32.xlu1 %v44_v19 }
 0x12a   :  { %v43_v20 = vpop.xlane.xlu1 %42 }
 0x12b   :  { %v47_v21 = vmul.f32 0.03125, %v43_v20 }
 0x12d   :  { %v49_v22 = vadd.f32 1e-05, %v47_v21 }
 0x12e   :  { %v46_v23 = vpop.xlane.xlu1 %45 }
 0x12f   :  { %102 = vrsqrt.f32 %v49_v22  ;;  %v48_v24 = vmul.f32 0.03125, %v46_v23 }
 0x131   :  { %v50_v25 = vadd.f32 1e-05, %v48_v24 }
 0x133   :  { %104 = vrsqrt.f32 %v50_v25 }
 0x139   :  { %v103_v26 = vpop.eup %102 }
 0x13a   :  { %v53_v28 = vmul.f32 %v103_v26, %v37_v12 }
 0x13c   :  { %v62_v30 = vmul.f32 %v88_v27, %v53_v28 }
 0x13d   :  { %v105_v31 = vpop.eup %104 }
 0x13e   :  { %v71_v32 = vadd.f32 %v89_v29, %v62_v30  ;;  %v54_v33 = vmul.f32 %v105_v31, %v38_v16 }
 0x140   :  { %v92_v34 = vpack.c.bf16 %v71_v32, %v71_v32  ;;  %v63_v35 = vmul.f32 %v88_v27, %v54_v33 }
 0x142   :  { %82 = vst.msk [vmem:[%s157_s4] sm:$0xf] %vm81_vm1, %v92_v34  ;;  %v72_v36 = vadd.f32 %v89_v29, %v63_v35 }
 0x144   :  { %v93_v37 = vpack.c.bf16 %v72_v36, %v72_v36 }
 0x146   :  { %83 = vst.msk [vmem:[%s157_s4 + $0x4] sm:$0xf] %vm81_vm1, %v93_v37 }

// kernel: _lambda_.58
= control target key start
LH: loop header
LB: loop body
LE: loop exit
PB: predicated region body
PF: predicated region fallthrough
CT: control target
= control target key end

     0   :  { %v250_v0 = vmov 0.0   ;;  %vm251_vm0 = vmmov 0   ;;  %vm51_vm1 = vcmask 261120   ;;  %vm138_vm2 = vcmask 523264   ;;  %s315_s1 = inlined_call_operand.vmem [shape: bf16[32,64], index: 1, kind: input, shape index: {}]   ;;  %s316_s3 = inlined_call_operand.vmem [shape: bf16[64,32], index: 3, kind: input, shape index: {}]   ;;  %s317_s0 = inlined_call_operand.vmem [shape: bf16[16,32], index: 0, kind: input, shape index: {}]   ;;  %s318_s2 = inlined_call_operand.vmem [shape: f32[1,64], index: 2, kind: input, shape index: {}]   ;;  %s319_s4 = inlined_call_operand.vmem [shape: f32[1,32], index: 4, kind: input, shape index: {}]   ;;  %s320_s5 = inlined_call_operand.vmem [shape: bf16[16,32], index: 5, kind: output, shape index: {}]  }
   0x1   :  { %221 = vmatprep.subr.bf16.mxu0 %v250_v0  ;;  %v243_v1 = vld [vmem:[%s315_s1] sm:$0xff]   ;;  %225 = vmatprep.mubr.msk.bf16.mxu0 %vm251_vm0, %v250_v0  ;;  %v244_v2 = vld [vmem:[%s315_s1 + $0x8] sm:$0xff]   ;;  %v248_v6 = vld [vmem:[%s316_s3 + $0x10] sm:$0xff]   ;;  %vm191_vm3 = vcmask 257024  }
   0x2   :  { %229 = vmatprep.subr.bf16.mxu1 %v250_v0  ;;  %237 = vmatprep.mubr.msk.bf16.mxu1 %vm251_vm0, %v250_v0  ;;  %v246_v3 = vld [vmem:[%s316_s3] sm:$0xff]   ;;  %v247_v5 = vld [vmem:[%s316_s3 + $0x8] sm:$0xff]   ;;  %v249_v7 = vld [vmem:[%s316_s3 + $0x18] sm:$0xff]  }
   0x3   :  { %222 = vmatpush3.bf16.msra.mxu0 %v243_v1  ;;  %v245_v4 = vld [vmem:[%s317_s0] sm:$0xff]   ;;  %230 = vmatpush3.bf16.msra.mxu1 %v246_v3 }
   0x4   :  { %223 = vmatprep.subr.bf16.mxu0 %v250_v0  ;;  %231 = vmatprep.subr.bf16.mxu1 %v250_v0  ;;  %v198_v8 = vld [vmem:[%s318_s2] ss:$0 sm:$0xff] }
   0x5   :  { %v203_v18 = vld [vmem:[%s319_s4] ss:$0 sm:$0xff] }
   0x7   :  { %224 = vmatpush3.bf16.msra.mxu0 %v244_v2  ;;  %232 = vmatpush3.bf16.msra.mxu1 %v247_v5 }
   0x8   :  { %233 = vmatprep.subr.bf16.mxu1 %v250_v0 }
   0xa   :  { %226 = vmatmul.mubr.msk.bf16.vlgmr.msra.gmra.mrb[0].mxu0 %vm51_vm1, %v245_v4 }
   0xb   :  { %234 = vmatpush3.bf16.msra.mxu1 %v248_v6 }
   0xc   :  { %235 = vmatprep.subr.bf16.mxu1 %v250_v0 }
   0xf   :  { %236 = vmatpush3.bf16.msra.mxu1 %v249_v7 }
  0xdd   :  { %v89_v9 = vpop.f32.mrb[0].mxu0 }
  0xde   :  { %v90_v10 = vadd.f32 %v198_v8, %v89_v9  ;;  %v227_v11 = vpop.f32.mrb[1].mxu0 }
  0xdf   :  { %v92_v12 = vpop.f32.mrb[2].mxu0 }
  0xe0   :  { %v93_v13 = vadd.f32 %v198_v8, %v92_v12  ;;  %v228_v14 = vpop.f32.mrb[3].mxu0  ;;  %v96_v15 = vmax.f32 %v90_v10, 0.0 }
  0xe2   :  { %v97_v16 = vmax.f32 %v93_v13, 0.0 }
  0xe4   :  { %v98_v17 = vpack.c.bf16 %v97_v16, %v96_v15 }
  0xe6   :  { %238 = vmatmul.mubr.msk.bf16.vlgmr.msra.gmra.mrb[0].mxu1 %vm138_vm2, %v98_v17 }
 0x1b9   :  { %v176_v19 = vpop.f32.mrb[0].mxu1 }
 0x1ba   :  { %v177_v20 = vadd.f32 %v203_v18, %v176_v19  ;;  %v239_v21 = vpop.f32.mrb[1].mxu1 }
 0x1bb   :  { %v179_v22 = vpop.f32.mrb[2].mxu1 }
 0x1bc   :  { %v211_v23 = vpack.c.bf16 %v177_v20, %v177_v20  ;;  %v180_v24 = vadd.f32 %v203_v18, %v179_v22  ;;  %v240_v25 = vpop.f32.mrb[3].mxu1 }
 0x1be   :  { %192 = vst.msk [vmem:[%s320_s5] sm:$0xf] %vm191_vm3, %v211_v23  ;;  %v212_v26 = vpack.c.bf16 %v180_v24, %v180_v24 }
 0x1c0   :  { %193 = vst.msk [vmem:[%s320_s5 + $0x4] sm:$0xf] %vm191_vm3, %v212_v26 }

// kernel: _lambda_.61
= control target key start
LH: loop header
LB: loop body
LE: loop exit
PB: predicated region body
PF: predicated region fallthrough
CT: control target
= control target key end

     0   :  { %v253_v0 = vmov 0.0   ;;  %vm254_vm0 = vmmov 0   ;;  %vm60_vm1 = vcmask 261120   ;;  %vm113_vm2 = vcmask 125952   ;;  %s337_s2 = inlined_call_operand.vmem [shape: bf16[32,16], index: 2, kind: input, shape index: {}]   ;;  %s338_s4 = inlined_call_operand.vmem [shape: bf16[32,16], index: 4, kind: input, shape index: {}]   ;;  %s339_s0 = inlined_call_operand.vmem [shape: bf16[16,32], index: 0, kind: input, shape index: {}]   ;;  %s340_s1 = inlined_call_operand.vmem [shape: bf16[16,32], index: 1, kind: input, shape index: {}]   ;;  %s341_s3 = inlined_call_operand.vmem [shape: f32[1,16], index: 3, kind: input, shape index: {}]   ;;  %s342_s5 = inlined_call_operand.vmem [shape: f32[1,16], index: 5, kind: input, shape index: {}]   ;;  %s343_s6 = inlined_call_operand.vmem [shape: bf16[16,16], index: 6, kind: output, shape index: {0}]   ;;  %s344_s7 = inlined_call_operand.vmem [shape: bf16[16,16], index: 7, kind: output, shape index: {1}]  }
   0x1   :  { %230 = vmatprep.subr.bf16.mxu0 %v253_v0  ;;  %238 = vmatprep.subr.bf16.mxu1 %v253_v0  ;;  %v248_v1 = vld [vmem:[%s337_s2] sm:$0xff]   ;;  %v250_v3 = vld [vmem:[%s337_s2 + $0x8] sm:$0xff]  }
   0x2   :  { %v249_v2 = vld [vmem:[%s338_s4] sm:$0xff]   ;;  %234 = vmatprep.mubr.msk.bf16.mxu0 %vm254_vm0, %v253_v0  ;;  %242 = vmatprep.mubr.msk.bf16.mxu1 %vm254_vm0, %v253_v0  ;;  %v251_v4 = vld [vmem:[%s338_s4 + $0x8] sm:$0xff]  }
   0x3   :  { %231 = vmatpush3.bf16.msra.mxu0 %v248_v1  ;;  %239 = vmatpush3.bf16.msra.mxu1 %v249_v2  ;;  %v26_v5 = vld [vmem:[%s339_s0] sm:$0xf]  ;;  %v27_v6 = vld [vmem:[%s339_s0 + $0x4] sm:$0xf] }
   0x4   :  { %232 = vmatprep.subr.bf16.mxu0 %v253_v0  ;;  %240 = vmatprep.subr.bf16.mxu1 %v253_v0  ;;  %v28_v7 = vld [vmem:[%s340_s1] sm:$0xf]  ;;  %v29_v8 = vld [vmem:[%s340_s1 + $0x4] sm:$0xf]  ;;  %v214_v11 = vcombine.low %v26_v5, %v27_v6 }
   0x5   :  { %v30_v9 = vadd.bf16 %v28_v7, %v26_v5  ;;  %v31_v10 = vadd.bf16 %v29_v8, %v27_v6  ;;  %v206_v13 = vld [vmem:[%s341_s3] ss:$0 sm:$0xff] }
   0x6   :  { %v213_v14 = vld [vmem:[%s342_s5] ss:$0 sm:$0xff] }
   0x7   :  { %233 = vmatpush3.bf16.msra.mxu0 %v250_v3  ;;  %241 = vmatpush3.bf16.msra.mxu1 %v251_v4  ;;  %v207_v12 = vcombine.low %v30_v9, %v31_v10 }
   0xa   :  { %235 = vmatmul.mubr.msk.bf16.vlgmr.msra.gmra.mrb[0].mxu0 %vm60_vm1, %v207_v12  ;;  %243 = vmatmul.mubr.msk.bf16.vlgmr.msra.gmra.mrb[0].mxu1 %vm60_vm1, %v214_v11 }
  0xdd   :  { %v98_v15 = vpop.f32.mrb[0].mxu0  ;;  %v181_v16 = vpop.f32.mrb[0].mxu1 }
  0xde   :  { %v99_v17 = vadd.f32 %v206_v13, %v98_v15  ;;  %v182_v18 = vadd.f32 %v213_v14, %v181_v16  ;;  %v236_v19 = vpop.f32.mrb[1].mxu0  ;;  %v244_v20 = vpop.f32.mrb[1].mxu1 }
  0xdf   :  { %v101_v21 = vpop.f32.mrb[2].mxu0  ;;  %v184_v22 = vpop.f32.mrb[2].mxu1 }
  0xe0   :  { %v220_v23 = vpack.c.bf16 %v99_v17, %v99_v17  ;;  %v222_v24 = vpack.c.bf16 %v182_v18, %v182_v18  ;;  %v102_v25 = vadd.f32 %v206_v13, %v101_v21  ;;  %v185_v26 = vadd.f32 %v213_v14, %v184_v22  ;;  %v237_v27 = vpop.f32.mrb[3].mxu0  ;;  %v245_v28 = vpop.f32.mrb[3].mxu1 }
  0xe2   :  { %114 = vst.msk [vmem:[%s343_s6] sm:$0xf] %vm113_vm2, %v220_v23  ;;  %196 = vst.msk [vmem:[%s344_s7] sm:$0xf] %vm113_vm2, %v222_v24  ;;  %v221_v29 = vpack.c.bf16 %v102_v25, %v102_v25  ;;  %v223_v30 = vpack.c.bf16 %v185_v26, %v185_v26 }
  0xe4   :  { %115 = vst.msk [vmem:[%s343_s6 + $0x4] sm:$0xf] %vm113_vm2, %v221_v29  ;;  %197 = vst.msk [vmem:[%s344_s7 + $0x4] sm:$0xf] %vm113_vm2, %v223_v30 }

// kernel: _lambda_.60
= control target key start
LH: loop header
LB: loop body
LE: loop exit
PB: predicated region body
PF: predicated region fallthrough
CT: control target
= control target key end

     0   :  { %vm129_vm0 = vcmask 261120   ;;  %vm315_vm1 = vcmask 125952   ;;  %s625_s2 = inlined_call_operand.vmem [shape: bf16[32,16], index: 2, kind: input, shape index: {}]   ;;  %s626_s0 = inlined_call_operand.vmem [shape: bf16[128,32], index: 0, kind: input, shape index: {}]   ;;  %s627_s1 = inlined_call_operand.vmem [shape: bf16[128,32], index: 1, kind: input, shape index: {}]   ;;  %s628_s3 = inlined_call_operand.vmem [shape: f32[1,16], index: 3, kind: input, shape index: {}]   ;;  %s629_s4 = inlined_call_operand.vmem [shape: bf16[128,16], index: 4, kind: output, shape index: {}]  }
   0x1   :  { %v421_v0 = vld [vmem:[%s625_s2] sm:$0xff]   ;;  %v422_v1 = vld [vmem:[%s625_s2 + $0x8] sm:$0xff]   ;;  %v22_v27 = vld [vmem:[%s626_s0 + $0x10] sm:$0xf] }
   0x2   :  { %397 = vmatprep.subr.bf16.mxu0 %v421_v0  ;;  %417 = vmatprep.subr.bf16.mxu1 %v421_v0  ;;  %v18_v2 = vld [vmem:[%s626_s0] sm:$0xf]  ;;  %v19_v3 = vld [vmem:[%s626_s0 + $0x4] sm:$0xf]  ;;  %v20_v12 = vld [vmem:[%s626_s0 + $0x8] sm:$0xf] }
   0x3   :  { %v34_v4 = vld [vmem:[%s627_s1] sm:$0xf]  ;;  %398 = vmatpush3.bf16.msra.mxu0 %v421_v0  ;;  %419 = vmatpush3.bf16.msra.mxu1 %v421_v0  ;;  %v35_v5 = vld [vmem:[%s627_s1 + $0x4] sm:$0xf]  ;;  %v21_v15 = vld [vmem:[%s626_s0 + $0xc] sm:$0xf] }
   0x4   :  { %v50_v6 = vadd.bf16 %v34_v4, %v18_v2  ;;  %v26_v7 = vld [vmem:[%s626_s0 + $0x20] sm:$0xf]  ;;  %v27_v8 = vld [vmem:[%s626_s0 + $0x24] sm:$0xf]  ;;  %399 = vmatprep.subr.bf16.mxu0 %v422_v1  ;;  %418 = vmatprep.subr.bf16.mxu1 %v422_v1  ;;  %v51_v9 = vadd.bf16 %v35_v5, %v19_v3  ;;  %v36_v16 = vld [vmem:[%s627_s1 + $0x8] sm:$0xf] }
   0x5   :  { %v42_v10 = vld [vmem:[%s627_s1 + $0x20] sm:$0xf]  ;;  %v43_v11 = vld [vmem:[%s627_s1 + $0x24] sm:$0xf]  ;;  %v37_v17 = vld [vmem:[%s627_s1 + $0xc] sm:$0xf]  ;;  %v52_v19 = vadd.bf16 %v36_v16, %v20_v12 }
   0x6   :  { %v58_v13 = vadd.bf16 %v42_v10, %v26_v7  ;;  %v59_v14 = vadd.bf16 %v43_v11, %v27_v8  ;;  %v337_v18 = vcombine.low %v50_v6, %v51_v9  ;;  %v53_v20 = vadd.bf16 %v37_v17, %v21_v15  ;;  %v28_v21 = vld [vmem:[%s626_s0 + $0x28] sm:$0xf]  ;;  %v29_v22 = vld [vmem:[%s626_s0 + $0x2c] sm:$0xf]  ;;  %v23_v28 = vld [vmem:[%s626_s0 + $0x14] sm:$0xf] }
   0x7   :  { %v44_v23 = vld [vmem:[%s627_s1 + $0x28] sm:$0xf]  ;;  %400 = vmatpush3.bf16.msra.mxu0 %v422_v1  ;;  %420 = vmatpush3.bf16.msra.mxu1 %v422_v1  ;;  %v45_v25 = vld [vmem:[%s627_s1 + $0x2c] sm:$0xf]  ;;  %v38_v31 = vld [vmem:[%s627_s1 + $0x10] sm:$0xf] }
   0x8   :  { %v341_v24 = vcombine.low %v58_v13, %v59_v14  ;;  %v60_v26 = vadd.bf16 %v44_v23, %v28_v21  ;;  %401 = vmatprep.mubr.msk.bf16.mxu0 %vm129_vm0, %v337_v18  ;;  %v338_v29 = vcombine.low %v52_v19, %v53_v20  ;;  %v61_v30 = vadd.bf16 %v45_v25, %v29_v22  ;;  %v39_v32 = vld [vmem:[%s627_s1 + $0x14] sm:$0xf]  ;;  %v30_v33 = vld [vmem:[%s626_s0 + $0x30] sm:$0xf]  ;;  %v24_v42 = vld [vmem:[%s626_s0 + $0x18] sm:$0xf] }
   0x9   :  { %v54_v34 = vadd.bf16 %v38_v31, %v22_v27  ;;  %v55_v35 = vadd.bf16 %v39_v32, %v23_v28  ;;  %v31_v36 = vld [vmem:[%s626_s0 + $0x34] sm:$0xf]  ;;  %v46_v37 = vld [vmem:[%s627_s1 + $0x30] sm:$0xf]  ;;  %v25_v43 = vld [vmem:[%s626_s0 + $0x1c] sm:$0xf] }
   0xa   :  { %409 = vmatprep.mubr.msk.bf16.mxu1 %vm129_vm0, %v341_v24  ;;  %v47_v38 = vld [vmem:[%s627_s1 + $0x34] sm:$0xf]  ;;  %402 = vmatmul.mubr.msk.bf16.vlgmr.msra.gmra.mrb[0].mxu0 %vm129_vm0, %v338_v29  ;;  %v342_v39 = vcombine.low %v60_v26, %v61_v30  ;;  %v62_v40 = vadd.bf16 %v46_v37, %v30_v33  ;;  %v40_v44 = vld [vmem:[%s627_s1 + $0x18] sm:$0xf]  ;;  %v41_v46 = vld [vmem:[%s627_s1 + $0x1c] sm:$0xf] }
   0xb   :  { %v63_v41 = vadd.bf16 %v47_v38, %v31_v36  ;;  %v339_v45 = vcombine.low %v54_v34, %v55_v35  ;;  %v56_v47 = vadd.bf16 %v40_v44, %v24_v42  ;;  %v32_v48 = vld [vmem:[%s626_s0 + $0x38] sm:$0xf]  ;;  %v33_v49 = vld [vmem:[%s626_s0 + $0x3c] sm:$0xf]  ;;  %v57_v51 = vadd.bf16 %v41_v46, %v25_v43  ;;  %v336_v58 = vld [vmem:[%s628_s3] ss:$0 sm:$0xff] }
   0xc   :  { %410 = vmatmul.mubr.msk.bf16.vlgmr.msra.gmra.mrb[0].mxu1 %vm129_vm0, %v342_v39  ;;  %v48_v52 = vld [vmem:[%s627_s1 + $0x38] sm:$0xf]  ;;  %v49_v53 = vld [vmem:[%s627_s1 + $0x3c] sm:$0xf] }
   0xd   :  { %v343_v50 = vcombine.low %v62_v40, %v63_v41  ;;  %405 = vmatprep.mubr.msk.bf16.mxu0 %vm129_vm0, %v339_v45  ;;  %v64_v54 = vadd.bf16 %v48_v52, %v32_v48  ;;  %v65_v55 = vadd.bf16 %v49_v53, %v33_v49  ;;  %v340_v56 = vcombine.low %v56_v47, %v57_v51 }
   0xf   :  { %413 = vmatprep.mubr.msk.bf16.mxu1 %vm129_vm0, %v343_v50  ;;  %v344_v57 = vcombine.low %v64_v54, %v65_v55 }
  0x12   :  { %406 = vmatmul.mubr.msk.bf16.gmra.mrb[4].mxu0 %vm129_vm0, %v340_v56 }
  0x14   :  { %414 = vmatmul.mubr.msk.bf16.gmra.mrb[4].mxu1 %vm129_vm0, %v344_v57 }
  0xdd   :  { %v403_v59 = vpop.f32.mrb[0].mxu0 }
  0xde   :  { %v197_v60 = vadd.f32 %v403_v59, %v336_v58  ;;  %v188_v61 = vpop.f32.mrb[1].mxu0 }
  0xdf   :  { %v411_v62 = vpop.f32.mrb[0].mxu1  ;;  %v189_v63 = vadd.f32 %v336_v58, %v188_v61  ;;  %v404_v0 = vpop.f32.mrb[2].mxu0 }
  0xe0   :  { %v373_v1 = vpack.c.bf16 %v197_v60, %v197_v60  ;;  %v229_v2 = vadd.f32 %v411_v62, %v336_v58  ;;  %v220_v3 = vpop.f32.mrb[1].mxu1  ;;  %v200_v4 = vadd.f32 %v404_v0, %v336_v58  ;;  %v191_v5 = vpop.f32.mrb[3].mxu0 }
  0xe1   :  { %v371_v6 = vpack.c.bf16 %v189_v63, %v189_v63  ;;  %v221_v7 = vadd.f32 %v336_v58, %v220_v3  ;;  %v412_v8 = vpop.f32.mrb[2].mxu1  ;;  %v192_v9 = vadd.f32 %v336_v58, %v191_v5 }
  0xe2   :  { %318 = vst.msk [vmem:[%s629_s4 + $0x8] sm:$0xf] %vm315_vm1, %v373_v1  ;;  %v381_v10 = vpack.c.bf16 %v229_v2, %v229_v2  ;;  %v374_v11 = vpack.c.bf16 %v200_v4, %v200_v4  ;;  %v232_v12 = vadd.f32 %v412_v8, %v336_v58  ;;  %v223_v13 = vpop.f32.mrb[3].mxu1 }
  0xe3   :  { %316 = vst.msk [vmem:[%s629_s4] sm:$0xf] %vm315_vm1, %v371_v6  ;;  %v379_v14 = vpack.c.bf16 %v221_v7, %v221_v7  ;;  %v372_v15 = vpack.c.bf16 %v192_v9, %v192_v9  ;;  %v224_v16 = vadd.f32 %v336_v58, %v223_v13 }
  0xe4   :  { %326 = vst.msk [vmem:[%s629_s4 + $0x28] sm:$0xf] %vm315_vm1, %v381_v10  ;;  %319 = vst.msk [vmem:[%s629_s4 + $0xc] sm:$0xf] %vm315_vm1, %v374_v11  ;;  %v382_v17 = vpack.c.bf16 %v232_v12, %v232_v12 }
  0xe5   :  { %324 = vst.msk [vmem:[%s629_s4 + $0x20] sm:$0xf] %vm315_vm1, %v379_v14  ;;  %317 = vst.msk [vmem:[%s629_s4 + $0x4] sm:$0xf] %vm315_vm1, %v372_v15  ;;  %v380_v18 = vpack.c.bf16 %v224_v16, %v224_v16  ;;  %v407_v19 = vpop.f32.mrb[4].mxu0 }
  0xe6   :  { %327 = vst.msk [vmem:[%s629_s4 + $0x2c] sm:$0xf] %vm315_vm1, %v382_v17  ;;  %v213_v20 = vadd.f32 %v407_v19, %v336_v58  ;;  %v204_v21 = vpop.f32.mrb[5].mxu0 }
  0xe7   :  { %325 = vst.msk [vmem:[%s629_s4 + $0x24] sm:$0xf] %vm315_vm1, %v380_v18  ;;  %v415_v22 = vpop.f32.mrb[4].mxu1  ;;  %v205_v23 = vadd.f32 %v336_v58, %v204_v21  ;;  %v408_v24 = vpop.f32.mrb[6].mxu0 }
  0xe8   :  { %v377_v25 = vpack.c.bf16 %v213_v20, %v213_v20  ;;  %v245_v26 = vadd.f32 %v415_v22, %v336_v58  ;;  %v236_v27 = vpop.f32.mrb[5].mxu1  ;;  %v216_v28 = vadd.f32 %v408_v24, %v336_v58  ;;  %v207_v29 = vpop.f32.mrb[7].mxu0 }
  0xe9   :  { %v375_v30 = vpack.c.bf16 %v205_v23, %v205_v23  ;;  %v237_v31 = vadd.f32 %v336_v58, %v236_v27  ;;  %v416_v32 = vpop.f32.mrb[6].mxu1  ;;  %v208_v33 = vadd.f32 %v336_v58, %v207_v29 }
  0xea   :  { %322 = vst.msk [vmem:[%s629_s4 + $0x18] sm:$0xf] %vm315_vm1, %v377_v25  ;;  %v385_v34 = vpack.c.bf16 %v245_v26, %v245_v26  ;;  %v378_v35 = vpack.c.bf16 %v216_v28, %v216_v28  ;;  %v248_v36 = vadd.f32 %v416_v32, %v336_v58  ;;  %v239_v37 = vpop.f32.mrb[7].mxu1 }
  0xeb   :  { %320 = vst.msk [vmem:[%s629_s4 + $0x10] sm:$0xf] %vm315_vm1, %v375_v30  ;;  %v383_v38 = vpack.c.bf16 %v237_v31, %v237_v31  ;;  %v376_v39 = vpack.c.bf16 %v208_v33, %v208_v33  ;;  %v240_v40 = vadd.f32 %v336_v58, %v239_v37 }
  0xec   :  { %330 = vst.msk [vmem:[%s629_s4 + $0x38] sm:$0xf] %vm315_vm1, %v385_v34  ;;  %323 = vst.msk [vmem:[%s629_s4 + $0x1c] sm:$0xf] %vm315_vm1, %v378_v35  ;;  %v386_v41 = vpack.c.bf16 %v248_v36, %v248_v36 }
  0xed   :  { %328 = vst.msk [vmem:[%s629_s4 + $0x30] sm:$0xf] %vm315_vm1, %v383_v38  ;;  %321 = vst.msk [vmem:[%s629_s4 + $0x14] sm:$0xf] %vm315_vm1, %v376_v39  ;;  %v384_v42 = vpack.c.bf16 %v240_v40, %v240_v40 }
  0xee   :  { %331 = vst.msk [vmem:[%s629_s4 + $0x3c] sm:$0xf] %vm315_vm1, %v386_v41 }
  0xef   :  { %329 = vst.msk [vmem:[%s629_s4 + $0x34] sm:$0xf] %vm315_vm1, %v384_v42 }

// kernel: _lambda_.62
= control target key start
LH: loop header
LB: loop body
LE: loop exit
PB: predicated region body
PF: predicated region fallthrough
CT: control target
= control target key end

     0   :  { %s1286_s12 = smov 0   ;;  %s1288_s13 = smov 0   ;;  %s1485_s0 = inlined_call_operand.vmem [shape: bf16[2,64,16], index: 0, kind: input, shape index: {}]   ;;  %s1486_s1 = inlined_call_operand.vmem [shape: bf16[2,8,16], index: 1, kind: input, shape index: {}]   ;;  %s1487_s2 = inlined_call_operand.vmem [shape: bf16[2,8,16], index: 2, kind: input, shape index: {}]   ;;  %s1488_s3 = inlined_call_operand.vmem [shape: bf16[2,64,16], index: 3, kind: output, shape index: {}]  }
   0x1   :  { %s1290_s14 = smov 0  }
   0x2 LB: > { %s25_s15 = sadd.s32 1, %s1258_s13  ;;  %p1011_p0 = scmp.ge.s32.totalorder %s1262_s14, 1  ;;  %s1262_s14 = sphi %s1290_s14, %s13_s14   ;;  %s1258_s13 = sphi %s1288_s13, %s1490_s13   ;;  %s1254_s12 = sphi %s1286_s12, %s1489_s12  }
   0x3   : > { %p27_p1 = scmp.ge.s32.totalorder %s25_s15, 2  ;;  %p176_p2 = scmp.lt.s32.totalorder %s1262_s14, 3 }
   0x5   : > { %s1492_s15 = smov (%p27_p1, %s25_s15), 0  ;;  %p177_p3 = pnand %p1011_p0, %p176_p2 }
   0x6   : > { %p217_p4 = scmp.lt.s32.totalorder (!%p177_p3), %s1254_s12, 1  ;;  %vm275_vm0 = vcmask (!%p177_p3), 64512   ;;  %vm468_vm1 = vcmask (!%p177_p3), 1043456   ;;  %s1264_s27 = smov (!%p177_p3), 120   ;;  %vm887_vm2 = vcmask (!%p177_p3), 125952  }
   0x7   : > { %180 = sbr.rel (%p177_p3) target bundleno = 1474 (0x5c2), region = 32  ;;  %s1265_s28 = smov (!%p177_p3), 8  }
   0xe   : > { %s1494_s12 = smov (!%p217_p4, %s1254_s12), 1 }
   0xf   : > { %s1050_s16 = sshll.u32 %s1494_s12, 5  ;;  %s1014_s17 = sshll.u32 %s1494_s12, 2 }
  0x10   : > { %s224_s20 = scalar_lea.vmem %s1485_s0, %s1050_s16  ;;  %s229_s23 = scalar_lea.vmem %s1486_s1, %s1014_s17 }
  0x11   : > { %v1318_v0 = vld [vmem:[%s229_s23] sm:$0xf]  ;;  %v1328_v3 = vld [vmem:[%s224_s20 + $0x8] sm:$0xff]   ;;  %v1330_v4 = vld [vmem:[%s224_s20 + $0x10] sm:$0xff]   ;;  %s233_s26 = scalar_lea.vmem %s1487_s2, %s1014_s17  ;;  %s1442_s4 = scalar_lea.vmem %s1488_s3, %s1050_s16 }
  0x12   : > { %1120 = vmatprep.subr.msk.bf16.mxu0 %vm275_vm0, %v1318_v0  ;;  %v289_v1 = vsel %vm275_vm0, %v1318_v0, 0  ;;  %v1324_v2 = vld [vmem:[%s224_s20] sm:$0xff]   ;;  %v1336_v5 = vld [vmem:[%s224_s20 + $0x18] sm:$0xff]  }
  0x13   : > { %1081 = vmatpush3.bf16.xpose.msra.mxu0 %v289_v1  ;;  %1082 = vmatprep.mubr.msk.bf16.mxu0 %vm275_vm0, %v1324_v2 }
  0x1a   : > { %1083 = vmatmul.mubr.msk.bf16.vlgmr.msra.gmra.mrb[0].mxu0 %vm275_vm0, %v1328_v3 }
  0x1b   : > { %1086 = vmatprep.mubr.msk.bf16.mxu0 %vm275_vm0, %v1330_v4 }
  0x22   : > { %1087 = vmatmul.mubr.msk.bf16.gmra.mrb[4].mxu0 %vm275_vm0, %v1336_v5 }
  0xed   : > { %v1084_v6 = vpop.f32.mrb[0].mxu0 }
  0xee   : > { %v358_v7 = vmul.f32 0.35355338, %v1084_v6  ;;  %v325_v8 = vpop.f32.mrb[1].mxu0 }
  0xef   : > { %v356_v9 = vmul.f32 0.35355338, %v325_v8  ;;  %v1085_v10 = vpop.f32.mrb[2].mxu0 }
  0xf0   : > { %v359_v11 = vmul.f32 0.35355338, %v1085_v10  ;;  %v328_v12 = vpop.f32.mrb[3].mxu0  ;;  %v370_v13 = vsel %vm275_vm0, %v358_v7, -inf }
  0xf1   : > { %v357_v14 = vmul.f32 0.35355338, %v328_v12  ;;  %371 = vmax.xlane.f32.xlu1 %v370_v13  ;;  %v364_v15 = vsel %vm275_vm0, %v356_v9, -inf  ;;  %v1030_v12 = vcombine.low %v1318_v0, %v1318_v0 }
  0xf2   : > { %365 = vmax.xlane.f32.xlu0 %v364_v15  ;;  %v373_v16 = vsel %vm275_vm0, %v359_v11, -inf }
  0xf3   : > { %v367_v18 = vsel %vm275_vm0, %v357_v14, -inf }
  0xf5   : > { %374 = vmax.xlane.f32.xlu1 %v373_v16  ;;  %v1088_v17 = vpop.f32.mrb[4].mxu0 }
  0xf6   : > { %368 = vmax.xlane.f32.xlu0 %v367_v18  ;;  %v341_v19 = vpop.f32.mrb[5].mxu0  ;;  %v362_v23 = vmul.f32 0.35355338, %v1088_v17 }
  0xf7   : > { %v360_v20 = vmul.f32 0.35355338, %v341_v19  ;;  %v1089_v21 = vpop.f32.mrb[6].mxu0 }
  0xf8   : > { %v344_v22 = vpop.f32.mrb[7].mxu0  ;;  %v363_v26 = vmul.f32 0.35355338, %v1089_v21  ;;  %v382_v28 = vsel %vm275_vm0, %v362_v23, -inf }
  0xf9   : > { %v361_v24 = vmul.f32 0.35355338, %v344_v22  ;;  %v376_v25 = vsel %vm275_vm0, %v360_v20, -inf }
  0xfa   : > { %377 = vmax.xlane.f32.xlu0 %v376_v25  ;;  %v385_v29 = vsel %vm275_vm0, %v363_v26, -inf }
  0xfb   : > { %v379_v27 = vsel %vm275_vm0, %v361_v24, -inf }
  0xfc   : > { %380 = vmax.xlane.f32.xlu1 %v379_v27 }
  0xfe   : > { %383 = vmax.xlane.f32.xlu0 %v382_v28 }
 0x100   : > { %386 = vmax.xlane.f32.xlu1 %v385_v29 }
 0x17e   : > { %v372_v30 = vpop.xlane.xlu1 %371 }
 0x17f   : > { %v390_v31 = vsub.f32 %v358_v7, %v372_v30  ;;  %v366_v32 = vpop.xlane.xlu0 %365 }
 0x180   : > { %v388_v33 = vsub.f32 %v356_v9, %v366_v32 }
 0x181   : > { %v400_v34 = vmul.f32 1.442695, %v390_v31 }
 0x182   : > { %v396_v35 = vmul.f32 1.442695, %v388_v33  ;;  %v375_v36 = vpop.xlane.xlu1 %374 }
 0x183   : > { %1176 = vpow2.f32 %v400_v34  ;;  %v391_v37 = vsub.f32 %v359_v11, %v375_v36  ;;  %v369_v38 = vpop.xlane.xlu0 %368  ;;  %v1367_v11 = vld [vmem:[%s233_s26] sm:$0xf] }
 0x184   : > { %v389_v39 = vsub.f32 %v357_v14, %v369_v38  ;;  %1178 = vpow2.f32 %v396_v35  ;;  %1121 = vmatprep.subr.msk.bf16.mxu1 %vm468_vm1, %v1367_v11  ;;  %v470_v13 = vsel %vm468_vm1, %v1367_v11, 0 }
 0x185   : > { %v402_v40 = vmul.f32 1.442695, %v391_v37  ;;  %1091 = vmatpush3.bf16.msra.mxu1 %v470_v13 }
 0x186   : > { %v398_v41 = vmul.f32 1.442695, %v389_v39 }
 0x187   : > { %1180 = vpow2.f32 %v402_v40  ;;  %v378_v42 = vpop.xlane.xlu0 %377 }
 0x188   : > { %1182 = vpow2.f32 %v398_v41  ;;  %v392_v43 = vsub.f32 %v360_v20, %v378_v42 }
 0x189   : > { %v381_v44 = vpop.xlane.xlu1 %380 }
 0x18a   : > { %v393_v46 = vsub.f32 %v361_v24, %v381_v44  ;;  %v404_v49 = vmul.f32 1.442695, %v392_v43 }
 0x18b   : > { %v384_v45 = vpop.xlane.xlu0 %383 }
 0x18c   : > { %v394_v47 = vsub.f32 %v362_v23, %v384_v45  ;;  %v406_v55 = vmul.f32 1.442695, %v393_v46 }
 0x18d   : > { %v1348_v48 = vpop.eup %1176  ;;  %v387_v50 = vpop.xlane.xlu1 %386 }
 0x18e   : > { %v408_v51 = vmul.f32 1.442695, %v394_v47  ;;  %v395_v52 = vsub.f32 %v363_v26, %v387_v50  ;;  %v418_v53 = vsel %vm275_vm0, %v1348_v48, 0.0  ;;  %v1179_v54 = vpop.eup %1178 }
 0x18f   : > { %419 = vadd.xlane.f32.xlu0 %v418_v53  ;;  %v412_v58 = vsel %vm275_vm0, %v1179_v54, 0.0 }
 0x190   : > { %1184 = vpow2.f32 %v408_v51  ;;  %v410_v56 = vmul.f32 1.442695, %v395_v52 }
 0x191   : > { %v1181_v57 = vpop.eup %1180  ;;  %1186 = vpow2.f32 %v404_v49 }
 0x192   : > { %1188 = vpow2.f32 %v410_v56  ;;  %v421_v59 = vsel %vm275_vm0, %v1181_v57, 0.0  ;;  %v1183_v60 = vpop.eup %1182 }
 0x193   : > { %413 = vadd.xlane.f32.xlu0 %v412_v58  ;;  %422 = vadd.xlane.f32.xlu1 %v421_v59  ;;  %1190 = vpow2.f32 %v406_v55  ;;  %v415_v61 = vsel %vm275_vm0, %v1183_v60, 0.0 }
 0x197   : > { %416 = vadd.xlane.f32.xlu1 %v415_v61 }
 0x19a   : > { %v1355_v62 = vpop.eup %1184 }
 0x19b   : > { %v1187_v63 = vpop.eup %1186  ;;  %v430_v1 = vsel %vm275_vm0, %v1355_v62, 0.0 }
 0x19c   : > { %v1189_v6 = vpop.eup %1188  ;;  %431 = vadd.xlane.f32.xlu0 %v430_v1  ;;  %v424_v9 = vsel %vm275_vm0, %v1187_v63, 0.0 }
 0x19d   : > { %v433_v7 = vsel %vm275_vm0, %v1189_v6, 0.0  ;;  %v1191_v8 = vpop.eup %1190 }
 0x19e   : > { %434 = vadd.xlane.f32.xlu1 %v433_v7  ;;  %v427_v10 = vsel %vm275_vm0, %v1191_v8, 0.0 }
 0x1a0   : > { %425 = vadd.xlane.f32.xlu0 %v424_v9 }
 0x1a2   : > { %428 = vadd.xlane.f32.xlu1 %v427_v10 }
 0x1b3   : > { %537 = vrot.lane.b32.xlu1 %v1324_v2, %s1264_s27 }
 0x1b6   : > { %548 = vrot.lane.b32.xlu0 %v1030_v12, %s1264_s27 }
 0x1b7   : > { %539 = vrot.lane.b32.xlu1 %v1328_v3, %s1264_s27 }
 0x1ba   : > { %543 = vrot.lane.b32.xlu0 %v1336_v5, %s1264_s27 }
 0x1bb   : > { %541 = vrot.lane.b32.xlu1 %v1330_v4, %s1264_s27 }
 0x21c   : > { %v420_v0 = vpop.xlane.xlu0 %419 }
 0x220   : > { %v414_v14 = vpop.xlane.xlu0 %413  ;;  %v423_v15 = vpop.xlane.xlu1 %422 }
 0x221   : > { %1192 = vrcp.f32 %v423_v15 }
 0x222   : > { %1194 = vrcp.f32 %v414_v14 }
 0x223   : > { %1196 = vrcp.f32 %v420_v0 }
 0x224   : > { %v417_v16 = vpop.xlane.xlu1 %416 }
 0x225   : > { %1198 = vrcp.f32 %v417_v16 }
 0x229   : > { %v432_v2 = vpop.xlane.xlu0 %431 }
 0x22b   : > { %v435_v17 = vpop.xlane.xlu1 %434  ;;  %v1193_v18 = vpop.eup %1192 }
 0x22c   : > { %v1195_v19 = vpop.eup %1194  ;;  %1200 = vrcp.f32 %v435_v17  ;;  %v447_v4 = vmul.f32 %v1193_v18, %v1181_v57 }
 0x22d   : > { %v426_v3 = vpop.xlane.xlu0 %425  ;;  %v1197_v20 = vpop.eup %1196  ;;  %v444_v22 = vmul.f32 %v1195_v19, %v1179_v54 }
 0x22e   : > { %1202 = vrcp.f32 %v426_v3  ;;  %v446_v24 = vmul.f32 %v1197_v20, %v1348_v48 }
 0x22f   : > { %v1199_v5 = vpop.eup %1198  ;;  %1204 = vrcp.f32 %v432_v2  ;;  %v429_v21 = vpop.xlane.xlu1 %428 }
 0x230   : > { %1206 = vrcp.f32 %v429_v21  ;;  %v445_v23 = vmul.f32 %v1199_v5, %v1183_v60  ;;  %v453_v27 = vpack.c.bf16 %v447_v4, %v446_v24 }
 0x231   : > { %v549_v25 = vpop.permute.xlu0 %548 }
 0x232   : > { %v452_v26 = vpack.c.bf16 %v445_v23, %v444_v22  ;;  %1122 = vmatprep.subr.msk.bf16.mxu1 %vm275_vm0, %v549_v25  ;;  %v563_v28 = vsel %vm275_vm0, %v549_v25, 0 }
 0x233   : > { %v538_v37 = vpop.permute.xlu1 %537 }
 0x234   : > { %1092 = vmatprep.mubr.msk.bf16.mxu1 %vm275_vm0, %v452_v26 }
 0x235   : > { %1093 = vmatmul.mubr.msk.bf16.vlgmr.msra.gmra.mrb[0].mxu1 %vm275_vm0, %v453_v27  ;;  %v544_v42 = vpop.permute.xlu0 %543 }
 0x236   : > { %1101 = vmatpush3.bf16.xpose.msra.mxu1 %v563_v28  ;;  %v1201_v29 = vpop.eup %1200 }
 0x237   : > { %v451_v33 = vmul.f32 %v1201_v29, %v1189_v6  ;;  %v540_v40 = vpop.permute.xlu1 %539 }
 0x238   : > { %v1203_v30 = vpop.eup %1202 }
 0x239   : > { %v1205_v31 = vpop.eup %1204  ;;  %v448_v34 = vmul.f32 %v1203_v30, %v1187_v63 }
 0x23a   : > { %v1207_v32 = vpop.eup %1206  ;;  %v450_v36 = vmul.f32 %v1205_v31, %v1355_v62 }
 0x23b   : > { %v449_v35 = vmul.f32 %v1207_v32, %v1191_v8  ;;  %v542_v41 = vpop.permute.xlu1 %541 }
 0x23c   : > { %v455_v39 = vpack.c.bf16 %v451_v33, %v450_v36 }
 0x23d   : > { %v454_v38 = vpack.c.bf16 %v449_v35, %v448_v34 }
 0x23f   : > { %1096 = vmatprep.mubr.msk.bf16.mxu1 %vm275_vm0, %v454_v38 }
 0x240   : > { %1097 = vmatmul.mubr.msk.bf16.gmra.mrb[4].mxu1 %vm275_vm0, %v455_v39 }
 0x241   : > { %1102 = vmatprep.mubr.msk.bf16.mxu1 %vm275_vm0, %v538_v37 }
 0x248   : > { %1103 = vmatmul.mubr.msk.bf16.vlgmr.msra.gmra.mrb[8].mxu1 %vm275_vm0, %v540_v40 }
 0x249   : > { %1106 = vmatprep.mubr.msk.bf16.mxu1 %vm275_vm0, %v542_v41 }
 0x250   : > { %1107 = vmatmul.mubr.msk.bf16.gmra.mrb[12].mxu1 %vm275_vm0, %v544_v42 }
 0x308   : > { %v1396_v43 = vpop.f32.mrb[0].mxu1 }
 0x309   : > { %v1398_v44 = vpop.f32.mrb[1].mxu1 }
 0x30a   : > { %v1400_v45 = vpop.f32.mrb[2].mxu1 }
 0x30b   : > { %v1402_v46 = vpop.f32.mrb[3].mxu1 }
 0x313   : > { %v1404_v47 = vpop.f32.mrb[4].mxu1 }
 0x314   : > { %v1406_v48 = vpop.f32.mrb[5].mxu1 }
 0x315   : > { %v1408_v49 = vpop.f32.mrb[6].mxu1 }
 0x316   : > { %v1410_v50 = vpop.f32.mrb[7].mxu1 }
 0x31b   : > { %v1104_v51 = vpop.f32.mrb[8].mxu1 }
 0x31c   : > { %v632_v52 = vmul.f32 0.35355338, %v1104_v51  ;;  %v599_v53 = vpop.f32.mrb[9].mxu1 }
 0x31d   : > { %v630_v54 = vmul.f32 0.35355338, %v599_v53  ;;  %v1105_v55 = vpop.f32.mrb[10].mxu1 }
 0x31e   : > { %v602_v56 = vpop.f32.mrb[11].mxu1  ;;  %v644_v57 = vsel %vm275_vm0, %v632_v52, -inf  ;;  %v633_v61 = vmul.f32 0.35355338, %v1105_v55 }
 0x31f   : > { %v631_v58 = vmul.f32 0.35355338, %v602_v56  ;;  %645 = vmax.xlane.f32.xlu0 %v644_v57  ;;  %v638_v59 = vsel %vm275_vm0, %v630_v54, -inf }
 0x320   : > { %639 = vmax.xlane.f32.xlu1 %v638_v59  ;;  %v647_v8 = vsel %vm275_vm0, %v633_v61, -inf }
 0x321   : > { %v641_v60 = vsel %vm275_vm0, %v631_v58, -inf }
 0x323   : > { %642 = vmax.xlane.f32.xlu0 %v641_v60  ;;  %v1108_v62 = vpop.f32.mrb[12].mxu1  ;;  %v1035_v60 = vcombine.low %v1367_v11, %v1367_v11 }
 0x324   : > { %v615_v63 = vpop.f32.mrb[13].mxu1  ;;  %v636_v9 = vmul.f32 0.35355338, %v1108_v62 }
 0x325   : > { %v634_v1 = vmul.f32 0.35355338, %v615_v63  ;;  %v1109_v6 = vpop.f32.mrb[14].mxu1 }
 0x326   : > { %v618_v7 = vpop.f32.mrb[15].mxu1  ;;  %v637_v0 = vmul.f32 0.35355338, %v1109_v6  ;;  %v656_v14 = vsel %vm275_vm0, %v636_v9, -inf }
 0x327   : > { %v635_v10 = vmul.f32 0.35355338, %v618_v7  ;;  %648 = vmax.xlane.f32.xlu0 %v647_v8  ;;  %v650_v12 = vsel %vm275_vm0, %v634_v1, -inf }
 0x328   : > { %651 = vmax.xlane.f32.xlu1 %v650_v12  ;;  %v659_v15 = vsel %vm275_vm0, %v637_v0, -inf }
 0x329   : > { %v653_v13 = vsel %vm275_vm0, %v635_v10, -inf }
 0x32b   : > { %654 = vmax.xlane.f32.xlu0 %v653_v13 }
 0x32c   : > { %657 = vmax.xlane.f32.xlu1 %v656_v14 }
 0x32f   : > { %660 = vmax.xlane.f32.xlu0 %v659_v15 }
 0x3ac   : > { %v646_v16 = vpop.xlane.xlu0 %645 }
 0x3ad   : > { %v664_v2 = vsub.f32 %v632_v52, %v646_v16  ;;  %v640_v17 = vpop.xlane.xlu1 %639 }
 0x3ae   : > { %v662_v18 = vsub.f32 %v630_v54, %v640_v17 }
 0x3af   : > { %v674_v19 = vmul.f32 1.442695, %v664_v2 }
 0x3b0   : > { %v670_v3 = vmul.f32 1.442695, %v662_v18  ;;  %v643_v20 = vpop.xlane.xlu0 %642 }
 0x3b1   : > { %1208 = vpow2.f32 %v674_v19  ;;  %v663_v5 = vsub.f32 %v631_v58, %v643_v20 }
 0x3b2   : > { %1210 = vpow2.f32 %v670_v3 }
 0x3b3   : > { %v672_v21 = vmul.f32 1.442695, %v663_v5 }
 0x3b4   : > { %v649_v4 = vpop.xlane.xlu0 %648 }
 0x3b5   : > { %1212 = vpow2.f32 %v672_v21  ;;  %v665_v22 = vsub.f32 %v633_v61, %v649_v4  ;;  %v652_v23 = vpop.xlane.xlu1 %651 }
 0x3b6   : > { %v666_v25 = vsub.f32 %v634_v1, %v652_v23 }
 0x3b7   : > { %v676_v24 = vmul.f32 1.442695, %v665_v22 }
 0x3b8   : > { %v655_v26 = vpop.xlane.xlu0 %654  ;;  %v678_v32 = vmul.f32 1.442695, %v666_v25 }
 0x3b9   : > { %1214 = vpow2.f32 %v676_v24  ;;  %v667_v27 = vsub.f32 %v635_v10, %v655_v26  ;;  %v658_v28 = vpop.xlane.xlu1 %657 }
 0x3ba   : > { %v668_v29 = vsub.f32 %v636_v9, %v658_v28 }
 0x3bb   : > { %v1209_v30 = vpop.eup %1208  ;;  %v680_v31 = vmul.f32 1.442695, %v667_v27 }
 0x3bc   : > { %v682_v33 = vmul.f32 1.442695, %v668_v29  ;;  %v661_v34 = vpop.xlane.xlu0 %660  ;;  %v692_v35 = vsel %vm275_vm0, %v1209_v30, 0.0  ;;  %v1211_v36 = vpop.eup %1210 }
 0x3bd   : > { %1216 = vpow2.f32 %v680_v31  ;;  %v669_v37 = vsub.f32 %v637_v0, %v661_v34  ;;  %693 = vadd.xlane.f32.xlu1 %v692_v35  ;;  %v686_v41 = vsel %vm275_vm0, %v1211_v36, 0.0 }
 0x3be   : > { %1218 = vpow2.f32 %v682_v33 }
 0x3bf   : > { %v1213_v38 = vpop.eup %1212  ;;  %v684_v39 = vmul.f32 1.442695, %v669_v37  ;;  %1220 = vpow2.f32 %v678_v32 }
 0x3c0   : > { %v689_v40 = vsel %vm275_vm0, %v1213_v38, 0.0 }
 0x3c1   : > { %1222 = vpow2.f32 %v684_v39  ;;  %690 = vadd.xlane.f32.xlu0 %v689_v40  ;;  %687 = vadd.xlane.f32.xlu1 %v686_v41 }
 0x3c3   : > { %v1215_v42 = vpop.eup %1214 }
 0x3c4   : > { %v695_v51 = vsel %vm275_vm0, %v1215_v42, 0.0 }
 0x3c5   : > { %696 = vadd.xlane.f32.xlu0 %v695_v51 }
 0x3c7   : > { %v1217_v52 = vpop.eup %1216 }
 0x3c8   : > { %v1219_v53 = vpop.eup %1218  ;;  %v701_v54 = vsel %vm275_vm0, %v1217_v52, 0.0 }
 0x3c9   : > { %702 = vadd.xlane.f32.xlu0 %v701_v54  ;;  %v704_v55 = vsel %vm275_vm0, %v1219_v53, 0.0  ;;  %v1221_v56 = vpop.eup %1220 }
 0x3ca   : > { %705 = vadd.xlane.f32.xlu1 %v704_v55  ;;  %v698_v59 = vsel %vm275_vm0, %v1221_v56, 0.0 }
 0x3cb   : > { %v1223_v57 = vpop.eup %1222 }
 0x3cc   : > { %v707_v58 = vsel %vm275_vm0, %v1223_v57, 0.0 }
 0x3cd   : > { %708 = vadd.xlane.f32.xlu0 %v707_v58 }
 0x3ce   : > { %699 = vadd.xlane.f32.xlu1 %v698_v59 }
 0x3df   : > { %733 = vrot.lane.b32.xlu1 %v1035_v60, %s1264_s27 }
 0x44a   : > { %v694_v61 = vpop.xlane.xlu1 %693 }
 0x44e   : > { %v691_v62 = vpop.xlane.xlu0 %690  ;;  %v688_v63 = vpop.xlane.xlu1 %687 }
 0x44f   : > { %1224 = vrcp.f32 %v691_v62 }
 0x450   : > { %1226 = vrcp.f32 %v688_v63 }
 0x451   : > { %1228 = vrcp.f32 %v694_v61 }
 0x452   : > { %v697_v1 = vpop.xlane.xlu0 %696 }
 0x453   : > { %1230 = vrcp.f32 %v697_v1 }
 0x456   : > { %v703_v6 = vpop.xlane.xlu0 %702 }
 0x457   : > { %v706_v7 = vpop.xlane.xlu1 %705  ;;  %1232 = vrcp.f32 %v703_v6 }
 0x458   : > { %1234 = vrcp.f32 %v706_v7 }
 0x459   : > { %v1225_v8 = vpop.eup %1224 }
 0x45a   : > { %v1227_v9 = vpop.eup %1226  ;;  %v709_v10 = vpop.xlane.xlu0 %708  ;;  %v719_v12 = vmul.f32 %v1225_v8, %v1213_v38 }
 0x45b   : > { %1236 = vrcp.f32 %v709_v10  ;;  %v700_v11 = vpop.xlane.xlu1 %699  ;;  %v718_v13 = vmul.f32 %v1227_v9, %v1211_v36  ;;  %v1229_v0 = vpop.eup %1228 }
 0x45c   : > { %1238 = vrcp.f32 %v700_v11  ;;  %v720_v17 = vmul.f32 %v1229_v0, %v1209_v30 }
 0x45d   : > { %v1231_v14 = vpop.eup %1230  ;;  %v726_v15 = vpack.c.bf16 %v719_v12, %v718_v13 }
 0x45e   : > { %v721_v16 = vmul.f32 %v1231_v14, %v1215_v42 }
 0x45f   : > { %1112 = vmatprep.mubr.msk.bf16.mxu0 %vm275_vm0, %v726_v15  ;;  %v734_v2 = vpop.permute.xlu1 %733 }
 0x460   : > { %v748_v18 = vsel %vm468_vm1, %v734_v2, 0  ;;  %1123 = vmatprep.subr.msk.bf16.mxu0 %vm468_vm1, %v734_v2  ;;  %v727_v19 = vpack.c.bf16 %v721_v16, %v720_v17 }
 0x461   : > { %1111 = vmatpush3.bf16.msra.mxu0 %v748_v18  ;;  %v1233_v3 = vpop.eup %1232 }
 0x462   : > { %v1235_v20 = vpop.eup %1234  ;;  %v723_v23 = vmul.f32 %v1233_v3, %v1217_v52 }
 0x463   : > { %v724_v24 = vmul.f32 %v1235_v20, %v1219_v53 }
 0x464   : > { %1113 = vmatmul.mubr.msk.bf16.vlgmr.msra.gmra.mrb[8].mxu0 %vm275_vm0, %v727_v19 }
 0x465   : > { %v1237_v5 = vpop.eup %1236 }
 0x466   : > { %v1239_v21 = vpop.eup %1238  ;;  %v725_v4 = vmul.f32 %v1237_v5, %v1223_v57 }
 0x467   : > { %v722_v22 = vmul.f32 %v1239_v21, %v1221_v56 }
 0x468   : > { %v729_v26 = vpack.c.bf16 %v725_v4, %v724_v24 }
 0x469   : > { %v728_v25 = vpack.c.bf16 %v723_v23, %v722_v22 }
 0x46b   : > { %1116 = vmatprep.mubr.msk.bf16.mxu0 %vm275_vm0, %v728_v25 }
 0x46c   : > { %1117 = vmatmul.mubr.msk.bf16.gmra.mrb[12].mxu0 %vm275_vm0, %v729_v26 }
 0x537   : > { %v1114_v27 = vpop.f32.mrb[8].mxu0 }
 0x538   : > { %v784_v28 = vpop.f32.mrb[9].mxu0 }
 0x539   : > { %v1115_v29 = vpop.f32.mrb[10].mxu0 }
 0x53a   : > { %v1155_v30 = vpack.i.bf16 %v1115_v29, %v1114_v27  ;;  %v787_v31 = vpop.f32.mrb[11].mxu0 }
 0x53b   : > { %v1150_v32 = vpack.i.bf16 %v787_v31, %v784_v28 }
 0x53c   : > { %1156 = vrot.lane.b32.xlu1 %v1155_v30, %s1265_s28 }
 0x53d   : > { %1151 = vrot.lane.b32.xlu0 %v1150_v32, %s1265_s28 }
 0x53f   : > { %v1118_v33 = vpop.f32.mrb[12].mxu0 }
 0x540   : > { %v800_v34 = vpop.f32.mrb[13].mxu0 }
 0x541   : > { %v1119_v35 = vpop.f32.mrb[14].mxu0 }
 0x542   : > { %v1165_v36 = vpack.i.bf16 %v1119_v35, %v1118_v33  ;;  %v803_v37 = vpop.f32.mrb[15].mxu0 }
 0x543   : > { %v1160_v38 = vpack.i.bf16 %v803_v37, %v800_v34 }
 0x545   : > { %1161 = vrot.lane.b32.xlu1 %v1160_v38, %s1265_s28 }
 0x549   : > { %1166 = vrot.lane.b32.xlu1 %v1165_v36, %s1265_s28 }
 0x5ae   : > { %v1157_v39 = vpop.permute.xlu1 %1156 }
 0x5af   : > { %v1159_v40 = vunpack.i.h.bf16 %v1157_v39  ;;  %v1158_v41 = vunpack.i.l.bf16 %v1157_v39  ;;  %v1152_v42 = vpop.permute.xlu0 %1151 }
 0x5b0   : > { %v1154_v51 = vunpack.i.h.bf16 %v1152_v42  ;;  %v1153_v52 = vunpack.i.l.bf16 %v1152_v42 }
 0x5b1   : > { %v850_v53 = vsel %vm275_vm0, %v1400_v45, %v1159_v40  ;;  %v849_v54 = vsel %vm275_vm0, %v1396_v43, %v1158_v41 }
 0x5b2   : > { %v1055_v55 = vpack.c.bf16 %v850_v53, %v850_v53  ;;  %v1054_v56 = vpack.c.bf16 %v849_v54, %v849_v54  ;;  %v848_v57 = vsel %vm275_vm0, %v1402_v46, %v1154_v51  ;;  %v847_v58 = vsel %vm275_vm0, %v1398_v44, %v1153_v52 }
 0x5b3   : > { %v1053_v59 = vpack.c.bf16 %v848_v57, %v848_v57  ;;  %v1052_v60 = vpack.c.bf16 %v847_v58, %v847_v58 }
 0x5b4   : > { %891 = vst.msk [vmem:[%s1442_s4 + $0xc] sm:$0xf] %vm887_vm2, %v1055_v55  ;;  %890 = vst.msk [vmem:[%s1442_s4 + $0x8] sm:$0xf] %vm887_vm2, %v1054_v56 }
 0x5b5   : > { %889 = vst.msk [vmem:[%s1442_s4 + $0x4] sm:$0xf] %vm887_vm2, %v1053_v59  ;;  %888 = vst.msk [vmem:[%s1442_s4] sm:$0xf] %vm887_vm2, %v1052_v60 }
 0x5b7   : > { %v1162_v43 = vpop.permute.xlu1 %1161 }
 0x5b8   : > { %v1164_v45 = vunpack.i.h.bf16 %v1162_v43  ;;  %v1163_v46 = vunpack.i.l.bf16 %v1162_v43 }
 0x5ba   : > { %v852_v44 = vsel %vm275_vm0, %v1410_v50, %v1164_v45  ;;  %v851_v61 = vsel %vm275_vm0, %v1406_v48, %v1163_v46 }
 0x5bb   : > { %v1057_v62 = vpack.c.bf16 %v852_v44, %v852_v44  ;;  %v1056_v63 = vpack.c.bf16 %v851_v61, %v851_v61  ;;  %v1167_v1 = vpop.permute.xlu1 %1166 }
 0x5bc   : > { %v1169_v6 = vunpack.i.h.bf16 %v1167_v1  ;;  %v1168_v7 = vunpack.i.l.bf16 %v1167_v1 }
 0x5bd   : > { %893 = vst.msk [vmem:[%s1442_s4 + $0x14] sm:$0xf] %vm887_vm2, %v1057_v62  ;;  %892 = vst.msk [vmem:[%s1442_s4 + $0x10] sm:$0xf] %vm887_vm2, %v1056_v63 }
 0x5be   : > { %v854_v8 = vsel %vm275_vm0, %v1408_v49, %v1169_v6  ;;  %v853_v9 = vsel %vm275_vm0, %v1404_v47, %v1168_v7 }
 0x5bf   : > { %v1059_v10 = vpack.c.bf16 %v854_v8, %v854_v8  ;;  %v1058_v50 = vpack.c.bf16 %v853_v9, %v853_v9 }
 0x5c1   : > { %895 = vst.msk [vmem:[%s1442_s4 + $0x1c] sm:$0xf] %vm887_vm2, %v1059_v10  ;;  %894 = vst.msk [vmem:[%s1442_s4 + $0x18] sm:$0xf] %vm887_vm2, %v1058_v50 }
 0x5c2 PF: > { %s13_s14 = sadd.s32 1, %s1262_s14   ;;  %s1489_s12 = smov %s1258_s13 }
 0x5c3   : > { %p10_p5 = scmp.ge.s32.totalorder %s13_s14, 4   ;;  %s1490_s13 = smov %s1492_s15 }
 0x5c5   :  { %12 = sbr.rel (!%p10_p5) target bundleno = 2 (0x2), region = 68 }

// kernel: _lambda_.63
= control target key start
LH: loop header
LB: loop body
LE: loop exit
PB: predicated region body
PF: predicated region fallthrough
CT: control target
= control target key end

     0   :  { %vm86_vm0 = vcmask 130048   ;;  %vm272_vm1 = vcmask 257024   ;;  %s503_s1 = inlined_call_operand.vmem [shape: bf16[16,32], index: 1, kind: input, shape index: {}]   ;;  %s504_s0 = inlined_call_operand.vmem [shape: bf16[128,16], index: 0, kind: input, shape index: {}]   ;;  %s505_s2 = inlined_call_operand.vmem [shape: f32[1,32], index: 2, kind: input, shape index: {}]   ;;  %s506_s3 = inlined_call_operand.vmem [shape: bf16[128,32], index: 3, kind: output, shape index: {}]  }
   0x1   :  { %v372_v0 = vld [vmem:[%s503_s1] sm:$0xff]   ;;  %v375_v3 = vld [vmem:[%s504_s0 + $0x8] sm:$0xff]   ;;  %v377_v5 = vld [vmem:[%s504_s0 + $0x10] sm:$0xff]  }
   0x2   :  { %v373_v1 = vld [vmem:[%s504_s0] sm:$0xff]   ;;  %352 = vmatprep.subr.bf16.mxu0 %v372_v0  ;;  %370 = vmatprep.subr.bf16.mxu1 %v372_v0  ;;  %v376_v4 = vld [vmem:[%s504_s0 + $0x28] sm:$0xff]   ;;  %v378_v6 = vld [vmem:[%s504_s0 + $0x30] sm:$0xff]  }
   0x3   :  { %v374_v2 = vld [vmem:[%s504_s0 + $0x20] sm:$0xff]   ;;  %353 = vmatpush3.bf16.msra.mxu0 %v372_v0  ;;  %371 = vmatpush3.bf16.msra.mxu1 %v372_v0  ;;  %v379_v7 = vld [vmem:[%s504_s0 + $0x18] sm:$0xff]  }
   0x4   :  { %354 = vmatprep.mubr.msk.bf16.mxu0 %vm86_vm0, %v373_v1  ;;  %362 = vmatprep.mubr.msk.bf16.mxu1 %vm86_vm0, %v374_v2  ;;  %v380_v8 = vld [vmem:[%s504_s0 + $0x38] sm:$0xff]   ;;  %v293_v9 = vld [vmem:[%s505_s2] ss:$0 sm:$0xff] }
   0x6   :  { %355 = vmatmul.mubr.msk.bf16.vlgmr.msra.gmra.mrb[0].mxu0 %vm86_vm0, %v375_v3  ;;  %363 = vmatmul.mubr.msk.bf16.vlgmr.msra.gmra.mrb[0].mxu1 %vm86_vm0, %v376_v4 }
   0x7   :  { %358 = vmatprep.mubr.msk.bf16.mxu0 %vm86_vm0, %v377_v5  ;;  %366 = vmatprep.mubr.msk.bf16.mxu1 %vm86_vm0, %v378_v6 }
   0xe   :  { %359 = vmatmul.mubr.msk.bf16.gmra.mrb[4].mxu0 %vm86_vm0, %v379_v7  ;;  %367 = vmatmul.mubr.msk.bf16.gmra.mrb[4].mxu1 %vm86_vm0, %v380_v8 }
  0xd9   :  { %v356_v10 = vpop.f32.mrb[0].mxu0  ;;  %v364_v11 = vpop.f32.mrb[0].mxu1 }
  0xda   :  { %v154_v12 = vadd.f32 %v356_v10, %v293_v9  ;;  %v186_v13 = vadd.f32 %v364_v11, %v293_v9  ;;  %v145_v14 = vpop.f32.mrb[1].mxu0  ;;  %v177_v15 = vpop.f32.mrb[1].mxu1 }
  0xdb   :  { %v146_v16 = vadd.f32 %v293_v9, %v145_v14  ;;  %v178_v17 = vadd.f32 %v293_v9, %v177_v15  ;;  %v357_v18 = vpop.f32.mrb[2].mxu0  ;;  %v365_v19 = vpop.f32.mrb[2].mxu1 }
  0xdc   :  { %v329_v20 = vpack.c.bf16 %v154_v12, %v154_v12  ;;  %v337_v21 = vpack.c.bf16 %v186_v13, %v186_v13  ;;  %v157_v22 = vadd.f32 %v357_v18, %v293_v9  ;;  %v189_v23 = vadd.f32 %v365_v19, %v293_v9  ;;  %v148_v24 = vpop.f32.mrb[3].mxu0  ;;  %v180_v25 = vpop.f32.mrb[3].mxu1 }
  0xdd   :  { %v327_v26 = vpack.c.bf16 %v146_v16, %v146_v16  ;;  %v335_v27 = vpack.c.bf16 %v178_v17, %v178_v17  ;;  %v149_v28 = vadd.f32 %v293_v9, %v148_v24  ;;  %v181_v29 = vadd.f32 %v293_v9, %v180_v25 }
  0xde   :  { %275 = vst.msk [vmem:[%s506_s3 + $0x8] sm:$0xf] %vm272_vm1, %v329_v20  ;;  %283 = vst.msk [vmem:[%s506_s3 + $0x28] sm:$0xf] %vm272_vm1, %v337_v21  ;;  %v330_v30 = vpack.c.bf16 %v157_v22, %v157_v22  ;;  %v338_v31 = vpack.c.bf16 %v189_v23, %v189_v23 }
  0xdf   :  { %273 = vst.msk [vmem:[%s506_s3] sm:$0xf] %vm272_vm1, %v327_v26  ;;  %281 = vst.msk [vmem:[%s506_s3 + $0x20] sm:$0xf] %vm272_vm1, %v335_v27  ;;  %v328_v32 = vpack.c.bf16 %v149_v28, %v149_v28  ;;  %v336_v33 = vpack.c.bf16 %v181_v29, %v181_v29 }
  0xe0   :  { %276 = vst.msk [vmem:[%s506_s3 + $0xc] sm:$0xf] %vm272_vm1, %v330_v30  ;;  %284 = vst.msk [vmem:[%s506_s3 + $0x2c] sm:$0xf] %vm272_vm1, %v338_v31 }
  0xe1   :  { %274 = vst.msk [vmem:[%s506_s3 + $0x4] sm:$0xf] %vm272_vm1, %v328_v32  ;;  %282 = vst.msk [vmem:[%s506_s3 + $0x24] sm:$0xf] %vm272_vm1, %v336_v33  ;;  %v360_v34 = vpop.f32.mrb[4].mxu0  ;;  %v368_v35 = vpop.f32.mrb[4].mxu1 }
  0xe2   :  { %v170_v36 = vadd.f32 %v360_v34, %v293_v9  ;;  %v202_v37 = vadd.f32 %v368_v35, %v293_v9  ;;  %v161_v38 = vpop.f32.mrb[5].mxu0  ;;  %v193_v39 = vpop.f32.mrb[5].mxu1 }
  0xe3   :  { %v162_v40 = vadd.f32 %v293_v9, %v161_v38  ;;  %v194_v41 = vadd.f32 %v293_v9, %v193_v39  ;;  %v361_v42 = vpop.f32.mrb[6].mxu0  ;;  %v369_v43 = vpop.f32.mrb[6].mxu1 }
  0xe4   :  { %v333_v44 = vpack.c.bf16 %v170_v36, %v170_v36  ;;  %v341_v45 = vpack.c.bf16 %v202_v37, %v202_v37  ;;  %v173_v46 = vadd.f32 %v361_v42, %v293_v9  ;;  %v205_v47 = vadd.f32 %v369_v43, %v293_v9  ;;  %v164_v48 = vpop.f32.mrb[7].mxu0  ;;  %v196_v49 = vpop.f32.mrb[7].mxu1 }
  0xe5   :  { %v331_v50 = vpack.c.bf16 %v162_v40, %v162_v40  ;;  %v339_v51 = vpack.c.bf16 %v194_v41, %v194_v41  ;;  %v165_v52 = vadd.f32 %v293_v9, %v164_v48  ;;  %v197_v53 = vadd.f32 %v293_v9, %v196_v49 }
  0xe6   :  { %279 = vst.msk [vmem:[%s506_s3 + $0x18] sm:$0xf] %vm272_vm1, %v333_v44  ;;  %287 = vst.msk [vmem:[%s506_s3 + $0x38] sm:$0xf] %vm272_vm1, %v341_v45  ;;  %v334_v54 = vpack.c.bf16 %v173_v46, %v173_v46  ;;  %v342_v55 = vpack.c.bf16 %v205_v47, %v205_v47 }
  0xe7   :  { %277 = vst.msk [vmem:[%s506_s3 + $0x10] sm:$0xf] %vm272_vm1, %v331_v50  ;;  %285 = vst.msk [vmem:[%s506_s3 + $0x30] sm:$0xf] %vm272_vm1, %v339_v51  ;;  %v332_v56 = vpack.c.bf16 %v165_v52, %v165_v52  ;;  %v340_v57 = vpack.c.bf16 %v197_v53, %v197_v53 }
  0xe8   :  { %280 = vst.msk [vmem:[%s506_s3 + $0x1c] sm:$0xf] %vm272_vm1, %v334_v54  ;;  %288 = vst.msk [vmem:[%s506_s3 + $0x3c] sm:$0xf] %vm272_vm1, %v342_v55 }
  0xe9   :  { %278 = vst.msk [vmem:[%s506_s3 + $0x14] sm:$0xf] %vm272_vm1, %v332_v56  ;;  %286 = vst.msk [vmem:[%s506_s3 + $0x34] sm:$0xf] %vm272_vm1, %v340_v57 }

// kernel: _lambda_.66
= control target key start
LH: loop header
LB: loop body
LE: loop exit
PB: predicated region body
PF: predicated region fallthrough
CT: control target
= control target key end

     0   :  { %v253_v0 = vmov 0.0   ;;  %vm254_vm0 = vmmov 0   ;;  %vm60_vm1 = vcmask 261120   ;;  %vm113_vm2 = vcmask 257024   ;;  %s337_s2 = inlined_call_operand.vmem [shape: bf16[32,32], index: 2, kind: input, shape index: {}]   ;;  %s338_s4 = inlined_call_operand.vmem [shape: bf16[32,32], index: 4, kind: input, shape index: {}]   ;;  %s339_s0 = inlined_call_operand.vmem [shape: bf16[16,32], index: 0, kind: input, shape index: {}]   ;;  %s340_s1 = inlined_call_operand.vmem [shape: bf16[16,32], index: 1, kind: input, shape index: {}]   ;;  %s341_s3 = inlined_call_operand.vmem [shape: f32[1,32], index: 3, kind: input, shape index: {}]   ;;  %s342_s5 = inlined_call_operand.vmem [shape: f32[1,32], index: 5, kind: input, shape index: {}]   ;;  %s343_s6 = inlined_call_operand.vmem [shape: bf16[16,32], index: 6, kind: output, shape index: {0}]   ;;  %s344_s7 = inlined_call_operand.vmem [shape: bf16[16,32], index: 7, kind: output, shape index: {1}]  }
   0x1   :  { %230 = vmatprep.subr.bf16.mxu0 %v253_v0  ;;  %238 = vmatprep.subr.bf16.mxu1 %v253_v0  ;;  %v248_v1 = vld [vmem:[%s337_s2] sm:$0xff]   ;;  %v250_v3 = vld [vmem:[%s337_s2 + $0x8] sm:$0xff]  }
   0x2   :  { %v249_v2 = vld [vmem:[%s338_s4] sm:$0xff]   ;;  %234 = vmatprep.mubr.msk.bf16.mxu0 %vm254_vm0, %v253_v0  ;;  %242 = vmatprep.mubr.msk.bf16.mxu1 %vm254_vm0, %v253_v0  ;;  %v251_v4 = vld [vmem:[%s338_s4 + $0x8] sm:$0xff]  }
   0x3   :  { %231 = vmatpush3.bf16.msra.mxu0 %v248_v1  ;;  %239 = vmatpush3.bf16.msra.mxu1 %v249_v2  ;;  %v26_v5 = vld [vmem:[%s339_s0] sm:$0xf]  ;;  %v27_v6 = vld [vmem:[%s339_s0 + $0x4] sm:$0xf] }
   0x4   :  { %232 = vmatprep.subr.bf16.mxu0 %v253_v0  ;;  %240 = vmatprep.subr.bf16.mxu1 %v253_v0  ;;  %v28_v7 = vld [vmem:[%s340_s1] sm:$0xf]  ;;  %v29_v8 = vld [vmem:[%s340_s1 + $0x4] sm:$0xf]  ;;  %v214_v11 = vcombine.low %v26_v5, %v27_v6 }
   0x5   :  { %v30_v9 = vadd.bf16 %v28_v7, %v26_v5  ;;  %v31_v10 = vadd.bf16 %v29_v8, %v27_v6  ;;  %v206_v13 = vld [vmem:[%s341_s3] ss:$0 sm:$0xff] }
   0x6   :  { %v213_v14 = vld [vmem:[%s342_s5] ss:$0 sm:$0xff] }
   0x7   :  { %233 = vmatpush3.bf16.msra.mxu0 %v250_v3  ;;  %241 = vmatpush3.bf16.msra.mxu1 %v251_v4  ;;  %v207_v12 = vcombine.low %v30_v9, %v31_v10 }
   0xa   :  { %235 = vmatmul.mubr.msk.bf16.vlgmr.msra.gmra.mrb[0].mxu0 %vm60_vm1, %v207_v12  ;;  %243 = vmatmul.mubr.msk.bf16.vlgmr.msra.gmra.mrb[0].mxu1 %vm60_vm1, %v214_v11 }
  0xdd   :  { %v98_v15 = vpop.f32.mrb[0].mxu0  ;;  %v181_v16 = vpop.f32.mrb[0].mxu1 }
  0xde   :  { %v99_v17 = vadd.f32 %v206_v13, %v98_v15  ;;  %v182_v18 = vadd.f32 %v213_v14, %v181_v16  ;;  %v236_v19 = vpop.f32.mrb[1].mxu0  ;;  %v244_v20 = vpop.f32.mrb[1].mxu1 }
  0xdf   :  { %v101_v21 = vpop.f32.mrb[2].mxu0  ;;  %v184_v22 = vpop.f32.mrb[2].mxu1 }
  0xe0   :  { %v220_v23 = vpack.c.bf16 %v99_v17, %v99_v17  ;;  %v222_v24 = vpack.c.bf16 %v182_v18, %v182_v18  ;;  %v102_v25 = vadd.f32 %v206_v13, %v101_v21  ;;  %v185_v26 = vadd.f32 %v213_v14, %v184_v22  ;;  %v237_v27 = vpop.f32.mrb[3].mxu0  ;;  %v245_v28 = vpop.f32.mrb[3].mxu1 }
  0xe2   :  { %114 = vst.msk [vmem:[%s343_s6] sm:$0xf] %vm113_vm2, %v220_v23  ;;  %196 = vst.msk [vmem:[%s344_s7] sm:$0xf] %vm113_vm2, %v222_v24  ;;  %v221_v29 = vpack.c.bf16 %v102_v25, %v102_v25  ;;  %v223_v30 = vpack.c.bf16 %v185_v26, %v185_v26 }
  0xe4   :  { %115 = vst.msk [vmem:[%s343_s6 + $0x4] sm:$0xf] %vm113_vm2, %v221_v29  ;;  %197 = vst.msk [vmem:[%s344_s7 + $0x4] sm:$0xf] %vm113_vm2, %v223_v30 }

// kernel: _lambda_.65
= control target key start
LH: loop header
LB: loop body
LE: loop exit
PB: predicated region body
PF: predicated region fallthrough
CT: control target
= control target key end

     0   :  { %v136_v0 = vmov 0.0   ;;  %vm137_vm0 = vmmov 0   ;;  %vm52_vm1 = vcmask 261120   ;;  %vm105_vm2 = vcmask 257024   ;;  %s190_s2 = inlined_call_operand.vmem [shape: bf16[32,32], index: 2, kind: input, shape index: {}]   ;;  %s191_s0 = inlined_call_operand.vmem [shape: bf16[16,32], index: 0, kind: input, shape index: {}]   ;;  %s192_s1 = inlined_call_operand.vmem [shape: bf16[16,32], index: 1, kind: input, shape index: {}]   ;;  %s193_s3 = inlined_call_operand.vmem [shape: f32[1,32], index: 3, kind: input, shape index: {}]   ;;  %s194_s4 = inlined_call_operand.vmem [shape: bf16[16,32], index: 4, kind: output, shape index: {}]  }
   0x1   :  { %124 = vmatprep.subr.bf16.mxu0 %v136_v0  ;;  %v134_v1 = vld [vmem:[%s190_s2] sm:$0xff]   ;;  %128 = vmatprep.mubr.msk.bf16.mxu0 %vm137_vm0, %v136_v0  ;;  %v135_v2 = vld [vmem:[%s190_s2 + $0x8] sm:$0xff]  }
   0x2   :  { %125 = vmatpush3.bf16.msra.mxu0 %v134_v1  ;;  %v18_v3 = vld [vmem:[%s191_s0] sm:$0xf]  ;;  %v19_v4 = vld [vmem:[%s191_s0 + $0x4] sm:$0xf] }
   0x3   :  { %v20_v5 = vld [vmem:[%s192_s1] sm:$0xf]  ;;  %126 = vmatprep.subr.bf16.mxu0 %v136_v0  ;;  %v21_v6 = vld [vmem:[%s192_s1 + $0x4] sm:$0xf] }
   0x4   :  { %v22_v7 = vadd.bf16 %v20_v5, %v18_v3  ;;  %v23_v8 = vadd.bf16 %v21_v6, %v19_v4  ;;  %v112_v10 = vld [vmem:[%s193_s3] ss:$0 sm:$0xff] }
   0x6   :  { %127 = vmatpush3.bf16.msra.mxu0 %v135_v2  ;;  %v113_v9 = vcombine.low %v22_v7, %v23_v8 }
   0x9   :  { %129 = vmatmul.mubr.msk.bf16.vlgmr.msra.gmra.mrb[0].mxu0 %vm52_vm1, %v113_v9 }
  0xdc   :  { %v90_v11 = vpop.f32.mrb[0].mxu0 }
  0xdd   :  { %v91_v12 = vadd.f32 %v112_v10, %v90_v11  ;;  %v130_v13 = vpop.f32.mrb[1].mxu0 }
  0xde   :  { %v93_v14 = vpop.f32.mrb[2].mxu0 }
  0xdf   :  { %v119_v15 = vpack.c.bf16 %v91_v12, %v91_v12  ;;  %v94_v16 = vadd.f32 %v112_v10, %v93_v14  ;;  %v131_v17 = vpop.f32.mrb[3].mxu0 }
  0xe1   :  { %106 = vst.msk [vmem:[%s194_s4] sm:$0xf] %vm105_vm2, %v119_v15  ;;  %v120_v18 = vpack.c.bf16 %v94_v16, %v94_v16 }
  0xe3   :  { %107 = vst.msk [vmem:[%s194_s4 + $0x4] sm:$0xf] %vm105_vm2, %v120_v18 }

// kernel: _lambda_.64
= control target key start
LH: loop header
LB: loop body
LE: loop exit
PB: predicated region body
PF: predicated region fallthrough
CT: control target
= control target key end

     0   :  { %vm97_vm0 = vcmask 261120   ;;  %vm417_vm1 = vcmask 257024   ;;  %s937_s0 = inlined_call_operand.vmem [shape: bf16[128,32], index: 0, kind: input, shape index: {}]   ;;  %s938_s1 = inlined_call_operand.vmem [shape: bf16[128,32], index: 1, kind: input, shape index: {}]   ;;  %s939_s2 = inlined_call_operand.vmem [shape: f32[1,32], index: 2, kind: input, shape index: {}]   ;;  %s940_s3 = inlined_call_operand.vmem [shape: f32[1,32], index: 3, kind: input, shape index: {}]   ;;  %s941_s4 = inlined_call_operand.vmem [shape: bf16[128,32], index: 4, kind: output, shape index: {}]  }
   0x1   :  { %v473_v0 = vld [vmem:[%s937_s0] sm:$0xff]   ;;  %v536_v2 = vld [vmem:[%s937_s0 + $0x8] sm:$0xff]   ;;  %v537_v8 = vld [vmem:[%s937_s0 + $0x10] sm:$0xff]  }
   0x2   :  { %v505_v1 = vld [vmem:[%s938_s1] sm:$0xff]   ;;  %v474_v3 = vunpack.c.l.bf16 %v473_v0  ;;  %v478_v5 = vunpack.c.l.bf16 %v536_v2  ;;  %v543_v6 = vld [vmem:[%s938_s1 + $0x8] sm:$0xff]   ;;  %v475_v7 = vunpack.c.h.bf16 %v473_v0  ;;  %v544_v9 = vld [vmem:[%s938_s1 + $0x10] sm:$0xff]   ;;  %v479_v12 = vunpack.c.h.bf16 %v536_v2 }
   0x3   :  { %v506_v4 = vunpack.c.l.bf16 %v505_v1  ;;  %v510_v10 = vunpack.c.l.bf16 %v543_v6  ;;  %v507_v11 = vunpack.c.h.bf16 %v505_v1  ;;  %v511_v13 = vunpack.c.h.bf16 %v543_v6  ;;  %v538_v22 = vld [vmem:[%s937_s0 + $0x18] sm:$0xff]   ;;  %v539_v34 = vld [vmem:[%s937_s0 + $0x20] sm:$0xff]   ;;  %v540_v44 = vld [vmem:[%s937_s0 + $0x28] sm:$0xff]  }
   0x4   :  { %v482_v15 = vunpack.c.l.bf16 %v537_v8  ;;  %v514_v16 = vunpack.c.l.bf16 %v544_v9  ;;  %v483_v17 = vunpack.c.h.bf16 %v537_v8  ;;  %v515_v21 = vunpack.c.h.bf16 %v544_v9  ;;  %v545_v23 = vld [vmem:[%s938_s1 + $0x18] sm:$0xff]   ;;  %v546_v35 = vld [vmem:[%s938_s1 + $0x20] sm:$0xff]   ;;  %v547_v45 = vld [vmem:[%s938_s1 + $0x28] sm:$0xff]  }
   0x5   :  { %v625_v14 = vadd.f32 %v506_v4, %v474_v3  ;;  %v627_v18 = vadd.f32 %v510_v10, %v478_v5  ;;  %v629_v19 = vadd.f32 %v507_v11, %v475_v7  ;;  %v631_v20 = vadd.f32 %v511_v13, %v479_v12  ;;  %v541_v54 = vld [vmem:[%s937_s0 + $0x30] sm:$0xff]   ;;  %v542_v0 = vld [vmem:[%s937_s0 + $0x38] sm:$0xff]  }
   0x6   :  { %v645_v27 = vadd.f32 %v514_v16, %v482_v15  ;;  %v486_v28 = vunpack.c.l.bf16 %v538_v22  ;;  %v518_v29 = vunpack.c.l.bf16 %v545_v23  ;;  %v649_v31 = vadd.f32 %v515_v21, %v483_v17  ;;  %v548_v55 = vld [vmem:[%s938_s1 + $0x30] sm:$0xff]   ;;  %v549_v1 = vld [vmem:[%s938_s1 + $0x38] sm:$0xff]  }
   0x7   :  { %v98_v24 = vsel %vm97_vm0, %v625_v14, 0.0  ;;  %v104_v25 = vsel %vm97_vm0, %v627_v18, 0.0  ;;  %v101_v26 = vsel %vm97_vm0, %v629_v19, 0.0  ;;  %v107_v30 = vsel %vm97_vm0, %v631_v20, 0.0 }
   0x8   :  { %99 = vadd.xlane.f32.xlu0 %v98_v24  ;;  %105 = vadd.xlane.f32.xlu1 %v104_v25  ;;  %v487_v32 = vunpack.c.h.bf16 %v538_v22  ;;  %v519_v33 = vunpack.c.h.bf16 %v545_v23  ;;  %v110_v36 = vsel %vm97_vm0, %v645_v27, 0.0  ;;  %v659_v37 = vadd.f32 %v518_v29, %v486_v28 }
   0x9   :  { %v490_v38 = vunpack.c.l.bf16 %v539_v34  ;;  %v522_v39 = vunpack.c.l.bf16 %v546_v35  ;;  %v113_v40 = vsel %vm97_vm0, %v649_v31, 0.0  ;;  %v491_v42 = vunpack.c.h.bf16 %v539_v34 }
   0xa   :  { %v663_v41 = vadd.f32 %v519_v33, %v487_v32  ;;  %v523_v43 = vunpack.c.h.bf16 %v546_v35  ;;  %v116_v46 = vsel %vm97_vm0, %v659_v37, 0.0  ;;  %v494_v48 = vunpack.c.l.bf16 %v540_v44 }
   0xb   :  { %v673_v47 = vadd.f32 %v522_v39, %v490_v38  ;;  %v526_v49 = vunpack.c.l.bf16 %v547_v45  ;;  %v495_v52 = vunpack.c.h.bf16 %v540_v44  ;;  %v527_v53 = vunpack.c.h.bf16 %v547_v45 }
   0xc   :  { %102 = vadd.xlane.f32.xlu0 %v101_v26  ;;  %108 = vadd.xlane.f32.xlu1 %v107_v30  ;;  %v119_v50 = vsel %vm97_vm0, %v663_v41, 0.0  ;;  %v677_v51 = vadd.f32 %v523_v43, %v491_v42  ;;  %v498_v58 = vunpack.c.l.bf16 %v541_v54  ;;  %v530_v59 = vunpack.c.l.bf16 %v548_v55 }
   0xd   :  { %v122_v56 = vsel %vm97_vm0, %v673_v47, 0.0  ;;  %v687_v57 = vadd.f32 %v526_v49, %v494_v48  ;;  %v691_v61 = vadd.f32 %v527_v53, %v495_v52  ;;  %v499_v62 = vunpack.c.h.bf16 %v541_v54 }
   0xe   :  { %v125_v60 = vsel %vm97_vm0, %v677_v51, 0.0  ;;  %v531_v63 = vunpack.c.h.bf16 %v548_v55  ;;  %v701_v3 = vadd.f32 %v530_v59, %v498_v58  ;;  %v502_v4 = vunpack.c.l.bf16 %v542_v0 }
   0xf   :  { %v128_v2 = vsel %vm97_vm0, %v687_v57, 0.0  ;;  %v534_v5 = vunpack.c.l.bf16 %v549_v1  ;;  %v131_v6 = vsel %vm97_vm0, %v691_v61, 0.0  ;;  %v503_v8 = vunpack.c.h.bf16 %v542_v0 }
  0x10   :  { %111 = vadd.xlane.f32.xlu0 %v110_v36  ;;  %114 = vadd.xlane.f32.xlu1 %v113_v40  ;;  %v705_v7 = vadd.f32 %v531_v63, %v499_v62  ;;  %v535_v9 = vunpack.c.h.bf16 %v549_v1  ;;  %v134_v10 = vsel %vm97_vm0, %v701_v3, 0.0 }
  0x11   :  { %v709_v11 = vadd.f32 %v534_v5, %v502_v4 }
  0x12   :  { %v137_v12 = vsel %vm97_vm0, %v705_v7, 0.0  ;;  %v713_v13 = vadd.f32 %v535_v9, %v503_v8 }
  0x13   :  { %v140_v15 = vsel %vm97_vm0, %v709_v11, 0.0 }
  0x14   :  { %117 = vadd.xlane.f32.xlu0 %v116_v46  ;;  %120 = vadd.xlane.f32.xlu1 %v119_v50  ;;  %v143_v16 = vsel %vm97_vm0, %v713_v13, 0.0 }
  0x18   :  { %123 = vadd.xlane.f32.xlu0 %v122_v56  ;;  %126 = vadd.xlane.f32.xlu1 %v125_v60 }
  0x1c   :  { %129 = vadd.xlane.f32.xlu0 %v128_v2  ;;  %132 = vadd.xlane.f32.xlu1 %v131_v6 }
  0x20   :  { %135 = vadd.xlane.f32.xlu0 %v134_v10  ;;  %138 = vadd.xlane.f32.xlu1 %v137_v12 }
  0x24   :  { %141 = vadd.xlane.f32.xlu0 %v140_v15  ;;  %144 = vadd.xlane.f32.xlu1 %v143_v16 }
  0x95   :  { %v100_v17 = vpop.xlane.xlu0 %99  ;;  %v106_v22 = vpop.xlane.xlu1 %105 }
  0x96   :  { %v147_v21 = vmul.f32 0.03125, %v100_v17  ;;  %v149_v23 = vmul.f32 0.03125, %v106_v22 }
  0x98   :  { %v720_v24 = vsub.f32 %v625_v14, %v147_v21  ;;  %v723_v25 = vsub.f32 %v627_v18, %v149_v23 }
  0x99   :  { %v103_v26 = vpop.xlane.xlu0 %102  ;;  %v109_v29 = vpop.xlane.xlu1 %108 }
  0x9a   :  { %v148_v28 = vmul.f32 0.03125, %v103_v26  ;;  %v179_v30 = vmul.f32 %v720_v24, %v720_v24  ;;  %v150_v32 = vmul.f32 0.03125, %v109_v29  ;;  %v181_v33 = vmul.f32 %v723_v25, %v723_v25 }
  0x9c   :  { %v730_v34 = vsub.f32 %v629_v19, %v148_v28  ;;  %v195_v35 = vsel %vm97_vm0, %v179_v30, 0.0  ;;  %v734_v14 = vsub.f32 %v631_v20, %v150_v32  ;;  %v201_v39 = vsel %vm97_vm0, %v181_v33, 0.0 }
  0x9d   :  { %196 = vadd.xlane.f32.xlu0 %v195_v35  ;;  %v112_v18 = vpop.xlane.xlu0 %111  ;;  %v115_v38 = vpop.xlane.xlu1 %114 }
  0x9e   :  { %v151_v36 = vmul.f32 0.03125, %v112_v18  ;;  %v180_v40 = vmul.f32 %v730_v34, %v730_v34  ;;  %v152_v42 = vmul.f32 0.03125, %v115_v38  ;;  %v182_v43 = vmul.f32 %v734_v14, %v734_v14 }
  0xa0   :  { %v742_v19 = vsub.f32 %v645_v27, %v151_v36  ;;  %v198_v44 = vsel %vm97_vm0, %v180_v40, 0.0  ;;  %v746_v20 = vsub.f32 %v649_v31, %v152_v42  ;;  %v204_v49 = vsel %vm97_vm0, %v182_v43, 0.0 }
  0xa1   :  { %202 = vadd.xlane.f32.xlu0 %v201_v39  ;;  %199 = vadd.xlane.f32.xlu1 %v198_v44  ;;  %v118_v45 = vpop.xlane.xlu0 %117  ;;  %v121_v48 = vpop.xlane.xlu1 %120 }
  0xa2   :  { %v153_v46 = vmul.f32 0.03125, %v118_v45  ;;  %v183_v50 = vmul.f32 %v742_v19, %v742_v19  ;;  %v154_v52 = vmul.f32 0.03125, %v121_v48  ;;  %v184_v27 = vmul.f32 %v746_v20, %v746_v20 }
  0xa4   :  { %v754_v53 = vsub.f32 %v659_v37, %v153_v46  ;;  %v207_v31 = vsel %vm97_vm0, %v183_v50, 0.0  ;;  %v758_v54 = vsub.f32 %v663_v41, %v154_v52  ;;  %v210_v59 = vsel %vm97_vm0, %v184_v27, 0.0 }
  0xa5   :  { %205 = vadd.xlane.f32.xlu1 %v204_v49  ;;  %208 = vadd.xlane.f32.xlu0 %v207_v31  ;;  %v124_v55 = vpop.xlane.xlu0 %123  ;;  %v127_v58 = vpop.xlane.xlu1 %126 }
  0xa6   :  { %v155_v56 = vmul.f32 0.03125, %v124_v55  ;;  %v185_v60 = vmul.f32 %v754_v53, %v754_v53  ;;  %v156_v62 = vmul.f32 0.03125, %v127_v58  ;;  %v186_v37 = vmul.f32 %v758_v54, %v758_v54 }
  0xa8   :  { %v766_v63 = vsub.f32 %v673_v47, %v155_v56  ;;  %v213_v41 = vsel %vm97_vm0, %v185_v60, 0.0  ;;  %v770_v0 = vsub.f32 %v677_v51, %v156_v62  ;;  %v216_v5 = vsel %vm97_vm0, %v186_v37, 0.0 }
  0xa9   :  { %211 = vadd.xlane.f32.xlu1 %v210_v59  ;;  %214 = vadd.xlane.f32.xlu0 %v213_v41  ;;  %v130_v1 = vpop.xlane.xlu0 %129  ;;  %v133_v4 = vpop.xlane.xlu1 %132 }
  0xaa   :  { %v157_v2 = vmul.f32 0.03125, %v130_v1  ;;  %v187_v6 = vmul.f32 %v766_v63, %v766_v63  ;;  %v158_v8 = vmul.f32 0.03125, %v133_v4  ;;  %v188_v47 = vmul.f32 %v770_v0, %v770_v0 }
  0xac   :  { %v778_v9 = vsub.f32 %v687_v57, %v157_v2  ;;  %v219_v51 = vsel %vm97_vm0, %v187_v6, 0.0  ;;  %v782_v10 = vsub.f32 %v691_v61, %v158_v8  ;;  %v222_v17 = vsel %vm97_vm0, %v188_v47, 0.0  ;;  %v818_v2 = vld [vmem:[%s939_s2] ss:$0 sm:$0xff] }
  0xad   :  { %217 = vadd.xlane.f32.xlu1 %v216_v5  ;;  %220 = vadd.xlane.f32.xlu0 %v219_v51  ;;  %v136_v12 = vpop.xlane.xlu0 %135  ;;  %v139_v16 = vpop.xlane.xlu1 %138  ;;  %v824_v51 = vld [vmem:[%s940_s3] ss:$0 sm:$0xff] }
  0xae   :  { %v159_v15 = vmul.f32 0.03125, %v136_v12  ;;  %v189_v21 = vmul.f32 %v778_v9, %v778_v9  ;;  %v160_v22 = vmul.f32 0.03125, %v139_v16  ;;  %v190_v57 = vmul.f32 %v782_v10, %v782_v10 }
  0xb0   :  { %v790_v23 = vsub.f32 %v701_v3, %v159_v15  ;;  %v225_v61 = vsel %vm97_vm0, %v189_v21, 0.0  ;;  %v794_v26 = vsub.f32 %v705_v7, %v160_v22  ;;  %v228_v32 = vsel %vm97_vm0, %v190_v57, 0.0 }
  0xb1   :  { %223 = vadd.xlane.f32.xlu1 %v222_v17  ;;  %226 = vadd.xlane.f32.xlu0 %v225_v61  ;;  %v142_v28 = vpop.xlane.xlu0 %141  ;;  %v145_v30 = vpop.xlane.xlu1 %144 }
  0xb2   :  { %v161_v29 = vmul.f32 0.03125, %v142_v28  ;;  %v191_v33 = vmul.f32 %v790_v23, %v790_v23  ;;  %v162_v35 = vmul.f32 0.03125, %v145_v30  ;;  %v192_v3 = vmul.f32 %v794_v26, %v794_v26 }
  0xb4   :  { %v802_v18 = vsub.f32 %v709_v11, %v161_v29  ;;  %v231_v7 = vsel %vm97_vm0, %v191_v33, 0.0  ;;  %v806_v36 = vsub.f32 %v713_v13, %v162_v35  ;;  %v234_v38 = vsel %vm97_vm0, %v192_v3, 0.0 }
  0xb5   :  { %229 = vadd.xlane.f32.xlu1 %v228_v32  ;;  %232 = vadd.xlane.f32.xlu0 %v231_v7 }
  0xb6   :  { %v193_v39 = vmul.f32 %v802_v18, %v802_v18  ;;  %v194_v40 = vmul.f32 %v806_v36, %v806_v36 }
  0xb8   :  { %v237_v42 = vsel %vm97_vm0, %v193_v39, 0.0  ;;  %v240_v11 = vsel %vm97_vm0, %v194_v40, 0.0 }
  0xb9   :  { %235 = vadd.xlane.f32.xlu1 %v234_v38  ;;  %238 = vadd.xlane.f32.xlu0 %v237_v42 }
  0xbd   :  { %241 = vadd.xlane.f32.xlu1 %v240_v11 }
 0x12a   :  { %v197_v43 = vpop.xlane.xlu0 %196 }
 0x12b   :  { %v243_v13 = vmul.f32 0.03125, %v197_v43 }
 0x12d   :  { %v259_v44 = vadd.f32 1e-05, %v243_v13 }
 0x12e   :  { %v200_v45 = vpop.xlane.xlu1 %199  ;;  %v203_v46 = vpop.xlane.xlu0 %202 }
 0x12f   :  { %550 = vrsqrt.f32 %v259_v44  ;;  %v244_v48 = vmul.f32 0.03125, %v200_v45  ;;  %v245_v49 = vmul.f32 0.03125, %v203_v46 }
 0x131   :  { %v260_v50 = vadd.f32 1e-05, %v244_v48  ;;  %v261_v52 = vadd.f32 1e-05, %v245_v49 }
 0x132   :  { %v206_v27 = vpop.xlane.xlu1 %205  ;;  %v209_v31 = vpop.xlane.xlu0 %208 }
 0x133   :  { %552 = vrsqrt.f32 %v260_v50  ;;  %v246_v55 = vmul.f32 0.03125, %v206_v27  ;;  %v247_v56 = vmul.f32 0.03125, %v209_v31 }
 0x134   :  { %554 = vrsqrt.f32 %v261_v52 }
 0x135   :  { %v262_v58 = vadd.f32 1e-05, %v246_v55  ;;  %v263_v59 = vadd.f32 1e-05, %v247_v56 }
 0x136   :  { %v212_v60 = vpop.xlane.xlu1 %211  ;;  %v215_v62 = vpop.xlane.xlu0 %214 }
 0x137   :  { %556 = vrsqrt.f32 %v262_v58  ;;  %v248_v37 = vmul.f32 0.03125, %v212_v60  ;;  %v249_v41 = vmul.f32 0.03125, %v215_v62 }
 0x138   :  { %558 = vrsqrt.f32 %v263_v59 }
 0x139   :  { %v551_v1 = vpop.eup %550  ;;  %v264_v4 = vadd.f32 1e-05, %v248_v37  ;;  %v265_v5 = vadd.f32 1e-05, %v249_v41 }
 0x13a   :  { %v291_v6 = vmul.f32 %v551_v1, %v720_v24  ;;  %v218_v8 = vpop.xlane.xlu1 %217  ;;  %v221_v47 = vpop.xlane.xlu0 %220 }
 0x13b   :  { %560 = vrsqrt.f32 %v264_v4  ;;  %v250_v12 = vmul.f32 0.03125, %v218_v8  ;;  %v251_v15 = vmul.f32 0.03125, %v221_v47 }
 0x13c   :  { %v314_v16 = vmul.f32 %v818_v2, %v291_v6  ;;  %562 = vrsqrt.f32 %v265_v5 }
 0x13d   :  { %v553_v17 = vpop.eup %552  ;;  %v266_v21 = vadd.f32 1e-05, %v250_v12  ;;  %v267_v22 = vadd.f32 1e-05, %v251_v15 }
 0x13e   :  { %v555_v57 = vpop.eup %554  ;;  %v337_v24 = vadd.f32 %v824_v51, %v314_v16  ;;  %v292_v61 = vmul.f32 %v553_v17, %v730_v34  ;;  %v224_v28 = vpop.xlane.xlu1 %223 }
 0x13f   :  { %v227_v29 = vpop.xlane.xlu0 %226  ;;  %v293_v30 = vmul.f32 %v555_v57, %v723_v25  ;;  %564 = vrsqrt.f32 %v266_v21  ;;  %v252_v32 = vmul.f32 0.03125, %v224_v28 }
 0x140   :  { %v253_v33 = vmul.f32 0.03125, %v227_v29  ;;  %v456_v35 = vpack.c.bf16 %v337_v24, %v337_v24  ;;  %v315_v3 = vmul.f32 %v818_v2, %v292_v61  ;;  %566 = vrsqrt.f32 %v267_v22 }
 0x141   :  { %v557_v7 = vpop.eup %556  ;;  %v316_v38 = vmul.f32 %v818_v2, %v293_v30  ;;  %v268_v39 = vadd.f32 1e-05, %v252_v32 }
 0x142   :  { %v269_v40 = vadd.f32 1e-05, %v253_v33  ;;  %v559_v42 = vpop.eup %558  ;;  %418 = vst.msk [vmem:[%s941_s4] sm:$0xf] %vm417_vm1, %v456_v35  ;;  %v338_v25 = vadd.f32 %v824_v51, %v315_v3  ;;  %v294_v34 = vmul.f32 %v557_v7, %v734_v14  ;;  %v230_v11 = vpop.xlane.xlu1 %229 }
 0x143   :  { %v233_v43 = vpop.xlane.xlu0 %232  ;;  %v339_v13 = vadd.f32 %v824_v51, %v316_v38  ;;  %v295_v44 = vmul.f32 %v559_v42, %v742_v19  ;;  %568 = vrsqrt.f32 %v268_v39  ;;  %v254_v45 = vmul.f32 0.03125, %v230_v11 }
 0x144   :  { %v457_v46 = vpack.c.bf16 %v338_v25, %v338_v25  ;;  %v317_v48 = vmul.f32 %v818_v2, %v294_v34  ;;  %570 = vrsqrt.f32 %v269_v40  ;;  %v255_v49 = vmul.f32 0.03125, %v233_v43 }
 0x145   :  { %v561_v50 = vpop.eup %560  ;;  %v458_v52 = vpack.c.bf16 %v339_v13, %v339_v13  ;;  %v318_v27 = vmul.f32 %v818_v2, %v295_v44  ;;  %v270_v31 = vadd.f32 1e-05, %v254_v45 }
 0x146   :  { %v563_v55 = vpop.eup %562  ;;  %419 = vst.msk [vmem:[%s941_s4 + $0x4] sm:$0xf] %vm417_vm1, %v457_v46  ;;  %v340_v14 = vadd.f32 %v824_v51, %v317_v48  ;;  %v296_v19 = vmul.f32 %v561_v50, %v746_v20  ;;  %v271_v56 = vadd.f32 1e-05, %v255_v49  ;;  %v236_v58 = vpop.xlane.xlu1 %235 }
 0x147   :  { %v239_v59 = vpop.xlane.xlu0 %238  ;;  %420 = vst.msk [vmem:[%s941_s4 + $0x8] sm:$0xf] %vm417_vm1, %v458_v52  ;;  %v341_v60 = vadd.f32 %v824_v51, %v318_v27  ;;  %v297_v62 = vmul.f32 %v563_v55, %v754_v53  ;;  %572 = vrsqrt.f32 %v270_v31  ;;  %v256_v37 = vmul.f32 0.03125, %v236_v58 }
 0x148   :  { %v459_v41 = vpack.c.bf16 %v340_v14, %v340_v14  ;;  %v319_v1 = vmul.f32 %v818_v2, %v296_v19  ;;  %574 = vrsqrt.f32 %v271_v56  ;;  %v257_v4 = vmul.f32 0.03125, %v239_v59 }
 0x149   :  { %v565_v20 = vpop.eup %564  ;;  %v460_v5 = vpack.c.bf16 %v341_v60, %v341_v60  ;;  %v320_v6 = vmul.f32 %v818_v2, %v297_v62  ;;  %v272_v8 = vadd.f32 1e-05, %v256_v37 }
 0x14a   :  { %v567_v47 = vpop.eup %566  ;;  %421 = vst.msk [vmem:[%s941_s4 + $0xc] sm:$0xf] %vm417_vm1, %v459_v41  ;;  %v342_v53 = vadd.f32 %v824_v51, %v319_v1  ;;  %v298_v12 = vmul.f32 %v565_v20, %v758_v54  ;;  %v273_v15 = vadd.f32 1e-05, %v257_v4  ;;  %v242_v16 = vpop.xlane.xlu1 %241 }
 0x14b   :  { %422 = vst.msk [vmem:[%s941_s4 + $0x10] sm:$0xf] %vm417_vm1, %v460_v5  ;;  %v343_v17 = vadd.f32 %v824_v51, %v320_v6  ;;  %v299_v21 = vmul.f32 %v567_v47, %v766_v63  ;;  %576 = vrsqrt.f32 %v272_v8  ;;  %v258_v22 = vmul.f32 0.03125, %v242_v16 }
 0x14c   :  { %v461_v57 = vpack.c.bf16 %v342_v53, %v342_v53  ;;  %v321_v24 = vmul.f32 %v818_v2, %v298_v12  ;;  %578 = vrsqrt.f32 %v273_v15 }
 0x14d   :  { %v569_v61 = vpop.eup %568  ;;  %v462_v28 = vpack.c.bf16 %v343_v17, %v343_v17  ;;  %v322_v54 = vmul.f32 %v818_v2, %v299_v21  ;;  %v274_v29 = vadd.f32 1e-05, %v258_v22 }
 0x14e   :  { %v571_v30 = vpop.eup %570  ;;  %423 = vst.msk [vmem:[%s941_s4 + $0x14] sm:$0xf] %vm417_vm1, %v461_v57  ;;  %v344_v32 = vadd.f32 %v824_v51, %v321_v24  ;;  %v300_v63 = vmul.f32 %v569_v61, %v770_v0 }
 0x14f   :  { %424 = vst.msk [vmem:[%s941_s4 + $0x18] sm:$0xf] %vm417_vm1, %v462_v28  ;;  %v345_v33 = vadd.f32 %v824_v51, %v322_v54  ;;  %v301_v35 = vmul.f32 %v571_v30, %v778_v9  ;;  %580 = vrsqrt.f32 %v274_v29 }
 0x150   :  { %v463_v3 = vpack.c.bf16 %v344_v32, %v344_v32  ;;  %v323_v7 = vmul.f32 %v818_v2, %v300_v63 }
 0x151   :  { %v573_v38 = vpop.eup %572  ;;  %v464_v39 = vpack.c.bf16 %v345_v33, %v345_v33  ;;  %v324_v40 = vmul.f32 %v818_v2, %v301_v35 }
 0x152   :  { %v575_v42 = vpop.eup %574  ;;  %425 = vst.msk [vmem:[%s941_s4 + $0x1c] sm:$0xf] %vm417_vm1, %v463_v3  ;;  %v346_v0 = vadd.f32 %v824_v51, %v323_v7  ;;  %v302_v25 = vmul.f32 %v573_v38, %v782_v10 }
 0x153   :  { %426 = vst.msk [vmem:[%s941_s4 + $0x20] sm:$0xf] %vm417_vm1, %v464_v39  ;;  %v347_v9 = vadd.f32 %v824_v51, %v324_v40  ;;  %v303_v34 = vmul.f32 %v575_v42, %v790_v23 }
 0x154   :  { %v465_v11 = vpack.c.bf16 %v346_v0, %v346_v0  ;;  %v325_v43 = vmul.f32 %v818_v2, %v302_v25 }
 0x155   :  { %v577_v13 = vpop.eup %576  ;;  %v466_v44 = vpack.c.bf16 %v347_v9, %v347_v9  ;;  %v326_v45 = vmul.f32 %v818_v2, %v303_v34 }
 0x156   :  { %v579_v46 = vpop.eup %578  ;;  %427 = vst.msk [vmem:[%s941_s4 + $0x24] sm:$0xf] %vm417_vm1, %v465_v11  ;;  %v348_v10 = vadd.f32 %v824_v51, %v325_v43  ;;  %v304_v48 = vmul.f32 %v577_v13, %v794_v26 }
 0x157   :  { %428 = vst.msk [vmem:[%s941_s4 + $0x28] sm:$0xf] %vm417_vm1, %v466_v44  ;;  %v349_v23 = vadd.f32 %v824_v51, %v326_v45  ;;  %v305_v49 = vmul.f32 %v579_v46, %v802_v18 }
 0x158   :  { %v467_v50 = vpack.c.bf16 %v348_v10, %v348_v10  ;;  %v327_v52 = vmul.f32 %v818_v2, %v304_v48 }
 0x159   :  { %v581_v27 = vpop.eup %580  ;;  %v468_v31 = vpack.c.bf16 %v349_v23, %v349_v23  ;;  %v328_v55 = vmul.f32 %v818_v2, %v305_v49 }
 0x15a   :  { %429 = vst.msk [vmem:[%s941_s4 + $0x2c] sm:$0xf] %vm417_vm1, %v467_v50  ;;  %v350_v26 = vadd.f32 %v824_v51, %v327_v52  ;;  %v306_v14 = vmul.f32 %v581_v27, %v806_v36 }
 0x15b   :  { %430 = vst.msk [vmem:[%s941_s4 + $0x30] sm:$0xf] %vm417_vm1, %v468_v31  ;;  %v351_v18 = vadd.f32 %v824_v51, %v328_v55 }
 0x15c   :  { %v469_v19 = vpack.c.bf16 %v350_v26, %v350_v26  ;;  %v329_v56 = vmul.f32 %v818_v2, %v306_v14 }
 0x15d   :  { %v470_v58 = vpack.c.bf16 %v351_v18, %v351_v18 }
 0x15e   :  { %431 = vst.msk [vmem:[%s941_s4 + $0x34] sm:$0xf] %vm417_vm1, %v469_v19  ;;  %v352_v59 = vadd.f32 %v824_v51, %v329_v56 }
 0x15f   :  { %432 = vst.msk [vmem:[%s941_s4 + $0x38] sm:$0xf] %vm417_vm1, %v470_v58 }
 0x160   :  { %v471_v36 = vpack.c.bf16 %v352_v59, %v352_v59 }
 0x162   :  { %433 = vst.msk [vmem:[%s941_s4 + $0x3c] sm:$0xf] %vm417_vm1, %v471_v36 }

// kernel: _lambda_.87
= control target key start
LH: loop header
LB: loop body
LE: loop exit
PB: predicated region body
PF: predicated region fallthrough
CT: control target
= control target key end

     0   :  { %vm94_vm0 = vcmask 261120   ;;  %vm280_vm1 = vcmask 257024   ;;  %s521_s1 = inlined_call_operand.vmem [shape: bf16[32,32], index: 1, kind: input, shape index: {}]   ;;  %s522_s0 = inlined_call_operand.vmem [shape: bf16[128,32], index: 0, kind: input, shape index: {}]   ;;  %s523_s2 = inlined_call_operand.vmem [shape: f32[1,32], index: 2, kind: input, shape index: {}]   ;;  %s524_s3 = inlined_call_operand.vmem [shape: bf16[128,32], index: 3, kind: output, shape index: {}]  }
   0x1   :  { %v386_v0 = vld [vmem:[%s521_s1] sm:$0xff]   ;;  %v387_v1 = vld [vmem:[%s521_s1 + $0x8] sm:$0xff]   ;;  %v392_v6 = vld [vmem:[%s522_s0 + $0x10] sm:$0xff]  }
   0x2   :  { %362 = vmatprep.subr.bf16.mxu0 %v386_v0  ;;  %382 = vmatprep.subr.bf16.mxu1 %v386_v0  ;;  %v388_v2 = vld [vmem:[%s522_s0] sm:$0xff]   ;;  %v390_v4 = vld [vmem:[%s522_s0 + $0x8] sm:$0xff]   ;;  %v393_v7 = vld [vmem:[%s522_s0 + $0x30] sm:$0xff]  }
   0x3   :  { %363 = vmatpush3.bf16.msra.mxu0 %v386_v0  ;;  %384 = vmatpush3.bf16.msra.mxu1 %v386_v0  ;;  %v389_v3 = vld [vmem:[%s522_s0 + $0x20] sm:$0xff]   ;;  %v391_v5 = vld [vmem:[%s522_s0 + $0x28] sm:$0xff]   ;;  %v394_v8 = vld [vmem:[%s522_s0 + $0x18] sm:$0xff]  }
   0x4   :  { %364 = vmatprep.subr.bf16.mxu0 %v387_v1  ;;  %383 = vmatprep.subr.bf16.mxu1 %v387_v1  ;;  %v395_v9 = vld [vmem:[%s522_s0 + $0x38] sm:$0xff]   ;;  %v301_v10 = vld [vmem:[%s523_s2] ss:$0 sm:$0xff] }
   0x5   :  { %366 = vmatprep.mubr.msk.bf16.mxu0 %vm94_vm0, %v388_v2  ;;  %374 = vmatprep.mubr.msk.bf16.mxu1 %vm94_vm0, %v389_v3 }
   0x7   :  { %365 = vmatpush3.bf16.msra.mxu0 %v387_v1  ;;  %385 = vmatpush3.bf16.msra.mxu1 %v387_v1 }
   0xa   :  { %367 = vmatmul.mubr.msk.bf16.vlgmr.msra.gmra.mrb[0].mxu0 %vm94_vm0, %v390_v4  ;;  %375 = vmatmul.mubr.msk.bf16.vlgmr.msra.gmra.mrb[0].mxu1 %vm94_vm0, %v391_v5 }
   0xb   :  { %370 = vmatprep.mubr.msk.bf16.mxu0 %vm94_vm0, %v392_v6  ;;  %378 = vmatprep.mubr.msk.bf16.mxu1 %vm94_vm0, %v393_v7 }
  0x12   :  { %371 = vmatmul.mubr.msk.bf16.gmra.mrb[4].mxu0 %vm94_vm0, %v394_v8  ;;  %379 = vmatmul.mubr.msk.bf16.gmra.mrb[4].mxu1 %vm94_vm0, %v395_v9 }
  0xdd   :  { %v368_v11 = vpop.f32.mrb[0].mxu0  ;;  %v376_v12 = vpop.f32.mrb[0].mxu1 }
  0xde   :  { %v162_v13 = vadd.f32 %v368_v11, %v301_v10  ;;  %v194_v14 = vadd.f32 %v376_v12, %v301_v10  ;;  %v153_v15 = vpop.f32.mrb[1].mxu0  ;;  %v185_v16 = vpop.f32.mrb[1].mxu1 }
  0xdf   :  { %v154_v17 = vadd.f32 %v301_v10, %v153_v15  ;;  %v186_v18 = vadd.f32 %v301_v10, %v185_v16  ;;  %v369_v19 = vpop.f32.mrb[2].mxu0  ;;  %v377_v20 = vpop.f32.mrb[2].mxu1 }
  0xe0   :  { %v338_v21 = vpack.c.bf16 %v162_v13, %v162_v13  ;;  %v346_v22 = vpack.c.bf16 %v194_v14, %v194_v14  ;;  %v165_v23 = vadd.f32 %v369_v19, %v301_v10  ;;  %v197_v24 = vadd.f32 %v377_v20, %v301_v10  ;;  %v156_v25 = vpop.f32.mrb[3].mxu0  ;;  %v188_v26 = vpop.f32.mrb[3].mxu1 }
  0xe1   :  { %v336_v27 = vpack.c.bf16 %v154_v17, %v154_v17  ;;  %v344_v28 = vpack.c.bf16 %v186_v18, %v186_v18  ;;  %v157_v29 = vadd.f32 %v301_v10, %v156_v25  ;;  %v189_v30 = vadd.f32 %v301_v10, %v188_v26 }
  0xe2   :  { %283 = vst.msk [vmem:[%s524_s3 + $0x8] sm:$0xf] %vm280_vm1, %v338_v21  ;;  %291 = vst.msk [vmem:[%s524_s3 + $0x28] sm:$0xf] %vm280_vm1, %v346_v22  ;;  %v339_v31 = vpack.c.bf16 %v165_v23, %v165_v23  ;;  %v347_v32 = vpack.c.bf16 %v197_v24, %v197_v24 }
  0xe3   :  { %281 = vst.msk [vmem:[%s524_s3] sm:$0xf] %vm280_vm1, %v336_v27  ;;  %289 = vst.msk [vmem:[%s524_s3 + $0x20] sm:$0xf] %vm280_vm1, %v344_v28  ;;  %v337_v33 = vpack.c.bf16 %v157_v29, %v157_v29  ;;  %v345_v34 = vpack.c.bf16 %v189_v30, %v189_v30 }
  0xe4   :  { %284 = vst.msk [vmem:[%s524_s3 + $0xc] sm:$0xf] %vm280_vm1, %v339_v31  ;;  %292 = vst.msk [vmem:[%s524_s3 + $0x2c] sm:$0xf] %vm280_vm1, %v347_v32 }
  0xe5   :  { %282 = vst.msk [vmem:[%s524_s3 + $0x4] sm:$0xf] %vm280_vm1, %v337_v33  ;;  %290 = vst.msk [vmem:[%s524_s3 + $0x24] sm:$0xf] %vm280_vm1, %v345_v34  ;;  %v372_v35 = vpop.f32.mrb[4].mxu0  ;;  %v380_v36 = vpop.f32.mrb[4].mxu1 }
  0xe6   :  { %v178_v37 = vadd.f32 %v372_v35, %v301_v10  ;;  %v210_v38 = vadd.f32 %v380_v36, %v301_v10  ;;  %v169_v39 = vpop.f32.mrb[5].mxu0  ;;  %v201_v40 = vpop.f32.mrb[5].mxu1 }
  0xe7   :  { %v170_v41 = vadd.f32 %v301_v10, %v169_v39  ;;  %v202_v42 = vadd.f32 %v301_v10, %v201_v40  ;;  %v373_v43 = vpop.f32.mrb[6].mxu0  ;;  %v381_v44 = vpop.f32.mrb[6].mxu1 }
  0xe8   :  { %v342_v45 = vpack.c.bf16 %v178_v37, %v178_v37  ;;  %v350_v46 = vpack.c.bf16 %v210_v38, %v210_v38  ;;  %v181_v47 = vadd.f32 %v373_v43, %v301_v10  ;;  %v213_v48 = vadd.f32 %v381_v44, %v301_v10  ;;  %v172_v49 = vpop.f32.mrb[7].mxu0  ;;  %v204_v50 = vpop.f32.mrb[7].mxu1 }
  0xe9   :  { %v340_v51 = vpack.c.bf16 %v170_v41, %v170_v41  ;;  %v348_v52 = vpack.c.bf16 %v202_v42, %v202_v42  ;;  %v173_v53 = vadd.f32 %v301_v10, %v172_v49  ;;  %v205_v54 = vadd.f32 %v301_v10, %v204_v50 }
  0xea   :  { %287 = vst.msk [vmem:[%s524_s3 + $0x18] sm:$0xf] %vm280_vm1, %v342_v45  ;;  %295 = vst.msk [vmem:[%s524_s3 + $0x38] sm:$0xf] %vm280_vm1, %v350_v46  ;;  %v343_v55 = vpack.c.bf16 %v181_v47, %v181_v47  ;;  %v351_v56 = vpack.c.bf16 %v213_v48, %v213_v48 }
  0xeb   :  { %285 = vst.msk [vmem:[%s524_s3 + $0x10] sm:$0xf] %vm280_vm1, %v340_v51  ;;  %293 = vst.msk [vmem:[%s524_s3 + $0x30] sm:$0xf] %vm280_vm1, %v348_v52  ;;  %v341_v57 = vpack.c.bf16 %v173_v53, %v173_v53  ;;  %v349_v58 = vpack.c.bf16 %v205_v54, %v205_v54 }
  0xec   :  { %288 = vst.msk [vmem:[%s524_s3 + $0x1c] sm:$0xf] %vm280_vm1, %v343_v55  ;;  %296 = vst.msk [vmem:[%s524_s3 + $0x3c] sm:$0xf] %vm280_vm1, %v351_v56 }
  0xed   :  { %286 = vst.msk [vmem:[%s524_s3 + $0x14] sm:$0xf] %vm280_vm1, %v341_v57  ;;  %294 = vst.msk [vmem:[%s524_s3 + $0x34] sm:$0xf] %vm280_vm1, %v349_v58 }

// kernel: _lambda_.88
= control target key start
LH: loop header
LB: loop body
LE: loop exit
PB: predicated region body
PF: predicated region fallthrough
CT: control target
= control target key end

     0   :  { %vm142_vm0 = vcmask 64512   ;;  %vm1374_vm1 = vcmask 60416   ;;  %s3214_s0 = inlined_call_operand.vmem [shape: bf16[512,8], index: 0, kind: input, shape index: {}]   ;;  %s3215_s1 = inlined_call_operand.vmem [shape: f32[1,8], index: 1, kind: input, shape index: {}]   ;;  %s3216_s2 = inlined_call_operand.vmem [shape: f32[1,8], index: 2, kind: input, shape index: {}]   ;;  %s3217_s3 = inlined_call_operand.vmem [shape: bf16[512,8], index: 3, kind: output, shape index: {}]  }
   0x1   :  { %v1885_v0 = vld [vmem:[%s3214_s0] sm:$0xff]   ;;  %v1890_v1 = vld [vmem:[%s3214_s0 + $0x8] sm:$0xff]   ;;  %v1899_v6 = vld [vmem:[%s3214_s0 + $0x10] sm:$0xff]  }
   0x2   :  { %v1575_v2 = vunpack.c.l.bf16 %v1885_v0  ;;  %v1579_v3 = vunpack.c.l.bf16 %v1890_v1  ;;  %v1576_v4 = vunpack.c.h.bf16 %v1885_v0  ;;  %v1580_v5 = vunpack.c.h.bf16 %v1890_v1  ;;  %v1918_v13 = vld [vmem:[%s3214_s0 + $0x18] sm:$0xff]   ;;  %v1931_v18 = vld [vmem:[%s3214_s0 + $0x20] sm:$0xff]   ;;  %v1944_v23 = vld [vmem:[%s3214_s0 + $0x28] sm:$0xff]  }
   0x3   :  { %v1583_v11 = vunpack.c.l.bf16 %v1899_v6  ;;  %v1584_v12 = vunpack.c.h.bf16 %v1899_v6  ;;  %v1587_v16 = vunpack.c.l.bf16 %v1918_v13  ;;  %v1588_v17 = vunpack.c.h.bf16 %v1918_v13  ;;  %v1957_v28 = vld [vmem:[%s3214_s0 + $0x30] sm:$0xff]   ;;  %v1970_v33 = vld [vmem:[%s3214_s0 + $0x38] sm:$0xff]   ;;  %v1983_v38 = vld [vmem:[%s3214_s0 + $0x40] sm:$0xff]  }
   0x4   :  { %v143_v7 = vsel %vm142_vm0, %v1575_v2, 0.0  ;;  %v149_v8 = vsel %vm142_vm0, %v1579_v3, 0.0  ;;  %v146_v9 = vsel %vm142_vm0, %v1576_v4, 0.0  ;;  %v152_v10 = vsel %vm142_vm0, %v1580_v5, 0.0  ;;  %v1996_v43 = vld [vmem:[%s3214_s0 + $0x48] sm:$0xff]   ;;  %v2009_v48 = vld [vmem:[%s3214_s0 + $0x50] sm:$0xff]  }
   0x5   :  { %144 = vadd.xlane.f32.xlu0 %v143_v7  ;;  %150 = vadd.xlane.f32.xlu1 %v149_v8  ;;  %v155_v14 = vsel %vm142_vm0, %v1583_v11, 0.0  ;;  %v158_v15 = vsel %vm142_vm0, %v1584_v12, 0.0  ;;  %v161_v19 = vsel %vm142_vm0, %v1587_v16, 0.0  ;;  %v164_v20 = vsel %vm142_vm0, %v1588_v17, 0.0  ;;  %v2022_v53 = vld [vmem:[%s3214_s0 + $0x58] sm:$0xff]   ;;  %v2035_v58 = vld [vmem:[%s3214_s0 + $0x60] sm:$0xff]  }
   0x6   :  { %v1591_v21 = vunpack.c.l.bf16 %v1931_v18  ;;  %v1592_v22 = vunpack.c.h.bf16 %v1931_v18  ;;  %v1595_v26 = vunpack.c.l.bf16 %v1944_v23  ;;  %v1596_v27 = vunpack.c.h.bf16 %v1944_v23  ;;  %v2048_v63 = vld [vmem:[%s3214_s0 + $0x68] sm:$0xff]  }
   0x7   :  { %v1599_v31 = vunpack.c.l.bf16 %v1957_v28  ;;  %v1600_v32 = vunpack.c.h.bf16 %v1957_v28  ;;  %v1603_v36 = vunpack.c.l.bf16 %v1970_v33  ;;  %v1604_v37 = vunpack.c.h.bf16 %v1970_v33 }
   0x8   :  { %v167_v24 = vsel %vm142_vm0, %v1591_v21, 0.0  ;;  %v170_v25 = vsel %vm142_vm0, %v1592_v22, 0.0  ;;  %v173_v29 = vsel %vm142_vm0, %v1595_v26, 0.0  ;;  %v176_v30 = vsel %vm142_vm0, %v1596_v27, 0.0 }
   0x9   :  { %147 = vadd.xlane.f32.xlu0 %v146_v9  ;;  %153 = vadd.xlane.f32.xlu1 %v152_v10  ;;  %v179_v34 = vsel %vm142_vm0, %v1599_v31, 0.0  ;;  %v182_v35 = vsel %vm142_vm0, %v1600_v32, 0.0  ;;  %v185_v39 = vsel %vm142_vm0, %v1603_v36, 0.0  ;;  %v188_v40 = vsel %vm142_vm0, %v1604_v37, 0.0 }
   0xa   :  { %v1607_v41 = vunpack.c.l.bf16 %v1983_v38  ;;  %v1608_v42 = vunpack.c.h.bf16 %v1983_v38  ;;  %v1611_v46 = vunpack.c.l.bf16 %v1996_v43  ;;  %v3261_v47 = vunpack.c.h.bf16 %v1996_v43 }
   0xb   :  { %v3260_v51 = vunpack.c.l.bf16 %v2009_v48  ;;  %v3258_v52 = vunpack.c.h.bf16 %v2009_v48  ;;  %v3256_v56 = vunpack.c.l.bf16 %v2022_v53  ;;  %v3254_v57 = vunpack.c.h.bf16 %v2022_v53 }
   0xc   :  { %v191_v44 = vsel %vm142_vm0, %v1607_v41, 0.0  ;;  %v194_v45 = vsel %vm142_vm0, %v1608_v42, 0.0  ;;  %v197_v49 = vsel %vm142_vm0, %v1611_v46, 0.0  ;;  %v200_v50 = vsel %vm142_vm0, %v3261_v47, 0.0 }
   0xd   :  { %156 = vadd.xlane.f32.xlu0 %v155_v14  ;;  %159 = vadd.xlane.f32.xlu1 %v158_v15  ;;  %v203_v54 = vsel %vm142_vm0, %v3260_v51, 0.0  ;;  %v206_v55 = vsel %vm142_vm0, %v3258_v52, 0.0  ;;  %v209_v59 = vsel %vm142_vm0, %v3256_v56, 0.0  ;;  %v212_v60 = vsel %vm142_vm0, %v3254_v57, 0.0  ;;  %v2061_v14 = vld [vmem:[%s3214_s0 + $0x70] sm:$0xff]  }
   0xe   :  { %v3251_v61 = vunpack.c.l.bf16 %v2035_v58  ;;  %v3248_v62 = vunpack.c.h.bf16 %v2035_v58  ;;  %v3245_v9 = vunpack.c.l.bf16 %v2048_v63  ;;  %v3242_v10 = vunpack.c.h.bf16 %v2048_v63 }
  0x10   :  { %v215_v7 = vsel %vm142_vm0, %v3251_v61, 0.0  ;;  %v218_v8 = vsel %vm142_vm0, %v3248_v62, 0.0  ;;  %v221_v15 = vsel %vm142_vm0, %v3245_v9, 0.0  ;;  %v2256_v9 = vld [vmem:[%s3214_s0 + $0xe8] sm:$0xff]   ;;  %v2269_v62 = vld [vmem:[%s3214_s0 + $0xf0] sm:$0xff]   ;;  %v2282_v61 = vld [vmem:[%s3214_s0 + $0xf8] sm:$0xff]  }
  0x11   :  { %162 = vadd.xlane.f32.xlu0 %v161_v19  ;;  %165 = vadd.xlane.f32.xlu1 %v164_v20  ;;  %v224_v19 = vsel %vm142_vm0, %v3242_v10, 0.0  ;;  %v3239_v20 = vunpack.c.l.bf16 %v2061_v14  ;;  %v2243_v10 = vld [vmem:[%s3214_s0 + $0xe0] sm:$0xff]  }
  0x15   :  { %168 = vadd.xlane.f32.xlu0 %v167_v24  ;;  %171 = vadd.xlane.f32.xlu1 %v170_v25  ;;  %v3236_v24 = vunpack.c.h.bf16 %v2061_v14  ;;  %v2074_v25 = vld [vmem:[%s3214_s0 + $0x78] sm:$0xff]  }
  0x19   :  { %174 = vadd.xlane.f32.xlu0 %v173_v29  ;;  %177 = vadd.xlane.f32.xlu1 %v176_v30  ;;  %v227_v29 = vsel %vm142_vm0, %v3239_v20, 0.0  ;;  %v230_v30 = vsel %vm142_vm0, %v3236_v24, 0.0  ;;  %v2217_v24 = vld [vmem:[%s3214_s0 + $0xd0] sm:$0xff]   ;;  %v2230_v20 = vld [vmem:[%s3214_s0 + $0xd8] sm:$0xff]  }
  0x1d   :  { %180 = vadd.xlane.f32.xlu0 %v179_v34  ;;  %183 = vadd.xlane.f32.xlu1 %v182_v35  ;;  %v3233_v34 = vunpack.c.l.bf16 %v2074_v25  ;;  %v3230_v35 = vunpack.c.h.bf16 %v2074_v25 }
  0x21   :  { %186 = vadd.xlane.f32.xlu0 %v185_v39  ;;  %189 = vadd.xlane.f32.xlu1 %v188_v40  ;;  %v2087_v39 = vld [vmem:[%s3214_s0 + $0x80] sm:$0xff]   ;;  %v233_v40 = vsel %vm142_vm0, %v3233_v34, 0.0  ;;  %v2204_v34 = vld [vmem:[%s3214_s0 + $0xc8] sm:$0xff]  }
  0x25   :  { %192 = vadd.xlane.f32.xlu0 %v191_v44  ;;  %195 = vadd.xlane.f32.xlu1 %v194_v45  ;;  %v236_v44 = vsel %vm142_vm0, %v3230_v35, 0.0  ;;  %v3227_v45 = vunpack.c.l.bf16 %v2087_v39  ;;  %v2191_v35 = vld [vmem:[%s3214_s0 + $0xc0] sm:$0xff]  }
  0x29   :  { %198 = vadd.xlane.f32.xlu0 %v197_v49  ;;  %201 = vadd.xlane.f32.xlu1 %v200_v50  ;;  %v3224_v49 = vunpack.c.h.bf16 %v2087_v39  ;;  %v2100_v50 = vld [vmem:[%s3214_s0 + $0x88] sm:$0xff]  }
  0x2d   :  { %204 = vadd.xlane.f32.xlu0 %v203_v54  ;;  %207 = vadd.xlane.f32.xlu1 %v206_v55  ;;  %v239_v54 = vsel %vm142_vm0, %v3227_v45, 0.0  ;;  %v242_v55 = vsel %vm142_vm0, %v3224_v49, 0.0  ;;  %v2165_v49 = vld [vmem:[%s3214_s0 + $0xb0] sm:$0xff]   ;;  %v2178_v45 = vld [vmem:[%s3214_s0 + $0xb8] sm:$0xff]  }
  0x31   :  { %210 = vadd.xlane.f32.xlu0 %v209_v59  ;;  %213 = vadd.xlane.f32.xlu1 %v212_v60  ;;  %v3221_v59 = vunpack.c.l.bf16 %v2100_v50  ;;  %v3218_v60 = vunpack.c.h.bf16 %v2100_v50 }
  0x35   :  { %216 = vadd.xlane.f32.xlu0 %v215_v7  ;;  %219 = vadd.xlane.f32.xlu1 %v218_v8  ;;  %v2113_v7 = vld [vmem:[%s3214_s0 + $0x90] sm:$0xff]   ;;  %v245_v8 = vsel %vm142_vm0, %v3221_v59, 0.0  ;;  %v2152_v59 = vld [vmem:[%s3214_s0 + $0xa8] sm:$0xff]  }
  0x39   :  { %222 = vadd.xlane.f32.xlu0 %v221_v15  ;;  %225 = vadd.xlane.f32.xlu1 %v224_v19  ;;  %v248_v15 = vsel %vm142_vm0, %v3218_v60, 0.0  ;;  %v3220_v19 = vunpack.c.l.bf16 %v2113_v7  ;;  %v2139_v60 = vld [vmem:[%s3214_s0 + $0xa0] sm:$0xff]  }
  0x3d   :  { %228 = vadd.xlane.f32.xlu0 %v227_v29  ;;  %231 = vadd.xlane.f32.xlu1 %v230_v30  ;;  %v3219_v29 = vunpack.c.h.bf16 %v2113_v7  ;;  %v2126_v30 = vld [vmem:[%s3214_s0 + $0x98] sm:$0xff]  }
  0x41   :  { %234 = vadd.xlane.f32.xlu0 %v233_v40  ;;  %237 = vadd.xlane.f32.xlu1 %v236_v44  ;;  %v251_v40 = vsel %vm142_vm0, %v3220_v19, 0.0  ;;  %v254_v44 = vsel %vm142_vm0, %v3219_v29, 0.0  ;;  %v3226_v29 = vunpack.c.l.bf16 %v2139_v60  ;;  %v3225_v19 = vunpack.c.h.bf16 %v2139_v60 }
  0x45   :  { %240 = vadd.xlane.f32.xlu0 %v239_v54  ;;  %243 = vadd.xlane.f32.xlu1 %v242_v55  ;;  %v3223_v54 = vunpack.c.l.bf16 %v2126_v30  ;;  %v3222_v55 = vunpack.c.h.bf16 %v2126_v30 }
  0x49   :  { %246 = vadd.xlane.f32.xlu0 %v245_v8  ;;  %249 = vadd.xlane.f32.xlu1 %v248_v15  ;;  %v257_v8 = vsel %vm142_vm0, %v3223_v54, 0.0  ;;  %v260_v15 = vsel %vm142_vm0, %v3222_v55, 0.0  ;;  %v3229_v55 = vunpack.c.l.bf16 %v2152_v59  ;;  %v3228_v54 = vunpack.c.h.bf16 %v2152_v59 }
  0x4d   :  { %252 = vadd.xlane.f32.xlu0 %v251_v40  ;;  %255 = vadd.xlane.f32.xlu1 %v254_v44  ;;  %v263_v40 = vsel %vm142_vm0, %v3226_v29, 0.0  ;;  %v266_v44 = vsel %vm142_vm0, %v3225_v19, 0.0  ;;  %v3232_v19 = vunpack.c.l.bf16 %v2165_v49  ;;  %v3231_v29 = vunpack.c.h.bf16 %v2165_v49 }
  0x51   :  { %258 = vadd.xlane.f32.xlu0 %v257_v8  ;;  %261 = vadd.xlane.f32.xlu1 %v260_v15  ;;  %v269_v8 = vsel %vm142_vm0, %v3229_v55, 0.0  ;;  %v272_v15 = vsel %vm142_vm0, %v3228_v54, 0.0  ;;  %v3235_v54 = vunpack.c.l.bf16 %v2178_v45  ;;  %v3234_v55 = vunpack.c.h.bf16 %v2178_v45 }
  0x55   :  { %264 = vadd.xlane.f32.xlu0 %v263_v40  ;;  %267 = vadd.xlane.f32.xlu1 %v266_v44  ;;  %v275_v40 = vsel %vm142_vm0, %v3232_v19, 0.0  ;;  %v278_v44 = vsel %vm142_vm0, %v3231_v29, 0.0  ;;  %v3238_v29 = vunpack.c.l.bf16 %v2191_v35  ;;  %v3237_v19 = vunpack.c.h.bf16 %v2191_v35 }
  0x59   :  { %270 = vadd.xlane.f32.xlu0 %v269_v8  ;;  %273 = vadd.xlane.f32.xlu1 %v272_v15  ;;  %v281_v8 = vsel %vm142_vm0, %v3235_v54, 0.0  ;;  %v284_v15 = vsel %vm142_vm0, %v3234_v55, 0.0  ;;  %v3241_v55 = vunpack.c.l.bf16 %v2204_v34  ;;  %v3240_v54 = vunpack.c.h.bf16 %v2204_v34 }
  0x5d   :  { %276 = vadd.xlane.f32.xlu0 %v275_v40  ;;  %279 = vadd.xlane.f32.xlu1 %v278_v44  ;;  %v287_v40 = vsel %vm142_vm0, %v3238_v29, 0.0  ;;  %v290_v44 = vsel %vm142_vm0, %v3237_v19, 0.0  ;;  %v3244_v19 = vunpack.c.l.bf16 %v2217_v24  ;;  %v3243_v29 = vunpack.c.h.bf16 %v2217_v24 }
  0x61   :  { %282 = vadd.xlane.f32.xlu0 %v281_v8  ;;  %285 = vadd.xlane.f32.xlu1 %v284_v15  ;;  %v293_v8 = vsel %vm142_vm0, %v3241_v55, 0.0  ;;  %v296_v15 = vsel %vm142_vm0, %v3240_v54, 0.0  ;;  %v3247_v54 = vunpack.c.l.bf16 %v2230_v20  ;;  %v3246_v55 = vunpack.c.h.bf16 %v2230_v20 }
  0x65   :  { %288 = vadd.xlane.f32.xlu0 %v287_v40  ;;  %291 = vadd.xlane.f32.xlu1 %v290_v44  ;;  %v299_v40 = vsel %vm142_vm0, %v3244_v19, 0.0  ;;  %v302_v44 = vsel %vm142_vm0, %v3243_v29, 0.0  ;;  %v3250_v29 = vunpack.c.l.bf16 %v2243_v10  ;;  %v3249_v19 = vunpack.c.h.bf16 %v2243_v10 }
  0x69   :  { %294 = vadd.xlane.f32.xlu0 %v293_v8  ;;  %297 = vadd.xlane.f32.xlu1 %v296_v15  ;;  %v305_v8 = vsel %vm142_vm0, %v3247_v54, 0.0  ;;  %v308_v15 = vsel %vm142_vm0, %v3246_v55, 0.0  ;;  %v3253_v55 = vunpack.c.l.bf16 %v2256_v9  ;;  %v3252_v54 = vunpack.c.h.bf16 %v2256_v9 }
  0x6d   :  { %300 = vadd.xlane.f32.xlu0 %v299_v40  ;;  %303 = vadd.xlane.f32.xlu1 %v302_v44  ;;  %v311_v40 = vsel %vm142_vm0, %v3250_v29, 0.0  ;;  %v314_v44 = vsel %vm142_vm0, %v3249_v19, 0.0  ;;  %v3255_v19 = vunpack.c.l.bf16 %v2269_v62  ;;  %v3257_v29 = vunpack.c.h.bf16 %v2269_v62 }
  0x71   :  { %306 = vadd.xlane.f32.xlu0 %v305_v8  ;;  %309 = vadd.xlane.f32.xlu1 %v308_v15  ;;  %v317_v8 = vsel %vm142_vm0, %v3253_v55, 0.0  ;;  %v320_v15 = vsel %vm142_vm0, %v3252_v54, 0.0  ;;  %v3259_v54 = vunpack.c.l.bf16 %v2282_v61  ;;  %v3262_v55 = vunpack.c.h.bf16 %v2282_v61 }
  0x73   :  { %v329_v57 = vsel %vm142_vm0, %v3259_v54, 0.0 }
  0x75   :  { %312 = vadd.xlane.f32.xlu0 %v311_v40  ;;  %315 = vadd.xlane.f32.xlu1 %v314_v44  ;;  %v323_v40 = vsel %vm142_vm0, %v3255_v19, 0.0  ;;  %v326_v44 = vsel %vm142_vm0, %v3257_v29, 0.0 }
  0x79   :  { %318 = vadd.xlane.f32.xlu0 %v317_v8  ;;  %321 = vadd.xlane.f32.xlu1 %v320_v15  ;;  %v332_v8 = vsel %vm142_vm0, %v3262_v55, 0.0 }
  0x7d   :  { %324 = vadd.xlane.f32.xlu0 %v323_v40  ;;  %327 = vadd.xlane.f32.xlu1 %v326_v44 }
  0x81   :  { %330 = vadd.xlane.f32.xlu0 %v329_v57  ;;  %333 = vadd.xlane.f32.xlu1 %v332_v8 }
  0x92   :  { %v145_v15 = vpop.xlane.xlu0 %144  ;;  %v151_v19 = vpop.xlane.xlu1 %150 }
  0x93   :  { %v336_v56 = vmul.f32 0.125, %v145_v15  ;;  %v338_v29 = vmul.f32 0.125, %v151_v19 }
  0x95   :  { %v2300_v52 = vsub.f32 %v1575_v2, %v336_v56  ;;  %v2304_v40 = vsub.f32 %v1579_v3, %v338_v29 }
  0x96   :  { %v148_v44 = vpop.xlane.xlu0 %147  ;;  %v154_v54 = vpop.xlane.xlu1 %153 }
  0x97   :  { %v337_v51 = vmul.f32 0.125, %v148_v44  ;;  %v339_v47 = vmul.f32 0.125, %v154_v54  ;;  %v464_v57 = vmul.f32 %v2300_v52, %v2300_v52  ;;  %v466_v8 = vmul.f32 %v2304_v40, %v2304_v40 }
  0x99   :  { %v2312_v19 = vsub.f32 %v1576_v4, %v337_v51  ;;  %v2316_v2 = vsub.f32 %v1580_v5, %v339_v47  ;;  %v528_v3 = vsel %vm142_vm0, %v464_v57, 0.0  ;;  %v534_v54 = vsel %vm142_vm0, %v466_v8, 0.0 }
  0x9a   :  { %529 = vadd.xlane.f32.xlu0 %v528_v3  ;;  %v157_v56 = vpop.xlane.xlu0 %156  ;;  %v160_v29 = vpop.xlane.xlu1 %159 }
  0x9b   :  { %v340_v15 = vmul.f32 0.125, %v157_v56  ;;  %v341_v44 = vmul.f32 0.125, %v160_v29  ;;  %v465_v55 = vmul.f32 %v2312_v19, %v2312_v19  ;;  %v467_v0 = vmul.f32 %v2316_v2, %v2316_v2 }
  0x9d   :  { %v2326_v1 = vsub.f32 %v1583_v11, %v340_v15  ;;  %v2330_v4 = vsub.f32 %v1584_v12, %v341_v44  ;;  %v531_v5 = vsel %vm142_vm0, %v465_v55, 0.0  ;;  %v537_v57 = vsel %vm142_vm0, %v467_v0, 0.0 }
  0x9e   :  { %535 = vadd.xlane.f32.xlu0 %v534_v54  ;;  %532 = vadd.xlane.f32.xlu1 %v531_v5  ;;  %v163_v47 = vpop.xlane.xlu0 %162  ;;  %v166_v51 = vpop.xlane.xlu1 %165 }
  0x9f   :  { %v342_v8 = vmul.f32 0.125, %v163_v47  ;;  %v343_v3 = vmul.f32 0.125, %v166_v51  ;;  %v468_v56 = vmul.f32 %v2326_v1, %v2326_v1  ;;  %v469_v11 = vmul.f32 %v2330_v4, %v2330_v4 }
  0xa1   :  { %v2340_v6 = vsub.f32 %v1587_v16, %v342_v8  ;;  %v2344_v12 = vsub.f32 %v1588_v17, %v343_v3  ;;  %v540_v55 = vsel %vm142_vm0, %v468_v56, 0.0  ;;  %v543_v15 = vsel %vm142_vm0, %v469_v11, 0.0 }
  0xa2   :  { %538 = vadd.xlane.f32.xlu1 %v537_v57  ;;  %541 = vadd.xlane.f32.xlu0 %v540_v55  ;;  %v169_v29 = vpop.xlane.xlu0 %168  ;;  %v172_v54 = vpop.xlane.xlu1 %171 }
  0xa3   :  { %v344_v44 = vmul.f32 0.125, %v169_v29  ;;  %v345_v0 = vmul.f32 0.125, %v172_v54  ;;  %v470_v5 = vmul.f32 %v2340_v6, %v2340_v6  ;;  %v471_v16 = vmul.f32 %v2344_v12, %v2344_v12 }
  0xa5   :  { %v2354_v13 = vsub.f32 %v1591_v21, %v344_v44  ;;  %v2358_v17 = vsub.f32 %v1592_v22, %v345_v0  ;;  %v546_v47 = vsel %vm142_vm0, %v470_v5, 0.0  ;;  %v549_v8 = vsel %vm142_vm0, %v471_v16, 0.0 }
  0xa6   :  { %544 = vadd.xlane.f32.xlu1 %v543_v15  ;;  %547 = vadd.xlane.f32.xlu0 %v546_v47  ;;  %v175_v51 = vpop.xlane.xlu0 %174  ;;  %v178_v57 = vpop.xlane.xlu1 %177 }
  0xa7   :  { %v346_v3 = vmul.f32 0.125, %v175_v51  ;;  %v347_v56 = vmul.f32 0.125, %v178_v57  ;;  %v472_v11 = vmul.f32 %v2354_v13, %v2354_v13  ;;  %v473_v21 = vmul.f32 %v2358_v17, %v2358_v17 }
  0xa9   :  { %v2368_v18 = vsub.f32 %v1595_v26, %v346_v3  ;;  %v2372_v22 = vsub.f32 %v1596_v27, %v347_v56  ;;  %v552_v55 = vsel %vm142_vm0, %v472_v11, 0.0  ;;  %v555_v15 = vsel %vm142_vm0, %v473_v21, 0.0 }
  0xaa   :  { %550 = vadd.xlane.f32.xlu1 %v549_v8  ;;  %553 = vadd.xlane.f32.xlu0 %v552_v55  ;;  %v181_v29 = vpop.xlane.xlu0 %180  ;;  %v184_v54 = vpop.xlane.xlu1 %183 }
  0xab   :  { %v348_v44 = vmul.f32 0.125, %v181_v29  ;;  %v349_v0 = vmul.f32 0.125, %v184_v54  ;;  %v474_v5 = vmul.f32 %v2368_v18, %v2368_v18  ;;  %v475_v26 = vmul.f32 %v2372_v22, %v2372_v22 }
  0xad   :  { %v2382_v23 = vsub.f32 %v1599_v31, %v348_v44  ;;  %v2386_v27 = vsub.f32 %v1600_v32, %v349_v0  ;;  %v558_v16 = vsel %vm142_vm0, %v474_v5, 0.0  ;;  %v561_v57 = vsel %vm142_vm0, %v475_v26, 0.0 }
  0xae   :  { %556 = vadd.xlane.f32.xlu1 %v555_v15  ;;  %559 = vadd.xlane.f32.xlu0 %v558_v16  ;;  %v187_v47 = vpop.xlane.xlu0 %186  ;;  %v190_v51 = vpop.xlane.xlu1 %189 }
  0xaf   :  { %v350_v8 = vmul.f32 0.125, %v187_v47  ;;  %v351_v3 = vmul.f32 0.125, %v190_v51  ;;  %v476_v56 = vmul.f32 %v2382_v23, %v2382_v23  ;;  %v477_v31 = vmul.f32 %v2386_v27, %v2386_v27 }
  0xb1   :  { %v2396_v28 = vsub.f32 %v1603_v36, %v350_v8  ;;  %v2400_v32 = vsub.f32 %v1604_v37, %v351_v3  ;;  %v564_v11 = vsel %vm142_vm0, %v476_v56, 0.0  ;;  %v567_v29 = vsel %vm142_vm0, %v477_v31, 0.0 }
  0xb2   :  { %562 = vadd.xlane.f32.xlu1 %v561_v57  ;;  %565 = vadd.xlane.f32.xlu0 %v564_v11  ;;  %v193_v21 = vpop.xlane.xlu0 %192  ;;  %v196_v55 = vpop.xlane.xlu1 %195 }
  0xb3   :  { %v352_v54 = vmul.f32 0.125, %v193_v21  ;;  %v353_v15 = vmul.f32 0.125, %v196_v55  ;;  %v478_v44 = vmul.f32 %v2396_v28, %v2396_v28  ;;  %v479_v36 = vmul.f32 %v2400_v32, %v2400_v32 }
  0xb5   :  { %v2410_v33 = vsub.f32 %v1607_v41, %v352_v54  ;;  %v2414_v37 = vsub.f32 %v1608_v42, %v353_v15  ;;  %v570_v0 = vsel %vm142_vm0, %v478_v44, 0.0  ;;  %v573_v16 = vsel %vm142_vm0, %v479_v36, 0.0 }
  0xb6   :  { %568 = vadd.xlane.f32.xlu1 %v567_v29  ;;  %571 = vadd.xlane.f32.xlu0 %v570_v0  ;;  %v199_v5 = vpop.xlane.xlu0 %198  ;;  %v202_v26 = vpop.xlane.xlu1 %201  ;;  %v3283_v42 = vunpack.c.h.bf16 %v1996_v43  ;;  %v3284_v43 = vunpack.c.l.bf16 %v2009_v48  ;;  %v3285_v15 = vunpack.c.h.bf16 %v2009_v48  ;;  %v3286_v48 = vunpack.c.l.bf16 %v2022_v53 }
  0xb7   :  { %v354_v47 = vmul.f32 0.125, %v199_v5  ;;  %v355_v51 = vmul.f32 0.125, %v202_v26  ;;  %v480_v57 = vmul.f32 %v2410_v33, %v2410_v33  ;;  %v481_v41 = vmul.f32 %v2414_v37, %v2414_v37 }
  0xb9   :  { %v2424_v38 = vsub.f32 %v1611_v46, %v354_v47  ;;  %v2428_v8 = vsub.f32 %v3283_v42, %v355_v51  ;;  %v576_v3 = vsel %vm142_vm0, %v480_v57, 0.0  ;;  %v579_v11 = vsel %vm142_vm0, %v481_v41, 0.0 }
  0xba   :  { %574 = vadd.xlane.f32.xlu1 %v573_v16  ;;  %577 = vadd.xlane.f32.xlu0 %v576_v3  ;;  %v205_v56 = vpop.xlane.xlu0 %204  ;;  %v208_v31 = vpop.xlane.xlu1 %207  ;;  %v3287_v42 = vunpack.c.h.bf16 %v2022_v53  ;;  %v3288_v53 = vunpack.c.l.bf16 %v2035_v58 }
  0xbb   :  { %v356_v21 = vmul.f32 0.125, %v205_v56  ;;  %v357_v55 = vmul.f32 0.125, %v208_v31  ;;  %v482_v29 = vmul.f32 %v2424_v38, %v2424_v38  ;;  %v483_v46 = vmul.f32 %v2428_v8, %v2428_v8 }
  0xbd   :  { %v2438_v54 = vsub.f32 %v3284_v43, %v356_v21  ;;  %v2442_v44 = vsub.f32 %v3285_v15, %v357_v55  ;;  %v582_v36 = vsel %vm142_vm0, %v482_v29, 0.0  ;;  %v585_v26 = vsel %vm142_vm0, %v483_v46, 0.0 }
  0xbe   :  { %580 = vadd.xlane.f32.xlu1 %v579_v11  ;;  %583 = vadd.xlane.f32.xlu0 %v582_v36  ;;  %v211_v0 = vpop.xlane.xlu0 %210  ;;  %v214_v5 = vpop.xlane.xlu1 %213  ;;  %v3289_v36 = vunpack.c.h.bf16 %v2035_v58  ;;  %v3290_v58 = vunpack.c.l.bf16 %v2048_v63 }
  0xbf   :  { %v358_v16 = vmul.f32 0.125, %v211_v0  ;;  %v359_v47 = vmul.f32 0.125, %v214_v5  ;;  %v484_v51 = vmul.f32 %v2438_v54, %v2438_v54  ;;  %v485_v57 = vmul.f32 %v2442_v44, %v2442_v44 }
  0xc1   :  { %v2452_v41 = vsub.f32 %v3286_v48, %v358_v16  ;;  %v2456_v3 = vsub.f32 %v3287_v42, %v359_v47  ;;  %v588_v56 = vsel %vm142_vm0, %v484_v51, 0.0  ;;  %v591_v21 = vsel %vm142_vm0, %v485_v57, 0.0 }
  0xc2   :  { %586 = vadd.xlane.f32.xlu1 %v585_v26  ;;  %589 = vadd.xlane.f32.xlu0 %v588_v56  ;;  %v217_v31 = vpop.xlane.xlu0 %216  ;;  %v220_v11 = vpop.xlane.xlu1 %219 }
  0xc3   :  { %v360_v55 = vmul.f32 0.125, %v217_v31  ;;  %v361_v29 = vmul.f32 0.125, %v220_v11  ;;  %v486_v46 = vmul.f32 %v2452_v41, %v2452_v41  ;;  %v487_v43 = vmul.f32 %v2456_v3, %v2456_v3 }
  0xc4   :  { %v3291_v31 = vunpack.c.h.bf16 %v2048_v63  ;;  %v3292_v63 = vunpack.c.l.bf16 %v2061_v14 }
  0xc5   :  { %v2466_v15 = vsub.f32 %v3288_v53, %v360_v55  ;;  %v2470_v0 = vsub.f32 %v3289_v36, %v361_v29  ;;  %v594_v5 = vsel %vm142_vm0, %v486_v46, 0.0  ;;  %v597_v47 = vsel %vm142_vm0, %v487_v43, 0.0 }
  0xc6   :  { %592 = vadd.xlane.f32.xlu1 %v591_v21  ;;  %595 = vadd.xlane.f32.xlu0 %v594_v5  ;;  %v223_v26 = vpop.xlane.xlu0 %222  ;;  %v226_v16 = vpop.xlane.xlu1 %225 }
  0xc7   :  { %v362_v51 = vmul.f32 0.125, %v223_v26  ;;  %v363_v57 = vmul.f32 0.125, %v226_v16  ;;  %v488_v48 = vmul.f32 %v2466_v15, %v2466_v15  ;;  %v489_v42 = vmul.f32 %v2470_v0, %v2470_v0 }
  0xc8   :  { %v3293_v16 = vunpack.c.h.bf16 %v2061_v14  ;;  %v3294_v14 = vunpack.c.l.bf16 %v2074_v25 }
  0xc9   :  { %v2480_v56 = vsub.f32 %v3290_v58, %v362_v51  ;;  %v2484_v11 = vsub.f32 %v3291_v31, %v363_v57  ;;  %v600_v21 = vsel %vm142_vm0, %v488_v48, 0.0  ;;  %v603_v46 = vsel %vm142_vm0, %v489_v42, 0.0 }
  0xca   :  { %598 = vadd.xlane.f32.xlu1 %v597_v47  ;;  %601 = vadd.xlane.f32.xlu0 %v600_v21  ;;  %v229_v55 = vpop.xlane.xlu0 %228  ;;  %v232_v29 = vpop.xlane.xlu1 %231 }
  0xcb   :  { %v364_v43 = vmul.f32 0.125, %v229_v55  ;;  %v365_v53 = vmul.f32 0.125, %v232_v29  ;;  %v490_v36 = vmul.f32 %v2480_v56, %v2480_v56  ;;  %v491_v5 = vmul.f32 %v2484_v11, %v2484_v11 }
  0xcd   :  { %v2494_v26 = vsub.f32 %v3292_v63, %v364_v43  ;;  %v2498_v47 = vsub.f32 %v3293_v16, %v365_v53  ;;  %v606_v51 = vsel %vm142_vm0, %v490_v36, 0.0  ;;  %v609_v42 = vsel %vm142_vm0, %v491_v5, 0.0 }
  0xce   :  { %604 = vadd.xlane.f32.xlu1 %v603_v46  ;;  %607 = vadd.xlane.f32.xlu0 %v606_v51  ;;  %v235_v57 = vpop.xlane.xlu0 %234  ;;  %v238_v48 = vpop.xlane.xlu1 %237  ;;  %v3295_v43 = vunpack.c.h.bf16 %v2074_v25  ;;  %v3296_v25 = vunpack.c.l.bf16 %v2087_v39 }
  0xcf   :  { %v366_v58 = vmul.f32 0.125, %v235_v57  ;;  %v367_v31 = vmul.f32 0.125, %v238_v48  ;;  %v492_v21 = vmul.f32 %v2494_v26, %v2494_v26  ;;  %v493_v55 = vmul.f32 %v2498_v47, %v2498_v47 }
  0xd1   :  { %v2508_v29 = vsub.f32 %v3294_v14, %v366_v58  ;;  %v2512_v46 = vsub.f32 %v3295_v43, %v367_v31  ;;  %v612_v53 = vsel %vm142_vm0, %v492_v21, 0.0  ;;  %v615_v63 = vsel %vm142_vm0, %v493_v55, 0.0 }
  0xd2   :  { %610 = vadd.xlane.f32.xlu1 %v609_v42  ;;  %613 = vadd.xlane.f32.xlu0 %v612_v53  ;;  %v241_v36 = vpop.xlane.xlu0 %240  ;;  %v244_v5 = vpop.xlane.xlu1 %243  ;;  %v3297_v31 = vunpack.c.h.bf16 %v2087_v39  ;;  %v3299_v39 = vunpack.c.l.bf16 %v2100_v50 }
  0xd3   :  { %v368_v16 = vmul.f32 0.125, %v241_v36  ;;  %v369_v51 = vmul.f32 0.125, %v244_v5  ;;  %v494_v57 = vmul.f32 %v2508_v29, %v2508_v29  ;;  %v495_v48 = vmul.f32 %v2512_v46, %v2512_v46 }
  0xd5   :  { %v2522_v58 = vsub.f32 %v3296_v25, %v368_v16  ;;  %v2526_v42 = vsub.f32 %v3297_v31, %v369_v51  ;;  %v618_v21 = vsel %vm142_vm0, %v494_v57, 0.0  ;;  %v621_v43 = vsel %vm142_vm0, %v495_v48, 0.0 }
  0xd6   :  { %616 = vadd.xlane.f32.xlu1 %v615_v63  ;;  %619 = vadd.xlane.f32.xlu0 %v618_v21  ;;  %v247_v55 = vpop.xlane.xlu0 %246  ;;  %v250_v14 = vpop.xlane.xlu1 %249  ;;  %v3300_v57 = vunpack.c.h.bf16 %v2100_v50  ;;  %v3302_v50 = vunpack.c.l.bf16 %v2113_v7 }
  0xd7   :  { %3298 = vst [vmem:[#allocation2_spill] sm:$0xff] %v2526_v42  ;;  %v370_v53 = vmul.f32 0.125, %v247_v55  ;;  %v371_v36 = vmul.f32 0.125, %v250_v14  ;;  %v496_v5 = vmul.f32 %v2522_v58, %v2522_v58  ;;  %v497_v16 = vmul.f32 %v2526_v42, %v2526_v42 }
  0xd9   :  { %v2536_v51 = vsub.f32 %v3299_v39, %v370_v53  ;;  %v2540_v63 = vsub.f32 %v3300_v57, %v371_v36  ;;  %v624_v25 = vsel %vm142_vm0, %v496_v5, 0.0  ;;  %v627_v21 = vsel %vm142_vm0, %v497_v16, 0.0 }
  0xda   :  { %622 = vadd.xlane.f32.xlu1 %v621_v43  ;;  %625 = vadd.xlane.f32.xlu0 %v624_v25  ;;  %v253_v48 = vpop.xlane.xlu0 %252  ;;  %v256_v31 = vpop.xlane.xlu1 %255  ;;  %v3303_v5 = vunpack.c.h.bf16 %v2113_v7  ;;  %v3305_v7 = vunpack.c.l.bf16 %v2126_v30 }
  0xdb   :  { %3301 = vst [vmem:[#allocation3_spill] sm:$0xff] %v2540_v63  ;;  %v372_v55 = vmul.f32 0.125, %v253_v48  ;;  %v373_v14 = vmul.f32 0.125, %v256_v31  ;;  %v498_v42 = vmul.f32 %v2536_v51, %v2536_v51  ;;  %v499_v53 = vmul.f32 %v2540_v63, %v2540_v63 }
  0xdd   :  { %v2550_v36 = vsub.f32 %v3302_v50, %v372_v55  ;;  %v2554_v43 = vsub.f32 %v3303_v5, %v373_v14  ;;  %v630_v39 = vsel %vm142_vm0, %v498_v42, 0.0  ;;  %v633_v25 = vsel %vm142_vm0, %v499_v53, 0.0 }
  0xde   :  { %628 = vadd.xlane.f32.xlu1 %v627_v21  ;;  %631 = vadd.xlane.f32.xlu0 %v630_v39  ;;  %v259_v16 = vpop.xlane.xlu0 %258  ;;  %v262_v57 = vpop.xlane.xlu1 %261  ;;  %v3306_v42 = vunpack.c.h.bf16 %v2126_v30  ;;  %v3308_v30 = vunpack.c.l.bf16 %v2139_v60 }
  0xdf   :  { %3304 = vst [vmem:[#allocation4_spill] sm:$0xff] %v2554_v43  ;;  %v374_v48 = vmul.f32 0.125, %v259_v16  ;;  %v375_v31 = vmul.f32 0.125, %v262_v57  ;;  %v500_v63 = vmul.f32 %v2550_v36, %v2550_v36  ;;  %v501_v55 = vmul.f32 %v2554_v43, %v2554_v43 }
  0xe1   :  { %v2564_v14 = vsub.f32 %v3305_v7, %v374_v48  ;;  %v2568_v21 = vsub.f32 %v3306_v42, %v375_v31  ;;  %v636_v50 = vsel %vm142_vm0, %v500_v63, 0.0  ;;  %v639_v39 = vsel %vm142_vm0, %v501_v55, 0.0 }
  0xe2   :  { %634 = vadd.xlane.f32.xlu1 %v633_v25  ;;  %637 = vadd.xlane.f32.xlu0 %v636_v50  ;;  %v265_v53 = vpop.xlane.xlu0 %264  ;;  %v268_v5 = vpop.xlane.xlu1 %267  ;;  %v3309_v63 = vunpack.c.h.bf16 %v2139_v60  ;;  %v3311_v60 = vunpack.c.l.bf16 %v2152_v59 }
  0xe3   :  { %3307 = vst [vmem:[#allocation5_spill] sm:$0xff] %v2568_v21  ;;  %v376_v16 = vmul.f32 0.125, %v265_v53  ;;  %v377_v57 = vmul.f32 0.125, %v268_v5  ;;  %v502_v43 = vmul.f32 %v2564_v14, %v2564_v14  ;;  %v503_v48 = vmul.f32 %v2568_v21, %v2568_v21 }
  0xe5   :  { %v2578_v31 = vsub.f32 %v3308_v30, %v376_v16  ;;  %v2582_v25 = vsub.f32 %v3309_v63, %v377_v57  ;;  %v642_v7 = vsel %vm142_vm0, %v502_v43, 0.0  ;;  %v645_v50 = vsel %vm142_vm0, %v503_v48, 0.0 }
  0xe6   :  { %640 = vadd.xlane.f32.xlu1 %v639_v39  ;;  %643 = vadd.xlane.f32.xlu0 %v642_v7  ;;  %v271_v55 = vpop.xlane.xlu0 %270  ;;  %v274_v42 = vpop.xlane.xlu1 %273  ;;  %v3312_v43 = vunpack.c.h.bf16 %v2152_v59  ;;  %v3314_v59 = vunpack.c.l.bf16 %v2165_v49 }
  0xe7   :  { %3310 = vst [vmem:[#allocation6_spill] sm:$0xff] %v2582_v25  ;;  %v378_v53 = vmul.f32 0.125, %v271_v55  ;;  %v379_v5 = vmul.f32 0.125, %v274_v42  ;;  %v504_v21 = vmul.f32 %v2578_v31, %v2578_v31  ;;  %v505_v16 = vmul.f32 %v2582_v25, %v2582_v25 }
  0xe9   :  { %v2592_v57 = vsub.f32 %v3311_v60, %v378_v53  ;;  %v2596_v39 = vsub.f32 %v3312_v43, %v379_v5  ;;  %v648_v30 = vsel %vm142_vm0, %v504_v21, 0.0  ;;  %v651_v7 = vsel %vm142_vm0, %v505_v16, 0.0 }
  0xea   :  { %646 = vadd.xlane.f32.xlu1 %v645_v50  ;;  %649 = vadd.xlane.f32.xlu0 %v648_v30  ;;  %v277_v48 = vpop.xlane.xlu0 %276  ;;  %v280_v63 = vpop.xlane.xlu1 %279  ;;  %v3315_v21 = vunpack.c.h.bf16 %v2165_v49  ;;  %v3317_v49 = vunpack.c.l.bf16 %v2178_v45 }
  0xeb   :  { %3313 = vst [vmem:[#allocation7_spill] sm:$0xff] %v2596_v39  ;;  %v380_v55 = vmul.f32 0.125, %v277_v48  ;;  %v381_v42 = vmul.f32 0.125, %v280_v63  ;;  %v506_v25 = vmul.f32 %v2592_v57, %v2592_v57  ;;  %v507_v53 = vmul.f32 %v2596_v39, %v2596_v39 }
  0xed   :  { %v2606_v5 = vsub.f32 %v3314_v59, %v380_v55  ;;  %v2610_v50 = vsub.f32 %v3315_v21, %v381_v42  ;;  %v654_v60 = vsel %vm142_vm0, %v506_v25, 0.0  ;;  %v657_v30 = vsel %vm142_vm0, %v507_v53, 0.0 }
  0xee   :  { %652 = vadd.xlane.f32.xlu1 %v651_v7  ;;  %655 = vadd.xlane.f32.xlu0 %v654_v60  ;;  %v283_v16 = vpop.xlane.xlu0 %282  ;;  %v286_v43 = vpop.xlane.xlu1 %285  ;;  %v3318_v25 = vunpack.c.h.bf16 %v2178_v45  ;;  %v3320_v45 = vunpack.c.l.bf16 %v2191_v35 }
  0xef   :  { %3316 = vst [vmem:[#allocation8_spill] sm:$0xff] %v2610_v50  ;;  %v382_v48 = vmul.f32 0.125, %v283_v16  ;;  %v383_v63 = vmul.f32 0.125, %v286_v43  ;;  %v508_v39 = vmul.f32 %v2606_v5, %v2606_v5  ;;  %v509_v55 = vmul.f32 %v2610_v50, %v2610_v50 }
  0xf1   :  { %v2620_v42 = vsub.f32 %v3317_v49, %v382_v48  ;;  %v2624_v7 = vsub.f32 %v3318_v25, %v383_v63  ;;  %v660_v59 = vsel %vm142_vm0, %v508_v39, 0.0  ;;  %v663_v60 = vsel %vm142_vm0, %v509_v55, 0.0 }
  0xf2   :  { %658 = vadd.xlane.f32.xlu1 %v657_v30  ;;  %661 = vadd.xlane.f32.xlu0 %v660_v59  ;;  %v289_v53 = vpop.xlane.xlu0 %288  ;;  %v292_v21 = vpop.xlane.xlu1 %291  ;;  %v3321_v39 = vunpack.c.h.bf16 %v2191_v35  ;;  %v3323_v35 = vunpack.c.l.bf16 %v2204_v34 }
  0xf3   :  { %3319 = vst [vmem:[#allocation9_spill] sm:$0xff] %v2624_v7  ;;  %v384_v16 = vmul.f32 0.125, %v289_v53  ;;  %v385_v43 = vmul.f32 0.125, %v292_v21  ;;  %v510_v50 = vmul.f32 %v2620_v42, %v2620_v42  ;;  %v511_v48 = vmul.f32 %v2624_v7, %v2624_v7 }
  0xf5   :  { %v2634_v63 = vsub.f32 %v3320_v45, %v384_v16  ;;  %v2638_v30 = vsub.f32 %v3321_v39, %v385_v43  ;;  %v666_v49 = vsel %vm142_vm0, %v510_v50, 0.0  ;;  %v669_v59 = vsel %vm142_vm0, %v511_v48, 0.0 }
  0xf6   :  { %664 = vadd.xlane.f32.xlu1 %v663_v60  ;;  %667 = vadd.xlane.f32.xlu0 %v666_v49  ;;  %v295_v55 = vpop.xlane.xlu0 %294  ;;  %v298_v25 = vpop.xlane.xlu1 %297  ;;  %v3324_v50 = vunpack.c.h.bf16 %v2204_v34  ;;  %v3326_v34 = vunpack.c.l.bf16 %v2217_v24 }
  0xf7   :  { %3322 = vst [vmem:[#allocation10_spill] sm:$0xff] %v2638_v30  ;;  %v386_v53 = vmul.f32 0.125, %v295_v55  ;;  %v387_v21 = vmul.f32 0.125, %v298_v25  ;;  %v512_v7 = vmul.f32 %v2634_v63, %v2634_v63  ;;  %v513_v16 = vmul.f32 %v2638_v30, %v2638_v30 }
  0xf9   :  { %v2648_v43 = vsub.f32 %v3323_v35, %v386_v53  ;;  %v2652_v60 = vsub.f32 %v3324_v50, %v387_v21  ;;  %v672_v45 = vsel %vm142_vm0, %v512_v7, 0.0  ;;  %v675_v49 = vsel %vm142_vm0, %v513_v16, 0.0 }
  0xfa   :  { %670 = vadd.xlane.f32.xlu1 %v669_v59  ;;  %673 = vadd.xlane.f32.xlu0 %v672_v45  ;;  %v301_v48 = vpop.xlane.xlu0 %300  ;;  %v304_v39 = vpop.xlane.xlu1 %303  ;;  %v3327_v7 = vunpack.c.h.bf16 %v2217_v24  ;;  %v3329_v24 = vunpack.c.l.bf16 %v2230_v20 }
  0xfb   :  { %3325 = vst [vmem:[#allocation11_spill] sm:$0xff] %v2652_v60  ;;  %v388_v55 = vmul.f32 0.125, %v301_v48  ;;  %v389_v25 = vmul.f32 0.125, %v304_v39  ;;  %v514_v30 = vmul.f32 %v2648_v43, %v2648_v43  ;;  %v515_v53 = vmul.f32 %v2652_v60, %v2652_v60 }
  0xfd   :  { %v2662_v21 = vsub.f32 %v3326_v34, %v388_v55  ;;  %v2666_v59 = vsub.f32 %v3327_v7, %v389_v25  ;;  %v678_v35 = vsel %vm142_vm0, %v514_v30, 0.0  ;;  %v681_v45 = vsel %vm142_vm0, %v515_v53, 0.0 }
  0xfe   :  { %676 = vadd.xlane.f32.xlu1 %v675_v49  ;;  %679 = vadd.xlane.f32.xlu0 %v678_v35  ;;  %v307_v16 = vpop.xlane.xlu0 %306  ;;  %v310_v50 = vpop.xlane.xlu1 %309  ;;  %v3330_v30 = vunpack.c.h.bf16 %v2230_v20  ;;  %v3332_v20 = vunpack.c.l.bf16 %v2243_v10 }
  0xff   :  { %3328 = vst [vmem:[#allocation12_spill] sm:$0xff] %v2666_v59  ;;  %v390_v48 = vmul.f32 0.125, %v307_v16  ;;  %v391_v39 = vmul.f32 0.125, %v310_v50  ;;  %v516_v60 = vmul.f32 %v2662_v21, %v2662_v21  ;;  %v517_v55 = vmul.f32 %v2666_v59, %v2666_v59 }
 0x101   :  { %v2676_v25 = vsub.f32 %v3329_v24, %v390_v48  ;;  %v2680_v49 = vsub.f32 %v3330_v30, %v391_v39  ;;  %v684_v34 = vsel %vm142_vm0, %v516_v60, 0.0  ;;  %v687_v35 = vsel %vm142_vm0, %v517_v55, 0.0 }
 0x102   :  { %682 = vadd.xlane.f32.xlu1 %v681_v45  ;;  %685 = vadd.xlane.f32.xlu0 %v684_v34  ;;  %v313_v53 = vpop.xlane.xlu0 %312  ;;  %v316_v7 = vpop.xlane.xlu1 %315  ;;  %v3334_v60 = vunpack.c.h.bf16 %v2243_v10  ;;  %v3336_v10 = vunpack.c.l.bf16 %v2256_v9 }
 0x103   :  { %3331 = vst [vmem:[#allocation13_spill] sm:$0xff] %v2680_v49  ;;  %v392_v16 = vmul.f32 0.125, %v313_v53  ;;  %v393_v50 = vmul.f32 0.125, %v316_v7  ;;  %v518_v59 = vmul.f32 %v2676_v25, %v2676_v25  ;;  %v519_v48 = vmul.f32 %v2680_v49, %v2680_v49 }
 0x105   :  { %v2690_v39 = vsub.f32 %v3332_v20, %v392_v16  ;;  %v2694_v45 = vsub.f32 %v3334_v60, %v393_v50  ;;  %v690_v24 = vsel %vm142_vm0, %v518_v59, 0.0  ;;  %v693_v34 = vsel %vm142_vm0, %v519_v48, 0.0 }
 0x106   :  { %688 = vadd.xlane.f32.xlu1 %v687_v35  ;;  %691 = vadd.xlane.f32.xlu0 %v690_v24  ;;  %v319_v55 = vpop.xlane.xlu0 %318  ;;  %v322_v30 = vpop.xlane.xlu1 %321  ;;  %v3338_v59 = vunpack.c.h.bf16 %v2256_v9  ;;  %v3340_v9 = vunpack.c.l.bf16 %v2269_v62 }
 0x107   :  { %3333 = vst [vmem:[#allocation14_spill] sm:$0xff] %v2690_v39  ;;  %3335 = vst [vmem:[#allocation15_spill] sm:$0xff] %v2694_v45  ;;  %v394_v53 = vmul.f32 0.125, %v319_v55  ;;  %v395_v7 = vmul.f32 0.125, %v322_v30  ;;  %v520_v49 = vmul.f32 %v2690_v39, %v2690_v39  ;;  %v521_v16 = vmul.f32 %v2694_v45, %v2694_v45 }
 0x109   :  { %v2704_v50 = vsub.f32 %v3336_v10, %v394_v53  ;;  %v2708_v35 = vsub.f32 %v3338_v59, %v395_v7  ;;  %v696_v20 = vsel %vm142_vm0, %v520_v49, 0.0  ;;  %v699_v24 = vsel %vm142_vm0, %v521_v16, 0.0 }
 0x10a   :  { %694 = vadd.xlane.f32.xlu1 %v693_v34  ;;  %697 = vadd.xlane.f32.xlu0 %v696_v20  ;;  %v325_v48 = vpop.xlane.xlu0 %324  ;;  %v328_v60 = vpop.xlane.xlu1 %327  ;;  %v3342_v49 = vunpack.c.h.bf16 %v2269_v62  ;;  %v3344_v62 = vunpack.c.l.bf16 %v2282_v61 }
 0x10b   :  { %3337 = vst [vmem:[#allocation16_spill] sm:$0xff] %v2704_v50  ;;  %3339 = vst [vmem:[#allocation17_spill] sm:$0xff] %v2708_v35  ;;  %v396_v55 = vmul.f32 0.125, %v325_v48  ;;  %v397_v30 = vmul.f32 0.125, %v328_v60  ;;  %v522_v45 = vmul.f32 %v2704_v50, %v2704_v50  ;;  %v523_v53 = vmul.f32 %v2708_v35, %v2708_v35 }
 0x10d   :  { %v2718_v7 = vsub.f32 %v3340_v9, %v396_v55  ;;  %v2722_v34 = vsub.f32 %v3342_v49, %v397_v30  ;;  %v702_v10 = vsel %vm142_vm0, %v522_v45, 0.0  ;;  %v705_v20 = vsel %vm142_vm0, %v523_v53, 0.0 }
 0x10e   :  { %700 = vadd.xlane.f32.xlu1 %v699_v24  ;;  %703 = vadd.xlane.f32.xlu0 %v702_v10  ;;  %v331_v16 = vpop.xlane.xlu0 %330  ;;  %v334_v59 = vpop.xlane.xlu1 %333  ;;  %v3346_v45 = vunpack.c.h.bf16 %v2282_v61 }
 0x10f   :  { %3341 = vst [vmem:[#allocation18_spill] sm:$0xff] %v2718_v7  ;;  %3343 = vst [vmem:[#allocation19_spill] sm:$0xff] %v2722_v34  ;;  %v398_v48 = vmul.f32 0.125, %v331_v16  ;;  %v399_v60 = vmul.f32 0.125, %v334_v59  ;;  %v524_v35 = vmul.f32 %v2718_v7, %v2718_v7  ;;  %v525_v55 = vmul.f32 %v2722_v34, %v2722_v34 }
 0x111   :  { %v2732_v30 = vsub.f32 %v3344_v62, %v398_v48  ;;  %v2736_v24 = vsub.f32 %v3346_v45, %v399_v60  ;;  %v708_v9 = vsel %vm142_vm0, %v524_v35, 0.0  ;;  %v711_v53 = vsel %vm142_vm0, %v525_v55, 0.0 }
 0x112   :  { %706 = vadd.xlane.f32.xlu1 %v705_v20  ;;  %709 = vadd.xlane.f32.xlu0 %v708_v9 }
 0x113   :  { %3345 = vst [vmem:[#allocation20_spill] sm:$0xff] %v2732_v30  ;;  %3347 = vst [vmem:[#allocation21_spill] sm:$0xff] %v2736_v24  ;;  %v526_v49 = vmul.f32 %v2732_v30, %v2732_v30  ;;  %v527_v10 = vmul.f32 %v2736_v24, %v2736_v24 }
 0x115   :  { %v714_v16 = vsel %vm142_vm0, %v526_v49, 0.0  ;;  %v717_v61 = vsel %vm142_vm0, %v527_v10, 0.0 }
 0x116   :  { %712 = vadd.xlane.f32.xlu1 %v711_v53  ;;  %715 = vadd.xlane.f32.xlu0 %v714_v16 }
 0x11a   :  { %718 = vadd.xlane.f32.xlu1 %v717_v61 }
 0x127   :  { %v530_v59 = vpop.xlane.xlu0 %529 }
 0x128   :  { %v720_v48 = vmul.f32 0.125, %v530_v59 }
 0x12a   :  { %v784_v35 = vadd.f32 1e-06, %v720_v48 }
 0x12b   :  { %v533_v20 = vpop.xlane.xlu1 %532  ;;  %v536_v60 = vpop.xlane.xlu0 %535 }
 0x12c   :  { %1732 = vrsqrt.f32 %v784_v35  ;;  %v721_v55 = vmul.f32 0.125, %v533_v20  ;;  %v722_v62 = vmul.f32 0.125, %v536_v60  ;;  %v2749_v35 = vld [vmem:[%s3215_s1] ss:$0 sm:$0xff] }
 0x12e   :  { %v785_v45 = vadd.f32 1e-06, %v721_v55  ;;  %v786_v9 = vadd.f32 1e-06, %v722_v62 }
 0x12f   :  { %v539_v30 = vpop.xlane.xlu1 %538  ;;  %v542_v34 = vpop.xlane.xlu0 %541 }
 0x130   :  { %1734 = vrsqrt.f32 %v785_v45  ;;  %v723_v24 = vmul.f32 0.125, %v539_v30  ;;  %v724_v49 = vmul.f32 0.125, %v542_v34 }
 0x131   :  { %1736 = vrsqrt.f32 %v786_v9 }
 0x132   :  { %v787_v53 = vadd.f32 1e-06, %v723_v24  ;;  %v788_v16 = vadd.f32 1e-06, %v724_v49  ;;  %v2755_v24 = vld [vmem:[%s3216_s2] ss:$0 sm:$0xff] }
 0x133   :  { %v545_v10 = vpop.xlane.xlu1 %544  ;;  %v548_v61 = vpop.xlane.xlu0 %547 }
 0x134   :  { %1738 = vrsqrt.f32 %v787_v53  ;;  %v725_v59 = vmul.f32 0.125, %v545_v10  ;;  %v726_v48 = vmul.f32 0.125, %v548_v61 }
 0x135   :  { %1740 = vrsqrt.f32 %v788_v16 }
 0x136   :  { %v1733_v7 = vpop.eup %1732  ;;  %v789_v20 = vadd.f32 1e-06, %v725_v59  ;;  %v790_v60 = vadd.f32 1e-06, %v726_v48 }
 0x137   :  { %v912_v30 = vmul.f32 %v1733_v7, %v2300_v52  ;;  %v551_v34 = vpop.xlane.xlu1 %550  ;;  %v554_v55 = vpop.xlane.xlu0 %553 }
 0x138   :  { %1742 = vrsqrt.f32 %v789_v20  ;;  %v727_v62 = vmul.f32 0.125, %v551_v34  ;;  %v728_v45 = vmul.f32 0.125, %v554_v55 }
 0x139   :  { %v983_v9 = vmul.f32 %v2749_v35, %v912_v30  ;;  %1744 = vrsqrt.f32 %v790_v60 }
 0x13a   :  { %v1735_v49 = vpop.eup %1734  ;;  %v791_v53 = vadd.f32 1e-06, %v727_v62  ;;  %v792_v16 = vadd.f32 1e-06, %v728_v45 }
 0x13b   :  { %v1737_v10 = vpop.eup %1736  ;;  %v1054_v52 = vadd.f32 %v2755_v24, %v983_v9  ;;  %v913_v7 = vmul.f32 %v1735_v49, %v2312_v19  ;;  %v557_v61 = vpop.xlane.xlu1 %556 }
 0x13c   :  { %v560_v59 = vpop.xlane.xlu0 %559  ;;  %v914_v48 = vmul.f32 %v1737_v10, %v2304_v40  ;;  %1746 = vrsqrt.f32 %v791_v53  ;;  %v729_v20 = vmul.f32 0.125, %v557_v61 }
 0x13d   :  { %v730_v34 = vmul.f32 0.125, %v560_v59  ;;  %v1509_v55 = vpack.c.bf16 %v1054_v52, %v1054_v52  ;;  %v984_v30 = vmul.f32 %v2749_v35, %v913_v7  ;;  %1748 = vrsqrt.f32 %v792_v16 }
 0x13e   :  { %v1739_v60 = vpop.eup %1738  ;;  %v985_v62 = vmul.f32 %v2749_v35, %v914_v48  ;;  %v793_v45 = vadd.f32 1e-06, %v729_v20 }
 0x13f   :  { %v794_v50 = vadd.f32 1e-06, %v730_v34  ;;  %v1741_v39 = vpop.eup %1740  ;;  %1375 = vst.msk [vmem:[%s3217_s3] sm:$0xf] %vm1374_vm1, %v1509_v55  ;;  %v1055_v40 = vadd.f32 %v2755_v24, %v984_v30  ;;  %v915_v19 = vmul.f32 %v1739_v60, %v2316_v2  ;;  %v563_v9 = vpop.xlane.xlu1 %562 }
 0x140   :  { %v566_v49 = vpop.xlane.xlu0 %565  ;;  %v1056_v53 = vadd.f32 %v2755_v24, %v985_v62  ;;  %v916_v16 = vmul.f32 %v1741_v39, %v2326_v1  ;;  %1750 = vrsqrt.f32 %v793_v45  ;;  %v731_v10 = vmul.f32 0.125, %v563_v9 }
 0x141   :  { %v1510_v52 = vpack.c.bf16 %v1055_v40, %v1055_v40  ;;  %v986_v7 = vmul.f32 %v2749_v35, %v915_v19  ;;  %1752 = vrsqrt.f32 %v794_v50  ;;  %v732_v61 = vmul.f32 0.125, %v566_v49 }
 0x142   :  { %v1743_v59 = vpop.eup %1742  ;;  %v1511_v48 = vpack.c.bf16 %v1056_v53, %v1056_v53  ;;  %v987_v20 = vmul.f32 %v2749_v35, %v916_v16  ;;  %v795_v34 = vadd.f32 1e-06, %v731_v10 }
 0x143   :  { %v1745_v55 = vpop.eup %1744  ;;  %1376 = vst.msk [vmem:[%s3217_s3 + $0x4] sm:$0xf] %vm1374_vm1, %v1510_v52  ;;  %v1057_v2 = vadd.f32 %v2755_v24, %v986_v7  ;;  %v917_v1 = vmul.f32 %v1743_v59, %v2330_v4  ;;  %v796_v39 = vadd.f32 1e-06, %v732_v61  ;;  %v569_v30 = vpop.xlane.xlu1 %568 }
 0x144   :  { %v572_v60 = vpop.xlane.xlu0 %571  ;;  %1377 = vst.msk [vmem:[%s3217_s3 + $0x8] sm:$0xf] %vm1374_vm1, %v1511_v48  ;;  %v1058_v50 = vadd.f32 %v2755_v24, %v987_v20  ;;  %v918_v62 = vmul.f32 %v1745_v55, %v2340_v6  ;;  %1754 = vrsqrt.f32 %v795_v34  ;;  %v733_v45 = vmul.f32 0.125, %v569_v30 }
 0x145   :  { %v1512_v40 = vpack.c.bf16 %v1057_v2, %v1057_v2  ;;  %v988_v19 = vmul.f32 %v2749_v35, %v917_v1  ;;  %1756 = vrsqrt.f32 %v796_v39  ;;  %v734_v9 = vmul.f32 0.125, %v572_v60 }
 0x146   :  { %v1747_v4 = vpop.eup %1746  ;;  %v1513_v49 = vpack.c.bf16 %v1058_v50, %v1058_v50  ;;  %v989_v53 = vmul.f32 %v2749_v35, %v918_v62  ;;  %v797_v16 = vadd.f32 1e-06, %v733_v45 }
 0x147   :  { %v1749_v10 = vpop.eup %1748  ;;  %1378 = vst.msk [vmem:[%s3217_s3 + $0xc] sm:$0xf] %vm1374_vm1, %v1512_v40  ;;  %v1059_v6 = vadd.f32 %v2755_v24, %v988_v19  ;;  %v919_v52 = vmul.f32 %v1747_v4, %v2344_v12  ;;  %v798_v7 = vadd.f32 1e-06, %v734_v9  ;;  %v575_v61 = vpop.xlane.xlu1 %574 }
 0x148   :  { %v578_v59 = vpop.xlane.xlu0 %577  ;;  %1379 = vst.msk [vmem:[%s3217_s3 + $0x10] sm:$0xf] %vm1374_vm1, %v1513_v49  ;;  %v1060_v48 = vadd.f32 %v2755_v24, %v989_v53  ;;  %v920_v20 = vmul.f32 %v1749_v10, %v2354_v13  ;;  %1758 = vrsqrt.f32 %v797_v16  ;;  %v735_v34 = vmul.f32 0.125, %v575_v61 }
 0x149   :  { %v1514_v55 = vpack.c.bf16 %v1059_v6, %v1059_v6  ;;  %v990_v2 = vmul.f32 %v2749_v35, %v919_v52  ;;  %1760 = vrsqrt.f32 %v798_v7  ;;  %v736_v1 = vmul.f32 0.125, %v578_v59 }
 0x14a   :  { %v1751_v12 = vpop.eup %1750  ;;  %v1515_v39 = vpack.c.bf16 %v1060_v48, %v1060_v48  ;;  %v991_v30 = vmul.f32 %v2749_v35, %v920_v20  ;;  %v799_v60 = vadd.f32 1e-06, %v735_v34 }
 0x14b   :  { %v1753_v50 = vpop.eup %1752  ;;  %1380 = vst.msk [vmem:[%s3217_s3 + $0x14] sm:$0xf] %vm1374_vm1, %v1514_v55  ;;  %v1061_v13 = vadd.f32 %v2755_v24, %v990_v2  ;;  %v921_v62 = vmul.f32 %v1751_v12, %v2358_v17  ;;  %v800_v45 = vadd.f32 1e-06, %v736_v1  ;;  %v581_v40 = vpop.xlane.xlu1 %580 }
 0x14c   :  { %v584_v19 = vpop.xlane.xlu0 %583  ;;  %1381 = vst.msk [vmem:[%s3217_s3 + $0x18] sm:$0xf] %vm1374_vm1, %v1515_v39  ;;  %v1062_v9 = vadd.f32 %v2755_v24, %v991_v30  ;;  %v922_v4 = vmul.f32 %v1753_v50, %v2368_v18  ;;  %1762 = vrsqrt.f32 %v799_v60  ;;  %v737_v49 = vmul.f32 0.125, %v581_v40 }
 0x14d   :  { %v1516_v53 = vpack.c.bf16 %v1061_v13, %v1061_v13  ;;  %v992_v16 = vmul.f32 %v2749_v35, %v921_v62  ;;  %1764 = vrsqrt.f32 %v800_v45  ;;  %v738_v10 = vmul.f32 0.125, %v584_v19 }
 0x14e   :  { %v1755_v17 = vpop.eup %1754  ;;  %v1517_v6 = vpack.c.bf16 %v1062_v9, %v1062_v9  ;;  %v993_v52 = vmul.f32 %v2749_v35, %v922_v4  ;;  %v801_v7 = vadd.f32 1e-06, %v737_v49 }
 0x14f   :  { %v1757_v61 = vpop.eup %1756  ;;  %1382 = vst.msk [vmem:[%s3217_s3 + $0x1c] sm:$0xf] %vm1374_vm1, %v1516_v53  ;;  %v1063_v18 = vadd.f32 %v2755_v24, %v992_v16  ;;  %v923_v59 = vmul.f32 %v1755_v17, %v2372_v22  ;;  %v802_v48 = vadd.f32 1e-06, %v738_v10  ;;  %v587_v20 = vpop.xlane.xlu1 %586 }
 0x150   :  { %v590_v34 = vpop.xlane.xlu0 %589  ;;  %1383 = vst.msk [vmem:[%s3217_s3 + $0x20] sm:$0xf] %vm1374_vm1, %v1517_v6  ;;  %v1064_v55 = vadd.f32 %v2755_v24, %v993_v52  ;;  %v924_v2 = vmul.f32 %v1757_v61, %v2382_v23  ;;  %1766 = vrsqrt.f32 %v801_v7  ;;  %v739_v1 = vmul.f32 0.125, %v587_v20 }
 0x151   :  { %v1518_v12 = vpack.c.bf16 %v1063_v18, %v1063_v18  ;;  %v994_v39 = vmul.f32 %v2749_v35, %v923_v59  ;;  %1768 = vrsqrt.f32 %v802_v48  ;;  %v740_v30 = vmul.f32 0.125, %v590_v34 }
 0x152   :  { %v1759_v22 = vpop.eup %1758  ;;  %v1519_v60 = vpack.c.bf16 %v1064_v55, %v1064_v55  ;;  %v995_v50 = vmul.f32 %v2749_v35, %v924_v2  ;;  %v803_v13 = vadd.f32 1e-06, %v739_v1 }
 0x153   :  { %v1761_v62 = vpop.eup %1760  ;;  %1384 = vst.msk [vmem:[%s3217_s3 + $0x24] sm:$0xf] %vm1374_vm1, %v1518_v12  ;;  %v1065_v23 = vadd.f32 %v2755_v24, %v994_v39  ;;  %v925_v45 = vmul.f32 %v1759_v22, %v2386_v27  ;;  %v804_v40 = vadd.f32 1e-06, %v740_v30  ;;  %v593_v19 = vpop.xlane.xlu1 %592 }
 0x154   :  { %v596_v9 = vpop.xlane.xlu0 %595  ;;  %1385 = vst.msk [vmem:[%s3217_s3 + $0x28] sm:$0xf] %vm1374_vm1, %v1519_v60  ;;  %v1066_v4 = vadd.f32 %v2755_v24, %v995_v50  ;;  %v926_v49 = vmul.f32 %v1761_v62, %v2396_v28  ;;  %1770 = vrsqrt.f32 %v803_v13  ;;  %v741_v53 = vmul.f32 0.125, %v593_v19 }
 0x155   :  { %v1520_v16 = vpack.c.bf16 %v1065_v23, %v1065_v23  ;;  %v996_v10 = vmul.f32 %v2749_v35, %v925_v45  ;;  %1772 = vrsqrt.f32 %v804_v40  ;;  %v742_v17 = vmul.f32 0.125, %v596_v9 }
 0x156   :  { %v1763_v27 = vpop.eup %1762  ;;  %v1521_v6 = vpack.c.bf16 %v1066_v4, %v1066_v4  ;;  %v997_v52 = vmul.f32 %v2749_v35, %v926_v49  ;;  %v805_v7 = vadd.f32 1e-06, %v741_v53 }
 0x157   :  { %v1765_v61 = vpop.eup %1764  ;;  %1386 = vst.msk [vmem:[%s3217_s3 + $0x2c] sm:$0xf] %vm1374_vm1, %v1520_v16  ;;  %v1067_v28 = vadd.f32 %v2755_v24, %v996_v10  ;;  %v927_v18 = vmul.f32 %v1763_v27, %v2400_v32  ;;  %v806_v59 = vadd.f32 1e-06, %v742_v17  ;;  %v599_v48 = vpop.xlane.xlu1 %598 }
 0x158   :  { %v602_v20 = vpop.xlane.xlu0 %601  ;;  %1387 = vst.msk [vmem:[%s3217_s3 + $0x30] sm:$0xf] %vm1374_vm1, %v1521_v6  ;;  %v1068_v34 = vadd.f32 %v2755_v24, %v997_v52  ;;  %v928_v55 = vmul.f32 %v1765_v61, %v2410_v33  ;;  %1774 = vrsqrt.f32 %v805_v7  ;;  %v743_v2 = vmul.f32 0.125, %v599_v48 }
 0x159   :  { %v1522_v1 = vpack.c.bf16 %v1067_v28, %v1067_v28  ;;  %v998_v12 = vmul.f32 %v2749_v35, %v927_v18  ;;  %1776 = vrsqrt.f32 %v806_v59  ;;  %v744_v39 = vmul.f32 0.125, %v602_v20 }
 0x15a   :  { %v1767_v32 = vpop.eup %1766  ;;  %v1523_v30 = vpack.c.bf16 %v1068_v34, %v1068_v34  ;;  %v999_v22 = vmul.f32 %v2749_v35, %v928_v55  ;;  %v807_v60 = vadd.f32 1e-06, %v743_v2 }
 0x15b   :  { %v1769_v50 = vpop.eup %1768  ;;  %1388 = vst.msk [vmem:[%s3217_s3 + $0x34] sm:$0xf] %vm1374_vm1, %v1522_v1  ;;  %v1069_v33 = vadd.f32 %v2755_v24, %v998_v12  ;;  %v929_v13 = vmul.f32 %v1767_v32, %v2414_v37  ;;  %v808_v62 = vadd.f32 1e-06, %v744_v39  ;;  %v605_v23 = vpop.xlane.xlu1 %604 }
 0x15c   :  { %v608_v45 = vpop.xlane.xlu0 %607  ;;  %1389 = vst.msk [vmem:[%s3217_s3 + $0x38] sm:$0xf] %vm1374_vm1, %v1523_v30  ;;  %v1070_v40 = vadd.f32 %v2755_v24, %v999_v22  ;;  %v930_v19 = vmul.f32 %v1769_v50, %v2424_v38  ;;  %1778 = vrsqrt.f32 %v807_v60  ;;  %v745_v9 = vmul.f32 0.125, %v605_v23 }
 0x15d   :  { %v1524_v4 = vpack.c.bf16 %v1069_v33, %v1069_v33  ;;  %v1000_v49 = vmul.f32 %v2749_v35, %v929_v13  ;;  %1780 = vrsqrt.f32 %v808_v62  ;;  %v746_v53 = vmul.f32 0.125, %v608_v45 }
 0x15e   :  { %v1771_v37 = vpop.eup %1770  ;;  %v1525_v16 = vpack.c.bf16 %v1070_v40, %v1070_v40  ;;  %v1001_v10 = vmul.f32 %v2749_v35, %v930_v19  ;;  %v809_v17 = vadd.f32 1e-06, %v745_v9 }
 0x15f   :  { %v1773_v27 = vpop.eup %1772  ;;  %1390 = vst.msk [vmem:[%s3217_s3 + $0x3c] sm:$0xf] %vm1374_vm1, %v1524_v4  ;;  %v1071_v38 = vadd.f32 %v2755_v24, %v1000_v49  ;;  %v931_v6 = vmul.f32 %v1771_v37, %v2428_v8  ;;  %v810_v52 = vadd.f32 1e-06, %v746_v53  ;;  %v611_v7 = vpop.xlane.xlu1 %610 }
 0x160   :  { %v614_v61 = vpop.xlane.xlu0 %613  ;;  %1391 = vst.msk [vmem:[%s3217_s3 + $0x40] sm:$0xf] %vm1374_vm1, %v1525_v16  ;;  %v1072_v28 = vadd.f32 %v2755_v24, %v1001_v10  ;;  %v932_v18 = vmul.f32 %v1773_v27, %v2438_v54  ;;  %1782 = vrsqrt.f32 %v809_v17  ;;  %v747_v59 = vmul.f32 0.125, %v611_v7 }
 0x161   :  { %v1526_v48 = vpack.c.bf16 %v1071_v38, %v1071_v38  ;;  %v1002_v20 = vmul.f32 %v2749_v35, %v931_v6  ;;  %1784 = vrsqrt.f32 %v810_v52  ;;  %v748_v34 = vmul.f32 0.125, %v614_v61 }
 0x162   :  { %v1775_v8 = vpop.eup %1774  ;;  %v1527_v55 = vpack.c.bf16 %v1072_v28, %v1072_v28  ;;  %v1003_v2 = vmul.f32 %v2749_v35, %v932_v18  ;;  %v811_v1 = vadd.f32 1e-06, %v747_v59 }
 0x163   :  { %v1777_v12 = vpop.eup %1776  ;;  %1392 = vst.msk [vmem:[%s3217_s3 + $0x44] sm:$0xf] %vm1374_vm1, %v1526_v48  ;;  %v1073_v54 = vadd.f32 %v2755_v24, %v1002_v20  ;;  %v933_v39 = vmul.f32 %v1775_v8, %v2442_v44  ;;  %v812_v32 = vadd.f32 1e-06, %v748_v34  ;;  %v617_v30 = vpop.xlane.xlu1 %616 }
 0x164   :  { %v620_v22 = vpop.xlane.xlu0 %619  ;;  %1393 = vst.msk [vmem:[%s3217_s3 + $0x48] sm:$0xf] %vm1374_vm1, %v1527_v55  ;;  %v1074_v60 = vadd.f32 %v2755_v24, %v1003_v2  ;;  %v934_v50 = vmul.f32 %v1777_v12, %v2452_v41  ;;  %1786 = vrsqrt.f32 %v811_v1  ;;  %v749_v33 = vmul.f32 0.125, %v617_v30 }
 0x165   :  { %v1528_v13 = vpack.c.bf16 %v1073_v54, %v1073_v54  ;;  %v1004_v62 = vmul.f32 %v2749_v35, %v933_v39  ;;  %1788 = vrsqrt.f32 %v812_v32  ;;  %v750_v23 = vmul.f32 0.125, %v620_v22 }
 0x166   :  { %v1779_v44 = vpop.eup %1778  ;;  %v1529_v45 = vpack.c.bf16 %v1074_v60, %v1074_v60  ;;  %v1005_v40 = vmul.f32 %v2749_v35, %v934_v50  ;;  %v813_v19 = vadd.f32 1e-06, %v749_v33 }
 0x167   :  { %v1781_v9 = vpop.eup %1780  ;;  %1394 = vst.msk [vmem:[%s3217_s3 + $0x4c] sm:$0xf] %vm1374_vm1, %v1528_v13  ;;  %v1075_v41 = vadd.f32 %v2755_v24, %v1004_v62  ;;  %v935_v4 = vmul.f32 %v1779_v44, %v2456_v3  ;;  %v814_v49 = vadd.f32 1e-06, %v750_v23  ;;  %v623_v53 = vpop.xlane.xlu1 %622 }
 0x168   :  { %v626_v37 = vpop.xlane.xlu0 %625  ;;  %1395 = vst.msk [vmem:[%s3217_s3 + $0x50] sm:$0xf] %vm1374_vm1, %v1529_v45  ;;  %v1076_v16 = vadd.f32 %v2755_v24, %v1005_v40  ;;  %v936_v10 = vmul.f32 %v1781_v9, %v2466_v15  ;;  %1790 = vrsqrt.f32 %v813_v19  ;;  %v751_v17 = vmul.f32 0.125, %v623_v53 }
 0x169   :  { %v1530_v27 = vpack.c.bf16 %v1075_v41, %v1075_v41  ;;  %v1006_v38 = vmul.f32 %v2749_v35, %v935_v4  ;;  %1792 = vrsqrt.f32 %v814_v49  ;;  %v752_v6 = vmul.f32 0.125, %v626_v37 }
 0x16a   :  { %v1783_v3 = vpop.eup %1782  ;;  %v1531_v52 = vpack.c.bf16 %v1076_v16, %v1076_v16  ;;  %v1007_v7 = vmul.f32 %v2749_v35, %v936_v10  ;;  %v815_v61 = vadd.f32 1e-06, %v751_v17 }
 0x16b   :  { %v1785_v28 = vpop.eup %1784  ;;  %1396 = vst.msk [vmem:[%s3217_s3 + $0x54] sm:$0xf] %vm1374_vm1, %v1530_v27  ;;  %v1077_v15 = vadd.f32 %v2755_v24, %v1006_v38  ;;  %v937_v18 = vmul.f32 %v1783_v3, %v2470_v0  ;;  %v816_v59 = vadd.f32 1e-06, %v752_v6  ;;  %v629_v48 = vpop.xlane.xlu1 %628 }
 0x16c   :  { %v632_v20 = vpop.xlane.xlu0 %631  ;;  %1397 = vst.msk [vmem:[%s3217_s3 + $0x58] sm:$0xf] %vm1374_vm1, %v1531_v52  ;;  %v1078_v34 = vadd.f32 %v2755_v24, %v1007_v7  ;;  %v938_v8 = vmul.f32 %v1785_v28, %v2480_v56  ;;  %1794 = vrsqrt.f32 %v815_v61  ;;  %v753_v55 = vmul.f32 0.125, %v629_v48 }
 0x16d   :  { %v1532_v2 = vpack.c.bf16 %v1077_v15, %v1077_v15  ;;  %v1008_v1 = vmul.f32 %v2749_v35, %v937_v18  ;;  %1796 = vrsqrt.f32 %v816_v59  ;;  %v754_v12 = vmul.f32 0.125, %v632_v20 }
 0x16e   :  { %v1787_v0 = vpop.eup %1786  ;;  %v1533_v54 = vpack.c.bf16 %v1078_v34, %v1078_v34  ;;  %v1009_v39 = vmul.f32 %v2749_v35, %v938_v8  ;;  %v817_v32 = vadd.f32 1e-06, %v753_v55 }
 0x16f   :  { %v1789_v30 = vpop.eup %1788  ;;  %1398 = vst.msk [vmem:[%s3217_s3 + $0x5c] sm:$0xf] %vm1374_vm1, %v1532_v2  ;;  %v1079_v56 = vadd.f32 %v2755_v24, %v1008_v1  ;;  %v939_v22 = vmul.f32 %v1787_v0, %v2484_v11  ;;  %v818_v60 = vadd.f32 1e-06, %v754_v12  ;;  %v635_v50 = vpop.xlane.xlu1 %634 }
 0x170   :  { %v638_v33 = vpop.xlane.xlu0 %637  ;;  %1399 = vst.msk [vmem:[%s3217_s3 + $0x60] sm:$0xf] %vm1374_vm1, %v1533_v54  ;;  %v1080_v13 = vadd.f32 %v2755_v24, %v1009_v39  ;;  %v940_v62 = vmul.f32 %v1789_v30, %v2494_v26  ;;  %1798 = vrsqrt.f32 %v817_v32  ;;  %v755_v23 = vmul.f32 0.125, %v635_v50  ;;  %v3348_v32 = vld [vmem:[#allocation2_spill] sm:$0xff] }
 0x171   :  { %v1534_v44 = vpack.c.bf16 %v1079_v56, %v1079_v56  ;;  %v1010_v45 = vmul.f32 %v2749_v35, %v939_v22  ;;  %1800 = vrsqrt.f32 %v818_v60  ;;  %v756_v40 = vmul.f32 0.125, %v638_v33 }
 0x172   :  { %v1791_v11 = vpop.eup %1790  ;;  %v1535_v19 = vpack.c.bf16 %v1080_v13, %v1080_v13  ;;  %v1011_v9 = vmul.f32 %v2749_v35, %v940_v62  ;;  %v819_v41 = vadd.f32 1e-06, %v755_v23 }
 0x173   :  { %v1793_v4 = vpop.eup %1792  ;;  %1400 = vst.msk [vmem:[%s3217_s3 + $0x64] sm:$0xf] %vm1374_vm1, %v1534_v44  ;;  %v1081_v26 = vadd.f32 %v2755_v24, %v1010_v45  ;;  %v941_v49 = vmul.f32 %v1791_v11, %v2498_v47  ;;  %v820_v53 = vadd.f32 1e-06, %v756_v40  ;;  %v641_v37 = vpop.xlane.xlu1 %640 }
 0x174   :  { %v644_v16 = vpop.xlane.xlu0 %643  ;;  %1401 = vst.msk [vmem:[%s3217_s3 + $0x68] sm:$0xf] %vm1374_vm1, %v1535_v19  ;;  %v1082_v10 = vadd.f32 %v2755_v24, %v1011_v9  ;;  %v942_v17 = vmul.f32 %v1793_v4, %v2508_v29  ;;  %1802 = vrsqrt.f32 %v819_v41  ;;  %v757_v27 = vmul.f32 0.125, %v641_v37  ;;  %v3349_v41 = vld [vmem:[#allocation3_spill] sm:$0xff] }
 0x175   :  { %v1536_v38 = vpack.c.bf16 %v1081_v26, %v1081_v26  ;;  %v1012_v6 = vmul.f32 %v2749_v35, %v941_v49  ;;  %1804 = vrsqrt.f32 %v820_v53  ;;  %v758_v3 = vmul.f32 0.125, %v644_v16 }
 0x176   :  { %v1795_v47 = vpop.eup %1794  ;;  %v1537_v52 = vpack.c.bf16 %v1082_v10, %v1082_v10  ;;  %v1013_v7 = vmul.f32 %v2749_v35, %v942_v17  ;;  %v821_v61 = vadd.f32 1e-06, %v757_v27 }
 0x177   :  { %v1797_v28 = vpop.eup %1796  ;;  %1402 = vst.msk [vmem:[%s3217_s3 + $0x6c] sm:$0xf] %vm1374_vm1, %v1536_v38  ;;  %v1083_v29 = vadd.f32 %v2755_v24, %v1012_v6  ;;  %v943_v15 = vmul.f32 %v1795_v47, %v2512_v46  ;;  %v822_v18 = vadd.f32 1e-06, %v758_v3  ;;  %v647_v59 = vpop.xlane.xlu1 %646 }
 0x178   :  { %v650_v48 = vpop.xlane.xlu0 %649  ;;  %1403 = vst.msk [vmem:[%s3217_s3 + $0x70] sm:$0xf] %vm1374_vm1, %v1537_v52  ;;  %v1084_v20 = vadd.f32 %v2755_v24, %v1013_v7  ;;  %v944_v34 = vmul.f32 %v1797_v28, %v2522_v58  ;;  %1806 = vrsqrt.f32 %v821_v61  ;;  %v759_v8 = vmul.f32 0.125, %v647_v59  ;;  %v3350_v61 = vld [vmem:[#allocation4_spill] sm:$0xff] }
 0x179   :  { %v1538_v55 = vpack.c.bf16 %v1083_v29, %v1083_v29  ;;  %v1014_v2 = vmul.f32 %v2749_v35, %v943_v15  ;;  %1808 = vrsqrt.f32 %v822_v18  ;;  %v760_v1 = vmul.f32 0.125, %v650_v48 }
 0x17a   :  { %v1799_v46 = vpop.eup %1798  ;;  %v1539_v12 = vpack.c.bf16 %v1084_v20, %v1084_v20  ;;  %v1015_v0 = vmul.f32 %v2749_v35, %v944_v34  ;;  %v823_v54 = vadd.f32 1e-06, %v759_v8 }
 0x17b   :  { %v1801_v39 = vpop.eup %1800  ;;  %1404 = vst.msk [vmem:[%s3217_s3 + $0x74] sm:$0xf] %vm1374_vm1, %v1538_v55  ;;  %v1085_v58 = vadd.f32 %v2755_v24, %v1014_v2  ;;  %v945_v30 = vmul.f32 %v1799_v46, %v3348_v32  ;;  %v824_v56 = vadd.f32 1e-06, %v760_v1  ;;  %v653_v22 = vpop.xlane.xlu1 %652 }
 0x17c   :  { %v656_v60 = vpop.xlane.xlu0 %655  ;;  %1405 = vst.msk [vmem:[%s3217_s3 + $0x78] sm:$0xf] %vm1374_vm1, %v1539_v12  ;;  %v1086_v50 = vadd.f32 %v2755_v24, %v1015_v0  ;;  %v946_v33 = vmul.f32 %v1801_v39, %v2536_v51  ;;  %1810 = vrsqrt.f32 %v823_v54  ;;  %v761_v13 = vmul.f32 0.125, %v653_v22  ;;  %v3351_v54 = vld [vmem:[#allocation5_spill] sm:$0xff] }
 0x17d   :  { %v1540_v62 = vpack.c.bf16 %v1085_v58, %v1085_v58  ;;  %v1016_v23 = vmul.f32 %v2749_v35, %v945_v30  ;;  %1812 = vrsqrt.f32 %v824_v56  ;;  %v762_v44 = vmul.f32 0.125, %v656_v60 }
 0x17e   :  { %v1803_v45 = vpop.eup %1802  ;;  %v1541_v40 = vpack.c.bf16 %v1086_v50, %v1086_v50  ;;  %v1017_v11 = vmul.f32 %v2749_v35, %v946_v33  ;;  %v825_v19 = vadd.f32 1e-06, %v761_v13 }
 0x17f   :  { %v1805_v9 = vpop.eup %1804  ;;  %1406 = vst.msk [vmem:[%s3217_s3 + $0x7c] sm:$0xf] %vm1374_vm1, %v1540_v62  ;;  %v1087_v51 = vadd.f32 %v2755_v24, %v1016_v23  ;;  %v947_v4 = vmul.f32 %v1803_v45, %v3349_v41  ;;  %v826_v26 = vadd.f32 1e-06, %v762_v44  ;;  %v659_v49 = vpop.xlane.xlu1 %658 }
 0x180   :  { %v662_v53 = vpop.xlane.xlu0 %661  ;;  %1407 = vst.msk [vmem:[%s3217_s3 + $0x80] sm:$0xf] %vm1374_vm1, %v1541_v40  ;;  %v1088_v37 = vadd.f32 %v2755_v24, %v1017_v11  ;;  %v948_v16 = vmul.f32 %v1805_v9, %v2550_v36  ;;  %1814 = vrsqrt.f32 %v825_v19  ;;  %v763_v10 = vmul.f32 0.125, %v659_v49  ;;  %v3352_v11 = vld [vmem:[#allocation6_spill] sm:$0xff] }
 0x181   :  { %v1542_v17 = vpack.c.bf16 %v1087_v51, %v1087_v51  ;;  %v1018_v27 = vmul.f32 %v2749_v35, %v947_v4  ;;  %1816 = vrsqrt.f32 %v826_v26  ;;  %v764_v38 = vmul.f32 0.125, %v662_v53 }
 0x182   :  { %v1807_v6 = vpop.eup %1806  ;;  %v1543_v3 = vpack.c.bf16 %v1088_v37, %v1088_v37  ;;  %v1019_v47 = vmul.f32 %v2749_v35, %v948_v16  ;;  %v827_v52 = vadd.f32 1e-06, %v763_v10 }
 0x183   :  { %v1809_v7 = vpop.eup %1808  ;;  %1408 = vst.msk [vmem:[%s3217_s3 + $0x84] sm:$0xf] %vm1374_vm1, %v1542_v17  ;;  %v1089_v36 = vadd.f32 %v2755_v24, %v1018_v27  ;;  %v949_v28 = vmul.f32 %v1807_v6, %v3350_v61  ;;  %v828_v29 = vadd.f32 1e-06, %v764_v38  ;;  %v665_v15 = vpop.xlane.xlu1 %664 }
 0x184   :  { %v668_v18 = vpop.xlane.xlu0 %667  ;;  %1409 = vst.msk [vmem:[%s3217_s3 + $0x88] sm:$0xf] %vm1374_vm1, %v1543_v3  ;;  %v1090_v59 = vadd.f32 %v2755_v24, %v1019_v47  ;;  %v950_v48 = vmul.f32 %v1809_v7, %v2564_v14  ;;  %1818 = vrsqrt.f32 %v827_v52  ;;  %v765_v20 = vmul.f32 0.125, %v665_v15  ;;  %v3353_v3 = vld [vmem:[#allocation7_spill] sm:$0xff] }
 0x185   :  { %v1544_v34 = vpack.c.bf16 %v1089_v36, %v1089_v36  ;;  %v1020_v8 = vmul.f32 %v2749_v35, %v949_v28  ;;  %1820 = vrsqrt.f32 %v828_v29  ;;  %v766_v55 = vmul.f32 0.125, %v668_v18 }
 0x186   :  { %v1811_v2 = vpop.eup %1810  ;;  %v1545_v1 = vpack.c.bf16 %v1090_v59, %v1090_v59  ;;  %v1021_v46 = vmul.f32 %v2749_v35, %v950_v48  ;;  %v829_v12 = vadd.f32 1e-06, %v765_v20 }
 0x187   :  { %v1813_v0 = vpop.eup %1812  ;;  %1410 = vst.msk [vmem:[%s3217_s3 + $0x8c] sm:$0xf] %vm1374_vm1, %v1544_v34  ;;  %v1091_v14 = vadd.f32 %v2755_v24, %v1020_v8  ;;  %v951_v39 = vmul.f32 %v1811_v2, %v3351_v54  ;;  %v830_v58 = vadd.f32 1e-06, %v766_v55  ;;  %v671_v32 = vpop.xlane.xlu1 %670  ;;  %v3354_v2 = vld [vmem:[#allocation8_spill] sm:$0xff] }
 0x188   :  { %v674_v30 = vpop.xlane.xlu0 %673  ;;  %1411 = vst.msk [vmem:[%s3217_s3 + $0x90] sm:$0xf] %vm1374_vm1, %v1545_v1  ;;  %v1092_v56 = vadd.f32 %v2755_v24, %v1021_v46  ;;  %v952_v22 = vmul.f32 %v1813_v0, %v2578_v31  ;;  %1822 = vrsqrt.f32 %v829_v12  ;;  %v767_v60 = vmul.f32 0.125, %v671_v32 }
 0x189   :  { %v1546_v50 = vpack.c.bf16 %v1091_v14, %v1091_v14  ;;  %v1022_v33 = vmul.f32 %v2749_v35, %v951_v39  ;;  %1824 = vrsqrt.f32 %v830_v58  ;;  %v768_v13 = vmul.f32 0.125, %v674_v30 }
 0x18a   :  { %v1815_v62 = vpop.eup %1814  ;;  %v1547_v23 = vpack.c.bf16 %v1092_v56, %v1092_v56  ;;  %v1023_v44 = vmul.f32 %v2749_v35, %v952_v22  ;;  %v831_v45 = vadd.f32 1e-06, %v767_v60 }
 0x18b   :  { %v1817_v40 = vpop.eup %1816  ;;  %1412 = vst.msk [vmem:[%s3217_s3 + $0x94] sm:$0xf] %vm1374_vm1, %v1546_v50  ;;  %v1093_v31 = vadd.f32 %v2755_v24, %v1022_v33  ;;  %v953_v19 = vmul.f32 %v1815_v62, %v3352_v11  ;;  %v832_v9 = vadd.f32 1e-06, %v768_v13  ;;  %v677_v51 = vpop.xlane.xlu1 %676  ;;  %v3355_v13 = vld [vmem:[#allocation9_spill] sm:$0xff] }
 0x18c   :  { %v680_v41 = vpop.xlane.xlu0 %679  ;;  %1413 = vst.msk [vmem:[%s3217_s3 + $0x98] sm:$0xf] %vm1374_vm1, %v1547_v23  ;;  %v1094_v4 = vadd.f32 %v2755_v24, %v1023_v44  ;;  %v954_v26 = vmul.f32 %v1817_v40, %v2592_v57  ;;  %1826 = vrsqrt.f32 %v831_v45  ;;  %v769_v49 = vmul.f32 0.125, %v677_v51 }
 0x18d   :  { %v1548_v53 = vpack.c.bf16 %v1093_v31, %v1093_v31  ;;  %v1024_v37 = vmul.f32 %v2749_v35, %v953_v19  ;;  %1828 = vrsqrt.f32 %v832_v9  ;;  %v770_v16 = vmul.f32 0.125, %v680_v41 }
 0x18e   :  { %v1819_v10 = vpop.eup %1818  ;;  %v1549_v17 = vpack.c.bf16 %v1094_v4, %v1094_v4  ;;  %v1025_v27 = vmul.f32 %v2749_v35, %v954_v26  ;;  %v833_v38 = vadd.f32 1e-06, %v769_v49 }
 0x18f   :  { %v1821_v6 = vpop.eup %1820  ;;  %1414 = vst.msk [vmem:[%s3217_s3 + $0x9c] sm:$0xf] %vm1374_vm1, %v1548_v53  ;;  %v1095_v57 = vadd.f32 %v2755_v24, %v1024_v37  ;;  %v955_v47 = vmul.f32 %v1819_v10, %v3353_v3  ;;  %v834_v52 = vadd.f32 1e-06, %v770_v16  ;;  %v683_v7 = vpop.xlane.xlu1 %682  ;;  %v3356_v37 = vld [vmem:[#allocation10_spill] sm:$0xff] }
 0x190   :  { %v686_v36 = vpop.xlane.xlu0 %685  ;;  %1415 = vst.msk [vmem:[%s3217_s3 + $0xa0] sm:$0xf] %vm1374_vm1, %v1549_v17  ;;  %v1096_v61 = vadd.f32 %v2755_v24, %v1025_v27  ;;  %v956_v28 = vmul.f32 %v1821_v6, %v2606_v5  ;;  %1830 = vrsqrt.f32 %v833_v38  ;;  %v771_v29 = vmul.f32 0.125, %v683_v7 }
 0x191   :  { %v1550_v15 = vpack.c.bf16 %v1095_v57, %v1095_v57  ;;  %v1026_v18 = vmul.f32 %v2749_v35, %v955_v47  ;;  %1832 = vrsqrt.f32 %v834_v52  ;;  %v772_v59 = vmul.f32 0.125, %v686_v36 }
 0x192   :  { %v1823_v48 = vpop.eup %1822  ;;  %v1551_v20 = vpack.c.bf16 %v1096_v61, %v1096_v61  ;;  %v1027_v34 = vmul.f32 %v2749_v35, %v956_v28  ;;  %v835_v8 = vadd.f32 1e-06, %v771_v29 }
 0x193   :  { %v1825_v55 = vpop.eup %1824  ;;  %1416 = vst.msk [vmem:[%s3217_s3 + $0xa4] sm:$0xf] %vm1374_vm1, %v1550_v15  ;;  %v1097_v5 = vadd.f32 %v2755_v24, %v1026_v18  ;;  %v957_v1 = vmul.f32 %v1823_v48, %v3354_v2  ;;  %v836_v46 = vadd.f32 1e-06, %v772_v59  ;;  %v689_v12 = vpop.xlane.xlu1 %688  ;;  %v3357_v15 = vld [vmem:[#allocation11_spill] sm:$0xff] }
 0x194   :  { %v692_v0 = vpop.xlane.xlu0 %691  ;;  %1417 = vst.msk [vmem:[%s3217_s3 + $0xa8] sm:$0xf] %vm1374_vm1, %v1551_v20  ;;  %v1098_v14 = vadd.f32 %v2755_v24, %v1027_v34  ;;  %v958_v54 = vmul.f32 %v1825_v55, %v2620_v42  ;;  %1834 = vrsqrt.f32 %v835_v8  ;;  %v773_v39 = vmul.f32 0.125, %v689_v12 }
 0x195   :  { %v1552_v58 = vpack.c.bf16 %v1097_v5, %v1097_v5  ;;  %v1028_v32 = vmul.f32 %v2749_v35, %v957_v1  ;;  %1836 = vrsqrt.f32 %v836_v46  ;;  %v774_v30 = vmul.f32 0.125, %v692_v0  ;;  %v3115_v5 = vld [vmem:[%s3215_s1] ss:$0 sm:$0xff] }
 0x196   :  { %v1827_v56 = vpop.eup %1826  ;;  %v1553_v22 = vpack.c.bf16 %v1098_v14, %v1098_v14  ;;  %v1029_v60 = vmul.f32 %v2749_v35, %v958_v54  ;;  %v837_v50 = vadd.f32 1e-06, %v773_v39  ;;  %v3358_v39 = vld [vmem:[#allocation12_spill] sm:$0xff] }
 0x197   :  { %v1829_v33 = vpop.eup %1828  ;;  %1418 = vst.msk [vmem:[%s3217_s3 + $0xac] sm:$0xf] %vm1374_vm1, %v1552_v58  ;;  %v1099_v42 = vadd.f32 %v2755_v24, %v1028_v32  ;;  %v959_v62 = vmul.f32 %v1827_v56, %v3355_v13  ;;  %v838_v23 = vadd.f32 1e-06, %v774_v30  ;;  %v695_v44 = vpop.xlane.xlu1 %694 }
 0x198   :  { %v698_v45 = vpop.xlane.xlu0 %697  ;;  %1419 = vst.msk [vmem:[%s3217_s3 + $0xb0] sm:$0xf] %vm1374_vm1, %v1553_v22  ;;  %v1100_v40 = vadd.f32 %v2755_v24, %v1029_v60  ;;  %v960_v31 = vmul.f32 %v1829_v33, %v2634_v63  ;;  %1838 = vrsqrt.f32 %v837_v50  ;;  %v775_v11 = vmul.f32 0.125, %v695_v44 }
 0x199   :  { %v1554_v19 = vpack.c.bf16 %v1099_v42, %v1099_v42  ;;  %v1030_v9 = vmul.f32 %v2749_v35, %v959_v62  ;;  %1840 = vrsqrt.f32 %v838_v23  ;;  %v776_v51 = vmul.f32 0.125, %v698_v45 }
 0x19a   :  { %v1831_v41 = vpop.eup %1830  ;;  %v1555_v4 = vpack.c.bf16 %v1100_v40, %v1100_v40  ;;  %v1031_v26 = vmul.f32 %v2749_v35, %v960_v31  ;;  %v839_v49 = vadd.f32 1e-06, %v775_v11  ;;  %v3359_v31 = vld [vmem:[#allocation13_spill] sm:$0xff] }
 0x19b   :  { %v1833_v53 = vpop.eup %1832  ;;  %1420 = vst.msk [vmem:[%s3217_s3 + $0xb4] sm:$0xf] %vm1374_vm1, %v1554_v19  ;;  %v1101_v63 = vadd.f32 %v2755_v24, %v1030_v9  ;;  %v961_v16 = vmul.f32 %v1831_v41, %v3356_v37  ;;  %v840_v10 = vadd.f32 1e-06, %v776_v51  ;;  %v701_v17 = vpop.xlane.xlu1 %700  ;;  %v3360_v41 = vld [vmem:[#allocation14_spill] sm:$0xff] }
 0x19c   :  { %v704_v27 = vpop.xlane.xlu0 %703  ;;  %1421 = vst.msk [vmem:[%s3217_s3 + $0xb8] sm:$0xf] %vm1374_vm1, %v1555_v4  ;;  %v1102_v38 = vadd.f32 %v2755_v24, %v1031_v26  ;;  %v962_v6 = vmul.f32 %v1833_v53, %v2648_v43  ;;  %1842 = vrsqrt.f32 %v839_v49  ;;  %v777_v57 = vmul.f32 0.125, %v701_v17 }
 0x19d   :  { %v1556_v3 = vpack.c.bf16 %v1101_v63, %v1101_v63  ;;  %v1032_v47 = vmul.f32 %v2749_v35, %v961_v16  ;;  %1844 = vrsqrt.f32 %v840_v10  ;;  %v778_v52 = vmul.f32 0.125, %v704_v27 }
 0x19e   :  { %v1835_v7 = vpop.eup %1834  ;;  %v1557_v36 = vpack.c.bf16 %v1102_v38, %v1102_v38  ;;  %v1033_v61 = vmul.f32 %v2749_v35, %v962_v6  ;;  %v841_v28 = vadd.f32 1e-06, %v777_v57  ;;  %v3108_v35 = vld [vmem:[%s3216_s2] ss:$0 sm:$0xff]  ;;  %v3361_v38 = vld [vmem:[#allocation15_spill] sm:$0xff] }
 0x19f   :  { %v1837_v29 = vpop.eup %1836  ;;  %1422 = vst.msk [vmem:[%s3217_s3 + $0xbc] sm:$0xf] %vm1374_vm1, %v1556_v3  ;;  %v1103_v43 = vadd.f32 %v2755_v24, %v1032_v47  ;;  %v963_v18 = vmul.f32 %v1835_v7, %v3357_v15  ;;  %v842_v59 = vadd.f32 1e-06, %v778_v52  ;;  %v707_v48 = vpop.xlane.xlu1 %706  ;;  %v3362_v3 = vld [vmem:[#allocation16_spill] sm:$0xff]  ;;  %v3363_v15 = vld [vmem:[#allocation17_spill] sm:$0xff] }
 0x1a0   :  { %v710_v20 = vpop.xlane.xlu0 %709  ;;  %1423 = vst.msk [vmem:[%s3217_s3 + $0xc0] sm:$0xf] %vm1374_vm1, %v1557_v36  ;;  %v1104_v34 = vadd.f32 %v3108_v35, %v1033_v61  ;;  %v964_v8 = vmul.f32 %v1837_v29, %v2662_v21  ;;  %1846 = vrsqrt.f32 %v841_v28  ;;  %v779_v24 = vmul.f32 0.125, %v707_v48  ;;  %v3364_v48 = vld [vmem:[#allocation18_spill] sm:$0xff] }
 0x1a1   :  { %v1558_v55 = vpack.c.bf16 %v1103_v43, %v1103_v43  ;;  %v1034_v2 = vmul.f32 %v3115_v5, %v963_v18  ;;  %1848 = vrsqrt.f32 %v842_v59  ;;  %v780_v1 = vmul.f32 0.125, %v710_v20 }
 0x1a2   :  { %v1839_v46 = vpop.eup %1838  ;;  %v1559_v12 = vpack.c.bf16 %v1104_v34, %v1104_v34  ;;  %v1035_v0 = vmul.f32 %v3115_v5, %v964_v8  ;;  %v843_v14 = vadd.f32 1e-06, %v779_v24 }
 0x1a3   :  { %v1841_v54 = vpop.eup %1840  ;;  %1424 = vst.msk [vmem:[%s3217_s3 + $0xc4] sm:$0xf] %vm1374_vm1, %v1558_v55  ;;  %v1105_v21 = vadd.f32 %v3108_v35, %v1034_v2  ;;  %v965_v58 = vmul.f32 %v1839_v46, %v3358_v39  ;;  %v844_v32 = vadd.f32 1e-06, %v780_v1  ;;  %v713_v30 = vpop.xlane.xlu1 %712 }
 0x1a4   :  { %v716_v56 = vpop.xlane.xlu0 %715  ;;  %1425 = vst.msk [vmem:[%s3217_s3 + $0xc8] sm:$0xf] %vm1374_vm1, %v1559_v12  ;;  %v1106_v22 = vadd.f32 %v3108_v35, %v1035_v0  ;;  %v966_v60 = vmul.f32 %v1841_v54, %v2676_v25  ;;  %1850 = vrsqrt.f32 %v843_v14  ;;  %v781_v50 = vmul.f32 0.125, %v713_v30  ;;  %v3365_v12 = vld [vmem:[#allocation19_spill] sm:$0xff]  ;;  %v3366_v54 = vld [vmem:[#allocation20_spill] sm:$0xff] }
 0x1a5   :  { %v1560_v33 = vpack.c.bf16 %v1105_v21, %v1105_v21  ;;  %v1036_v42 = vmul.f32 %v3115_v5, %v965_v58  ;;  %1852 = vrsqrt.f32 %v844_v32  ;;  %v782_v13 = vmul.f32 0.125, %v716_v56 }
 0x1a6   :  { %v1843_v62 = vpop.eup %1842  ;;  %v1561_v23 = vpack.c.bf16 %v1106_v22, %v1106_v22  ;;  %v1037_v44 = vmul.f32 %v3115_v5, %v966_v60  ;;  %v845_v45 = vadd.f32 1e-06, %v781_v50  ;;  %v3367_v60 = vld [vmem:[#allocation21_spill] sm:$0xff] }
 0x1a7   :  { %v1845_v40 = vpop.eup %1844  ;;  %1426 = vst.msk [vmem:[%s3217_s3 + $0xcc] sm:$0xf] %vm1374_vm1, %v1560_v33  ;;  %v1107_v25 = vadd.f32 %v3108_v35, %v1036_v42  ;;  %v967_v11 = vmul.f32 %v1843_v62, %v3359_v31  ;;  %v846_v19 = vadd.f32 1e-06, %v782_v13  ;;  %v719_v9 = vpop.xlane.xlu1 %718 }
 0x1a8   :  { %1427 = vst.msk [vmem:[%s3217_s3 + $0xd0] sm:$0xf] %vm1374_vm1, %v1561_v23  ;;  %v1108_v51 = vadd.f32 %v3108_v35, %v1037_v44  ;;  %v968_v4 = vmul.f32 %v1845_v40, %v3360_v41  ;;  %1854 = vrsqrt.f32 %v845_v45  ;;  %v783_v26 = vmul.f32 0.125, %v719_v9 }
 0x1a9   :  { %v1562_v49 = vpack.c.bf16 %v1107_v25, %v1107_v25  ;;  %v1038_v53 = vmul.f32 %v3115_v5, %v967_v11  ;;  %1856 = vrsqrt.f32 %v846_v19 }
 0x1aa   :  { %v1847_v63 = vpop.eup %1846  ;;  %v1563_v37 = vpack.c.bf16 %v1108_v51, %v1108_v51  ;;  %v1039_v16 = vmul.f32 %v3115_v5, %v968_v4  ;;  %v847_v10 = vadd.f32 1e-06, %v783_v26 }
 0x1ab   :  { %v1849_v17 = vpop.eup %1848  ;;  %1428 = vst.msk [vmem:[%s3217_s3 + $0xd4] sm:$0xf] %vm1374_vm1, %v1562_v49  ;;  %v1109_v27 = vadd.f32 %v3108_v35, %v1038_v53  ;;  %v969_v6 = vmul.f32 %v1847_v63, %v3361_v38 }
 0x1ac   :  { %1429 = vst.msk [vmem:[%s3217_s3 + $0xd8] sm:$0xf] %vm1374_vm1, %v1563_v37  ;;  %v1110_v57 = vadd.f32 %v3108_v35, %v1039_v16  ;;  %v970_v47 = vmul.f32 %v1849_v17, %v3362_v3  ;;  %1858 = vrsqrt.f32 %v847_v10 }
 0x1ad   :  { %v1564_v52 = vpack.c.bf16 %v1109_v27, %v1109_v27  ;;  %v1040_v7 = vmul.f32 %v3115_v5, %v969_v6 }
 0x1ae   :  { %v1851_v36 = vpop.eup %1850  ;;  %v1565_v61 = vpack.c.bf16 %v1110_v57, %v1110_v57  ;;  %v1041_v28 = vmul.f32 %v3115_v5, %v970_v47 }
 0x1af   :  { %v1853_v29 = vpop.eup %1852  ;;  %1430 = vst.msk [vmem:[%s3217_s3 + $0xdc] sm:$0xf] %vm1374_vm1, %v1564_v52  ;;  %v1111_v43 = vadd.f32 %v3108_v35, %v1040_v7  ;;  %v971_v18 = vmul.f32 %v1851_v36, %v3363_v15 }
 0x1b0   :  { %1431 = vst.msk [vmem:[%s3217_s3 + $0xe0] sm:$0xf] %vm1374_vm1, %v1565_v61  ;;  %v1112_v59 = vadd.f32 %v3108_v35, %v1041_v28  ;;  %v972_v20 = vmul.f32 %v1853_v29, %v3364_v48 }
 0x1b1   :  { %v1566_v34 = vpack.c.bf16 %v1111_v43, %v1111_v43  ;;  %v1042_v8 = vmul.f32 %v3115_v5, %v971_v18 }
 0x1b2   :  { %v1855_v24 = vpop.eup %1854  ;;  %v1567_v55 = vpack.c.bf16 %v1112_v59, %v1112_v59  ;;  %v1043_v2 = vmul.f32 %v3115_v5, %v972_v20 }
 0x1b3   :  { %v1857_v1 = vpop.eup %1856  ;;  %1432 = vst.msk [vmem:[%s3217_s3 + $0xe4] sm:$0xf] %vm1374_vm1, %v1566_v34  ;;  %v1113_v46 = vadd.f32 %v3108_v35, %v1042_v8  ;;  %v973_v0 = vmul.f32 %v1855_v24, %v3365_v12 }
 0x1b4   :  { %1433 = vst.msk [vmem:[%s3217_s3 + $0xe8] sm:$0xf] %vm1374_vm1, %v1567_v55  ;;  %v1114_v14 = vadd.f32 %v3108_v35, %v1043_v2  ;;  %v974_v21 = vmul.f32 %v1857_v1, %v3366_v54 }
 0x1b5   :  { %v1568_v39 = vpack.c.bf16 %v1113_v46, %v1113_v46  ;;  %v1044_v58 = vmul.f32 %v3115_v5, %v973_v0 }
 0x1b6   :  { %v1859_v32 = vpop.eup %1858  ;;  %v1569_v30 = vpack.c.bf16 %v1114_v14, %v1114_v14  ;;  %v1045_v56 = vmul.f32 %v3115_v5, %v974_v21 }
 0x1b7   :  { %1434 = vst.msk [vmem:[%s3217_s3 + $0xec] sm:$0xf] %vm1374_vm1, %v1568_v39  ;;  %v1115_v22 = vadd.f32 %v3108_v35, %v1044_v58  ;;  %v975_v50 = vmul.f32 %v1859_v32, %v3367_v60 }
 0x1b8   :  { %1435 = vst.msk [vmem:[%s3217_s3 + $0xf0] sm:$0xf] %vm1374_vm1, %v1569_v30  ;;  %v1116_v33 = vadd.f32 %v3108_v35, %v1045_v56 }
 0x1b9   :  { %v1570_v42 = vpack.c.bf16 %v1115_v22, %v1115_v22  ;;  %v1046_v13 = vmul.f32 %v3115_v5, %v975_v50 }
 0x1ba   :  { %v1571_v62 = vpack.c.bf16 %v1116_v33, %v1116_v33 }
 0x1bb   :  { %1436 = vst.msk [vmem:[%s3217_s3 + $0xf4] sm:$0xf] %vm1374_vm1, %v1570_v42  ;;  %v1117_v23 = vadd.f32 %v3108_v35, %v1046_v13 }
 0x1bc   :  { %1437 = vst.msk [vmem:[%s3217_s3 + $0xf8] sm:$0xf] %vm1374_vm1, %v1571_v62 }
 0x1bd   :  { %v1572_v44 = vpack.c.bf16 %v1117_v23, %v1117_v23 }
 0x1bf   :  { %1438 = vst.msk [vmem:[%s3217_s3 + $0xfc] sm:$0xf] %vm1374_vm1, %v1572_v44 }

// kernel: _lambda_.89
= control target key start
LH: loop header
LB: loop body
LE: loop exit
PB: predicated region body
PF: predicated region fallthrough
CT: control target
= control target key end

     0   :  { %vm344_vm0 = vcmask 1043456   ;;  %vm247_vm1 = vcmask 64512   ;;  %vm893_vm2 = vcmask 125952   ;;  %s1766_s1 = inlined_call_operand.vmem [shape: bf16[8,16], index: 1, kind: input, shape index: {}]   ;;  %s1767_s0 = inlined_call_operand.vmem [shape: bf16[512,8], index: 0, kind: input, shape index: {}]   ;;  %s1768_s2 = inlined_call_operand.vmem [shape: f32[1,16], index: 2, kind: input, shape index: {}]   ;;  %s1769_s3 = inlined_call_operand.vmem [shape: bf16[512,16], index: 3, kind: output, shape index: {}]  }
   0x1   :  { %v79_v0 = vld [vmem:[%s1766_s1] sm:$0xf]  ;;  %v1260_v4 = vld [vmem:[%s1767_s0 + $0x8] sm:$0xff]   ;;  %v1262_v6 = vld [vmem:[%s1767_s0 + $0x10] sm:$0xff]  }
   0x2   :  { %1256 = vmatprep.subr.msk.bf16.mxu0 %vm344_vm0, %v79_v0  ;;  %1257 = vmatprep.subr.msk.bf16.mxu1 %vm344_vm0, %v79_v0  ;;  %v346_v1 = vsel %vm344_vm0, %v79_v0, 0  ;;  %v1258_v2 = vld [vmem:[%s1767_s0] sm:$0xff]   ;;  %v1261_v5 = vld [vmem:[%s1767_s0 + $0x88] sm:$0xff]   ;;  %v1263_v7 = vld [vmem:[%s1767_s0 + $0x90] sm:$0xff]  }
   0x3   :  { %1189 = vmatpush3.bf16.msra.mxu0 %v346_v1  ;;  %1255 = vmatpush3.bf16.msra.mxu1 %v346_v1  ;;  %v1259_v3 = vld [vmem:[%s1767_s0 + $0x80] sm:$0xff]   ;;  %v1264_v8 = vld [vmem:[%s1767_s0 + $0x18] sm:$0xff]   ;;  %v1268_v12 = vld [vmem:[%s1767_s0 + $0x28] sm:$0xff]  }
   0x4   :  { %1190 = vmatprep.mubr.msk.bf16.mxu0 %vm247_vm1, %v1258_v2  ;;  %1222 = vmatprep.mubr.msk.bf16.mxu1 %vm247_vm1, %v1259_v3  ;;  %v1265_v9 = vld [vmem:[%s1767_s0 + $0x98] sm:$0xff]   ;;  %v1266_v10 = vld [vmem:[%s1767_s0 + $0x20] sm:$0xff]   ;;  %v1269_v13 = vld [vmem:[%s1767_s0 + $0xa8] sm:$0xff]  }
   0x5   :  { %v1267_v11 = vld [vmem:[%s1767_s0 + $0xa0] sm:$0xff]   ;;  %v1270_v14 = vld [vmem:[%s1767_s0 + $0x30] sm:$0xff]   ;;  %v1272_v16 = vld [vmem:[%s1767_s0 + $0x38] sm:$0xff]  }
   0x6   :  { %1191 = vmatmul.mubr.msk.bf16.vlgmr.msra.gmra.mrb[0].mxu0 %vm247_vm1, %v1260_v4  ;;  %1223 = vmatmul.mubr.msk.bf16.vlgmr.msra.gmra.mrb[0].mxu1 %vm247_vm1, %v1261_v5  ;;  %v1271_v15 = vld [vmem:[%s1767_s0 + $0xb0] sm:$0xff]   ;;  %v1273_v17 = vld [vmem:[%s1767_s0 + $0xb8] sm:$0xff]   ;;  %v1274_v18 = vld [vmem:[%s1767_s0 + $0x40] sm:$0xff]  }
   0x7   :  { %1194 = vmatprep.mubr.msk.bf16.mxu0 %vm247_vm1, %v1262_v6  ;;  %1226 = vmatprep.mubr.msk.bf16.mxu1 %vm247_vm1, %v1263_v7  ;;  %v1275_v19 = vld [vmem:[%s1767_s0 + $0xc0] sm:$0xff]   ;;  %v1276_v20 = vld [vmem:[%s1767_s0 + $0x48] sm:$0xff]   ;;  %v1278_v22 = vld [vmem:[%s1767_s0 + $0x50] sm:$0xff]  }
   0x8   :  { %v1277_v21 = vld [vmem:[%s1767_s0 + $0xc8] sm:$0xff]   ;;  %v1279_v23 = vld [vmem:[%s1767_s0 + $0xd0] sm:$0xff]   ;;  %v1280_v24 = vld [vmem:[%s1767_s0 + $0x58] sm:$0xff]  }
   0x9   :  { %v1281_v25 = vld [vmem:[%s1767_s0 + $0xd8] sm:$0xff]   ;;  %v1282_v26 = vld [vmem:[%s1767_s0 + $0x60] sm:$0xff]   ;;  %v1284_v28 = vld [vmem:[%s1767_s0 + $0x68] sm:$0xff]  }
   0xa   :  { %v1283_v27 = vld [vmem:[%s1767_s0 + $0xe0] sm:$0xff]   ;;  %v1285_v29 = vld [vmem:[%s1767_s0 + $0xe8] sm:$0xff]   ;;  %v1286_v30 = vld [vmem:[%s1767_s0 + $0x70] sm:$0xff]  }
   0xb   :  { %v1287_v31 = vld [vmem:[%s1767_s0 + $0xf0] sm:$0xff]   ;;  %v1288_v32 = vld [vmem:[%s1767_s0 + $0x78] sm:$0xff]   ;;  %v1444_v34 = vld [vmem:[%s1768_s2] ss:$0 sm:$0xff] }
   0xc   :  { %v1289_v33 = vld [vmem:[%s1767_s0 + $0xf8] sm:$0xff]  }
   0xe   :  { %1195 = vmatmul.mubr.msk.bf16.gmra.mrb[4].mxu0 %vm247_vm1, %v1264_v8  ;;  %1227 = vmatmul.mubr.msk.bf16.gmra.mrb[4].mxu1 %vm247_vm1, %v1265_v9 }
   0xf   :  { %1198 = vmatprep.mubr.msk.bf16.mxu0 %vm247_vm1, %v1266_v10  ;;  %1230 = vmatprep.mubr.msk.bf16.mxu1 %vm247_vm1, %v1267_v11 }
  0x16   :  { %1199 = vmatmul.mubr.msk.bf16.gmra.mrb[8].mxu0 %vm247_vm1, %v1268_v12  ;;  %1231 = vmatmul.mubr.msk.bf16.gmra.mrb[8].mxu1 %vm247_vm1, %v1269_v13 }
  0x17   :  { %1202 = vmatprep.mubr.msk.bf16.mxu0 %vm247_vm1, %v1270_v14  ;;  %1234 = vmatprep.mubr.msk.bf16.mxu1 %vm247_vm1, %v1271_v15 }
  0x1e   :  { %1203 = vmatmul.mubr.msk.bf16.gmra.mrb[12].mxu0 %vm247_vm1, %v1272_v16  ;;  %1235 = vmatmul.mubr.msk.bf16.gmra.mrb[12].mxu1 %vm247_vm1, %v1273_v17 }
  0x1f   :  { %1206 = vmatprep.mubr.msk.bf16.mxu0 %vm247_vm1, %v1274_v18  ;;  %1238 = vmatprep.mubr.msk.bf16.mxu1 %vm247_vm1, %v1275_v19 }
  0x26   :  { %1207 = vmatmul.mubr.msk.bf16.gmra.mrb[16].mxu0 %vm247_vm1, %v1276_v20  ;;  %1239 = vmatmul.mubr.msk.bf16.gmra.mrb[16].mxu1 %vm247_vm1, %v1277_v21 }
  0x27   :  { %1210 = vmatprep.mubr.msk.bf16.mxu0 %vm247_vm1, %v1278_v22  ;;  %1242 = vmatprep.mubr.msk.bf16.mxu1 %vm247_vm1, %v1279_v23 }
  0x2e   :  { %1211 = vmatmul.mubr.msk.bf16.gmra.mrb[20].mxu0 %vm247_vm1, %v1280_v24  ;;  %1243 = vmatmul.mubr.msk.bf16.gmra.mrb[20].mxu1 %vm247_vm1, %v1281_v25 }
  0x2f   :  { %1214 = vmatprep.mubr.msk.bf16.mxu0 %vm247_vm1, %v1282_v26  ;;  %1246 = vmatprep.mubr.msk.bf16.mxu1 %vm247_vm1, %v1283_v27 }
  0x36   :  { %1215 = vmatmul.mubr.msk.bf16.gmra.mrb[24].mxu0 %vm247_vm1, %v1284_v28  ;;  %1247 = vmatmul.mubr.msk.bf16.gmra.mrb[24].mxu1 %vm247_vm1, %v1285_v29 }
  0x37   :  { %1218 = vmatprep.mubr.msk.bf16.mxu0 %vm247_vm1, %v1286_v30  ;;  %1250 = vmatprep.mubr.msk.bf16.mxu1 %vm247_vm1, %v1287_v31 }
  0x3e   :  { %1219 = vmatmul.mubr.msk.bf16.gmra.mrb[28].mxu0 %vm247_vm1, %v1288_v32  ;;  %1251 = vmatmul.mubr.msk.bf16.gmra.mrb[28].mxu1 %vm247_vm1, %v1289_v33 }
  0xd9   :  { %v1192_v35 = vpop.f32.mrb[0].mxu0  ;;  %v1224_v37 = vpop.f32.mrb[0].mxu1 }
  0xda   :  { %v391_v36 = vadd.f32 %v1192_v35, %v1444_v34  ;;  %v382_v38 = vpop.f32.mrb[1].mxu0  ;;  %v519_v39 = vadd.f32 %v1224_v37, %v1444_v34  ;;  %v510_v41 = vpop.f32.mrb[1].mxu1 }
  0xdb   :  { %v383_v40 = vadd.f32 %v1444_v34, %v382_v38  ;;  %v1193_v42 = vpop.f32.mrb[2].mxu0  ;;  %v511_v44 = vadd.f32 %v1444_v34, %v510_v41  ;;  %v1225_v46 = vpop.f32.mrb[2].mxu1 }
  0xdc   :  { %v1093_v43 = vpack.c.bf16 %v391_v36, %v391_v36  ;;  %v394_v45 = vadd.f32 %v1193_v42, %v1444_v34  ;;  %v385_v47 = vpop.f32.mrb[3].mxu0  ;;  %v1125_v48 = vpack.c.bf16 %v519_v39, %v519_v39  ;;  %v522_v50 = vadd.f32 %v1225_v46, %v1444_v34  ;;  %v513_v52 = vpop.f32.mrb[3].mxu1 }
  0xdd   :  { %v1091_v49 = vpack.c.bf16 %v383_v40, %v383_v40  ;;  %v386_v51 = vadd.f32 %v1444_v34, %v385_v47  ;;  %v1123_v53 = vpack.c.bf16 %v511_v44, %v511_v44  ;;  %v514_v55 = vadd.f32 %v1444_v34, %v513_v52 }
  0xde   :  { %896 = vst.msk [vmem:[%s1769_s3 + $0x8] sm:$0xf] %vm893_vm2, %v1093_v43  ;;  %v1094_v54 = vpack.c.bf16 %v394_v45, %v394_v45  ;;  %928 = vst.msk [vmem:[%s1769_s3 + $0x88] sm:$0xf] %vm893_vm2, %v1125_v48  ;;  %v1126_v56 = vpack.c.bf16 %v522_v50, %v522_v50 }
  0xdf   :  { %894 = vst.msk [vmem:[%s1769_s3] sm:$0xf] %vm893_vm2, %v1091_v49  ;;  %v1092_v57 = vpack.c.bf16 %v386_v51, %v386_v51  ;;  %926 = vst.msk [vmem:[%s1769_s3 + $0x80] sm:$0xf] %vm893_vm2, %v1123_v53  ;;  %v1124_v58 = vpack.c.bf16 %v514_v55, %v514_v55 }
  0xe0   :  { %897 = vst.msk [vmem:[%s1769_s3 + $0xc] sm:$0xf] %vm893_vm2, %v1094_v54  ;;  %929 = vst.msk [vmem:[%s1769_s3 + $0x8c] sm:$0xf] %vm893_vm2, %v1126_v56 }
  0xe1   :  { %895 = vst.msk [vmem:[%s1769_s3 + $0x4] sm:$0xf] %vm893_vm2, %v1092_v57  ;;  %v1196_v59 = vpop.f32.mrb[4].mxu0  ;;  %927 = vst.msk [vmem:[%s1769_s3 + $0x84] sm:$0xf] %vm893_vm2, %v1124_v58  ;;  %v1228_v61 = vpop.f32.mrb[4].mxu1 }
  0xe2   :  { %v407_v60 = vadd.f32 %v1196_v59, %v1444_v34  ;;  %v398_v62 = vpop.f32.mrb[5].mxu0  ;;  %v535_v63 = vadd.f32 %v1228_v61, %v1444_v34  ;;  %v526_v1 = vpop.f32.mrb[5].mxu1 }
  0xe3   :  { %v399_v0 = vadd.f32 %v1444_v34, %v398_v62  ;;  %v1197_v2 = vpop.f32.mrb[6].mxu0  ;;  %v527_v4 = vadd.f32 %v1444_v34, %v526_v1  ;;  %v1229_v6 = vpop.f32.mrb[6].mxu1 }
  0xe4   :  { %v1097_v3 = vpack.c.bf16 %v407_v60, %v407_v60  ;;  %v410_v5 = vadd.f32 %v1197_v2, %v1444_v34  ;;  %v401_v7 = vpop.f32.mrb[7].mxu0  ;;  %v1129_v8 = vpack.c.bf16 %v535_v63, %v535_v63  ;;  %v538_v10 = vadd.f32 %v1229_v6, %v1444_v34  ;;  %v529_v12 = vpop.f32.mrb[7].mxu1 }
  0xe5   :  { %v1095_v9 = vpack.c.bf16 %v399_v0, %v399_v0  ;;  %v402_v11 = vadd.f32 %v1444_v34, %v401_v7  ;;  %v1127_v13 = vpack.c.bf16 %v527_v4, %v527_v4  ;;  %v530_v15 = vadd.f32 %v1444_v34, %v529_v12 }
  0xe6   :  { %900 = vst.msk [vmem:[%s1769_s3 + $0x18] sm:$0xf] %vm893_vm2, %v1097_v3  ;;  %v1098_v14 = vpack.c.bf16 %v410_v5, %v410_v5  ;;  %932 = vst.msk [vmem:[%s1769_s3 + $0x98] sm:$0xf] %vm893_vm2, %v1129_v8  ;;  %v1130_v16 = vpack.c.bf16 %v538_v10, %v538_v10 }
  0xe7   :  { %898 = vst.msk [vmem:[%s1769_s3 + $0x10] sm:$0xf] %vm893_vm2, %v1095_v9  ;;  %v1096_v17 = vpack.c.bf16 %v402_v11, %v402_v11  ;;  %930 = vst.msk [vmem:[%s1769_s3 + $0x90] sm:$0xf] %vm893_vm2, %v1127_v13  ;;  %v1128_v18 = vpack.c.bf16 %v530_v15, %v530_v15 }
  0xe8   :  { %901 = vst.msk [vmem:[%s1769_s3 + $0x1c] sm:$0xf] %vm893_vm2, %v1098_v14  ;;  %933 = vst.msk [vmem:[%s1769_s3 + $0x9c] sm:$0xf] %vm893_vm2, %v1130_v16 }
  0xe9   :  { %899 = vst.msk [vmem:[%s1769_s3 + $0x14] sm:$0xf] %vm893_vm2, %v1096_v17  ;;  %v1200_v19 = vpop.f32.mrb[8].mxu0  ;;  %931 = vst.msk [vmem:[%s1769_s3 + $0x94] sm:$0xf] %vm893_vm2, %v1128_v18  ;;  %v1232_v21 = vpop.f32.mrb[8].mxu1 }
  0xea   :  { %v423_v20 = vadd.f32 %v1200_v19, %v1444_v34  ;;  %v414_v22 = vpop.f32.mrb[9].mxu0  ;;  %v551_v23 = vadd.f32 %v1232_v21, %v1444_v34  ;;  %v542_v25 = vpop.f32.mrb[9].mxu1 }
  0xeb   :  { %v415_v24 = vadd.f32 %v1444_v34, %v414_v22  ;;  %v1201_v26 = vpop.f32.mrb[10].mxu0  ;;  %v543_v28 = vadd.f32 %v1444_v34, %v542_v25  ;;  %v1233_v30 = vpop.f32.mrb[10].mxu1 }
  0xec   :  { %v1101_v27 = vpack.c.bf16 %v423_v20, %v423_v20  ;;  %v426_v29 = vadd.f32 %v1201_v26, %v1444_v34  ;;  %v417_v31 = vpop.f32.mrb[11].mxu0  ;;  %v1133_v32 = vpack.c.bf16 %v551_v23, %v551_v23  ;;  %v554_v35 = vadd.f32 %v1233_v30, %v1444_v34  ;;  %v545_v37 = vpop.f32.mrb[11].mxu1 }
  0xed   :  { %v1099_v33 = vpack.c.bf16 %v415_v24, %v415_v24  ;;  %v418_v36 = vadd.f32 %v1444_v34, %v417_v31  ;;  %v1131_v38 = vpack.c.bf16 %v543_v28, %v543_v28  ;;  %v546_v40 = vadd.f32 %v1444_v34, %v545_v37 }
  0xee   :  { %904 = vst.msk [vmem:[%s1769_s3 + $0x28] sm:$0xf] %vm893_vm2, %v1101_v27  ;;  %v1102_v39 = vpack.c.bf16 %v426_v29, %v426_v29  ;;  %936 = vst.msk [vmem:[%s1769_s3 + $0xa8] sm:$0xf] %vm893_vm2, %v1133_v32  ;;  %v1134_v41 = vpack.c.bf16 %v554_v35, %v554_v35 }
  0xef   :  { %902 = vst.msk [vmem:[%s1769_s3 + $0x20] sm:$0xf] %vm893_vm2, %v1099_v33  ;;  %v1100_v42 = vpack.c.bf16 %v418_v36, %v418_v36  ;;  %934 = vst.msk [vmem:[%s1769_s3 + $0xa0] sm:$0xf] %vm893_vm2, %v1131_v38  ;;  %v1132_v43 = vpack.c.bf16 %v546_v40, %v546_v40 }
  0xf0   :  { %905 = vst.msk [vmem:[%s1769_s3 + $0x2c] sm:$0xf] %vm893_vm2, %v1102_v39  ;;  %937 = vst.msk [vmem:[%s1769_s3 + $0xac] sm:$0xf] %vm893_vm2, %v1134_v41 }
  0xf1   :  { %903 = vst.msk [vmem:[%s1769_s3 + $0x24] sm:$0xf] %vm893_vm2, %v1100_v42  ;;  %v1204_v44 = vpop.f32.mrb[12].mxu0  ;;  %935 = vst.msk [vmem:[%s1769_s3 + $0xa4] sm:$0xf] %vm893_vm2, %v1132_v43  ;;  %v1236_v46 = vpop.f32.mrb[12].mxu1 }
  0xf2   :  { %v439_v45 = vadd.f32 %v1204_v44, %v1444_v34  ;;  %v430_v47 = vpop.f32.mrb[13].mxu0  ;;  %v567_v48 = vadd.f32 %v1236_v46, %v1444_v34  ;;  %v558_v50 = vpop.f32.mrb[13].mxu1 }
  0xf3   :  { %v431_v49 = vadd.f32 %v1444_v34, %v430_v47  ;;  %v1205_v51 = vpop.f32.mrb[14].mxu0  ;;  %v559_v53 = vadd.f32 %v1444_v34, %v558_v50  ;;  %v1237_v55 = vpop.f32.mrb[14].mxu1 }
  0xf4   :  { %v1105_v52 = vpack.c.bf16 %v439_v45, %v439_v45  ;;  %v442_v54 = vadd.f32 %v1205_v51, %v1444_v34  ;;  %v433_v56 = vpop.f32.mrb[15].mxu0  ;;  %v1137_v57 = vpack.c.bf16 %v567_v48, %v567_v48  ;;  %v570_v59 = vadd.f32 %v1237_v55, %v1444_v34  ;;  %v561_v61 = vpop.f32.mrb[15].mxu1 }
  0xf5   :  { %v1103_v58 = vpack.c.bf16 %v431_v49, %v431_v49  ;;  %v434_v60 = vadd.f32 %v1444_v34, %v433_v56  ;;  %v1135_v62 = vpack.c.bf16 %v559_v53, %v559_v53  ;;  %v562_v0 = vadd.f32 %v1444_v34, %v561_v61 }
  0xf6   :  { %908 = vst.msk [vmem:[%s1769_s3 + $0x38] sm:$0xf] %vm893_vm2, %v1105_v52  ;;  %v1106_v63 = vpack.c.bf16 %v442_v54, %v442_v54  ;;  %940 = vst.msk [vmem:[%s1769_s3 + $0xb8] sm:$0xf] %vm893_vm2, %v1137_v57  ;;  %v1138_v1 = vpack.c.bf16 %v570_v59, %v570_v59 }
  0xf7   :  { %906 = vst.msk [vmem:[%s1769_s3 + $0x30] sm:$0xf] %vm893_vm2, %v1103_v58  ;;  %v1104_v2 = vpack.c.bf16 %v434_v60, %v434_v60  ;;  %938 = vst.msk [vmem:[%s1769_s3 + $0xb0] sm:$0xf] %vm893_vm2, %v1135_v62  ;;  %v1136_v3 = vpack.c.bf16 %v562_v0, %v562_v0 }
  0xf8   :  { %909 = vst.msk [vmem:[%s1769_s3 + $0x3c] sm:$0xf] %vm893_vm2, %v1106_v63  ;;  %941 = vst.msk [vmem:[%s1769_s3 + $0xbc] sm:$0xf] %vm893_vm2, %v1138_v1 }
  0xf9   :  { %907 = vst.msk [vmem:[%s1769_s3 + $0x34] sm:$0xf] %vm893_vm2, %v1104_v2  ;;  %v1208_v4 = vpop.f32.mrb[16].mxu0  ;;  %939 = vst.msk [vmem:[%s1769_s3 + $0xb4] sm:$0xf] %vm893_vm2, %v1136_v3  ;;  %v1240_v6 = vpop.f32.mrb[16].mxu1 }
  0xfa   :  { %v455_v5 = vadd.f32 %v1208_v4, %v1444_v34  ;;  %v446_v7 = vpop.f32.mrb[17].mxu0  ;;  %v583_v8 = vadd.f32 %v1240_v6, %v1444_v34  ;;  %v574_v10 = vpop.f32.mrb[17].mxu1 }
  0xfb   :  { %v447_v9 = vadd.f32 %v1444_v34, %v446_v7  ;;  %v1209_v11 = vpop.f32.mrb[18].mxu0  ;;  %v575_v13 = vadd.f32 %v1444_v34, %v574_v10  ;;  %v1241_v15 = vpop.f32.mrb[18].mxu1 }
  0xfc   :  { %v1109_v12 = vpack.c.bf16 %v455_v5, %v455_v5  ;;  %v458_v14 = vadd.f32 %v1209_v11, %v1444_v34  ;;  %v449_v16 = vpop.f32.mrb[19].mxu0  ;;  %v1141_v17 = vpack.c.bf16 %v583_v8, %v583_v8  ;;  %v586_v19 = vadd.f32 %v1241_v15, %v1444_v34  ;;  %v577_v21 = vpop.f32.mrb[19].mxu1 }
  0xfd   :  { %v1107_v18 = vpack.c.bf16 %v447_v9, %v447_v9  ;;  %v450_v20 = vadd.f32 %v1444_v34, %v449_v16  ;;  %v1139_v22 = vpack.c.bf16 %v575_v13, %v575_v13  ;;  %v578_v24 = vadd.f32 %v1444_v34, %v577_v21 }
  0xfe   :  { %912 = vst.msk [vmem:[%s1769_s3 + $0x48] sm:$0xf] %vm893_vm2, %v1109_v12  ;;  %v1110_v23 = vpack.c.bf16 %v458_v14, %v458_v14  ;;  %944 = vst.msk [vmem:[%s1769_s3 + $0xc8] sm:$0xf] %vm893_vm2, %v1141_v17  ;;  %v1142_v25 = vpack.c.bf16 %v586_v19, %v586_v19 }
  0xff   :  { %910 = vst.msk [vmem:[%s1769_s3 + $0x40] sm:$0xf] %vm893_vm2, %v1107_v18  ;;  %v1108_v26 = vpack.c.bf16 %v450_v20, %v450_v20  ;;  %942 = vst.msk [vmem:[%s1769_s3 + $0xc0] sm:$0xf] %vm893_vm2, %v1139_v22  ;;  %v1140_v27 = vpack.c.bf16 %v578_v24, %v578_v24 }
 0x100   :  { %913 = vst.msk [vmem:[%s1769_s3 + $0x4c] sm:$0xf] %vm893_vm2, %v1110_v23  ;;  %945 = vst.msk [vmem:[%s1769_s3 + $0xcc] sm:$0xf] %vm893_vm2, %v1142_v25 }
 0x101   :  { %911 = vst.msk [vmem:[%s1769_s3 + $0x44] sm:$0xf] %vm893_vm2, %v1108_v26  ;;  %v1212_v28 = vpop.f32.mrb[20].mxu0  ;;  %943 = vst.msk [vmem:[%s1769_s3 + $0xc4] sm:$0xf] %vm893_vm2, %v1140_v27  ;;  %v1244_v30 = vpop.f32.mrb[20].mxu1 }
 0x102   :  { %v471_v29 = vadd.f32 %v1212_v28, %v1444_v34  ;;  %v462_v31 = vpop.f32.mrb[21].mxu0  ;;  %v599_v32 = vadd.f32 %v1244_v30, %v1444_v34  ;;  %v590_v35 = vpop.f32.mrb[21].mxu1 }
 0x103   :  { %v463_v33 = vadd.f32 %v1444_v34, %v462_v31  ;;  %v1213_v36 = vpop.f32.mrb[22].mxu0  ;;  %v591_v38 = vadd.f32 %v1444_v34, %v590_v35  ;;  %v1245_v40 = vpop.f32.mrb[22].mxu1 }
 0x104   :  { %v1113_v37 = vpack.c.bf16 %v471_v29, %v471_v29  ;;  %v474_v39 = vadd.f32 %v1213_v36, %v1444_v34  ;;  %v465_v41 = vpop.f32.mrb[23].mxu0  ;;  %v1145_v42 = vpack.c.bf16 %v599_v32, %v599_v32  ;;  %v602_v44 = vadd.f32 %v1245_v40, %v1444_v34  ;;  %v593_v46 = vpop.f32.mrb[23].mxu1 }
 0x105   :  { %v1111_v43 = vpack.c.bf16 %v463_v33, %v463_v33  ;;  %v466_v45 = vadd.f32 %v1444_v34, %v465_v41  ;;  %v1143_v47 = vpack.c.bf16 %v591_v38, %v591_v38  ;;  %v594_v49 = vadd.f32 %v1444_v34, %v593_v46 }
 0x106   :  { %916 = vst.msk [vmem:[%s1769_s3 + $0x58] sm:$0xf] %vm893_vm2, %v1113_v37  ;;  %v1114_v48 = vpack.c.bf16 %v474_v39, %v474_v39  ;;  %948 = vst.msk [vmem:[%s1769_s3 + $0xd8] sm:$0xf] %vm893_vm2, %v1145_v42  ;;  %v1146_v50 = vpack.c.bf16 %v602_v44, %v602_v44 }
 0x107   :  { %914 = vst.msk [vmem:[%s1769_s3 + $0x50] sm:$0xf] %vm893_vm2, %v1111_v43  ;;  %v1112_v51 = vpack.c.bf16 %v466_v45, %v466_v45  ;;  %946 = vst.msk [vmem:[%s1769_s3 + $0xd0] sm:$0xf] %vm893_vm2, %v1143_v47  ;;  %v1144_v52 = vpack.c.bf16 %v594_v49, %v594_v49 }
 0x108   :  { %917 = vst.msk [vmem:[%s1769_s3 + $0x5c] sm:$0xf] %vm893_vm2, %v1114_v48  ;;  %949 = vst.msk [vmem:[%s1769_s3 + $0xdc] sm:$0xf] %vm893_vm2, %v1146_v50 }
 0x109   :  { %915 = vst.msk [vmem:[%s1769_s3 + $0x54] sm:$0xf] %vm893_vm2, %v1112_v51  ;;  %v1216_v53 = vpop.f32.mrb[24].mxu0  ;;  %947 = vst.msk [vmem:[%s1769_s3 + $0xd4] sm:$0xf] %vm893_vm2, %v1144_v52  ;;  %v1248_v55 = vpop.f32.mrb[24].mxu1 }
 0x10a   :  { %v487_v54 = vadd.f32 %v1216_v53, %v1444_v34  ;;  %v478_v56 = vpop.f32.mrb[25].mxu0  ;;  %v615_v57 = vadd.f32 %v1248_v55, %v1444_v34  ;;  %v606_v59 = vpop.f32.mrb[25].mxu1 }
 0x10b   :  { %v479_v58 = vadd.f32 %v1444_v34, %v478_v56  ;;  %v1217_v60 = vpop.f32.mrb[26].mxu0  ;;  %v607_v62 = vadd.f32 %v1444_v34, %v606_v59  ;;  %v1249_v0 = vpop.f32.mrb[26].mxu1 }
 0x10c   :  { %v1117_v61 = vpack.c.bf16 %v487_v54, %v487_v54  ;;  %v490_v63 = vadd.f32 %v1217_v60, %v1444_v34  ;;  %v481_v1 = vpop.f32.mrb[27].mxu0  ;;  %v1149_v2 = vpack.c.bf16 %v615_v57, %v615_v57  ;;  %v618_v4 = vadd.f32 %v1249_v0, %v1444_v34  ;;  %v609_v6 = vpop.f32.mrb[27].mxu1 }
 0x10d   :  { %v1115_v3 = vpack.c.bf16 %v479_v58, %v479_v58  ;;  %v482_v5 = vadd.f32 %v1444_v34, %v481_v1  ;;  %v1147_v7 = vpack.c.bf16 %v607_v62, %v607_v62  ;;  %v610_v9 = vadd.f32 %v1444_v34, %v609_v6 }
 0x10e   :  { %920 = vst.msk [vmem:[%s1769_s3 + $0x68] sm:$0xf] %vm893_vm2, %v1117_v61  ;;  %v1118_v8 = vpack.c.bf16 %v490_v63, %v490_v63  ;;  %952 = vst.msk [vmem:[%s1769_s3 + $0xe8] sm:$0xf] %vm893_vm2, %v1149_v2  ;;  %v1150_v10 = vpack.c.bf16 %v618_v4, %v618_v4 }
 0x10f   :  { %918 = vst.msk [vmem:[%s1769_s3 + $0x60] sm:$0xf] %vm893_vm2, %v1115_v3  ;;  %v1116_v11 = vpack.c.bf16 %v482_v5, %v482_v5  ;;  %950 = vst.msk [vmem:[%s1769_s3 + $0xe0] sm:$0xf] %vm893_vm2, %v1147_v7  ;;  %v1148_v12 = vpack.c.bf16 %v610_v9, %v610_v9 }
 0x110   :  { %921 = vst.msk [vmem:[%s1769_s3 + $0x6c] sm:$0xf] %vm893_vm2, %v1118_v8  ;;  %953 = vst.msk [vmem:[%s1769_s3 + $0xec] sm:$0xf] %vm893_vm2, %v1150_v10 }
 0x111   :  { %919 = vst.msk [vmem:[%s1769_s3 + $0x64] sm:$0xf] %vm893_vm2, %v1116_v11  ;;  %v1220_v13 = vpop.f32.mrb[28].mxu0  ;;  %951 = vst.msk [vmem:[%s1769_s3 + $0xe4] sm:$0xf] %vm893_vm2, %v1148_v12  ;;  %v1252_v15 = vpop.f32.mrb[28].mxu1 }
 0x112   :  { %v503_v14 = vadd.f32 %v1220_v13, %v1444_v34  ;;  %v494_v16 = vpop.f32.mrb[29].mxu0  ;;  %v631_v17 = vadd.f32 %v1252_v15, %v1444_v34  ;;  %v622_v19 = vpop.f32.mrb[29].mxu1 }
 0x113   :  { %v495_v18 = vadd.f32 %v1444_v34, %v494_v16  ;;  %v1221_v20 = vpop.f32.mrb[30].mxu0  ;;  %v623_v22 = vadd.f32 %v1444_v34, %v622_v19  ;;  %v1253_v24 = vpop.f32.mrb[30].mxu1 }
 0x114   :  { %v1121_v21 = vpack.c.bf16 %v503_v14, %v503_v14  ;;  %v506_v23 = vadd.f32 %v1221_v20, %v1444_v34  ;;  %v497_v25 = vpop.f32.mrb[31].mxu0  ;;  %v1153_v26 = vpack.c.bf16 %v631_v17, %v631_v17  ;;  %v634_v28 = vadd.f32 %v1253_v24, %v1444_v34  ;;  %v625_v30 = vpop.f32.mrb[31].mxu1 }
 0x115   :  { %v1119_v27 = vpack.c.bf16 %v495_v18, %v495_v18  ;;  %v498_v29 = vadd.f32 %v1444_v34, %v497_v25  ;;  %v1151_v31 = vpack.c.bf16 %v623_v22, %v623_v22  ;;  %v626_v33 = vadd.f32 %v1444_v34, %v625_v30 }
 0x116   :  { %924 = vst.msk [vmem:[%s1769_s3 + $0x78] sm:$0xf] %vm893_vm2, %v1121_v21  ;;  %v1122_v32 = vpack.c.bf16 %v506_v23, %v506_v23  ;;  %956 = vst.msk [vmem:[%s1769_s3 + $0xf8] sm:$0xf] %vm893_vm2, %v1153_v26  ;;  %v1154_v35 = vpack.c.bf16 %v634_v28, %v634_v28 }
 0x117   :  { %922 = vst.msk [vmem:[%s1769_s3 + $0x70] sm:$0xf] %vm893_vm2, %v1119_v27  ;;  %v1120_v36 = vpack.c.bf16 %v498_v29, %v498_v29  ;;  %954 = vst.msk [vmem:[%s1769_s3 + $0xf0] sm:$0xf] %vm893_vm2, %v1151_v31  ;;  %v1152_v34 = vpack.c.bf16 %v626_v33, %v626_v33 }
 0x118   :  { %925 = vst.msk [vmem:[%s1769_s3 + $0x7c] sm:$0xf] %vm893_vm2, %v1122_v32  ;;  %957 = vst.msk [vmem:[%s1769_s3 + $0xfc] sm:$0xf] %vm893_vm2, %v1154_v35 }
 0x119   :  { %923 = vst.msk [vmem:[%s1769_s3 + $0x74] sm:$0xf] %vm893_vm2, %v1120_v36  ;;  %955 = vst.msk [vmem:[%s1769_s3 + $0xf4] sm:$0xf] %vm893_vm2, %v1152_v34 }

// kernel: _lambda_.90
= control target key start
LH: loop header
LB: loop body
LE: loop exit
PB: predicated region body
PF: predicated region fallthrough
CT: control target
= control target key end

     0   :  { %s813_s24 = smov 0   ;;  %s862_s0 = inlined_call_operand.vmem [shape: bf16[4,2,32], index: 0, kind: input, shape index: {}]   ;;  %s863_s1 = inlined_call_operand.vmem [shape: bf16[4,32,32], index: 1, kind: input, shape index: {}]   ;;  %s864_s2 = inlined_call_operand.vmem [shape: f32[4,1,32], index: 2, kind: input, shape index: {}]   ;;  %s865_s3 = inlined_call_operand.vmem [shape: bf16[4,32,32], index: 3, kind: input, shape index: {}]   ;;  %s866_s4 = inlined_call_operand.vmem [shape: f32[4,1,32], index: 4, kind: input, shape index: {}]   ;;  %s867_s5 = inlined_call_operand.vmem [shape: bf16[4,32,4], index: 5, kind: input, shape index: {}]   ;;  %s868_s6 = inlined_call_operand.vmem [shape: f32[4,1,4], index: 6, kind: input, shape index: {}]   ;;  %s869_s7 = inlined_call_operand.vmem [shape: bf16[4,2,4], index: 7, kind: output, shape index: {}]  }
   0x1 LB: > { %s686_s25 = sadd.s32 4294967295, %s769_s24   ;;  %p690_p0 = scmp.ge.s32.totalorder %s769_s24, 1  ;;  %s769_s24 = sphi %s813_s24, %s17_s24  }
   0x2   : > { %p289_p1 = scmp.lt.s32.totalorder %s769_s24, 5 }
   0x4   : > { %p290_p2 = pnand %p690_p0, %p289_p1 }
   0x5   : > { %p341_p3 = scmp.lt.s32.totalorder (!%p290_p2), %s686_s25, 3  ;;  %v771_v0 = vmov (!%p290_p2), 0.0   ;;  %vm772_vm0 = vmmov (!%p290_p2), 0   ;;  %vm396_vm1 = vcmask (!%p290_p2), 261120   ;;  %vm577_vm2 = vcmask (!%p290_p2), 24576  }
   0x6   : > { %293 = sbr.rel (%p290_p2) target bundleno = 677 (0x2a5), region = 48  ;;  %723 = vmatprep.subr.bf16.mxu0 (!%p290_p2), %v771_v0  ;;  %727 = vmatprep.mubr.msk.bf16.mxu0 (!%p290_p2), %vm772_vm0, %v771_v0 }
   0x7   : > { %731 = vmatprep.subr.bf16.mxu1 (!%p290_p2), %v771_v0  ;;  %735 = vmatprep.mubr.msk.bf16.mxu1 (!%p290_p2), %vm772_vm0, %v771_v0 }
   0xd   : > { %s871_s25 = smov (!%p341_p3, %s686_s25), 3 }
   0xe   : > { %s711_s26 = sshll.u32 %s871_s25, 4  ;;  %s343_s12 = scalar_lea.vmem %s862_s0, %s871_s25 }
   0xf   : > { %s348_s29 = scalar_lea.vmem %s863_s1, %s711_s26  ;;  %s364_s9 = scalar_lea.vmem %s867_s5, %s711_s26  ;;  %v372_v3 = vld [vmem:[%s343_s12] sm:$0x1] }
  0x10   : > { %v757_v1 = vld [vmem:[%s348_s29] sm:$0xff]   ;;  %v758_v2 = vld [vmem:[%s348_s29 + $0x8] sm:$0xff]   ;;  %s356_s15 = scalar_lea.vmem %s865_s3, %s711_s26  ;;  %s351_s18 = scalar_lea.vmem %s864_s2, %s871_s25 }
  0x11   : > { %724 = vmatpush3.bf16.msra.mxu0 %v757_v1  ;;  %v759_v4 = vld [vmem:[%s356_s15] sm:$0xff]   ;;  %v760_v5 = vld [vmem:[%s356_s15 + $0x8] sm:$0xff]   ;;  %s359_s21 = scalar_lea.vmem %s866_s4, %s871_s25  ;;  %s367_s26 = scalar_lea.vmem %s868_s6, %s871_s25 }
  0x12   : > { %725 = vmatprep.subr.bf16.mxu0 %v771_v0  ;;  %732 = vmatpush3.bf16.msra.mxu1 %v759_v4  ;;  %v761_v6 = vld [vmem:[%s364_s9] sm:$0xff]   ;;  %v762_v15 = vld [vmem:[%s364_s9 + $0x8] sm:$0xff]   ;;  %s370_s29 = scalar_lea.vmem %s869_s7, %s871_s25 }
  0x13   : > { %733 = vmatprep.subr.bf16.mxu1 %v771_v0  ;;  %v697_v7 = vld [vmem:[%s351_s18] ss:$0 sm:$0xff] }
  0x14   : > { %v701_v16 = vld [vmem:[%s359_s21] ss:$0 sm:$0xff] }
  0x15   : > { %726 = vmatpush3.bf16.msra.mxu0 %v758_v2  ;;  %v705_v24 = vld [vmem:[%s367_s26] ss:$0 sm:$0xff] }
  0x16   : > { %739 = vmatprep.subr.bf16.mxu0 %v771_v0  ;;  %734 = vmatpush3.bf16.msra.mxu1 %v760_v5 }
  0x18   : > { %728 = vmatmul.mubr.msk.bf16.vlgmr.msra.gmra.mrb[0].mxu0 %vm396_vm1, %v372_v3 }
  0x19   : > { %743 = vmatprep.mubr.msk.bf16.mxu0 %vm772_vm0, %v771_v0  ;;  %740 = vmatpush3.bf16.msra.mxu0 %v761_v6 }
  0x1a   : > { %741 = vmatprep.subr.bf16.mxu0 %v771_v0 }
  0x1d   : > { %742 = vmatpush3.bf16.msra.mxu0 %v762_v15 }
  0xeb   : > { %v434_v8 = vpop.f32.mrb[0].mxu0 }
  0xec   : > { %v435_v9 = vadd.f32 %v697_v7, %v434_v8  ;;  %v729_v10 = vpop.f32.mrb[1].mxu0 }
  0xed   : > { %v437_v11 = vpop.f32.mrb[2].mxu0 }
  0xee   : > { %v440_v12 = vmax.f32 %v435_v9, 0.0  ;;  %v730_v13 = vpop.f32.mrb[3].mxu0 }
  0xf0   : > { %v441_v14 = vpack.c.bf16 %v440_v12, %v440_v12 }
  0xf2   : > { %736 = vmatmul.mubr.msk.bf16.vlgmr.msra.gmra.mrb[0].mxu1 %vm396_vm1, %v441_v14 }
 0x1c5   : > { %v502_v17 = vpop.f32.mrb[0].mxu1 }
 0x1c6   : > { %v503_v18 = vadd.f32 %v701_v16, %v502_v17  ;;  %v737_v19 = vpop.f32.mrb[1].mxu1 }
 0x1c7   : > { %v505_v20 = vpop.f32.mrb[2].mxu1 }
 0x1c8   : > { %v508_v21 = vmax.f32 %v503_v18, 0.0  ;;  %v738_v22 = vpop.f32.mrb[3].mxu1 }
 0x1ca   : > { %v509_v23 = vpack.c.bf16 %v508_v21, %v508_v21 }
 0x1cc   : > { %744 = vmatmul.mubr.msk.bf16.vlgmr.msra.gmra.mrb[4].mxu0 %vm396_vm1, %v509_v23 }
 0x29f   : > { %v570_v25 = vpop.f32.mrb[4].mxu0 }
 0x2a0   : > { %v571_v26 = vadd.f32 %v705_v24, %v570_v25  ;;  %v745_v27 = vpop.f32.mrb[5].mxu0 }
 0x2a1   : > { %v573_v28 = vpop.f32.mrb[6].mxu0 }
 0x2a2   : > { %v576_v29 = vpack.c.bf16 %v571_v26, %v571_v26  ;;  %v746_v30 = vpop.f32.mrb[7].mxu0 }
 0x2a4   : > { %578 = vst.msk [vmem:[%s370_s29] sm:$0x1] %vm577_vm2, %v576_v29 }
 0x2a5 PF: > { %s17_s24 = sadd.s32 1, %s769_s24  }
 0x2a6   : > { %p14_p4 = scmp.ge.s32.totalorder %s17_s24, 6  }
 0x2a8   :  { %16 = sbr.rel (!%p14_p4) target bundleno = 1 (0x1), region = 96 }

// kernel: _lambda_.91
= control target key start
LH: loop header
LB: loop body
LE: loop exit
PB: predicated region body
PF: predicated region fallthrough
CT: control target
= control target key end

     0   :  { %s1442_s9 = smov 0   ;;  %s1444_s10 = smov 0   ;;  %s1631_s0 = inlined_call_operand.vmem [shape: bf16[2,4,4], index: 0, kind: input, shape index: {}]   ;;  %s1632_s1 = inlined_call_operand.vmem [shape: bf16[2,1024,4], index: 1, kind: input, shape index: {}]   ;;  %s1633_s2 = inlined_call_operand.vmem [shape: f32[2,4,1024], index: 2, kind: output, shape index: {}]  }
   0x1   :  { %s1446_s11 = smov 0  }
   0x2 LB: > { %s24_s12 = sadd.s32 1, %s1421_s10  ;;  %p1133_p0 = scmp.ge.s32.totalorder %s1425_s11, 1  ;;  %s1425_s11 = sphi %s1446_s11, %s12_s11   ;;  %s1421_s10 = sphi %s1444_s10, %s1635_s10   ;;  %s1417_s9 = sphi %s1442_s9, %s1634_s9  }
   0x3   : > { %p26_p1 = scmp.ge.s32.totalorder %s24_s12, 2  ;;  %p142_p2 = scmp.lt.s32.totalorder %s1425_s11, 3 }
   0x5   : > { %s1637_s12 = smov (%p26_p1, %s24_s12), 0  ;;  %p143_p3 = pnand %p1133_p0, %p142_p2 }
   0x6   : > { %p176_p4 = scmp.lt.s32.totalorder (!%p143_p3), %s1417_s9, 1  ;;  %vm650_vm0 = vcmask (!%p143_p3), 31744  }
   0x7   : > { %146 = sbr.rel (%p143_p3) target bundleno = 365 (0x16d), region = 28 }
   0xe   : > { %s1639_s9 = smov (!%p176_p4, %s1417_s9), 1 }
   0xf   : > { %s1209_s13 = sshll.u32 %s1639_s9, 9  ;;  %s1134_s17 = sshll.u32 %s1639_s9, 1 }
  0x10   : > { %s1466_s16 = scalar_lea.vmem %s1632_s1, %s1209_s13  ;;  %s179_s20 = scalar_lea.vmem %s1631_s0, %s1134_s17 }
  0x11   : > { %v1339_v0 = vld [vmem:[%s1466_s16 + $0x40] sm:$0xff]   ;;  %v1343_v5 = vld [vmem:[%s1466_s16 + $0x48] sm:$0xff]   ;;  %v1347_v11 = vld [vmem:[%s1466_s16 + $0x50] sm:$0xff]   ;;  %s1210_s21 = sshll.u32 %s1639_s9, 5 }
  0x12   : > { %v1340_v1 = vld [vmem:[%s1466_s16 + $0xc0] sm:$0xff]   ;;  %1283 = vmatprep.subr.msk.bf16.mxu0 %vm650_vm0, %v1339_v0  ;;  %v1344_v7 = vld [vmem:[%s1466_s16 + $0xc8] sm:$0xff]   ;;  %v1348_v13 = vld [vmem:[%s1466_s16 + $0xd0] sm:$0xff]   ;;  %s198_s24 = scalar_lea.vmem %s1633_s2, %s1210_s21 }
  0x13   : > { %v1341_v2 = vld [vmem:[%s1466_s16] sm:$0xff]   ;;  %1291 = vmatprep.subr.msk.bf16.mxu1 %vm650_vm0, %v1340_v1  ;;  %v1345_v8 = vld [vmem:[%s1466_s16 + $0x8] sm:$0xff]   ;;  %v1349_v14 = vld [vmem:[%s1466_s16 + $0x10] sm:$0xff]  }
  0x14   : > { %v1342_v3 = vld [vmem:[%s1466_s16 + $0x80] sm:$0xff]   ;;  %v655_v4 = vsel %vm650_vm0, %v1341_v2, 0  ;;  %v1346_v9 = vld [vmem:[%s1466_s16 + $0x88] sm:$0xff]   ;;  %v658_v10 = vsel %vm650_vm0, %v1345_v8, 0  ;;  %v1350_v15 = vld [vmem:[%s1466_s16 + $0x90] sm:$0xff]   ;;  %v661_v16 = vsel %vm650_vm0, %v1349_v14, 0 }
  0x15   : > { %1212 = vmatpush3.bf16.xpose.msra.mxu0 %v655_v4  ;;  %v703_v6 = vsel %vm650_vm0, %v1342_v3, 0  ;;  %v706_v12 = vsel %vm650_vm0, %v1346_v9, 0  ;;  %v1351_v17 = vld [vmem:[%s1466_s16 + $0x58] sm:$0xff]   ;;  %v709_v18 = vsel %vm650_vm0, %v1350_v15, 0  ;;  %v1355_v23 = vld [vmem:[%s1466_s16 + $0x60] sm:$0xff]   ;;  %v1359_v30 = vld [vmem:[%s1466_s16 + $0x68] sm:$0xff]  }
  0x16   : > { %1230 = vmatpush3.bf16.xpose.msra.mxu1 %v703_v6  ;;  %1284 = vmatprep.subr.msk.bf16.mxu0 %vm650_vm0, %v1343_v5  ;;  %v1352_v19 = vld [vmem:[%s1466_s16 + $0xd8] sm:$0xff]   ;;  %v1356_v25 = vld [vmem:[%s1466_s16 + $0xe0] sm:$0xff]   ;;  %v1360_v32 = vld [vmem:[%s1466_s16 + $0xe8] sm:$0xff]  }
  0x17   : > { %1292 = vmatprep.subr.msk.bf16.mxu1 %vm650_vm0, %v1344_v7  ;;  %v1353_v20 = vld [vmem:[%s1466_s16 + $0x18] sm:$0xff]   ;;  %v1357_v26 = vld [vmem:[%s1466_s16 + $0x20] sm:$0xff]   ;;  %v1361_v33 = vld [vmem:[%s1466_s16 + $0x28] sm:$0xff]  }
  0x18   : > { %v1354_v21 = vld [vmem:[%s1466_s16 + $0x98] sm:$0xff]   ;;  %v664_v22 = vsel %vm650_vm0, %v1353_v20, 0  ;;  %v1358_v27 = vld [vmem:[%s1466_s16 + $0xa0] sm:$0xff]   ;;  %v667_v29 = vsel %vm650_vm0, %v1357_v26, 0  ;;  %v1362_v34 = vld [vmem:[%s1466_s16 + $0xa8] sm:$0xff]   ;;  %v670_v35 = vsel %vm650_vm0, %v1361_v33, 0 }
  0x19   : > { %v712_v24 = vsel %vm650_vm0, %v1354_v21, 0  ;;  %v1510_v28 = vld [vmem:[%s179_s20] sm:$0x3]  ;;  %v715_v31 = vsel %vm650_vm0, %v1358_v27, 0  ;;  %v1363_v36 = vld [vmem:[%s1466_s16 + $0x70] sm:$0xff]   ;;  %v718_v37 = vsel %vm650_vm0, %v1362_v34, 0 }
  0x1a   : > { %1227 = vmatprep.mubr.msk.bf16.mxu0 %vm650_vm0, %v1510_v28  ;;  %1245 = vmatprep.mubr.msk.bf16.mxu1 %vm650_vm0, %v1510_v28  ;;  %v1364_v38 = vld [vmem:[%s1466_s16 + $0xf0] sm:$0xff]   ;;  %v1367_v42 = vld [vmem:[%s1466_s16 + $0x78] sm:$0xff]   ;;  %v1371_v48 = vld [vmem:[%s1466_s16 + $0x140] sm:$0xff]  }
  0x1b   : > { %v1365_v39 = vld [vmem:[%s1466_s16 + $0x30] sm:$0xff]   ;;  %v1368_v44 = vld [vmem:[%s1466_s16 + $0xf8] sm:$0xff]   ;;  %v1372_v50 = vld [vmem:[%s1466_s16 + $0x1c0] sm:$0xff]  }
  0x1c   : > { %v1366_v40 = vld [vmem:[%s1466_s16 + $0xb0] sm:$0xff]   ;;  %v673_v41 = vsel %vm650_vm0, %v1365_v39, 0  ;;  %v1369_v45 = vld [vmem:[%s1466_s16 + $0x38] sm:$0xff]   ;;  %v1373_v51 = vld [vmem:[%s1466_s16 + $0x100] sm:$0xff]  }
  0x1d   : > { %1214 = vmatpush3.bf16.xpose.msra.mxu0 %v658_v10  ;;  %v721_v43 = vsel %vm650_vm0, %v1366_v40, 0  ;;  %v1370_v46 = vld [vmem:[%s1466_s16 + $0xb8] sm:$0xff]   ;;  %v676_v47 = vsel %vm650_vm0, %v1369_v45, 0  ;;  %v1374_v52 = vld [vmem:[%s1466_s16 + $0x180] sm:$0xff]   ;;  %v751_v53 = vsel %vm650_vm0, %v1373_v51, 0  ;;  %v1375_v54 = vld [vmem:[%s1466_s16 + $0x148] sm:$0xff]  }
  0x1e   : > { %1232 = vmatpush3.bf16.xpose.msra.mxu1 %v706_v12  ;;  %1285 = vmatprep.subr.msk.bf16.mxu0 %vm650_vm0, %v1347_v11  ;;  %v724_v49 = vsel %vm650_vm0, %v1370_v46, 0  ;;  %v799_v55 = vsel %vm650_vm0, %v1374_v52, 0  ;;  %v1376_v56 = vld [vmem:[%s1466_s16 + $0x1c8] sm:$0xff]   ;;  %v1379_v60 = vld [vmem:[%s1466_s16 + $0x150] sm:$0xff]   ;;  %v1383_v2 = vld [vmem:[%s1466_s16 + $0x158] sm:$0xff]  }
  0x1f   : > { %1293 = vmatprep.subr.msk.bf16.mxu1 %vm650_vm0, %v1348_v13  ;;  %v1377_v57 = vld [vmem:[%s1466_s16 + $0x108] sm:$0xff]   ;;  %v1380_v62 = vld [vmem:[%s1466_s16 + $0x1d0] sm:$0xff]   ;;  %v1384_v4 = vld [vmem:[%s1466_s16 + $0x1d8] sm:$0xff]  }
  0x20   : > { %v1378_v58 = vld [vmem:[%s1466_s16 + $0x188] sm:$0xff]   ;;  %v754_v59 = vsel %vm650_vm0, %v1377_v57, 0  ;;  %v1381_v63 = vld [vmem:[%s1466_s16 + $0x110] sm:$0xff]   ;;  %v1385_v5 = vld [vmem:[%s1466_s16 + $0x118] sm:$0xff]  }
  0x21   : > { %v802_v61 = vsel %vm650_vm0, %v1378_v58, 0  ;;  %v1382_v0 = vld [vmem:[%s1466_s16 + $0x190] sm:$0xff]   ;;  %v757_v1 = vsel %vm650_vm0, %v1381_v63, 0  ;;  %v1386_v6 = vld [vmem:[%s1466_s16 + $0x198] sm:$0xff]   ;;  %v760_v7 = vsel %vm650_vm0, %v1385_v5, 0  ;;  %v1387_v8 = vld [vmem:[%s1466_s16 + $0x160] sm:$0xff]  }
  0x22   : > { %v805_v3 = vsel %vm650_vm0, %v1382_v0, 0  ;;  %v808_v9 = vsel %vm650_vm0, %v1386_v6, 0  ;;  %v1388_v10 = vld [vmem:[%s1466_s16 + $0x1e0] sm:$0xff]   ;;  %v1391_v14 = vld [vmem:[%s1466_s16 + $0x168] sm:$0xff]   ;;  %v1395_v20 = vld [vmem:[%s1466_s16 + $0x170] sm:$0xff]  }
  0x23   : > { %v1389_v11 = vld [vmem:[%s1466_s16 + $0x120] sm:$0xff]   ;;  %v1399_v26 = vld [vmem:[%s1466_s16 + $0x178] sm:$0xff]  }
  0x24   : > { %v1390_v12 = vld [vmem:[%s1466_s16 + $0x1a0] sm:$0xff]   ;;  %v763_v13 = vsel %vm650_vm0, %v1389_v11, 0 }
  0x25   : > { %1216 = vmatpush3.bf16.xpose.msra.mxu0 %v661_v16  ;;  %v811_v15 = vsel %vm650_vm0, %v1390_v12, 0  ;;  %v1392_v16 = vld [vmem:[%s1466_s16 + $0x1e8] sm:$0xff]  }
  0x26   : > { %1234 = vmatpush3.bf16.xpose.msra.mxu1 %v709_v18  ;;  %1286 = vmatprep.subr.msk.bf16.mxu0 %vm650_vm0, %v1351_v17  ;;  %v1393_v17 = vld [vmem:[%s1466_s16 + $0x128] sm:$0xff]  }
  0x27   : > { %1294 = vmatprep.subr.msk.bf16.mxu1 %vm650_vm0, %v1352_v19  ;;  %v1394_v18 = vld [vmem:[%s1466_s16 + $0x1a8] sm:$0xff]   ;;  %v766_v19 = vsel %vm650_vm0, %v1393_v17, 0 }
  0x28   : > { %v814_v21 = vsel %vm650_vm0, %v1394_v18, 0 }
  0x2d   : > { %1218 = vmatpush3.bf16.xpose.msra.mxu0 %v664_v22  ;;  %v1396_v22 = vld [vmem:[%s1466_s16 + $0x1f0] sm:$0xff]  }
  0x2e   : > { %1236 = vmatpush3.bf16.xpose.msra.mxu1 %v712_v24  ;;  %1287 = vmatprep.subr.msk.bf16.mxu0 %vm650_vm0, %v1355_v23  ;;  %v1397_v23 = vld [vmem:[%s1466_s16 + $0x130] sm:$0xff]  }
  0x2f   : > { %1295 = vmatprep.subr.msk.bf16.mxu1 %vm650_vm0, %v1356_v25  ;;  %v1398_v24 = vld [vmem:[%s1466_s16 + $0x1b0] sm:$0xff]   ;;  %v769_v25 = vsel %vm650_vm0, %v1397_v23, 0 }
  0x30   : > { %v817_v27 = vsel %vm650_vm0, %v1398_v24, 0 }
  0x35   : > { %1220 = vmatpush3.bf16.xpose.msra.mxu0 %v667_v29  ;;  %v1400_v29 = vld [vmem:[%s1466_s16 + $0x1f8] sm:$0xff]  }
  0x36   : > { %1238 = vmatpush3.bf16.xpose.msra.mxu1 %v715_v31  ;;  %1288 = vmatprep.subr.msk.bf16.mxu0 %vm650_vm0, %v1359_v30  ;;  %v1401_v30 = vld [vmem:[%s1466_s16 + $0x138] sm:$0xff]  }
  0x37   : > { %1296 = vmatprep.subr.msk.bf16.mxu1 %vm650_vm0, %v1360_v32  ;;  %v1402_v31 = vld [vmem:[%s1466_s16 + $0x1b8] sm:$0xff]   ;;  %v772_v32 = vsel %vm650_vm0, %v1401_v30, 0 }
  0x38   : > { %v820_v33 = vsel %vm650_vm0, %v1402_v31, 0 }
  0x3d   : > { %1222 = vmatpush3.bf16.xpose.msra.mxu0 %v670_v35 }
  0x3e   : > { %1240 = vmatpush3.bf16.xpose.msra.mxu1 %v718_v37  ;;  %1289 = vmatprep.subr.msk.bf16.mxu0 %vm650_vm0, %v1363_v36 }
  0x3f   : > { %1297 = vmatprep.subr.msk.bf16.mxu1 %vm650_vm0, %v1364_v38 }
  0x45   : > { %1224 = vmatpush3.bf16.xpose.msra.mxu0 %v673_v41 }
  0x46   : > { %1242 = vmatpush3.bf16.xpose.msra.mxu1 %v721_v43  ;;  %1290 = vmatprep.subr.msk.bf16.mxu0 %vm650_vm0, %v1367_v42 }
  0x47   : > { %1298 = vmatprep.subr.msk.bf16.mxu1 %vm650_vm0, %v1368_v44 }
  0x4d   : > { %1226 = vmatpush3.bf16.xpose.msra.mxu0 %v676_v47 }
  0x4e   : > { %1244 = vmatpush3.bf16.xpose.msra.mxu1 %v724_v49  ;;  %1299 = vmatprep.subr.msk.bf16.mxu0 %vm650_vm0, %v1371_v48 }
  0x4f   : > { %1307 = vmatprep.subr.msk.bf16.mxu1 %vm650_vm0, %v1372_v50 }
  0x54   : > { %1228 = vmatmul.mubr.msk.bf16.vlgmr.msra.gmra.mrb[0].mxu0 %vm650_vm0, %v1510_v28 }
  0x55   : > { %1246 = vmatmul.mubr.msk.bf16.vlgmr.msra.gmra.mrb[0].mxu1 %vm650_vm0, %v1510_v28  ;;  %1248 = vmatpush3.bf16.xpose.msra.mxu0 %v751_v53 }
  0x56   : > { %1266 = vmatpush3.bf16.xpose.msra.mxu1 %v799_v55  ;;  %1300 = vmatprep.subr.msk.bf16.mxu0 %vm650_vm0, %v1375_v54 }
  0x57   : > { %1308 = vmatprep.subr.msk.bf16.mxu1 %vm650_vm0, %v1376_v56  ;;  %1263 = vmatprep.mubr.msk.bf16.mxu0 %vm650_vm0, %v1510_v28 }
  0x58   : > { %1281 = vmatprep.mubr.msk.bf16.mxu1 %vm650_vm0, %v1510_v28 }
  0x5d   : > { %1250 = vmatpush3.bf16.xpose.msra.mxu0 %v754_v59 }
  0x5e   : > { %1268 = vmatpush3.bf16.xpose.msra.mxu1 %v802_v61  ;;  %1301 = vmatprep.subr.msk.bf16.mxu0 %vm650_vm0, %v1379_v60 }
  0x5f   : > { %1309 = vmatprep.subr.msk.bf16.mxu1 %vm650_vm0, %v1380_v62 }
  0x65   : > { %1252 = vmatpush3.bf16.xpose.msra.mxu0 %v757_v1 }
  0x66   : > { %1270 = vmatpush3.bf16.xpose.msra.mxu1 %v805_v3  ;;  %1302 = vmatprep.subr.msk.bf16.mxu0 %vm650_vm0, %v1383_v2 }
  0x67   : > { %1310 = vmatprep.subr.msk.bf16.mxu1 %vm650_vm0, %v1384_v4 }
  0x6d   : > { %1254 = vmatpush3.bf16.xpose.msra.mxu0 %v760_v7 }
  0x6e   : > { %1272 = vmatpush3.bf16.xpose.msra.mxu1 %v808_v9  ;;  %1303 = vmatprep.subr.msk.bf16.mxu0 %vm650_vm0, %v1387_v8 }
  0x6f   : > { %1311 = vmatprep.subr.msk.bf16.mxu1 %vm650_vm0, %v1388_v10 }
  0x75   : > { %1256 = vmatpush3.bf16.xpose.msra.mxu0 %v763_v13 }
  0x76   : > { %1274 = vmatpush3.bf16.xpose.msra.mxu1 %v811_v15  ;;  %1304 = vmatprep.subr.msk.bf16.mxu0 %vm650_vm0, %v1391_v14 }
  0x77   : > { %1312 = vmatprep.subr.msk.bf16.mxu1 %vm650_vm0, %v1392_v16 }
  0x7d   : > { %1258 = vmatpush3.bf16.xpose.msra.mxu0 %v766_v19 }
  0x7e   : > { %1276 = vmatpush3.bf16.xpose.msra.mxu1 %v814_v21  ;;  %1305 = vmatprep.subr.msk.bf16.mxu0 %vm650_vm0, %v1395_v20 }
  0x7f   : > { %1313 = vmatprep.subr.msk.bf16.mxu1 %vm650_vm0, %v1396_v22 }
  0x85   : > { %1260 = vmatpush3.bf16.xpose.msra.mxu0 %v769_v25 }
  0x86   : > { %1278 = vmatpush3.bf16.xpose.msra.mxu1 %v817_v27  ;;  %1306 = vmatprep.subr.msk.bf16.mxu0 %vm650_vm0, %v1399_v26 }
  0x87   : > { %1314 = vmatprep.subr.msk.bf16.mxu1 %vm650_vm0, %v1400_v29 }
  0x8d   : > { %1262 = vmatpush3.bf16.xpose.msra.mxu0 %v772_v32 }
  0x8e   : > { %1280 = vmatpush3.bf16.xpose.msra.mxu1 %v820_v33 }
  0x94   : > { %1264 = vmatmul.mubr.msk.bf16.vlgmr.msra.gmra.mrb[4].mxu0 %vm650_vm0, %v1510_v28 }
  0x95   : > { %1282 = vmatmul.mubr.msk.bf16.vlgmr.msra.gmra.mrb[4].mxu1 %vm650_vm0, %v1510_v28 }
 0x127   : > { %v880_v34 = vpop.f32.mrb[0].mxu0 }
 0x128   : > { %v921_v35 = vpop.f32.mrb[0].mxu1  ;;  %v882_v36 = vpop.f32.mrb[1].mxu0 }
 0x129   : > { %v1018_v37 = vcombine.low %v880_v34, %v882_v36  ;;  %v923_v38 = vpop.f32.mrb[1].mxu1  ;;  %v884_v39 = vpop.f32.mrb[2].mxu0 }
 0x12a   : > { %v1019_v40 = vcombine.low %v921_v35, %v923_v38  ;;  %v925_v41 = vpop.f32.mrb[2].mxu1  ;;  %v885_v42 = vpop.f32.mrb[3].mxu0 }
 0x12b   : > { %1026 = vst [vmem:[%s198_s24] sm:$0xff] %v1018_v37  ;;  %v926_v43 = vpop.f32.mrb[3].mxu1 }
 0x12c   : > { %1027 = vst [vmem:[%s198_s24 + $0x8] sm:$0xff] %v1019_v40 }
 0x167   : > { %v962_v44 = vpop.f32.mrb[4].mxu0 }
 0x168   : > { %v1003_v45 = vpop.f32.mrb[4].mxu1  ;;  %v964_v28 = vpop.f32.mrb[5].mxu0 }
 0x169   : > { %v1020_v46 = vcombine.low %v962_v44, %v964_v28  ;;  %v1005_v47 = vpop.f32.mrb[5].mxu1  ;;  %v966_v48 = vpop.f32.mrb[6].mxu0 }
 0x16a   : > { %v1021_v49 = vcombine.low %v1003_v45, %v1005_v47  ;;  %v1007_v50 = vpop.f32.mrb[6].mxu1  ;;  %v967_v51 = vpop.f32.mrb[7].mxu0 }
 0x16b   : > { %1028 = vst [vmem:[%s198_s24 + $0x10] sm:$0xff] %v1020_v46  ;;  %v1008_v52 = vpop.f32.mrb[7].mxu1 }
 0x16c   : > { %1029 = vst [vmem:[%s198_s24 + $0x18] sm:$0xff] %v1021_v49 }
 0x16d PF: > { %s12_s11 = sadd.s32 1, %s1425_s11   ;;  %s1634_s9 = smov %s1421_s10 }
 0x16e   : > { %p9_p5 = scmp.ge.s32.totalorder %s12_s11, 4   ;;  %s1635_s10 = smov %s1637_s12 }
 0x170   :  { %11 = sbr.rel (!%p9_p5) target bundleno = 2 (0x2), region = 61 }

// kernel: _lambda_.92
= control target key start
LH: loop header
LB: loop body
LE: loop exit
PB: predicated region body
PF: predicated region fallthrough
CT: control target
= control target key end

     0   :  { %vm23_vm0 = vcmask 261120   ;;  %s300_s1 = inlined_call_operand.vmem [shape: f32[32,128], index: 1, kind: input, shape index: {}]   ;;  %s301_s0 = inlined_call_operand.vmem [shape: f32[64,32], index: 0, kind: input, shape index: {}]   ;;  %s302_s2 = inlined_call_operand.vmem [shape: f32[64,128], index: 2, kind: output, shape index: {}]  }
   0x1   :  { %v19_v0 = vld [vmem:[%s300_s1] sm:$0xff]  ;;  %v20_v1 = vld [vmem:[%s300_s1 + $0x8] sm:$0xff]  ;;  %v21_v2 = vld [vmem:[%s300_s1 + $0x10] sm:$0xff] }
   0x2   :  { %v205_v3 = vpack.c.bf16 %v20_v1, %v19_v0  ;;  %v22_v4 = vld [vmem:[%s300_s1 + $0x18] sm:$0xff]  ;;  %v11_v5 = vld [vmem:[%s301_s0] sm:$0xff]  ;;  %v12_v8 = vld [vmem:[%s301_s0 + $0x8] sm:$0xff] }
   0x3   :  { %v15_v6 = vld [vmem:[%s301_s0 + $0x20] sm:$0xff]  ;;  %v209_v7 = vpack.c.bf16 %v22_v4, %v21_v2  ;;  %193 = vmatprep.mubr.msk.f32.mxu0 %vm23_vm0, %v11_v5  ;;  %v16_v9 = vld [vmem:[%s301_s0 + $0x28] sm:$0xff]  ;;  %v13_v10 = vld [vmem:[%s301_s0 + $0x10] sm:$0xff] }
   0x4   :  { %199 = vmatprep.mubr.msk.f32.mxu1 %vm23_vm0, %v15_v6  ;;  %206 = vmatprep.subr.bf16.mxu0 %v205_v3  ;;  %v17_v11 = vld [vmem:[%s301_s0 + $0x30] sm:$0xff]  ;;  %v14_v12 = vld [vmem:[%s301_s0 + $0x18] sm:$0xff] }
   0x5   :  { %213 = vmatprep.subr.bf16.mxu1 %v205_v3  ;;  %208 = vmatpush3.bf16.msra.mxu0 %v205_v3  ;;  %v18_v13 = vld [vmem:[%s301_s0 + $0x38] sm:$0xff] }
   0x6   :  { %215 = vmatpush3.bf16.msra.mxu1 %v205_v3  ;;  %210 = vmatprep.subr.bf16.mxu0 %v209_v7 }
   0x7   :  { %214 = vmatprep.subr.bf16.mxu1 %v209_v7 }
   0x9   :  { %212 = vmatpush3.bf16.msra.mxu0 %v209_v7 }
   0xa   :  { %216 = vmatpush3.bf16.msra.mxu1 %v209_v7 }
   0xc   :  { %194 = vmatmul.mubr.msk.f32.vlgmr.msra.gmra.mrb[0].mxu0 %vm23_vm0, %v12_v8 }
   0xd   :  { %200 = vmatmul.mubr.msk.f32.vlgmr.msra.gmra.mrb[0].mxu1 %vm23_vm0, %v16_v9  ;;  %196 = vmatprep.mubr.msk.f32.mxu0 %vm23_vm0, %v13_v10 }
   0xe   :  { %202 = vmatprep.mubr.msk.f32.mxu1 %vm23_vm0, %v17_v11 }
  0x10   :  { %197 = vmatmul.mubr.msk.f32.gmra.mrb[2].mxu0 %vm23_vm0, %v14_v12 }
  0x11   :  { %203 = vmatmul.mubr.msk.f32.gmra.mrb[2].mxu1 %vm23_vm0, %v18_v13 }
  0xdf   :  { %v195_v14 = vpop.f32.mrb[0].mxu0 }
  0xe0   :  { %v201_v15 = vpop.f32.mrb[0].mxu1  ;;  %154 = vst [vmem:[%s302_s2 + $0x8] sm:$0xff] %v195_v14  ;;  %v114_v16 = vpop.f32.mrb[1].mxu0 }
  0xe1   :  { %158 = vst [vmem:[%s302_s2 + $0x28] sm:$0xff] %v201_v15  ;;  %v134_v17 = vpop.f32.mrb[1].mxu1  ;;  %153 = vst [vmem:[%s302_s2] sm:$0xff] %v114_v16 }
  0xe2   :  { %157 = vst [vmem:[%s302_s2 + $0x20] sm:$0xff] %v134_v17 }
  0xe3   :  { %v198_v18 = vpop.f32.mrb[2].mxu0 }
  0xe4   :  { %v204_v19 = vpop.f32.mrb[2].mxu1  ;;  %156 = vst [vmem:[%s302_s2 + $0x18] sm:$0xff] %v198_v18  ;;  %v124_v20 = vpop.f32.mrb[3].mxu0 }
  0xe5   :  { %160 = vst [vmem:[%s302_s2 + $0x38] sm:$0xff] %v204_v19  ;;  %v144_v21 = vpop.f32.mrb[3].mxu1  ;;  %155 = vst [vmem:[%s302_s2 + $0x10] sm:$0xff] %v124_v20 }
  0xe6   :  { %159 = vst [vmem:[%s302_s2 + $0x30] sm:$0xff] %v144_v21 }

// kernel: _lambda_.93
= control target key start
LH: loop header
LB: loop body
LE: loop exit
PB: predicated region body
PF: predicated region fallthrough
CT: control target
= control target key end

     0   :  { %s644_s9 = smov 0   ;;  %s646_s10 = smov 0   ;;  %s763_s0 = inlined_call_operand.vmem [shape: f32[128,32], index: 0, kind: input, shape index: {}]   ;;  %s764_s1 = inlined_call_operand.vmem [shape: f32[2,32,128], index: 1, kind: input, shape index: {}]   ;;  %s765_s2 = inlined_call_operand.vmem [shape: f32[2,128,128], index: 2, kind: output, shape index: {}]  }
   0x1   :  { %s648_s11 = smov 0  }
   0x2 LB: > { %s24_s12 = sadd.s32 1, %s623_s10  ;;  %p492_p0 = scmp.ge.s32.totalorder %s627_s11, 1  ;;  %s627_s11 = sphi %s648_s11, %s12_s11   ;;  %s623_s10 = sphi %s646_s10, %s767_s10   ;;  %s619_s9 = sphi %s644_s9, %s766_s9  }
   0x3   : > { %p26_p1 = scmp.ge.s32.totalorder %s24_s12, 2  ;;  %p131_p2 = scmp.lt.s32.totalorder %s627_s11, 3 }
   0x5   : > { %s769_s12 = smov (%p26_p1, %s24_s12), 0  ;;  %p132_p3 = pnand %p492_p0, %p131_p2 }
   0x6   : > { %p159_p4 = scmp.lt.s32.totalorder (!%p132_p3), %s619_s9, 1  ;;  %v175_v0 = vld [vmem:[%s763_s0] sm:$0xff] (!%p132_p3)  ;;  %vm195_vm0 = vcmask (!%p132_p3), 261120   ;;  %v176_v8 = vld [vmem:[%s763_s0 + $0x8] sm:$0xff] (!%p132_p3)  ;;  %v177_v10 = vld [vmem:[%s763_s0 + $0x10] sm:$0xff] (!%p132_p3) }
   0x7   : > { %135 = sbr.rel (%p132_p3) target bundleno = 254 (0xfe), region = 28  ;;  %v183_v1 = vld [vmem:[%s763_s0 + $0x40] sm:$0xff] (!%p132_p3)  ;;  %545 = vmatprep.mubr.msk.f32.mxu0 (!%p132_p3), %vm195_vm0, %v175_v0  ;;  %v184_v9 = vld [vmem:[%s763_s0 + $0x48] sm:$0xff] (!%p132_p3)  ;;  %v185_v11 = vld [vmem:[%s763_s0 + $0x50] sm:$0xff] (!%p132_p3) }
   0x8   : > { %557 = vmatprep.mubr.msk.f32.mxu1 (!%p132_p3), %vm195_vm0, %v183_v1  ;;  %v178_v12 = vld [vmem:[%s763_s0 + $0x18] sm:$0xff] (!%p132_p3)  ;;  %v179_v14 = vld [vmem:[%s763_s0 + $0x20] sm:$0xff] (!%p132_p3)  ;;  %v180_v16 = vld [vmem:[%s763_s0 + $0x28] sm:$0xff] (!%p132_p3) }
   0x9   : > { %v186_v13 = vld [vmem:[%s763_s0 + $0x58] sm:$0xff] (!%p132_p3)  ;;  %v187_v15 = vld [vmem:[%s763_s0 + $0x60] sm:$0xff] (!%p132_p3)  ;;  %v188_v17 = vld [vmem:[%s763_s0 + $0x68] sm:$0xff] (!%p132_p3) }
   0xa   : > { %v181_v18 = vld [vmem:[%s763_s0 + $0x30] sm:$0xff] (!%p132_p3)  ;;  %v182_v20 = vld [vmem:[%s763_s0 + $0x38] sm:$0xff] (!%p132_p3) }
   0xb   : > { %v189_v19 = vld [vmem:[%s763_s0 + $0x70] sm:$0xff] (!%p132_p3)  ;;  %v190_v21 = vld [vmem:[%s763_s0 + $0x78] sm:$0xff] (!%p132_p3) }
   0xe   : > { %s771_s9 = smov (!%p159_p4, %s619_s9), 1 }
   0xf   : > { %s515_s17 = sshll.u32 %s771_s9, 5  ;;  %s516_s25 = sshll.u32 %s771_s9, 7 }
  0x10   : > { %s166_s20 = scalar_lea.vmem %s764_s1, %s515_s17  ;;  %s736_s28 = scalar_lea.vmem %s765_s2, %s516_s25 }
  0x11   : > { %v191_v2 = vld [vmem:[%s166_s20] sm:$0xff]  ;;  %v192_v3 = vld [vmem:[%s166_s20 + $0x8] sm:$0xff]  ;;  %v193_v4 = vld [vmem:[%s166_s20 + $0x10] sm:$0xff] }
  0x12   : > { %v569_v5 = vpack.c.bf16 %v192_v3, %v191_v2  ;;  %v194_v6 = vld [vmem:[%s166_s20 + $0x18] sm:$0xff] }
  0x13   : > { %v573_v7 = vpack.c.bf16 %v194_v6, %v193_v4 }
  0x14   : > { %570 = vmatprep.subr.bf16.mxu0 %v569_v5  ;;  %577 = vmatprep.subr.bf16.mxu1 %v569_v5 }
  0x15   : > { %572 = vmatpush3.bf16.msra.mxu0 %v569_v5  ;;  %579 = vmatpush3.bf16.msra.mxu1 %v569_v5 }
  0x16   : > { %574 = vmatprep.subr.bf16.mxu0 %v573_v7  ;;  %578 = vmatprep.subr.bf16.mxu1 %v573_v7 }
  0x19   : > { %576 = vmatpush3.bf16.msra.mxu0 %v573_v7  ;;  %580 = vmatpush3.bf16.msra.mxu1 %v573_v7 }
  0x1c   : > { %546 = vmatmul.mubr.msk.f32.vlgmr.msra.gmra.mrb[0].mxu0 %vm195_vm0, %v176_v8  ;;  %558 = vmatmul.mubr.msk.f32.vlgmr.msra.gmra.mrb[0].mxu1 %vm195_vm0, %v184_v9 }
  0x1d   : > { %548 = vmatprep.mubr.msk.f32.mxu0 %vm195_vm0, %v177_v10  ;;  %560 = vmatprep.mubr.msk.f32.mxu1 %vm195_vm0, %v185_v11 }
  0x20   : > { %549 = vmatmul.mubr.msk.f32.gmra.mrb[2].mxu0 %vm195_vm0, %v178_v12  ;;  %561 = vmatmul.mubr.msk.f32.gmra.mrb[2].mxu1 %vm195_vm0, %v186_v13 }
  0x21   : > { %551 = vmatprep.mubr.msk.f32.mxu0 %vm195_vm0, %v179_v14  ;;  %563 = vmatprep.mubr.msk.f32.mxu1 %vm195_vm0, %v187_v15 }
  0x24   : > { %552 = vmatmul.mubr.msk.f32.gmra.mrb[4].mxu0 %vm195_vm0, %v180_v16  ;;  %564 = vmatmul.mubr.msk.f32.gmra.mrb[4].mxu1 %vm195_vm0, %v188_v17 }
  0x25   : > { %554 = vmatprep.mubr.msk.f32.mxu0 %vm195_vm0, %v181_v18  ;;  %566 = vmatprep.mubr.msk.f32.mxu1 %vm195_vm0, %v189_v19 }
  0x28   : > { %555 = vmatmul.mubr.msk.f32.gmra.mrb[6].mxu0 %vm195_vm0, %v182_v20  ;;  %567 = vmatmul.mubr.msk.f32.gmra.mrb[6].mxu1 %vm195_vm0, %v190_v21 }
  0xef   : > { %v547_v22 = vpop.f32.mrb[0].mxu0  ;;  %v559_v23 = vpop.f32.mrb[0].mxu1 }
  0xf0   : > { %390 = vst [vmem:[%s736_s28 + $0x8] sm:$0xff] %v547_v22  ;;  %398 = vst [vmem:[%s736_s28 + $0x48] sm:$0xff] %v559_v23  ;;  %v310_v24 = vpop.f32.mrb[1].mxu0  ;;  %v350_v25 = vpop.f32.mrb[1].mxu1 }
  0xf1   : > { %389 = vst [vmem:[%s736_s28] sm:$0xff] %v310_v24  ;;  %397 = vst [vmem:[%s736_s28 + $0x40] sm:$0xff] %v350_v25 }
  0xf3   : > { %v550_v26 = vpop.f32.mrb[2].mxu0  ;;  %v562_v27 = vpop.f32.mrb[2].mxu1 }
  0xf4   : > { %392 = vst [vmem:[%s736_s28 + $0x18] sm:$0xff] %v550_v26  ;;  %400 = vst [vmem:[%s736_s28 + $0x58] sm:$0xff] %v562_v27  ;;  %v320_v28 = vpop.f32.mrb[3].mxu0  ;;  %v360_v29 = vpop.f32.mrb[3].mxu1 }
  0xf5   : > { %391 = vst [vmem:[%s736_s28 + $0x10] sm:$0xff] %v320_v28  ;;  %399 = vst [vmem:[%s736_s28 + $0x50] sm:$0xff] %v360_v29 }
  0xf7   : > { %v553_v30 = vpop.f32.mrb[4].mxu0  ;;  %v565_v31 = vpop.f32.mrb[4].mxu1 }
  0xf8   : > { %394 = vst [vmem:[%s736_s28 + $0x28] sm:$0xff] %v553_v30  ;;  %402 = vst [vmem:[%s736_s28 + $0x68] sm:$0xff] %v565_v31  ;;  %v330_v32 = vpop.f32.mrb[5].mxu0  ;;  %v370_v33 = vpop.f32.mrb[5].mxu1 }
  0xf9   : > { %393 = vst [vmem:[%s736_s28 + $0x20] sm:$0xff] %v330_v32  ;;  %401 = vst [vmem:[%s736_s28 + $0x60] sm:$0xff] %v370_v33 }
  0xfb   : > { %v556_v34 = vpop.f32.mrb[6].mxu0  ;;  %v568_v35 = vpop.f32.mrb[6].mxu1 }
  0xfc   : > { %396 = vst [vmem:[%s736_s28 + $0x38] sm:$0xff] %v556_v34  ;;  %404 = vst [vmem:[%s736_s28 + $0x78] sm:$0xff] %v568_v35  ;;  %v340_v36 = vpop.f32.mrb[7].mxu0  ;;  %v380_v37 = vpop.f32.mrb[7].mxu1 }
  0xfd   : > { %395 = vst [vmem:[%s736_s28 + $0x30] sm:$0xff] %v340_v36  ;;  %403 = vst [vmem:[%s736_s28 + $0x70] sm:$0xff] %v380_v37 }
  0xfe PF: > { %s12_s11 = sadd.s32 1, %s627_s11   ;;  %s766_s9 = smov %s623_s10 }
  0xff   : > { %p9_p5 = scmp.ge.s32.totalorder %s12_s11, 4   ;;  %s767_s10 = smov %s769_s12 }
 0x101   :  { %11 = sbr.rel (!%p9_p5) target bundleno = 2 (0x2), region = 58 }

// kernel: _lambda_.94
= control target key start
LH: loop header
LB: loop body
LE: loop exit
PB: predicated region body
PF: predicated region fallthrough
CT: control target
= control target key end

     0   :  { %v486_v0 = vmov 0.0|0.0   ;;  %vm487_vm0 = vmmov 0   ;;  %v488_v6 = vmov 0.0   ;;  %vm254_vm1 = vcmask 982016   ;;  %s794_s1 = inlined_call_operand.vmem [shape: f32[128,120], index: 1, kind: input, shape index: {}]   ;;  %s795_s0 = inlined_call_operand.vmem [shape: f32[214,128], index: 0, kind: input, shape index: {}]   ;;  %s796_s2 = inlined_call_operand.vmem [shape: f32[214,120], index: 2, kind: output, shape index: {}]  }
   0x1   :  { %443 = vmatprep.subr.bf16.mxu0 %v486_v0  ;;  %v38_v1 = vld [vmem:[%s794_s1] sm:$0xff]  ;;  %v39_v2 = vld [vmem:[%s794_s1 + $0x8] sm:$0xff]  ;;  %467 = vmatprep.subr.bf16.mxu1 %v486_v0  ;;  %v40_v3 = vld [vmem:[%s794_s1 + $0x10] sm:$0xff]  ;;  %vm281_vm2 = vcmask 979968  }
   0x2   :  { %v444_v4 = vpack.c.bf16 %v39_v2, %v38_v1  ;;  %v41_v5 = vld [vmem:[%s794_s1 + $0x18] sm:$0xff]  ;;  %362 = vmatprep.mubr.msk.f32.mxu0 %vm487_vm0, %v488_v6  ;;  %404 = vmatprep.mubr.msk.f32.mxu1 %vm487_vm0, %v488_v6  ;;  %v42_v8 = vld [vmem:[%s794_s1 + $0x20] sm:$0xff]  ;;  %v43_v9 = vld [vmem:[%s794_s1 + $0x28] sm:$0xff] }
   0x3   :  { %v447_v7 = vpack.c.bf16 %v41_v5, %v40_v3  ;;  %v450_v10 = vpack.c.bf16 %v43_v9, %v42_v8  ;;  %v44_v11 = vld [vmem:[%s794_s1 + $0x30] sm:$0xff]  ;;  %v45_v12 = vld [vmem:[%s794_s1 + $0x38] sm:$0xff]  ;;  %v46_v14 = vld [vmem:[%s794_s1 + $0x40] sm:$0xff] }
   0x4   :  { %445 = vmatpush3.bf16.msra.mxu0 %v444_v4  ;;  %475 = vmatpush3.bf16.msra.mxu1 %v444_v4  ;;  %v453_v13 = vpack.c.bf16 %v45_v12, %v44_v11  ;;  %v47_v15 = vld [vmem:[%s794_s1 + $0x48] sm:$0xff]  ;;  %v48_v17 = vld [vmem:[%s794_s1 + $0x50] sm:$0xff]  ;;  %v49_v18 = vld [vmem:[%s794_s1 + $0x58] sm:$0xff] }
   0x5   :  { %446 = vmatprep.subr.bf16.mxu0 %v486_v0  ;;  %468 = vmatprep.subr.bf16.mxu1 %v486_v0  ;;  %v456_v16 = vpack.c.bf16 %v47_v15, %v46_v14  ;;  %v459_v19 = vpack.c.bf16 %v49_v18, %v48_v17  ;;  %v50_v20 = vld [vmem:[%s794_s1 + $0x60] sm:$0xff]  ;;  %v51_v21 = vld [vmem:[%s794_s1 + $0x68] sm:$0xff]  ;;  %v52_v23 = vld [vmem:[%s794_s1 + $0x70] sm:$0xff] }
   0x6   :  { %v462_v22 = vpack.c.bf16 %v51_v21, %v50_v20  ;;  %v53_v24 = vld [vmem:[%s794_s1 + $0x78] sm:$0xff]  ;;  %v11_v26 = vld [vmem:[%s795_s0] sm:$0xff]  ;;  %v25_v27 = vld [vmem:[%s795_s0 + $0x70] sm:$0xff] }
   0x7   :  { %v465_v25 = vpack.c.bf16 %v53_v24, %v52_v23  ;;  %v12_v28 = vld [vmem:[%s795_s0 + $0x8] sm:$0xff]  ;;  %v26_v29 = vld [vmem:[%s795_s0 + $0x78] sm:$0xff]  ;;  %v13_v30 = vld [vmem:[%s795_s0 + $0x10] sm:$0xff] }
   0x8   :  { %448 = vmatpush3.bf16.msra.mxu0 %v447_v7  ;;  %476 = vmatpush3.bf16.msra.mxu1 %v447_v7  ;;  %v27_v31 = vld [vmem:[%s795_s0 + $0x80] sm:$0xff]  ;;  %v14_v32 = vld [vmem:[%s795_s0 + $0x18] sm:$0xff]  ;;  %v28_v33 = vld [vmem:[%s795_s0 + $0x88] sm:$0xff] }
   0x9   :  { %449 = vmatprep.subr.bf16.mxu0 %v486_v0  ;;  %469 = vmatprep.subr.bf16.mxu1 %v486_v0  ;;  %v15_v34 = vld [vmem:[%s795_s0 + $0x20] sm:$0xff]  ;;  %v29_v35 = vld [vmem:[%s795_s0 + $0x90] sm:$0xff]  ;;  %v16_v36 = vld [vmem:[%s795_s0 + $0x28] sm:$0xff] }
   0xa   :  { %v30_v37 = vld [vmem:[%s795_s0 + $0x98] sm:$0xff]  ;;  %v17_v38 = vld [vmem:[%s795_s0 + $0x30] sm:$0xff]  ;;  %v31_v39 = vld [vmem:[%s795_s0 + $0xa0] sm:$0xff] }
   0xb   :  { %v18_v40 = vld [vmem:[%s795_s0 + $0x38] sm:$0xff]  ;;  %v32_v41 = vld [vmem:[%s795_s0 + $0xa8] sm:$0xff]  ;;  %v19_v42 = vld [vmem:[%s795_s0 + $0x40] sm:$0xff] }
   0xc   :  { %451 = vmatpush3.bf16.msra.mxu0 %v450_v10  ;;  %477 = vmatpush3.bf16.msra.mxu1 %v450_v10  ;;  %v33_v43 = vld [vmem:[%s795_s0 + $0xb0] sm:$0xff]  ;;  %v20_v44 = vld [vmem:[%s795_s0 + $0x48] sm:$0xff]  ;;  %v34_v45 = vld [vmem:[%s795_s0 + $0xb8] sm:$0xff] }
   0xd   :  { %452 = vmatprep.subr.bf16.mxu0 %v486_v0  ;;  %470 = vmatprep.subr.bf16.mxu1 %v486_v0  ;;  %v21_v46 = vld [vmem:[%s795_s0 + $0x50] sm:$0xff]  ;;  %v35_v47 = vld [vmem:[%s795_s0 + $0xc0] sm:$0xff]  ;;  %v22_v48 = vld [vmem:[%s795_s0 + $0x58] sm:$0xff] }
   0xe   :  { %v36_v49 = vld [vmem:[%s795_s0 + $0xc8] sm:$0xff]  ;;  %v23_v50 = vld [vmem:[%s795_s0 + $0x60] sm:$0xff]  ;;  %v37_v51 = vld [vmem:[%s795_s0 + $0xd0] sm:$0x3f] }
   0xf   :  { %v24_v52 = vld [vmem:[%s795_s0 + $0x68] sm:$0xff] }
  0x10   :  { %454 = vmatpush3.bf16.msra.mxu0 %v453_v13  ;;  %478 = vmatpush3.bf16.msra.mxu1 %v453_v13 }
  0x11   :  { %455 = vmatprep.subr.bf16.mxu0 %v486_v0  ;;  %471 = vmatprep.subr.bf16.mxu1 %v486_v0 }
  0x14   :  { %457 = vmatpush3.bf16.msra.mxu0 %v456_v16  ;;  %479 = vmatpush3.bf16.msra.mxu1 %v456_v16 }
  0x15   :  { %458 = vmatprep.subr.bf16.mxu0 %v486_v0  ;;  %472 = vmatprep.subr.bf16.mxu1 %v486_v0 }
  0x18   :  { %460 = vmatpush3.bf16.msra.mxu0 %v459_v19  ;;  %480 = vmatpush3.bf16.msra.mxu1 %v459_v19 }
  0x19   :  { %461 = vmatprep.subr.bf16.mxu0 %v486_v0  ;;  %473 = vmatprep.subr.bf16.mxu1 %v486_v0 }
  0x1c   :  { %463 = vmatpush3.bf16.msra.mxu0 %v462_v22  ;;  %481 = vmatpush3.bf16.msra.mxu1 %v462_v22 }
  0x1d   :  { %464 = vmatprep.subr.bf16.mxu0 %v486_v0  ;;  %474 = vmatprep.subr.bf16.mxu1 %v486_v0 }
  0x20   :  { %466 = vmatpush3.bf16.msra.mxu0 %v465_v25  ;;  %482 = vmatpush3.bf16.msra.mxu1 %v465_v25 }
  0x23   :  { %363 = vmatmul.mubr.f32.vlgmr.msra.gmra.mrb[0].mxu0 %v11_v26  ;;  %405 = vmatmul.mubr.f32.vlgmr.msra.gmra.mrb[0].mxu1 %v25_v27 }
  0x24   :  { %365 = vmatprep.mubr.msk.f32.mxu0 %vm487_vm0, %v488_v6  ;;  %407 = vmatprep.mubr.msk.f32.mxu1 %vm487_vm0, %v488_v6 }
  0x27   :  { %366 = vmatmul.mubr.f32.gmra.mrb[2].mxu0 %v12_v28  ;;  %408 = vmatmul.mubr.f32.gmra.mrb[2].mxu1 %v26_v29 }
  0x28   :  { %368 = vmatprep.mubr.msk.f32.mxu0 %vm487_vm0, %v488_v6  ;;  %410 = vmatprep.mubr.msk.f32.mxu1 %vm487_vm0, %v488_v6 }
  0x2b   :  { %369 = vmatmul.mubr.f32.gmra.mrb[4].mxu0 %v13_v30  ;;  %411 = vmatmul.mubr.f32.gmra.mrb[4].mxu1 %v27_v31 }
  0x2c   :  { %371 = vmatprep.mubr.msk.f32.mxu0 %vm487_vm0, %v488_v6  ;;  %413 = vmatprep.mubr.msk.f32.mxu1 %vm487_vm0, %v488_v6 }
  0x2f   :  { %372 = vmatmul.mubr.f32.gmra.mrb[6].mxu0 %v14_v32  ;;  %414 = vmatmul.mubr.f32.gmra.mrb[6].mxu1 %v28_v33 }
  0x30   :  { %374 = vmatprep.mubr.msk.f32.mxu0 %vm487_vm0, %v488_v6  ;;  %416 = vmatprep.mubr.msk.f32.mxu1 %vm487_vm0, %v488_v6 }
  0x33   :  { %375 = vmatmul.mubr.f32.gmra.mrb[8].mxu0 %v15_v34  ;;  %417 = vmatmul.mubr.f32.gmra.mrb[8].mxu1 %v29_v35 }
  0x34   :  { %377 = vmatprep.mubr.msk.f32.mxu0 %vm487_vm0, %v488_v6  ;;  %419 = vmatprep.mubr.msk.f32.mxu1 %vm487_vm0, %v488_v6 }
  0x37   :  { %378 = vmatmul.mubr.f32.gmra.mrb[10].mxu0 %v16_v36  ;;  %420 = vmatmul.mubr.f32.gmra.mrb[10].mxu1 %v30_v37 }
  0x38   :  { %380 = vmatprep.mubr.msk.f32.mxu0 %vm487_vm0, %v488_v6  ;;  %422 = vmatprep.mubr.msk.f32.mxu1 %vm487_vm0, %v488_v6 }
  0x3b   :  { %381 = vmatmul.mubr.f32.gmra.mrb[12].mxu0 %v17_v38  ;;  %423 = vmatmul.mubr.f32.gmra.mrb[12].mxu1 %v31_v39 }
  0x3c   :  { %383 = vmatprep.mubr.msk.f32.mxu0 %vm487_vm0, %v488_v6  ;;  %425 = vmatprep.mubr.msk.f32.mxu1 %vm487_vm0, %v488_v6 }
  0x3f   :  { %384 = vmatmul.mubr.f32.gmra.mrb[14].mxu0 %v18_v40  ;;  %426 = vmatmul.mubr.f32.gmra.mrb[14].mxu1 %v32_v41 }
  0x40   :  { %386 = vmatprep.mubr.msk.f32.mxu0 %vm487_vm0, %v488_v6  ;;  %428 = vmatprep.mubr.msk.f32.mxu1 %vm487_vm0, %v488_v6 }
  0x43   :  { %387 = vmatmul.mubr.f32.gmra.mrb[16].mxu0 %v19_v42  ;;  %429 = vmatmul.mubr.f32.gmra.mrb[16].mxu1 %v33_v43 }
  0x44   :  { %389 = vmatprep.mubr.msk.f32.mxu0 %vm487_vm0, %v488_v6  ;;  %431 = vmatprep.mubr.msk.f32.mxu1 %vm487_vm0, %v488_v6 }
  0x47   :  { %390 = vmatmul.mubr.f32.gmra.mrb[18].mxu0 %v20_v44  ;;  %432 = vmatmul.mubr.f32.gmra.mrb[18].mxu1 %v34_v45 }
  0x48   :  { %392 = vmatprep.mubr.msk.f32.mxu0 %vm487_vm0, %v488_v6  ;;  %434 = vmatprep.mubr.msk.f32.mxu1 %vm487_vm0, %v488_v6 }
  0x4b   :  { %393 = vmatmul.mubr.f32.gmra.mrb[20].mxu0 %v21_v46  ;;  %435 = vmatmul.mubr.f32.gmra.mrb[20].mxu1 %v35_v47 }
  0x4c   :  { %395 = vmatprep.mubr.msk.f32.mxu0 %vm487_vm0, %v488_v6  ;;  %437 = vmatprep.mubr.msk.f32.mxu1 %vm487_vm0, %v488_v6 }
  0x4f   :  { %396 = vmatmul.mubr.f32.gmra.mrb[22].mxu0 %v22_v48  ;;  %438 = vmatmul.mubr.f32.gmra.mrb[22].mxu1 %v36_v49 }
  0x50   :  { %398 = vmatprep.mubr.msk.f32.mxu0 %vm487_vm0, %v488_v6  ;;  %440 = vmatprep.mubr.msk.f32.mxu1 %vm487_vm0, %v488_v6 }
  0x53   :  { %399 = vmatmul.mubr.f32.gmra.mrb[24].mxu0 %v23_v50  ;;  %441 = vmatmul.mubr.f32.gmra.mrb[24].mxu1 %v37_v51 }
  0x54   :  { %401 = vmatprep.mubr.msk.f32.mxu0 %vm487_vm0, %v488_v6 }
  0x57   :  { %402 = vmatmul.mubr.f32.gmra.mrb[26].mxu0 %v24_v52 }
  0xf6   :  { %v120_v53 = vpop.f32.mrb[0].mxu0  ;;  %v190_v54 = vpop.f32.mrb[0].mxu1 }
  0xf7   :  { %255 = vst.msk [vmem:[%s796_s2] sm:$0xff] %vm254_vm1, %v120_v53  ;;  %v364_v55 = vpop.f32.mrb[1].mxu0  ;;  %269 = vst.msk [vmem:[%s796_s2 + $0x70] sm:$0xff] %vm254_vm1, %v190_v54  ;;  %v406_v56 = vpop.f32.mrb[1].mxu1 }
  0xfa   :  { %v125_v57 = vpop.f32.mrb[2].mxu0  ;;  %v195_v58 = vpop.f32.mrb[2].mxu1 }
  0xfb   :  { %256 = vst.msk [vmem:[%s796_s2 + $0x8] sm:$0xff] %vm254_vm1, %v125_v57  ;;  %v367_v59 = vpop.f32.mrb[3].mxu0  ;;  %270 = vst.msk [vmem:[%s796_s2 + $0x78] sm:$0xff] %vm254_vm1, %v195_v58  ;;  %v409_v60 = vpop.f32.mrb[3].mxu1 }
  0xfe   :  { %v130_v61 = vpop.f32.mrb[4].mxu0  ;;  %v200_v62 = vpop.f32.mrb[4].mxu1 }
  0xff   :  { %257 = vst.msk [vmem:[%s796_s2 + $0x10] sm:$0xff] %vm254_vm1, %v130_v61  ;;  %v370_v63 = vpop.f32.mrb[5].mxu0  ;;  %271 = vst.msk [vmem:[%s796_s2 + $0x80] sm:$0xff] %vm254_vm1, %v200_v62  ;;  %v412_v0 = vpop.f32.mrb[5].mxu1 }
 0x102   :  { %v135_v1 = vpop.f32.mrb[6].mxu0  ;;  %v205_v2 = vpop.f32.mrb[6].mxu1 }
 0x103   :  { %258 = vst.msk [vmem:[%s796_s2 + $0x18] sm:$0xff] %vm254_vm1, %v135_v1  ;;  %v373_v3 = vpop.f32.mrb[7].mxu0  ;;  %272 = vst.msk [vmem:[%s796_s2 + $0x88] sm:$0xff] %vm254_vm1, %v205_v2  ;;  %v415_v4 = vpop.f32.mrb[7].mxu1 }
 0x106   :  { %v140_v5 = vpop.f32.mrb[8].mxu0  ;;  %v210_v6 = vpop.f32.mrb[8].mxu1 }
 0x107   :  { %259 = vst.msk [vmem:[%s796_s2 + $0x20] sm:$0xff] %vm254_vm1, %v140_v5  ;;  %v376_v7 = vpop.f32.mrb[9].mxu0  ;;  %273 = vst.msk [vmem:[%s796_s2 + $0x90] sm:$0xff] %vm254_vm1, %v210_v6  ;;  %v418_v8 = vpop.f32.mrb[9].mxu1 }
 0x10a   :  { %v145_v9 = vpop.f32.mrb[10].mxu0  ;;  %v215_v10 = vpop.f32.mrb[10].mxu1 }
 0x10b   :  { %260 = vst.msk [vmem:[%s796_s2 + $0x28] sm:$0xff] %vm254_vm1, %v145_v9  ;;  %v379_v11 = vpop.f32.mrb[11].mxu0  ;;  %274 = vst.msk [vmem:[%s796_s2 + $0x98] sm:$0xff] %vm254_vm1, %v215_v10  ;;  %v421_v12 = vpop.f32.mrb[11].mxu1 }
 0x10e   :  { %v150_v13 = vpop.f32.mrb[12].mxu0  ;;  %v220_v14 = vpop.f32.mrb[12].mxu1 }
 0x10f   :  { %261 = vst.msk [vmem:[%s796_s2 + $0x30] sm:$0xff] %vm254_vm1, %v150_v13  ;;  %v382_v15 = vpop.f32.mrb[13].mxu0  ;;  %275 = vst.msk [vmem:[%s796_s2 + $0xa0] sm:$0xff] %vm254_vm1, %v220_v14  ;;  %v424_v16 = vpop.f32.mrb[13].mxu1 }
 0x112   :  { %v155_v17 = vpop.f32.mrb[14].mxu0  ;;  %v225_v18 = vpop.f32.mrb[14].mxu1 }
 0x113   :  { %262 = vst.msk [vmem:[%s796_s2 + $0x38] sm:$0xff] %vm254_vm1, %v155_v17  ;;  %v385_v19 = vpop.f32.mrb[15].mxu0  ;;  %276 = vst.msk [vmem:[%s796_s2 + $0xa8] sm:$0xff] %vm254_vm1, %v225_v18  ;;  %v427_v20 = vpop.f32.mrb[15].mxu1 }
 0x116   :  { %v160_v21 = vpop.f32.mrb[16].mxu0  ;;  %v230_v22 = vpop.f32.mrb[16].mxu1 }
 0x117   :  { %263 = vst.msk [vmem:[%s796_s2 + $0x40] sm:$0xff] %vm254_vm1, %v160_v21  ;;  %v388_v23 = vpop.f32.mrb[17].mxu0  ;;  %277 = vst.msk [vmem:[%s796_s2 + $0xb0] sm:$0xff] %vm254_vm1, %v230_v22  ;;  %v430_v24 = vpop.f32.mrb[17].mxu1 }
 0x11a   :  { %v165_v25 = vpop.f32.mrb[18].mxu0  ;;  %v235_v26 = vpop.f32.mrb[18].mxu1 }
 0x11b   :  { %264 = vst.msk [vmem:[%s796_s2 + $0x48] sm:$0xff] %vm254_vm1, %v165_v25  ;;  %v391_v27 = vpop.f32.mrb[19].mxu0  ;;  %278 = vst.msk [vmem:[%s796_s2 + $0xb8] sm:$0xff] %vm254_vm1, %v235_v26  ;;  %v433_v28 = vpop.f32.mrb[19].mxu1 }
 0x11e   :  { %v170_v29 = vpop.f32.mrb[20].mxu0  ;;  %v240_v30 = vpop.f32.mrb[20].mxu1 }
 0x11f   :  { %265 = vst.msk [vmem:[%s796_s2 + $0x50] sm:$0xff] %vm254_vm1, %v170_v29  ;;  %v394_v31 = vpop.f32.mrb[21].mxu0  ;;  %279 = vst.msk [vmem:[%s796_s2 + $0xc0] sm:$0xff] %vm254_vm1, %v240_v30  ;;  %v436_v32 = vpop.f32.mrb[21].mxu1 }
 0x122   :  { %v175_v33 = vpop.f32.mrb[22].mxu0  ;;  %v245_v34 = vpop.f32.mrb[22].mxu1 }
 0x123   :  { %266 = vst.msk [vmem:[%s796_s2 + $0x58] sm:$0xff] %vm254_vm1, %v175_v33  ;;  %v397_v35 = vpop.f32.mrb[23].mxu0  ;;  %280 = vst.msk [vmem:[%s796_s2 + $0xc8] sm:$0xff] %vm254_vm1, %v245_v34  ;;  %v439_v36 = vpop.f32.mrb[23].mxu1 }
 0x126   :  { %v180_v37 = vpop.f32.mrb[24].mxu0  ;;  %v250_v38 = vpop.f32.mrb[24].mxu1 }
 0x127   :  { %267 = vst.msk [vmem:[%s796_s2 + $0x60] sm:$0xff] %vm254_vm1, %v180_v37  ;;  %v400_v39 = vpop.f32.mrb[25].mxu0  ;;  %v442_v40 = vpop.f32.mrb[25].mxu1 }
 0x128   :  { %282 = vst.msk [vmem:[%s796_s2 + $0xd0] sm:$0x3f] %vm281_vm2, %v250_v38 }
 0x12a   :  { %v185_v41 = vpop.f32.mrb[26].mxu0 }
 0x12b   :  { %268 = vst.msk [vmem:[%s796_s2 + $0x68] sm:$0xff] %vm254_vm1, %v185_v41  ;;  %v403_v42 = vpop.f32.mrb[27].mxu0 }

// kernel: _lambda_.95
= control target key start
LH: loop header
LB: loop body
LE: loop exit
PB: predicated region body
PF: predicated region fallthrough
CT: control target
= control target key end

     0   :  { %s700_s9 = smov 0   ;;  %s702_s10 = smov 0   ;;  %s858_s0 = inlined_call_operand.vmem [shape: f32[100,107], index: 0, kind: input, shape index: {}]   ;;  %s859_s1 = inlined_call_operand.vmem [shape: f32[2,107,120], index: 1, kind: input, shape index: {}]   ;;  %s860_s2 = inlined_call_operand.vmem [shape: f32[2,100,120], index: 2, kind: output, shape index: {}]  }
   0x1   :  { %s704_s11 = smov 0  }
   0x2 LB: > { %s24_s12 = sadd.s32 1, %s675_s10  ;;  %p478_p0 = scmp.ge.s32.totalorder %s679_s11, 1  ;;  %s679_s11 = sphi %s704_s11, %s12_s11   ;;  %s675_s10 = sphi %s702_s10, %s862_s10   ;;  %s671_s9 = sphi %s700_s9, %s861_s9  }
   0x3   : > { %p26_p1 = scmp.ge.s32.totalorder %s24_s12, 2  ;;  %p131_p2 = scmp.lt.s32.totalorder %s679_s11, 3 }
   0x5   : > { %s864_s12 = smov (%p26_p1, %s24_s12), 0  ;;  %p132_p3 = pnand %p478_p0, %p131_p2 }
   0x6   : > { %p159_p4 = scmp.lt.s32.totalorder (!%p132_p3), %s671_s9, 1  ;;  %v681_v0 = vmov (!%p132_p3), 0.0|0.0   ;;  %vm682_vm0 = vmmov (!%p132_p3), 0   ;;  %v683_v1 = vmov (!%p132_p3), 0.0   ;;  %vm242_vm1 = vcmask (!%p132_p3), 1042432   ;;  %v175_v23 = vld [vmem:[%s858_s0] sm:$0xff] (!%p132_p3) }
   0x7   : > { %135 = sbr.rel (%p132_p3) target bundleno = 285 (0x11d), region = 28  ;;  %591 = vmatprep.subr.bf16.mxu0 (!%p132_p3), %v681_v0  ;;  %613 = vmatprep.subr.bf16.mxu1 (!%p132_p3), %v681_v0  ;;  %vm684_vm2 = vmmov (!%p132_p3), 1   ;;  %vm202_vm4 = vcmask (!%p132_p3), 875520   ;;  %v182_v24 = vld [vmem:[%s858_s0 + $0x38] sm:$0xff] (!%p132_p3)  ;;  %v176_v25 = vld [vmem:[%s858_s0 + $0x8] sm:$0xff] (!%p132_p3)  ;;  %v183_v26 = vld [vmem:[%s858_s0 + $0x40] sm:$0xff] (!%p132_p3) }
   0x8   : > { %552 = vmatprep.mubr.msk.f32.mxu0 (!%p132_p3), %vm682_vm0, %v683_v1  ;;  %573 = vmatprep.mubr.msk.f32.mxu1 (!%p132_p3), %vm682_vm0, %v683_v1  ;;  %vm611_vm3 = vmpackc.low (!%p132_p3), %vm242_vm1, %vm684_vm2  ;;  %v177_v27 = vld [vmem:[%s858_s0 + $0x10] sm:$0xff] (!%p132_p3)  ;;  %v184_v28 = vld [vmem:[%s858_s0 + $0x48] sm:$0xff] (!%p132_p3)  ;;  %vm376_vm5 = vcmask (!%p132_p3), 982016   ;;  %vm389_vm6 = vcmask (!%p132_p3), 977920  }
   0x9   : > { %v178_v29 = vld [vmem:[%s858_s0 + $0x18] sm:$0xff] (!%p132_p3)  ;;  %v185_v30 = vld [vmem:[%s858_s0 + $0x50] sm:$0xff] (!%p132_p3)  ;;  %v179_v31 = vld [vmem:[%s858_s0 + $0x20] sm:$0xff] (!%p132_p3) }
   0xa   : > { %v186_v32 = vld [vmem:[%s858_s0 + $0x58] sm:$0xff] (!%p132_p3)  ;;  %v180_v33 = vld [vmem:[%s858_s0 + $0x28] sm:$0xff] (!%p132_p3)  ;;  %v187_v34 = vld [vmem:[%s858_s0 + $0x60] sm:$0xf] (!%p132_p3) }
   0xb   : > { %v181_v35 = vld [vmem:[%s858_s0 + $0x30] sm:$0xff] (!%p132_p3) }
   0xe   : > { %s866_s9 = smov (!%p159_p4, %s671_s9), 1 }
   0xf   : > { %s627_s13 = smul.u32 112, %s866_s9 }
  0x10   : > { %s628_s19 = smul.u32 104, %s866_s9 }
  0x11   : > { %s728_s16 = scalar_lea.vmem %s859_s1, %s627_s13 }
  0x12   : > { %v188_v2 = vld [vmem:[%s728_s16] sm:$0xff]  ;;  %v189_v3 = vld [vmem:[%s728_s16 + $0x8] sm:$0xff]  ;;  %v190_v4 = vld [vmem:[%s728_s16 + $0x10] sm:$0xff]  ;;  %s822_s22 = scalar_lea.vmem %s860_s2, %s628_s19 }
  0x13   : > { %v592_v5 = vpack.c.bf16 %v189_v3, %v188_v2  ;;  %v191_v6 = vld [vmem:[%s728_s16 + $0x18] sm:$0xff]  ;;  %v192_v8 = vld [vmem:[%s728_s16 + $0x20] sm:$0xff]  ;;  %v193_v9 = vld [vmem:[%s728_s16 + $0x28] sm:$0xff] }
  0x14   : > { %v595_v7 = vpack.c.bf16 %v191_v6, %v190_v4  ;;  %v598_v10 = vpack.c.bf16 %v193_v9, %v192_v8  ;;  %v194_v11 = vld [vmem:[%s728_s16 + $0x30] sm:$0xff]  ;;  %v195_v12 = vld [vmem:[%s728_s16 + $0x38] sm:$0xff]  ;;  %v196_v14 = vld [vmem:[%s728_s16 + $0x40] sm:$0xff] }
  0x15   : > { %593 = vmatpush3.bf16.msra.mxu0 %v592_v5  ;;  %620 = vmatpush3.bf16.msra.mxu1 %v592_v5  ;;  %v601_v13 = vpack.c.bf16 %v195_v12, %v194_v11  ;;  %v197_v15 = vld [vmem:[%s728_s16 + $0x48] sm:$0xff]  ;;  %v198_v17 = vld [vmem:[%s728_s16 + $0x50] sm:$0xff]  ;;  %v199_v18 = vld [vmem:[%s728_s16 + $0x58] sm:$0xff] }
  0x16   : > { %594 = vmatprep.subr.bf16.mxu0 %v681_v0  ;;  %614 = vmatprep.subr.bf16.mxu1 %v681_v0  ;;  %v604_v16 = vpack.c.bf16 %v197_v15, %v196_v14  ;;  %v607_v19 = vpack.c.bf16 %v199_v18, %v198_v17  ;;  %v200_v20 = vld [vmem:[%s728_s16 + $0x60] sm:$0xff]  ;;  %v201_v21 = vld [vmem:[%s728_s16 + $0x68] sm:$0x7] }
  0x17   : > { %v610_v22 = vpack.c.bf16 %v201_v21, %v200_v20 }
  0x19   : > { %596 = vmatpush3.bf16.msra.mxu0 %v595_v7  ;;  %621 = vmatpush3.bf16.msra.mxu1 %v595_v7 }
  0x1a   : > { %597 = vmatprep.subr.bf16.mxu0 %v681_v0  ;;  %615 = vmatprep.subr.bf16.mxu1 %v681_v0 }
  0x1d   : > { %599 = vmatpush3.bf16.msra.mxu0 %v598_v10  ;;  %622 = vmatpush3.bf16.msra.mxu1 %v598_v10 }
  0x1e   : > { %600 = vmatprep.subr.bf16.mxu0 %v681_v0  ;;  %616 = vmatprep.subr.bf16.mxu1 %v681_v0 }
  0x21   : > { %602 = vmatpush3.bf16.msra.mxu0 %v601_v13  ;;  %623 = vmatpush3.bf16.msra.mxu1 %v601_v13 }
  0x22   : > { %603 = vmatprep.subr.bf16.mxu0 %v681_v0  ;;  %617 = vmatprep.subr.bf16.mxu1 %v681_v0 }
  0x25   : > { %605 = vmatpush3.bf16.msra.mxu0 %v604_v16  ;;  %624 = vmatpush3.bf16.msra.mxu1 %v604_v16 }
  0x26   : > { %606 = vmatprep.subr.bf16.mxu0 %v681_v0  ;;  %618 = vmatprep.subr.bf16.mxu1 %v681_v0 }
  0x29   : > { %608 = vmatpush3.bf16.msra.mxu0 %v607_v19  ;;  %625 = vmatpush3.bf16.msra.mxu1 %v607_v19 }
  0x2a   : > { %609 = vmatprep.subr.bf16.mxu0 %v681_v0  ;;  %619 = vmatprep.subr.bf16.mxu1 %v681_v0 }
  0x2d   : > { %612 = vmatpush3.bf16.msk.msra.mxu0 %vm611_vm3, %v610_v22  ;;  %626 = vmatpush3.bf16.msk.msra.mxu1 %vm611_vm3, %v610_v22 }
  0x30   : > { %553 = vmatmul.mubr.msk.f32.vlgmr.msra.gmra.mrb[0].mxu0 %vm202_vm4, %v175_v23  ;;  %574 = vmatmul.mubr.msk.f32.vlgmr.msra.gmra.mrb[0].mxu1 %vm202_vm4, %v182_v24 }
  0x31   : > { %555 = vmatprep.mubr.msk.f32.mxu0 %vm682_vm0, %v683_v1  ;;  %576 = vmatprep.mubr.msk.f32.mxu1 %vm682_vm0, %v683_v1 }
  0x34   : > { %556 = vmatmul.mubr.msk.f32.gmra.mrb[2].mxu0 %vm202_vm4, %v176_v25  ;;  %577 = vmatmul.mubr.msk.f32.gmra.mrb[2].mxu1 %vm202_vm4, %v183_v26 }
  0x35   : > { %558 = vmatprep.mubr.msk.f32.mxu0 %vm682_vm0, %v683_v1  ;;  %579 = vmatprep.mubr.msk.f32.mxu1 %vm682_vm0, %v683_v1 }
  0x38   : > { %559 = vmatmul.mubr.msk.f32.gmra.mrb[4].mxu0 %vm202_vm4, %v177_v27  ;;  %580 = vmatmul.mubr.msk.f32.gmra.mrb[4].mxu1 %vm202_vm4, %v184_v28 }
  0x39   : > { %561 = vmatprep.mubr.msk.f32.mxu0 %vm682_vm0, %v683_v1  ;;  %582 = vmatprep.mubr.msk.f32.mxu1 %vm682_vm0, %v683_v1 }
  0x3c   : > { %562 = vmatmul.mubr.msk.f32.gmra.mrb[6].mxu0 %vm202_vm4, %v178_v29  ;;  %583 = vmatmul.mubr.msk.f32.gmra.mrb[6].mxu1 %vm202_vm4, %v185_v30 }
  0x3d   : > { %564 = vmatprep.mubr.msk.f32.mxu0 %vm682_vm0, %v683_v1  ;;  %585 = vmatprep.mubr.msk.f32.mxu1 %vm682_vm0, %v683_v1 }
  0x40   : > { %565 = vmatmul.mubr.msk.f32.gmra.mrb[8].mxu0 %vm202_vm4, %v179_v31  ;;  %586 = vmatmul.mubr.msk.f32.gmra.mrb[8].mxu1 %vm202_vm4, %v186_v32 }
  0x41   : > { %567 = vmatprep.mubr.msk.f32.mxu0 %vm682_vm0, %v683_v1  ;;  %588 = vmatprep.mubr.msk.f32.mxu1 %vm682_vm0, %v683_v1 }
  0x44   : > { %568 = vmatmul.mubr.msk.f32.gmra.mrb[10].mxu0 %vm202_vm4, %v180_v33  ;;  %589 = vmatmul.mubr.msk.f32.gmra.mrb[10].mxu1 %vm202_vm4, %v187_v34 }
  0x45   : > { %570 = vmatprep.mubr.msk.f32.mxu0 %vm682_vm0, %v683_v1 }
  0x48   : > { %571 = vmatmul.mubr.msk.f32.gmra.mrb[12].mxu0 %vm202_vm4, %v181_v35 }
 0x103   : > { %v312_v36 = vpop.f32.mrb[0].mxu0  ;;  %v347_v37 = vpop.f32.mrb[0].mxu1 }
 0x104   : > { %377 = vst.msk [vmem:[%s822_s22] sm:$0xff] %vm376_vm5, %v312_v36  ;;  %v554_v38 = vpop.f32.mrb[1].mxu0  ;;  %384 = vst.msk [vmem:[%s822_s22 + $0x38] sm:$0xff] %vm376_vm5, %v347_v37  ;;  %v575_v39 = vpop.f32.mrb[1].mxu1 }
 0x107   : > { %v317_v40 = vpop.f32.mrb[2].mxu0  ;;  %v352_v41 = vpop.f32.mrb[2].mxu1 }
 0x108   : > { %378 = vst.msk [vmem:[%s822_s22 + $0x8] sm:$0xff] %vm376_vm5, %v317_v40  ;;  %v557_v42 = vpop.f32.mrb[3].mxu0  ;;  %385 = vst.msk [vmem:[%s822_s22 + $0x40] sm:$0xff] %vm376_vm5, %v352_v41  ;;  %v578_v43 = vpop.f32.mrb[3].mxu1 }
 0x10b   : > { %v322_v44 = vpop.f32.mrb[4].mxu0  ;;  %v357_v45 = vpop.f32.mrb[4].mxu1 }
 0x10c   : > { %379 = vst.msk [vmem:[%s822_s22 + $0x10] sm:$0xff] %vm376_vm5, %v322_v44  ;;  %v560_v46 = vpop.f32.mrb[5].mxu0  ;;  %386 = vst.msk [vmem:[%s822_s22 + $0x48] sm:$0xff] %vm376_vm5, %v357_v45  ;;  %v581_v47 = vpop.f32.mrb[5].mxu1 }
 0x10f   : > { %v327_v48 = vpop.f32.mrb[6].mxu0  ;;  %v362_v49 = vpop.f32.mrb[6].mxu1 }
 0x110   : > { %380 = vst.msk [vmem:[%s822_s22 + $0x18] sm:$0xff] %vm376_vm5, %v327_v48  ;;  %v563_v50 = vpop.f32.mrb[7].mxu0  ;;  %387 = vst.msk [vmem:[%s822_s22 + $0x50] sm:$0xff] %vm376_vm5, %v362_v49  ;;  %v584_v51 = vpop.f32.mrb[7].mxu1 }
 0x113   : > { %v332_v52 = vpop.f32.mrb[8].mxu0  ;;  %v367_v53 = vpop.f32.mrb[8].mxu1 }
 0x114   : > { %381 = vst.msk [vmem:[%s822_s22 + $0x20] sm:$0xff] %vm376_vm5, %v332_v52  ;;  %v566_v54 = vpop.f32.mrb[9].mxu0  ;;  %388 = vst.msk [vmem:[%s822_s22 + $0x58] sm:$0xff] %vm376_vm5, %v367_v53  ;;  %v587_v55 = vpop.f32.mrb[9].mxu1 }
 0x117   : > { %v337_v56 = vpop.f32.mrb[10].mxu0  ;;  %v372_v57 = vpop.f32.mrb[10].mxu1 }
 0x118   : > { %382 = vst.msk [vmem:[%s822_s22 + $0x28] sm:$0xff] %vm376_vm5, %v337_v56  ;;  %v569_v58 = vpop.f32.mrb[11].mxu0  ;;  %v590_v59 = vpop.f32.mrb[11].mxu1 }
 0x119   : > { %390 = vst.msk [vmem:[%s822_s22 + $0x60] sm:$0xf] %vm389_vm6, %v372_v57 }
 0x11b   : > { %v342_v60 = vpop.f32.mrb[12].mxu0 }
 0x11c   : > { %383 = vst.msk [vmem:[%s822_s22 + $0x30] sm:$0xff] %vm376_vm5, %v342_v60  ;;  %v572_v61 = vpop.f32.mrb[13].mxu0 }
 0x11d PF: > { %s12_s11 = sadd.s32 1, %s679_s11   ;;  %s861_s9 = smov %s675_s10 }
 0x11e   : > { %p9_p5 = scmp.ge.s32.totalorder %s12_s11, 4   ;;  %s862_s10 = smov %s864_s12 }
 0x120   :  { %11 = sbr.rel (!%p9_p5) target bundleno = 2 (0x2), region = 58 }

</bundles_post_ra>
